<compile_context>
chip_gen: v6e
topology: v6e:2x2x1
jax: 0.10.0
libtpu: 0.0.40
codegen_flags: <defaults>
</compile_context>

<pallas_src>
import functools

import jax
import jax.numpy as jnp
from jax import lax
from jax.experimental import pallas as pl
from jax.experimental.pallas import tpu as pltpu

NUM_CLASSES = 14          # len(CLASSES) in the source repo (ChestX-ray14 labels)
GROWTH = 32
BN_SIZE = 4
INIT_FEATURES = 64
# TODO(synk): real DenseNet-121 uses block_config=(6, 12, 24, 16); reduced here to keep this
# synthetic script's compile time small — the layer structure / dataflow is identical.
BLOCK_CONFIG = (2, 2, 2, 2)
BN_EPS = 1e-5


def _round_up(x, m):
    return (x + m - 1) // m * m


# --- Per-generation tiling / VMEM constants (trace-time hardware query) ---------------------
def _detect_vmem_capacity_bytes():
    try:
        info = pltpu.get_tpu_info()
        cap = getattr(info, "vmem_capacity_bytes", None)
        if cap:
            return int(cap)
    except Exception:
        pass
    return 64 * 1024 * 1024          # conservative fallback (v7x-sized)


_VMEM_CAP = _detect_vmem_capacity_bytes()
if _VMEM_CAP >= 100 * 1024 * 1024:   # v5e / v6e: 128 MiB physical VMEM
    TILE_M, TILE_N, TILE_K = 512, 256, 1024
    VMEM_LIMIT_BYTES = 96 * 1024 * 1024
else:                                # v7x: 64 MiB physical VMEM — keep a tighter budget
    TILE_M, TILE_N, TILE_K = 256, 256, 512
    VMEM_LIMIT_BYTES = 48 * 1024 * 1024


# ---------------------------------------------------------------------------
# Pallas kernels
# ---------------------------------------------------------------------------

def _mm_kernel(*refs, prologue, prologue_relu, epilogue, epilogue_relu):
    """Tiled matmul with optional fused BN(+ReLU) prologue (per-K) and additive epilogue (per-N).

    Operand layout: a, b, [ksc, ksh], [nsh], out, acc.  The BN epilogue's multiplicative factor
    is already folded into `b` at trace time, so the epilogue is only `+shift (+ReLU)`.
    """
    a_ref, b_ref = refs[0], refs[1]
    pos = 2
    if prologue:
        ksc_ref, ksh_ref = refs[pos], refs[pos + 1]
        pos += 2
    if epilogue:
        nsh_ref = refs[pos]
        pos += 1
    o_ref, acc_ref = refs[pos], refs[pos + 1]

    @pl.when(pl.program_id(2) == 0)
    def _init():
        acc_ref[...] = jnp.zeros_like(acc_ref)

    a = a_ref[...]
    if prologue:                                   # folded BN on the conv *input* channels (f32 math)
        a = a.astype(jnp.float32) * ksc_ref[...] + ksh_ref[...]
        if prologue_relu:
            a = jnp.maximum(a, 0.0)
        a = a.astype(jnp.bfloat16)
    acc_ref[...] += jnp.dot(a, b_ref[...], preferred_element_type=jnp.float32)

    @pl.when(pl.program_id(2) == pl.num_programs(2) - 1)
    def _finalize():
        y = acc_ref[...]
        if epilogue:                               # BN scale folded into weights; only shift here
            y = y + nsh_ref[...]
            if epilogue_relu:
                y = jnp.maximum(y, 0.0)
        o_ref[...] = y.astype(o_ref.dtype)


def pallas_matmul_fused(a, b, k_scale=None, k_shift=None, prologue_relu=True,
                        n_scale=None, n_shift=None, epilogue_relu=True,
                        out_dtype=jnp.float32):
    """out = [relu](([relu](a*k_scale+k_shift)) @ (b*n_scale) + n_shift), tiled on the MXU."""
    M, K = a.shape
    K2, N = b.shape
    assert K == K2
    prologue = k_scale is not None
    epilogue = (n_scale is not None) or (n_shift is not None)

    # Fold the multiplicative BN factor into the weights (f32), then cast once to bf16.
    b = b.astype(jnp.float32)
    if n_scale is not None:
        b = b * n_scale[None, :]

    tm = min(TILE_M, _round_up(M, 8))
    tn = min(TILE_N, _round_up(N, 128))
    tk = min(TILE_K, _round_up(K, 128))
    Mp, Kp, Np = _round_up(M, tm), _round_up(K, tk), _round_up(N, tn)
    # v7x megacore: guarantee a >=2-tile *parallel* axis so both TensorCores get work
    # (harmless extra grid step on 1-TC chips; skipped for tiny layers).
    if Mp // tm == 1 and Np // tn == 1 and M >= 256:
        tm = _round_up(-(-M // 2), 8)
        Mp = _round_up(M, tm)

    if not prologue and a.dtype != jnp.bfloat16:
        a = a.astype(jnp.bfloat16)        # no f32 elementwise math on A -> ship bf16
    if (Mp, Kp) != (M, K):
        a = jnp.pad(a, ((0, Mp - M), (0, Kp - K)))
    b = b.astype(jnp.bfloat16)
    if (Kp, Np) != (K, N):
        b = jnp.pad(b, ((0, Kp - K), (0, Np - N)))

    operands = [a, b]
    in_specs = [pl.BlockSpec((tm, tk), lambda i, j, k: (i, k)),
                pl.BlockSpec((tk, tn), lambda i, j, k: (k, j))]
    if prologue:
        ksc = jnp.pad(k_scale, (0, Kp - K)).reshape(1, Kp)
        ksh = jnp.pad(k_shift, (0, Kp - K)).reshape(1, Kp)
        operands += [ksc, ksh]
        in_specs += [pl.BlockSpec((1, tk), lambda i, j, k: (0, k)),
                     pl.BlockSpec((1, tk), lambda i, j, k: (0, k))]
    if epilogue:
        nsh = n_shift if n_shift is not None else jnp.zeros((N,), jnp.float32)
        nsh = jnp.pad(nsh, (0, Np - N)).reshape(1, Np)
        operands += [nsh]
        in_specs += [pl.BlockSpec((1, tn), lambda i, j, k: (0, j))]

    grid = (Mp // tm, Np // tn, Kp // tk)
    kern = functools.partial(_mm_kernel, prologue=prologue, prologue_relu=prologue_relu,
                             epilogue=epilogue, epilogue_relu=epilogue_relu)
    out = pl.pallas_call(
        kern,
        out_shape=jax.ShapeDtypeStruct((Mp, Np), out_dtype),
        grid_spec=pltpu.PrefetchScalarGridSpec(
            num_scalar_prefetch=0,
            grid=grid,
            in_specs=in_specs,
            out_specs=pl.BlockSpec((tm, tn), lambda i, j, k: (i, j)),
            scratch_shapes=[pltpu.VMEM((tm, tn), jnp.float32)]),
        compiler_params=pltpu.CompilerParams(
            dimension_semantics=("parallel", "parallel", "arbitrary"),
            vmem_limit_bytes=VMEM_LIMIT_BYTES),
    )(*operands)
    if (Mp, Np) != (M, N):
        out = out[:M, :N]
    return out


def _conv3x3_kernel(x_ref, w_ref, o_ref, *, H, W, Wpal):
    """Direct 3x3 / stride-1 / pad-1 conv for one image: 9 tap matmuls accumulated in-kernel.

    x_ref: (1, H+2, Wpal, Cin) bf16, already zero-padded; Wpal is a multiple of 16 so all
    reshapes here are layout-trivial.  w_ref: (9, Cin, Cout) bf16 (tap-major).
    """
    Hp = H + 2
    cin = x_ref.shape[-1]
    cout = w_ref.shape[-1]
    xf = x_ref[0].reshape(Hp * Wpal, cin)              # aligned flatten (Wpal % 16 == 0)
    z = [None, None, None]
    for i in range(3):                                  # row taps
        a_i = xf[i * Wpal:i * Wpal + H * Wpal, :]       # 16-aligned sublane slice
        for j in range(3):                              # column taps
            y = jnp.dot(a_i, w_ref[3 * i + j], preferred_element_type=jnp.float32)
            z[j] = y if z[j] is None else z[j] + y
    out = None
    for j in range(3):                                  # shift-and-add the column taps
        zj = z[j].reshape(H, Wpal, cout)[:, j:j + W, :]
        out = zj if out is None else out + zj
    o_ref[...] = out.reshape(1, H, W, cout).astype(o_ref.dtype)


def conv3x3_direct(x, w, out_dtype=jnp.float32):
    """3x3 stride-1 pad-1 conv with NO HBM im2col; grid over the batch (megacore-parallel)."""
    N, H, W, C = x.shape
    kh, kw, cin, cout = w.shape
    assert (kh, kw) == (3, 3) and cin == C
    Wpal = _round_up(W + 2, 16)                          # bf16 sublane-pack aligned padded width
    Hp = H + 2
    xp = jnp.pad(x.astype(jnp.bfloat16),
                 ((0, 0), (1, 1), (1, Wpal - W - 1), (0, 0)))
    wr = w.reshape(9, cin, cout).astype(jnp.bfloat16)
    kern = functools.partial(_conv3x3_kernel, H=H, W=W, Wpal=Wpal)
    return pl.pallas_call(
        kern,
        out_shape=jax.ShapeDtypeStruct((N, H, W, cout), out_dtype),
        grid=(N,),
        in_specs=[pl.BlockSpec((1, Hp, Wpal, cin), lambda n: (n, 0, 0, 0)),
                  pl.BlockSpec((9, cin, cout), lambda n: (0, 0, 0))],
        out_specs=pl.BlockSpec((1, H, W, cout), lambda n: (n, 0, 0, 0)),
        compiler_params=pltpu.CompilerParams(
            dimension_semantics=("parallel",),
            vmem_limit_bytes=VMEM_LIMIT_BYTES),
    )(xp, wr)


def _head_kernel(feat_ref, sc_ref, sh_ref, w_ref, b_ref,
                 feat_out_ref, logits_ref, scores_ref):
    """Fused, per-batch-tile: norm5 (BN, no relu) -> features out -> GAP -> Linear -> sigmoid."""
    f = feat_ref[...] * sc_ref[...] + sh_ref[...]            # (bn, H*W, C)
    feat_out_ref[...] = f
    pooled = jnp.mean(f, axis=1)                             # (bn, C)  adaptive_avg_pool2d((1,1))
    logits = jnp.dot(pooled, w_ref[...], preferred_element_type=jnp.float32) + b_ref[...]
    logits_ref[...] = logits[:, None, :]
    # Numerically stable sigmoid (no exp overflow for strongly negative logits).
    z = jnp.where(logits >= 0.0, -logits, logits)            # always <= 0
    ez = jnp.exp(z)
    scores = jnp.where(logits >= 0.0, 1.0 / (1.0 + ez), ez / (1.0 + ez))
    scores_ref[...] = scores[:, None, :]


def pallas_head(feat_nhwc, norm5, w, b):
    N, H, W, C = feat_nhwc.shape
    HW = H * W
    feat3 = feat_nhwc.reshape(N, HW, C)
    scale, shift = _fold_bn(norm5)
    nc = w.shape[1]
    ncp = _round_up(nc, 128)                                 # lane-dense logits/scores stores
    w_p = jnp.pad(w, ((0, 0), (0, ncp - nc)))
    b_p = jnp.pad(b, (0, ncp - nc)).reshape(1, ncp)
    feat_n, logits3, scores3 = pl.pallas_call(
        _head_kernel,
        out_shape=(jax.ShapeDtypeStruct((N, HW, C), jnp.float32),
                   jax.ShapeDtypeStruct((N, 1, ncp), jnp.float32),
                   jax.ShapeDtypeStruct((N, 1, ncp), jnp.float32)),
        grid=(N,),                                           # batch-tiled (VMEM-safe for big N)
        in_specs=[pl.BlockSpec((1, HW, C), lambda n: (n, 0, 0)),
                  pl.BlockSpec((1, 1, C), lambda n: (0, 0, 0)),
                  pl.BlockSpec((1, 1, C), lambda n: (0, 0, 0)),
                  pl.BlockSpec((C, ncp), lambda n: (0, 0)),
                  pl.BlockSpec((1, ncp), lambda n: (0, 0))],
        out_specs=(pl.BlockSpec((1, HW, C), lambda n: (n, 0, 0)),
                   pl.BlockSpec((1, 1, ncp), lambda n: (n, 0, 0)),
                   pl.BlockSpec((1, 1, ncp), lambda n: (n, 0, 0))),
        compiler_params=pltpu.CompilerParams(
            dimension_semantics=("parallel",),
            vmem_limit_bytes=VMEM_LIMIT_BYTES),
    )(feat3, scale.reshape(1, 1, C), shift.reshape(1, 1, C), w_p, b_p)
    logits = logits3[:, 0, :nc]
    scores = scores3[:, 0, :nc]
    return feat_n.reshape(N, H, W, C), logits, scores


# ---------------------------------------------------------------------------
# Backbone building blocks (pool / pad / concat glue in plain JAX, conv math in Pallas)
# ---------------------------------------------------------------------------

def _fold_bn(bn):
    # TODO(synk): BatchNorm folded in eval-mode (running-stats) form; train-mode batch
    # statistics are not reproduced.
    gamma, beta, mean, var = bn
    scale = gamma / jnp.sqrt(var + BN_EPS)
    shift = beta - mean * scale
    return scale, shift


def conv2d_fused(x, w, stride, padding, pre_bn=None, pre_relu=True,
                 post_bn=None, post_relu=True, out_dtype=jnp.float32):
    """Matmul-based conv.  1x1 convs need no im2col; the 7x7 stem uses a bf16 im2col.

    pre_bn  : BN(+ReLU) on x BEFORE the conv, fused as the matmul's per-K prologue (padding=0 only).
    post_bn : BN(+ReLU) on the conv output; scale folded into weights, shift fused as epilogue.
    """
    N, H, W, C = x.shape
    kh, kw, cin, cout = w.shape
    assert cin == C
    if pre_bn is not None:
        assert padding == 0, "prologue BN fusion is only valid for padding=0 convs"

    if kh == 1 and kw == 1 and stride == 1 and padding == 0:
        Ho, Wo = H, W
        a = x.reshape(N * H * W, C)
    else:
        # TODO(synk): im2col kept only for the one-off 7x7 stem conv (Cin=3); it is now bf16.
        xp = jnp.pad(x, ((0, 0), (padding, padding), (padding, padding), (0, 0)))
        Ho = (H + 2 * padding - kh) // stride + 1
        Wo = (W + 2 * padding - kw) // stride + 1
        cols = []
        for i in range(kh):
            for j in range(kw):
                c_ = xp[:, i:i + (Ho - 1) * stride + 1:stride,
                        j:j + (Wo - 1) * stride + 1:stride, :]
                if pre_bn is None:
                    c_ = c_.astype(jnp.bfloat16)
                cols.append(c_)
        a = jnp.concatenate(cols, axis=-1).reshape(N * Ho * Wo, kh * kw * cin)

    bmat = w.reshape(kh * kw * cin, cout)                    # (ki,kj,cin) order matches patches

    k_scale = k_shift = n_scale = n_shift = None
    if pre_bn is not None:
        s, t = _fold_bn(pre_bn)
        k_scale = jnp.tile(s, kh * kw)
        k_shift = jnp.tile(t, kh * kw)
    if post_bn is not None:
        n_scale, n_shift = _fold_bn(post_bn)

    out = pallas_matmul_fused(a, bmat,
                              k_scale=k_scale, k_shift=k_shift, prologue_relu=pre_relu,
                              n_scale=n_scale, n_shift=n_shift, epilogue_relu=post_relu,
                              out_dtype=out_dtype)
    return out.reshape(N, Ho, Wo, cout)


def max_pool_3x3_s2(x):
    # TODO(synk): pooling kept as plain-JAX glue (XLA reduce_window); negligible vs convs.
    return lax.reduce_window(x, -jnp.inf, lax.max,
                             window_dimensions=(1, 3, 3, 1),
                             window_strides=(1, 2, 2, 1),
                             padding=[(0, 0), (1, 1), (1, 1), (0, 0)])


def avg_pool_2x2(x):
    N, H, W, C = x.shape
    return x.reshape(N, H // 2, 2, W // 2, 2, C).mean(axis=(2, 4))


def dense_layer(x, p):
    # norm1 -> relu -> conv1 (1x1) with norm2+relu fused as the matmul's epilogue.
    # conv1 output is bf16: it is only consumed by the 3x3 conv's bf16 MXU (flagged numerics).
    y = conv2d_fused(x, p['conv1'], stride=1, padding=0,
                     pre_bn=p['norm1'], pre_relu=True,
                     post_bn=p['norm2'], post_relu=True,
                     out_dtype=jnp.bfloat16)
    # conv2 (3x3, pad=1): direct in-kernel tap accumulation, no HBM im2col; f32 out (feeds concat).
    y = conv3x3_direct(y, p['conv2'], out_dtype=jnp.float32)
    return jnp.concatenate([x, y], axis=-1)                  # channel concat (DenseNet), f32


def transition(x, p):
    # norm -> relu -> conv (1x1) with the BN+ReLU fused as the matmul's prologue.
    y = conv2d_fused(x, p['conv'], stride=1, padding=0,
                     pre_bn=p['norm'], pre_relu=True)
    return avg_pool_2x2(y)


def densenet_features_pre_norm5(x, params):
    # Stem: 7x7/s2 conv with norm0+relu fused as the epilogue, then 3x3/s2 maxpool.
    y = conv2d_fused(x, params['conv0'], stride=2, padding=3,
                     post_bn=params['norm0'], post_relu=True)
    y = max_pool_3x3_s2(y)
    for bi, n_layers in enumerate(BLOCK_CONFIG):
        for li in range(n_layers):
            y = dense_layer(y, params['blocks'][bi][li])
        if bi != len(BLOCK_CONFIG) - 1:
            y = transition(y, params['transitions'][bi])
    # norm5 (BN, NO relu — matches torchvision densenet.features) is fused into the head kernel.
    return y


def heatmap_forward(x_nchw, params):
    x = jnp.transpose(x_nchw, (0, 2, 3, 1))                  # NCHW -> NHWC for the kernels
    pre = densenet_features_pre_norm5(x, params)             # (N, Hf, Wf, Cf), pre-norm5, f32
    feat, logits, scores = pallas_head(pre, params['norm5'],
                                       params['classifier_w'], params['classifier_b'])
    features_nchw = jnp.transpose(feat, (0, 3, 1, 2))        # return NCHW like PyTorch
    return logits, scores, features_nchw


# ---------------------------------------------------------------------------
# Deterministic synthetic parameter initialization
# ---------------------------------------------------------------------------

def _init_conv(key, kh, kw, cin, cout):
    fan_in = kh * kw * cin
    return jax.random.normal(key, (kh, kw, cin, cout), jnp.float32) / jnp.sqrt(float(fan_in))


def _init_bn(key, c):
    k1, k2, k3 = jax.random.split(key, 3)
    gamma = 1.0 + 0.1 * jax.random.normal(k1, (c,), jnp.float32)
    beta = 0.1 * jax.random.normal(k2, (c,), jnp.float32)
    mean = 0.1 * jax.random.normal(k3, (c,), jnp.float32)
    var = jnp.ones((c,), jnp.float32)
    return (gamma, beta, mean, var)


def init_params(key):
    keys = iter(jax.random.split(key, 1024))
    params = {
        'conv0': _init_conv(next(keys), 7, 7, 3, INIT_FEATURES),
        'norm0': _init_bn(next(keys), INIT_FEATURES),
    }
    ch = INIT_FEATURES
    blocks, transitions = [], []
    for bi, n_layers in enumerate(BLOCK_CONFIG):
        layers = []
        for _ in range(n_layers):
            layers.append({
                'norm1': _init_bn(next(keys), ch),
                'conv1': _init_conv(next(keys), 1, 1, ch, BN_SIZE * GROWTH),
                'norm2': _init_bn(next(keys), BN_SIZE * GROWTH),
                'conv2': _init_conv(next(keys), 3, 3, BN_SIZE * GROWTH, GROWTH),
            })
            ch += GROWTH
        blocks.append(layers)
        if bi != len(BLOCK_CONFIG) - 1:
            transitions.append({
                'norm': _init_bn(next(keys), ch),
                'conv': _init_conv(next(keys), 1, 1, ch, ch // 2),
            })
            ch //= 2
    params['blocks'] = blocks
    params['transitions'] = transitions
    params['norm5'] = _init_bn(next(keys), ch)
    kw_, kb_ = jax.random.split(next(keys))
    params['classifier_w'] = 0.05 * jax.random.normal(kw_, (ch, NUM_CLASSES), jnp.float32)
    params['classifier_b'] = 0.05 * jax.random.normal(kb_, (NUM_CLASSES,), jnp.float32)
    return params


# ---------------------------------------------------------------------------

if __name__ == "__main__":
    root = jax.random.PRNGKey(0)
    k_x, k_p = jax.random.split(root)
    x = jax.random.normal(k_x, (2, 3, 64, 64), jnp.float32)   # NCHW, like PyTorch input
    params = init_params(k_p)

    fwd = jax.jit(heatmap_forward)
    y_pred, y_scores, features = fwd(x, params)
    jax.block_until_ready((y_pred, y_scores, features))

    assert y_pred.shape == (2, NUM_CLASSES)
    assert y_scores.shape == (2, NUM_CLASSES)
    assert features.shape[0] == 2 and features.shape[1] == 128   # NCHW features
    assert bool(jnp.all(jnp.isfinite(y_pred)))
    assert bool(jnp.all(jnp.isfinite(features)))
    assert bool(jnp.all((y_scores >= 0.0) & (y_scores <= 1.0)))

    print("KERNEL_OK")
</pallas_src>

<mosaic_0001>
module attributes {stable_mosaic.version = 11 : i64} {
  func.func @_mm_kernel(%arg0: i32, %arg1: i32, %arg2: i32, %arg3: memref<256x256xbf16, #tpu.memory_space<vmem>>, %arg4: memref<256x128xbf16, #tpu.memory_space<vmem>>, %arg5: memref<1x128xf32, #tpu.memory_space<vmem>>, %arg6: memref<256x128xf32, #tpu.memory_space<vmem>>, %arg7: memref<256x128xf32, #tpu.memory_space<vmem>>) attributes {dimension_semantics = [#tpu.dimension_semantics<parallel>, #tpu.dimension_semantics<parallel>, #tpu.dimension_semantics<arbitrary>], iteration_bounds = array<i64: 8, 1, 1>, scalar_prefetch = 0 : i64, scratch_operands = 1 : i64, tpu.core_type = #tpu.core_type<tc>, window_params = [{transform_indices = @transform_0, window_bounds = array<i64: 256, 256>}, {transform_indices = @transform_1, window_bounds = array<i64: 256, 128>}, {transform_indices = @transform_2, window_bounds = array<i64: 1, 128>}, {transform_indices = @transform_3, window_bounds = array<i64: 256, 128>}]} {
    %c0_i32 = arith.constant 0 : i32
    %0 = arith.cmpi eq, %arg2, %c0_i32 : i32
    %1 = arith.extui %0 : i1 to i32
    %c0_i32_0 = arith.constant 0 : i32
    %2 = arith.cmpi ne, %1, %c0_i32_0 : i32
    scf.if %2 {
      %cst_10 = arith.constant 0.000000e+00 : f32
      %12 = vector.broadcast %cst_10 : f32 to vector<256x128xf32>
      %c0_11 = arith.constant 0 : index
      %c0_12 = arith.constant 0 : index
      %13 = vector.load %arg7[%c0_11, %c0_12] : memref<256x128xf32, #tpu.memory_space<vmem>>, vector<256x128xf32>
      tpu.vector_store %arg7[%c0_11, %c0_12], %12 {strides = array<i32>} : memref<256x128xf32, #tpu.memory_space<vmem>>, vector<256x128xf32>,
    } else {
    }
    %c0 = arith.constant 0 : index
    %c0_1 = arith.constant 0 : index
    %3 = vector.load %arg3[%c0, %c0_1] : memref<256x256xbf16, #tpu.memory_space<vmem>>, vector<256x256xbf16>
    %c0_2 = arith.constant 0 : index
    %c0_3 = arith.constant 0 : index
    %4 = vector.load %arg7[%c0_2, %c0_3] : memref<256x128xf32, #tpu.memory_space<vmem>>, vector<256x128xf32>
    %c0_4 = arith.constant 0 : index
    %c0_5 = arith.constant 0 : index
    %5 = vector.load %arg4[%c0_4, %c0_5] : memref<256x128xbf16, #tpu.memory_space<vmem>>, vector<256x128xbf16>
    %cst = arith.constant dense<0.000000e+00> : vector<256x128xf32>
    %6 = tpu.matmul %3, %5, %cst {dimension_numbers = #tpu.dot_dimension_numbers<[1], [0], [0], [1], [0, 0, 1, 1], [], []>} : vector<256x256xbf16>, vector<256x128xbf16>, vector<256x128xf32> -> vector<256x128xf32>
    %7 = arith.addf %4, %6 : vector<256x128xf32>
    %c0_6 = arith.constant 0 : index
    %c0_7 = arith.constant 0 : index
    %8 = vector.load %arg7[%c0_6, %c0_7] : memref<256x128xf32, #tpu.memory_space<vmem>>, vector<256x128xf32>
    tpu.vector_store %arg7[%c0_6, %c0_7], %7 {strides = array<i32>} : memref<256x128xf32, #tpu.memory_space<vmem>>, vector<256x128xf32>,
    %c0_i32_8 = arith.constant 0 : i32
    %9 = arith.cmpi eq, %arg2, %c0_i32_8 : i32
    %10 = arith.extui %9 : i1 to i32
    %c0_i32_9 = arith.constant 0 : i32
    %11 = arith.cmpi ne, %10, %c0_i32_9 : i32
    scf.if %11 {
      %c0_10 = arith.constant 0 : index
      %c0_11 = arith.constant 0 : index
      %12 = vector.load %arg7[%c0_10, %c0_11] : memref<256x128xf32, #tpu.memory_space<vmem>>, vector<256x128xf32>
      %c0_12 = arith.constant 0 : index
      %c0_13 = arith.constant 0 : index
      %13 = vector.load %arg5[%c0_12, %c0_13] : memref<1x128xf32, #tpu.memory_space<vmem>>, vector<1x128xf32>
      %14 = vector.broadcast %13 : vector<1x128xf32> to vector<256x128xf32>
      %15 = arith.addf %12, %14 : vector<256x128xf32>
      %cst_14 = arith.constant 0.000000e+00 : f32
      %16 = vector.broadcast %cst_14 : f32 to vector<256x128xf32>
      %17 = arith.maximumf %15, %16 : vector<256x128xf32>
      %c0_15 = arith.constant 0 : index
      %c0_16 = arith.constant 0 : index
      %18 = vector.load %arg6[%c0_15, %c0_16] : memref<256x128xf32, #tpu.memory_space<vmem>>, vector<256x128xf32>
      tpu.vector_store %arg6[%c0_15, %c0_16], %17 {strides = array<i32>} : memref<256x128xf32, #tpu.memory_space<vmem>>, vector<256x128xf32>,
    } else {
    }
    return
  }
  func.func @transform_0(%arg0: i32, %arg1: i32, %arg2: i32) -> (i32, i32) {
    %c0_i32 = arith.constant 0 : i32
    return %arg0, %arg2 : i32, i32
  }
  func.func @transform_1(%arg0: i32, %arg1: i32, %arg2: i32) -> (i32, i32) {
    %c0_i32 = arith.constant 0 : i32
    return %arg2, %arg1 : i32, i32
  }
  func.func @transform_2(%arg0: i32, %arg1: i32, %arg2: i32) -> (i32, i32) {
    %c0_i32 = arith.constant 0 : i32
    %c0_i32_0 = arith.constant 0 : i32
    return %c0_i32, %arg1 : i32, i32
  }
  func.func @transform_3(%arg0: i32, %arg1: i32, %arg2: i32) -> (i32, i32) {
    %c0_i32 = arith.constant 0 : i32
    return %arg0, %arg1 : i32, i32
  }
}

module attributes {stable_mosaic.version = 11 : i64} {
  func.func @_mm_kernel(%arg0: i32, %arg1: i32, %arg2: i32, %arg3: memref<256x128xf32, #tpu.memory_space<vmem>>, %arg4: memref<128x128xbf16, #tpu.memory_space<vmem>>, %arg5: memref<1x128xf32, #tpu.memory_space<vmem>>, %arg6: memref<1x128xf32, #tpu.memory_space<vmem>>, %arg7: memref<1x128xf32, #tpu.memory_space<vmem>>, %arg8: memref<256x128xbf16, #tpu.memory_space<vmem>>, %arg9: memref<256x128xf32, #tpu.memory_space<vmem>>) attributes {dimension_semantics = [#tpu.dimension_semantics<parallel>, #tpu.dimension_semantics<parallel>, #tpu.dimension_semantics<arbitrary>], iteration_bounds = array<i64: 2, 1, 1>, scalar_prefetch = 0 : i64, scratch_operands = 1 : i64, tpu.core_type = #tpu.core_type<tc>, window_params = [{transform_indices = @transform_0, window_bounds = array<i64: 256, 128>}, {transform_indices = @transform_1, window_bounds = array<i64: 128, 128>}, {transform_indices = @transform_2, window_bounds = array<i64: 1, 128>}, {transform_indices = @transform_3, window_bounds = array<i64: 1, 128>}, {transform_indices = @transform_4, window_bounds = array<i64: 1, 128>}, {transform_indices = @transform_5, window_bounds = array<i64: 256, 128>}]} {
    %c0_i32 = arith.constant 0 : i32
    %0 = arith.cmpi eq, %arg2, %c0_i32 : i32
    %1 = arith.extui %0 : i1 to i32
    %c0_i32_0 = arith.constant 0 : i32
    %2 = arith.cmpi ne, %1, %c0_i32_0 : i32
    scf.if %2 {
      %cst_15 = arith.constant 0.000000e+00 : f32
      %21 = vector.broadcast %cst_15 : f32 to vector<256x128xf32>
      %c0_16 = arith.constant 0 : index
      %c0_17 = arith.constant 0 : index
      %22 = vector.load %arg9[%c0_16, %c0_17] : memref<256x128xf32, #tpu.memory_space<vmem>>, vector<256x128xf32>
      tpu.vector_store %arg9[%c0_16, %c0_17], %21 {strides = array<i32>} : memref<256x128xf32, #tpu.memory_space<vmem>>, vector<256x128xf32>,
    } else {
    }
    %c0 = arith.constant 0 : index
    %c0_1 = arith.constant 0 : index
    %3 = vector.load %arg3[%c0, %c0_1] : memref<256x128xf32, #tpu.memory_space<vmem>>, vector<256x128xf32>
    %c0_2 = arith.constant 0 : index
    %c0_3 = arith.constant 0 : index
    %4 = vector.load %arg5[%c0_2, %c0_3] : memref<1x128xf32, #tpu.memory_space<vmem>>, vector<1x128xf32>
    %5 = vector.broadcast %4 : vector<1x128xf32> to vector<256x128xf32>
    %6 = arith.mulf %3, %5 : vector<256x128xf32>
    %c0_4 = arith.constant 0 : index
    %c0_5 = arith.constant 0 : index
    %7 = vector.load %arg6[%c0_4, %c0_5] : memref<1x128xf32, #tpu.memory_space<vmem>>, vector<1x128xf32>
    %8 = vector.broadcast %7 : vector<1x128xf32> to vector<256x128xf32>
    %9 = arith.addf %6, %8 : vector<256x128xf32>
    %cst = arith.constant 0.000000e+00 : f32
    %10 = vector.broadcast %cst : f32 to vector<256x128xf32>
    %11 = arith.maximumf %9, %10 : vector<256x128xf32>
    %12 = arith.truncf %11 : vector<256x128xf32> to vector<256x128xbf16>
    %c0_6 = arith.constant 0 : index
    %c0_7 = arith.constant 0 : index
    %13 = vector.load %arg9[%c0_6, %c0_7] : memref<256x128xf32, #tpu.memory_space<vmem>>, vector<256x128xf32>
    %c0_8 = arith.constant 0 : index
    %c0_9 = arith.constant 0 : index
    %14 = vector.load %arg4[%c0_8, %c0_9] : memref<128x128xbf16, #tpu.memory_space<vmem>>, vector<128x128xbf16>
    %cst_10 = arith.constant dense<0.000000e+00> : vector<256x128xf32>
    %15 = tpu.matmul %12, %14, %cst_10 {dimension_numbers = #tpu.dot_dimension_numbers<[1], [0], [0], [1], [0, 0, 1, 1], [], []>} : vector<256x128xbf16>, vector<128x128xbf16>, vector<256x128xf32> -> vector<256x128xf32>
    %16 = arith.addf %13, %15 : vector<256x128xf32>
    %c0_11 = arith.constant 0 : index
    %c0_12 = arith.constant 0 : index
    %17 = vector.load %arg9[%c0_11, %c0_12] : memref<256x128xf32, #tpu.memory_space<vmem>>, vector<256x128xf32>
    tpu.vector_store %arg9[%c0_11, %c0_12], %16 {strides = array<i32>} : memref<256x128xf32, #tpu.memory_space<vmem>>, vector<256x128xf32>,
    %c0_i32_13 = arith.constant 0 : i32
    %18 = arith.cmpi eq, %arg2, %c0_i32_13 : i32
    %19 = arith.extui %18 : i1 to i32
    %c0_i32_14 = arith.constant 0 : i32
    %20 = arith.cmpi ne, %19, %c0_i32_14 : i32
    scf.if %20 {
      %c0_15 = arith.constant 0 : index
      %c0_16 = arith.constant 0 : index
      %21 = vector.load %arg9[%c0_15, %c0_16] : memref<256x128xf32, #tpu.memory_space<vmem>>, vector<256x128xf32>
      %c0_17 = arith.constant 0 : index
      %c0_18 = arith.constant 0 : index
      %22 = vector.load %arg7[%c0_17, %c0_18] : memref<1x128xf32, #tpu.memory_space<vmem>>, vector<1x128xf32>
      %23 = vector.broadcast %22 : vector<1x128xf32> to vector<256x128xf32>
      %24 = arith.addf %21, %23 : vector<256x128xf32>
      %cst_19 = arith.constant 0.000000e+00 : f32
      %25 = vector.broadcast %cst_19 : f32 to vector<256x128xf32>
      %26 = arith.maximumf %24, %25 : vector<256x128xf32>
      %27 = arith.truncf %26 : vector<256x128xf32> to vector<256x128xbf16>
      %c0_20 = arith.constant 0 : index
      %c0_21 = arith.constant 0 : index
      %28 = vector.load %arg8[%c0_20, %c0_21] : memref<256x128xbf16, #tpu.memory_space<vmem>>, vector<256x128xbf16>
      tpu.vector_store %arg8[%c0_20, %c0_21], %27 {strides = array<i32>} : memref<256x128xbf16, #tpu.memory_space<vmem>>, vector<256x128xbf16>,
    } else {
    }
    return
  }
  func.func @transform_0(%arg0: i32, %arg1: i32, %arg2: i32) -> (i32, i32) {
    %c0_i32 = arith.constant 0 : i32
    return %arg0, %arg2 : i32, i32
  }
  func.func @transform_1(%arg0: i32, %arg1: i32, %arg2: i32) -> (i32, i32) {
    %c0_i32 = arith.constant 0 : i32
    return %arg2, %arg1 : i32, i32
  }
  func.func @transform_2(%arg0: i32, %arg1: i32, %arg2: i32) -> (i32, i32) {
    %c0_i32 = arith.constant 0 : i32
    %c0_i32_0 = arith.constant 0 : i32
    return %c0_i32, %arg2 : i32, i32
  }
  func.func @transform_3(%arg0: i32, %arg1: i32, %arg2: i32) -> (i32, i32) {
    %c0_i32 = arith.constant 0 : i32
    %c0_i32_0 = arith.constant 0 : i32
    return %c0_i32, %arg2 : i32, i32
  }
  func.func @transform_4(%arg0: i32, %arg1: i32, %arg2: i32) -> (i32, i32) {
    %c0_i32 = arith.constant 0 : i32
    %c0_i32_0 = arith.constant 0 : i32
    return %c0_i32, %arg1 : i32, i32
  }
  func.func @transform_5(%arg0: i32, %arg1: i32, %arg2: i32) -> (i32, i32) {
    %c0_i32 = arith.constant 0 : i32
    return %arg0, %arg1 : i32, i32
  }
}

module attributes {stable_mosaic.version = 11 : i64} {
  func.func @_conv3x3_kernel(%arg0: i32, %arg1: memref<1x18x32x128xbf16, #tpu.memory_space<vmem>>, %arg2: memref<9x128x32xbf16, #tpu.memory_space<vmem>>, %arg3: memref<1x16x16x32xf32, #tpu.memory_space<vmem>>) attributes {dimension_semantics = [#tpu.dimension_semantics<parallel>], iteration_bounds = array<i64: 2>, scalar_prefetch = 0 : i64, scratch_operands = 0 : i64, tpu.core_type = #tpu.core_type<tc>, window_params = [{transform_indices = @transform_0, window_bounds = array<i64: 1, 18, 32, 128>}, {pipeline_mode = #tpu.pipeline_mode<synchronous>, transform_indices = @transform_1, window_bounds = array<i64: 9, 128, 32>}, {transform_indices = @transform_2, window_bounds = array<i64: 1, 16, 16, 32>}]} {
    %c0 = arith.constant 0 : index
    %c0_0 = arith.constant 0 : index
    %c0_1 = arith.constant 0 : index
    %c0_2 = arith.constant 0 : index
    %0 = vector.load %arg1[%c0, %c0_0, %c0_1, %c0_2] : memref<1x18x32x128xbf16, #tpu.memory_space<vmem>>, vector<1x18x32x128xbf16>
    %1 = vector.shape_cast %0 : vector<1x18x32x128xbf16> to vector<18x32x128xbf16>
    %2 = vector.shape_cast %1 : vector<18x32x128xbf16> to vector<576x128xbf16>
    %3 = vector.extract_strided_slice %2 {offsets = [0, 0], sizes = [512, 128], strides = [1, 1]} : vector<576x128xbf16> to vector<512x128xbf16>
    %c0_3 = arith.constant 0 : index
    %c0_4 = arith.constant 0 : index
    %c0_5 = arith.constant 0 : index
    %4 = vector.load %arg2[%c0_3, %c0_4, %c0_5] : memref<9x128x32xbf16, #tpu.memory_space<vmem>>, vector<1x128x32xbf16>
    %5 = vector.shape_cast %4 : vector<1x128x32xbf16> to vector<128x32xbf16>
    %cst = arith.constant dense<0.000000e+00> : vector<512x32xf32>
    %6 = tpu.matmul %3, %5, %cst {dimension_numbers = #tpu.dot_dimension_numbers<[1], [0], [0], [1], [0, 0, 1, 1], [], []>} : vector<512x128xbf16>, vector<128x32xbf16>, vector<512x32xf32> -> vector<512x32xf32>
    %c1 = arith.constant 1 : index
    %c0_6 = arith.constant 0 : index
    %c0_7 = arith.constant 0 : index
    %7 = vector.load %arg2[%c1, %c0_6, %c0_7] : memref<9x128x32xbf16, #tpu.memory_space<vmem>>, vector<1x128x32xbf16>
    %8 = vector.shape_cast %7 : vector<1x128x32xbf16> to vector<128x32xbf16>
    %cst_8 = arith.constant dense<0.000000e+00> : vector<512x32xf32>
    %9 = tpu.matmul %3, %8, %cst_8 {dimension_numbers = #tpu.dot_dimension_numbers<[1], [0], [0], [1], [0, 0, 1, 1], [], []>} : vector<512x128xbf16>, vector<128x32xbf16>, vector<512x32xf32> -> vector<512x32xf32>
    %c2 = arith.constant 2 : index
    %c0_9 = arith.constant 0 : index
    %c0_10 = arith.constant 0 : index
    %10 = vector.load %arg2[%c2, %c0_9, %c0_10] : memref<9x128x32xbf16, #tpu.memory_space<vmem>>, vector<1x128x32xbf16>
    %11 = vector.shape_cast %10 : vector<1x128x32xbf16> to vector<128x32xbf16>
    %cst_11 = arith.constant dense<0.000000e+00> : vector<512x32xf32>
    %12 = tpu.matmul %3, %11, %cst_11 {dimension_numbers = #tpu.dot_dimension_numbers<[1], [0], [0], [1], [0, 0, 1, 1], [], []>} : vector<512x128xbf16>, vector<128x32xbf16>, vector<512x32xf32> -> vector<512x32xf32>
    %13 = vector.extract_strided_slice %2 {offsets = [32, 0], sizes = [512, 128], strides = [1, 1]} : vector<576x128xbf16> to vector<512x128xbf16>
    %c3 = arith.constant 3 : index
    %c0_12 = arith.constant 0 : index
    %c0_13 = arith.constant 0 : index
    %14 = vector.load %arg2[%c3, %c0_12, %c0_13] : memref<9x128x32xbf16, #tpu.memory_space<vmem>>, vector<1x128x32xbf16>
    %15 = vector.shape_cast %14 : vector<1x128x32xbf16> to vector<128x32xbf16>
    %cst_14 = arith.constant dense<0.000000e+00> : vector<512x32xf32>
    %16 = tpu.matmul %13, %15, %cst_14 {dimension_numbers = #tpu.dot_dimension_numbers<[1], [0], [0], [1], [0, 0, 1, 1], [], []>} : vector<512x128xbf16>, vector<128x32xbf16>, vector<512x32xf32> -> vector<512x32xf32>
    %17 = arith.addf %6, %16 : vector<512x32xf32>
    %c4 = arith.constant 4 : index
    %c0_15 = arith.constant 0 : index
    %c0_16 = arith.constant 0 : index
    %18 = vector.load %arg2[%c4, %c0_15, %c0_16] : memref<9x128x32xbf16, #tpu.memory_space<vmem>>, vector<1x128x32xbf16>
    %19 = vector.shape_cast %18 : vector<1x128x32xbf16> to vector<128x32xbf16>
    %cst_17 = arith.constant dense<0.000000e+00> : vector<512x32xf32>
    %20 = tpu.matmul %13, %19, %cst_17 {dimension_numbers = #tpu.dot_dimension_numbers<[1], [0], [0], [1], [0, 0, 1, 1], [], []>} : vector<512x128xbf16>, vector<128x32xbf16>, vector<512x32xf32> -> vector<512x32xf32>
    %21 = arith.addf %9, %20 : vector<512x32xf32>
    %c5 = arith.constant 5 : index
    %c0_18 = arith.constant 0 : index
    %c0_19 = arith.constant 0 : index
    %22 = vector.load %arg2[%c5, %c0_18, %c0_19] : memref<9x128x32xbf16, #tpu.memory_space<vmem>>, vector<1x128x32xbf16>
    %23 = vector.shape_cast %22 : vector<1x128x32xbf16> to vector<128x32xbf16>
    %cst_20 = arith.constant dense<0.000000e+00> : vector<512x32xf32>
    %24 = tpu.matmul %13, %23, %cst_20 {dimension_numbers = #tpu.dot_dimension_numbers<[1], [0], [0], [1], [0, 0, 1, 1], [], []>} : vector<512x128xbf16>, vector<128x32xbf16>, vector<512x32xf32> -> vector<512x32xf32>
    %25 = arith.addf %12, %24 : vector<512x32xf32>
    %26 = vector.extract_strided_slice %2 {offsets = [64, 0], sizes = [512, 128], strides = [1, 1]} : vector<576x128xbf16> to vector<512x128xbf16>
    %c6 = arith.constant 6 : index
    %c0_21 = arith.constant 0 : index
    %c0_22 = arith.constant 0 : index
    %27 = vector.load %arg2[%c6, %c0_21, %c0_22] : memref<9x128x32xbf16, #tpu.memory_space<vmem>>, vector<1x128x32xbf16>
    %28 = vector.shape_cast %27 : vector<1x128x32xbf16> to vector<128x32xbf16>
    %cst_23 = arith.constant dense<0.000000e+00> : vector<512x32xf32>
    %29 = tpu.matmul %26, %28, %cst_23 {dimension_numbers = #tpu.dot_dimension_numbers<[1], [0], [0], [1], [0, 0, 1, 1], [], []>} : vector<512x128xbf16>, vector<128x32xbf16>, vector<512x32xf32> -> vector<512x32xf32>
    %30 = arith.addf %17, %29 : vector<512x32xf32>
    %c7 = arith.constant 7 : index
    %c0_24 = arith.constant 0 : index
    %c0_25 = arith.constant 0 : index
    %31 = vector.load %arg2[%c7, %c0_24, %c0_25] : memref<9x128x32xbf16, #tpu.memory_space<vmem>>, vector<1x128x32xbf16>
    %32 = vector.shape_cast %31 : vector<1x128x32xbf16> to vector<128x32xbf16>
    %cst_26 = arith.constant dense<0.000000e+00> : vector<512x32xf32>
    %33 = tpu.matmul %26, %32, %cst_26 {dimension_numbers = #tpu.dot_dimension_numbers<[1], [0], [0], [1], [0, 0, 1, 1], [], []>} : vector<512x128xbf16>, vector<128x32xbf16>, vector<512x32xf32> -> vector<512x32xf32>
    %34 = arith.addf %21, %33 : vector<512x32xf32>
    %c8 = arith.constant 8 : index
    %c0_27 = arith.constant 0 : index
    %c0_28 = arith.constant 0 : index
    %35 = vector.load %arg2[%c8, %c0_27, %c0_28] : memref<9x128x32xbf16, #tpu.memory_space<vmem>>, vector<1x128x32xbf16>
    %36 = vector.shape_cast %35 : vector<1x128x32xbf16> to vector<128x32xbf16>
    %cst_29 = arith.constant dense<0.000000e+00> : vector<512x32xf32>
    %37 = tpu.matmul %26, %36, %cst_29 {dimension_numbers = #tpu.dot_dimension_numbers<[1], [0], [0], [1], [0, 0, 1, 1], [], []>} : vector<512x128xbf16>, vector<128x32xbf16>, vector<512x32xf32> -> vector<512x32xf32>
    %38 = arith.addf %25, %37 : vector<512x32xf32>
    %39 = vector.shape_cast %30 : vector<512x32xf32> to vector<16x32x32xf32>
    %40 = vector.extract_strided_slice %39 {offsets = [0, 0, 0], sizes = [16, 16, 32], strides = [1, 1, 1]} : vector<16x32x32xf32> to vector<16x16x32xf32>
    %41 = vector.shape_cast %34 : vector<512x32xf32> to vector<16x32x32xf32>
    %42 = vector.extract_strided_slice %41 {offsets = [0, 1, 0], sizes = [16, 16, 32], strides = [1, 1, 1]} : vector<16x32x32xf32> to vector<16x16x32xf32>
    %43 = arith.addf %40, %42 : vector<16x16x32xf32>
    %44 = vector.shape_cast %38 : vector<512x32xf32> to vector<16x32x32xf32>
    %45 = vector.extract_strided_slice %44 {offsets = [0, 2, 0], sizes = [16, 16, 32], strides = [1, 1, 1]} : vector<16x32x32xf32> to vector<16x16x32xf32>
    %46 = arith.addf %43, %45 : vector<16x16x32xf32>
    %47 = vector.shape_cast %46 : vector<16x16x32xf32> to vector<1x16x16x32xf32>
    %c0_30 = arith.constant 0 : index
    %c0_31 = arith.constant 0 : index
    %c0_32 = arith.constant 0 : index
    %c0_33 = arith.constant 0 : index
    %48 = vector.load %arg3[%c0_30, %c0_31, %c0_32, %c0_33] : memref<1x16x16x32xf32, #tpu.memory_space<vmem>>, vector<1x16x16x32xf32>
    tpu.vector_store %arg3[%c0_30, %c0_31, %c0_32, %c0_33], %47 {strides = array<i32>} : memref<1x16x16x32xf32, #tpu.memory_space<vmem>>, vector<1x16x16x32xf32>,
    return
  }
  func.func @transform_0(%arg0: i32) -> (i32, i32, i32, i32) {
    %c0_i32 = arith.constant 0 : i32
    %c0_i32_0 = arith.constant 0 : i32
    %c0_i32_1 = arith.constant 0 : i32
    %c0_i32_2 = arith.constant 0 : i32
    return %arg0, %c0_i32, %c0_i32_0, %c0_i32_1 : i32, i32, i32, i32
  }
  func.func @transform_1(%arg0: i32) -> (i32, i32, i32) {
    %c0_i32 = arith.constant 0 : i32
    %c0_i32_0 = arith.constant 0 : i32
    %c0_i32_1 = arith.constant 0 : i32
    %c0_i32_2 = arith.constant 0 : i32
    return %c0_i32, %c0_i32_0, %c0_i32_1 : i32, i32, i32
  }
  func.func @transform_2(%arg0: i32) -> (i32, i32, i32, i32) {
    %c0_i32 = arith.constant 0 : i32
    %c0_i32_0 = arith.constant 0 : i32
    %c0_i32_1 = arith.constant 0 : i32
    %c0_i32_2 = arith.constant 0 : i32
    return %arg0, %c0_i32, %c0_i32_0, %c0_i32_1 : i32, i32, i32, i32
  }
}

module attributes {stable_mosaic.version = 11 : i64} {
  func.func @_mm_kernel(%arg0: i32, %arg1: i32, %arg2: i32, %arg3: memref<256x128xf32, #tpu.memory_space<vmem>>, %arg4: memref<128x128xbf16, #tpu.memory_space<vmem>>, %arg5: memref<1x128xf32, #tpu.memory_space<vmem>>, %arg6: memref<1x128xf32, #tpu.memory_space<vmem>>, %arg7: memref<256x128xf32, #tpu.memory_space<vmem>>, %arg8: memref<256x128xf32, #tpu.memory_space<vmem>>) attributes {dimension_semantics = [#tpu.dimension_semantics<parallel>, #tpu.dimension_semantics<parallel>, #tpu.dimension_semantics<arbitrary>], iteration_bounds = array<i64: 2, 1, 1>, scalar_prefetch = 0 : i64, scratch_operands = 1 : i64, tpu.core_type = #tpu.core_type<tc>, window_params = [{transform_indices = @transform_0, window_bounds = array<i64: 256, 128>}, {transform_indices = @transform_1, window_bounds = array<i64: 128, 128>}, {transform_indices = @transform_2, window_bounds = array<i64: 1, 128>}, {transform_indices = @transform_3, window_bounds = array<i64: 1, 128>}, {transform_indices = @transform_4, window_bounds = array<i64: 256, 128>}]} {
    %c0_i32 = arith.constant 0 : i32
    %0 = arith.cmpi eq, %arg2, %c0_i32 : i32
    %1 = arith.extui %0 : i1 to i32
    %c0_i32_0 = arith.constant 0 : i32
    %2 = arith.cmpi ne, %1, %c0_i32_0 : i32
    scf.if %2 {
      %cst_15 = arith.constant 0.000000e+00 : f32
      %21 = vector.broadcast %cst_15 : f32 to vector<256x128xf32>
      %c0_16 = arith.constant 0 : index
      %c0_17 = arith.constant 0 : index
      %22 = vector.load %arg8[%c0_16, %c0_17] : memref<256x128xf32, #tpu.memory_space<vmem>>, vector<256x128xf32>
      tpu.vector_store %arg8[%c0_16, %c0_17], %21 {strides = array<i32>} : memref<256x128xf32, #tpu.memory_space<vmem>>, vector<256x128xf32>,
    } else {
    }
    %c0 = arith.constant 0 : index
    %c0_1 = arith.constant 0 : index
    %3 = vector.load %arg3[%c0, %c0_1] : memref<256x128xf32, #tpu.memory_space<vmem>>, vector<256x128xf32>
    %c0_2 = arith.constant 0 : index
    %c0_3 = arith.constant 0 : index
    %4 = vector.load %arg5[%c0_2, %c0_3] : memref<1x128xf32, #tpu.memory_space<vmem>>, vector<1x128xf32>
    %5 = vector.broadcast %4 : vector<1x128xf32> to vector<256x128xf32>
    %6 = arith.mulf %3, %5 : vector<256x128xf32>
    %c0_4 = arith.constant 0 : index
    %c0_5 = arith.constant 0 : index
    %7 = vector.load %arg6[%c0_4, %c0_5] : memref<1x128xf32, #tpu.memory_space<vmem>>, vector<1x128xf32>
    %8 = vector.broadcast %7 : vector<1x128xf32> to vector<256x128xf32>
    %9 = arith.addf %6, %8 : vector<256x128xf32>
    %cst = arith.constant 0.000000e+00 : f32
    %10 = vector.broadcast %cst : f32 to vector<256x128xf32>
    %11 = arith.maximumf %9, %10 : vector<256x128xf32>
    %12 = arith.truncf %11 : vector<256x128xf32> to vector<256x128xbf16>
    %c0_6 = arith.constant 0 : index
    %c0_7 = arith.constant 0 : index
    %13 = vector.load %arg8[%c0_6, %c0_7] : memref<256x128xf32, #tpu.memory_space<vmem>>, vector<256x128xf32>
    %c0_8 = arith.constant 0 : index
    %c0_9 = arith.constant 0 : index
    %14 = vector.load %arg4[%c0_8, %c0_9] : memref<128x128xbf16, #tpu.memory_space<vmem>>, vector<128x128xbf16>
    %cst_10 = arith.constant dense<0.000000e+00> : vector<256x128xf32>
    %15 = tpu.matmul %12, %14, %cst_10 {dimension_numbers = #tpu.dot_dimension_numbers<[1], [0], [0], [1], [0, 0, 1, 1], [], []>} : vector<256x128xbf16>, vector<128x128xbf16>, vector<256x128xf32> -> vector<256x128xf32>
    %16 = arith.addf %13, %15 : vector<256x128xf32>
    %c0_11 = arith.constant 0 : index
    %c0_12 = arith.constant 0 : index
    %17 = vector.load %arg8[%c0_11, %c0_12] : memref<256x128xf32, #tpu.memory_space<vmem>>, vector<256x128xf32>
    tpu.vector_store %arg8[%c0_11, %c0_12], %16 {strides = array<i32>} : memref<256x128xf32, #tpu.memory_space<vmem>>, vector<256x128xf32>,
    %c0_i32_13 = arith.constant 0 : i32
    %18 = arith.cmpi eq, %arg2, %c0_i32_13 : i32
    %19 = arith.extui %18 : i1 to i32
    %c0_i32_14 = arith.constant 0 : i32
    %20 = arith.cmpi ne, %19, %c0_i32_14 : i32
    scf.if %20 {
      %c0_15 = arith.constant 0 : index
      %c0_16 = arith.constant 0 : index
      %21 = vector.load %arg8[%c0_15, %c0_16] : memref<256x128xf32, #tpu.memory_space<vmem>>, vector<256x128xf32>
      %c0_17 = arith.constant 0 : index
      %c0_18 = arith.constant 0 : index
      %22 = vector.load %arg7[%c0_17, %c0_18] : memref<256x128xf32, #tpu.memory_space<vmem>>, vector<256x128xf32>
      tpu.vector_store %arg7[%c0_17, %c0_18], %21 {strides = array<i32>} : memref<256x128xf32, #tpu.memory_space<vmem>>, vector<256x128xf32>,
    } else {
    }
    return
  }
  func.func @transform_0(%arg0: i32, %arg1: i32, %arg2: i32) -> (i32, i32) {
    %c0_i32 = arith.constant 0 : i32
    return %arg0, %arg2 : i32, i32
  }
  func.func @transform_1(%arg0: i32, %arg1: i32, %arg2: i32) -> (i32, i32) {
    %c0_i32 = arith.constant 0 : i32
    return %arg2, %arg1 : i32, i32
  }
  func.func @transform_2(%arg0: i32, %arg1: i32, %arg2: i32) -> (i32, i32) {
    %c0_i32 = arith.constant 0 : i32
    %c0_i32_0 = arith.constant 0 : i32
    return %c0_i32, %arg2 : i32, i32
  }
  func.func @transform_3(%arg0: i32, %arg1: i32, %arg2: i32) -> (i32, i32) {
    %c0_i32 = arith.constant 0 : i32
    %c0_i32_0 = arith.constant 0 : i32
    return %c0_i32, %arg2 : i32, i32
  }
  func.func @transform_4(%arg0: i32, %arg1: i32, %arg2: i32) -> (i32, i32) {
    %c0_i32 = arith.constant 0 : i32
    return %arg0, %arg1 : i32, i32
  }
}

module attributes {stable_mosaic.version = 11 : i64} {
  func.func @_mm_kernel(%arg0: i32, %arg1: i32, %arg2: i32, %arg3: memref<128x128xf32, #tpu.memory_space<vmem>>, %arg4: memref<128x128xbf16, #tpu.memory_space<vmem>>, %arg5: memref<1x128xf32, #tpu.memory_space<vmem>>, %arg6: memref<1x128xf32, #tpu.memory_space<vmem>>, %arg7: memref<1x128xf32, #tpu.memory_space<vmem>>, %arg8: memref<128x128xbf16, #tpu.memory_space<vmem>>, %arg9: memref<128x128xf32, #tpu.memory_space<vmem>>) attributes {dimension_semantics = [#tpu.dimension_semantics<parallel>, #tpu.dimension_semantics<parallel>, #tpu.dimension_semantics<arbitrary>], iteration_bounds = array<i64: 1, 1, 1>, scalar_prefetch = 0 : i64, scratch_operands = 1 : i64, tpu.core_type = #tpu.core_type<tc>, window_params = [{transform_indices = @transform_0, window_bounds = array<i64: 128, 128>}, {transform_indices = @transform_1, window_bounds = array<i64: 128, 128>}, {transform_indices = @transform_2, window_bounds = array<i64: 1, 128>}, {transform_indices = @transform_3, window_bounds = array<i64: 1, 128>}, {transform_indices = @transform_4, window_bounds = array<i64: 1, 128>}, {transform_indices = @transform_5, window_bounds = array<i64: 128, 128>}]} {
    %c0_i32 = arith.constant 0 : i32
    %0 = arith.cmpi eq, %arg2, %c0_i32 : i32
    %1 = arith.extui %0 : i1 to i32
    %c0_i32_0 = arith.constant 0 : i32
    %2 = arith.cmpi ne, %1, %c0_i32_0 : i32
    scf.if %2 {
      %cst_15 = arith.constant 0.000000e+00 : f32
      %21 = vector.broadcast %cst_15 : f32 to vector<128x128xf32>
      %c0_16 = arith.constant 0 : index
      %c0_17 = arith.constant 0 : index
      %22 = vector.load %arg9[%c0_16, %c0_17] : memref<128x128xf32, #tpu.memory_space<vmem>>, vector<128x128xf32>
      tpu.vector_store %arg9[%c0_16, %c0_17], %21 {strides = array<i32>} : memref<128x128xf32, #tpu.memory_space<vmem>>, vector<128x128xf32>,
    } else {
    }
    %c0 = arith.constant 0 : index
    %c0_1 = arith.constant 0 : index
    %3 = vector.load %arg3[%c0, %c0_1] : memref<128x128xf32, #tpu.memory_space<vmem>>, vector<128x128xf32>
    %c0_2 = arith.constant 0 : index
    %c0_3 = arith.constant 0 : index
    %4 = vector.load %arg5[%c0_2, %c0_3] : memref<1x128xf32, #tpu.memory_space<vmem>>, vector<1x128xf32>
    %5 = vector.broadcast %4 : vector<1x128xf32> to vector<128x128xf32>
    %6 = arith.mulf %3, %5 : vector<128x128xf32>
    %c0_4 = arith.constant 0 : index
    %c0_5 = arith.constant 0 : index
    %7 = vector.load %arg6[%c0_4, %c0_5] : memref<1x128xf32, #tpu.memory_space<vmem>>, vector<1x128xf32>
    %8 = vector.broadcast %7 : vector<1x128xf32> to vector<128x128xf32>
    %9 = arith.addf %6, %8 : vector<128x128xf32>
    %cst = arith.constant 0.000000e+00 : f32
    %10 = vector.broadcast %cst : f32 to vector<128x128xf32>
    %11 = arith.maximumf %9, %10 : vector<128x128xf32>
    %12 = arith.truncf %11 : vector<128x128xf32> to vector<128x128xbf16>
    %c0_6 = arith.constant 0 : index
    %c0_7 = arith.constant 0 : index
    %13 = vector.load %arg9[%c0_6, %c0_7] : memref<128x128xf32, #tpu.memory_space<vmem>>, vector<128x128xf32>
    %c0_8 = arith.constant 0 : index
    %c0_9 = arith.constant 0 : index
    %14 = vector.load %arg4[%c0_8, %c0_9] : memref<128x128xbf16, #tpu.memory_space<vmem>>, vector<128x128xbf16>
    %cst_10 = arith.constant dense<0.000000e+00> : vector<128x128xf32>
    %15 = tpu.matmul %12, %14, %cst_10 {dimension_numbers = #tpu.dot_dimension_numbers<[1], [0], [0], [1], [0, 0, 1, 1], [], []>} : vector<128x128xbf16>, vector<128x128xbf16>, vector<128x128xf32> -> vector<128x128xf32>
    %16 = arith.addf %13, %15 : vector<128x128xf32>
    %c0_11 = arith.constant 0 : index
    %c0_12 = arith.constant 0 : index
    %17 = vector.load %arg9[%c0_11, %c0_12] : memref<128x128xf32, #tpu.memory_space<vmem>>, vector<128x128xf32>
    tpu.vector_store %arg9[%c0_11, %c0_12], %16 {strides = array<i32>} : memref<128x128xf32, #tpu.memory_space<vmem>>, vector<128x128xf32>,
    %c0_i32_13 = arith.constant 0 : i32
    %18 = arith.cmpi eq, %arg2, %c0_i32_13 : i32
    %19 = arith.extui %18 : i1 to i32
    %c0_i32_14 = arith.constant 0 : i32
    %20 = arith.cmpi ne, %19, %c0_i32_14 : i32
    scf.if %20 {
      %c0_15 = arith.constant 0 : index
      %c0_16 = arith.constant 0 : index
      %21 = vector.load %arg9[%c0_15, %c0_16] : memref<128x128xf32, #tpu.memory_space<vmem>>, vector<128x128xf32>
      %c0_17 = arith.constant 0 : index
      %c0_18 = arith.constant 0 : index
      %22 = vector.load %arg7[%c0_17, %c0_18] : memref<1x128xf32, #tpu.memory_space<vmem>>, vector<1x128xf32>
      %23 = vector.broadcast %22 : vector<1x128xf32> to vector<128x128xf32>
      %24 = arith.addf %21, %23 : vector<128x128xf32>
      %cst_19 = arith.constant 0.000000e+00 : f32
      %25 = vector.broadcast %cst_19 : f32 to vector<128x128xf32>
      %26 = arith.maximumf %24, %25 : vector<128x128xf32>
      %27 = arith.truncf %26 : vector<128x128xf32> to vector<128x128xbf16>
      %c0_20 = arith.constant 0 : index
      %c0_21 = arith.constant 0 : index
      %28 = vector.load %arg8[%c0_20, %c0_21] : memref<128x128xbf16, #tpu.memory_space<vmem>>, vector<128x128xbf16>
      tpu.vector_store %arg8[%c0_20, %c0_21], %27 {strides = array<i32>} : memref<128x128xbf16, #tpu.memory_space<vmem>>, vector<128x128xbf16>,
    } else {
    }
    return
  }
  func.func @transform_0(%arg0: i32, %arg1: i32, %arg2: i32) -> (i32, i32) {
    %c0_i32 = arith.constant 0 : i32
    return %arg0, %arg2 : i32, i32
  }
  func.func @transform_1(%arg0: i32, %arg1: i32, %arg2: i32) -> (i32, i32) {
    %c0_i32 = arith.constant 0 : i32
    return %arg2, %arg1 : i32, i32
  }
  func.func @transform_2(%arg0: i32, %arg1: i32, %arg2: i32) -> (i32, i32) {
    %c0_i32 = arith.constant 0 : i32
    %c0_i32_0 = arith.constant 0 : i32
    return %c0_i32, %arg2 : i32, i32
  }
  func.func @transform_3(%arg0: i32, %arg1: i32, %arg2: i32) -> (i32, i32) {
    %c0_i32 = arith.constant 0 : i32
    %c0_i32_0 = arith.constant 0 : i32
    return %c0_i32, %arg2 : i32, i32
  }
  func.func @transform_4(%arg0: i32, %arg1: i32, %arg2: i32) -> (i32, i32) {
    %c0_i32 = arith.constant 0 : i32
    %c0_i32_0 = arith.constant 0 : i32
    return %c0_i32, %arg1 : i32, i32
  }
  func.func @transform_5(%arg0: i32, %arg1: i32, %arg2: i32) -> (i32, i32) {
    %c0_i32 = arith.constant 0 : i32
    return %arg0, %arg1 : i32, i32
  }
}

module attributes {stable_mosaic.version = 11 : i64} {
  func.func @_conv3x3_kernel(%arg0: i32, %arg1: memref<1x10x16x128xbf16, #tpu.memory_space<vmem>>, %arg2: memref<9x128x32xbf16, #tpu.memory_space<vmem>>, %arg3: memref<1x8x8x32xf32, #tpu.memory_space<vmem>>) attributes {dimension_semantics = [#tpu.dimension_semantics<parallel>], iteration_bounds = array<i64: 2>, scalar_prefetch = 0 : i64, scratch_operands = 0 : i64, tpu.core_type = #tpu.core_type<tc>, window_params = [{transform_indices = @transform_0, window_bounds = array<i64: 1, 10, 16, 128>}, {pipeline_mode = #tpu.pipeline_mode<synchronous>, transform_indices = @transform_1, window_bounds = array<i64: 9, 128, 32>}, {transform_indices = @transform_2, window_bounds = array<i64: 1, 8, 8, 32>}]} {
    %c0 = arith.constant 0 : index
    %c0_0 = arith.constant 0 : index
    %c0_1 = arith.constant 0 : index
    %c0_2 = arith.constant 0 : index
    %0 = vector.load %arg1[%c0, %c0_0, %c0_1, %c0_2] : memref<1x10x16x128xbf16, #tpu.memory_space<vmem>>, vector<1x10x16x128xbf16>
    %1 = vector.shape_cast %0 : vector<1x10x16x128xbf16> to vector<10x16x128xbf16>
    %2 = vector.shape_cast %1 : vector<10x16x128xbf16> to vector<160x128xbf16>
    %3 = vector.extract_strided_slice %2 {offsets = [0, 0], sizes = [128, 128], strides = [1, 1]} : vector<160x128xbf16> to vector<128x128xbf16>
    %c0_3 = arith.constant 0 : index
    %c0_4 = arith.constant 0 : index
    %c0_5 = arith.constant 0 : index
    %4 = vector.load %arg2[%c0_3, %c0_4, %c0_5] : memref<9x128x32xbf16, #tpu.memory_space<vmem>>, vector<1x128x32xbf16>
    %5 = vector.shape_cast %4 : vector<1x128x32xbf16> to vector<128x32xbf16>
    %cst = arith.constant dense<0.000000e+00> : vector<128x32xf32>
    %6 = tpu.matmul %3, %5, %cst {dimension_numbers = #tpu.dot_dimension_numbers<[1], [0], [0], [1], [0, 0, 1, 1], [], []>} : vector<128x128xbf16>, vector<128x32xbf16>, vector<128x32xf32> -> vector<128x32xf32>
    %c1 = arith.constant 1 : index
    %c0_6 = arith.constant 0 : index
    %c0_7 = arith.constant 0 : index
    %7 = vector.load %arg2[%c1, %c0_6, %c0_7] : memref<9x128x32xbf16, #tpu.memory_space<vmem>>, vector<1x128x32xbf16>
    %8 = vector.shape_cast %7 : vector<1x128x32xbf16> to vector<128x32xbf16>
    %cst_8 = arith.constant dense<0.000000e+00> : vector<128x32xf32>
    %9 = tpu.matmul %3, %8, %cst_8 {dimension_numbers = #tpu.dot_dimension_numbers<[1], [0], [0], [1], [0, 0, 1, 1], [], []>} : vector<128x128xbf16>, vector<128x32xbf16>, vector<128x32xf32> -> vector<128x32xf32>
    %c2 = arith.constant 2 : index
    %c0_9 = arith.constant 0 : index
    %c0_10 = arith.constant 0 : index
    %10 = vector.load %arg2[%c2, %c0_9, %c0_10] : memref<9x128x32xbf16, #tpu.memory_space<vmem>>, vector<1x128x32xbf16>
    %11 = vector.shape_cast %10 : vector<1x128x32xbf16> to vector<128x32xbf16>
    %cst_11 = arith.constant dense<0.000000e+00> : vector<128x32xf32>
    %12 = tpu.matmul %3, %11, %cst_11 {dimension_numbers = #tpu.dot_dimension_numbers<[1], [0], [0], [1], [0, 0, 1, 1], [], []>} : vector<128x128xbf16>, vector<128x32xbf16>, vector<128x32xf32> -> vector<128x32xf32>
    %13 = vector.extract_strided_slice %2 {offsets = [16, 0], sizes = [128, 128], strides = [1, 1]} : vector<160x128xbf16> to vector<128x128xbf16>
    %c3 = arith.constant 3 : index
    %c0_12 = arith.constant 0 : index
    %c0_13 = arith.constant 0 : index
    %14 = vector.load %arg2[%c3, %c0_12, %c0_13] : memref<9x128x32xbf16, #tpu.memory_space<vmem>>, vector<1x128x32xbf16>
    %15 = vector.shape_cast %14 : vector<1x128x32xbf16> to vector<128x32xbf16>
    %cst_14 = arith.constant dense<0.000000e+00> : vector<128x32xf32>
    %16 = tpu.matmul %13, %15, %cst_14 {dimension_numbers = #tpu.dot_dimension_numbers<[1], [0], [0], [1], [0, 0, 1, 1], [], []>} : vector<128x128xbf16>, vector<128x32xbf16>, vector<128x32xf32> -> vector<128x32xf32>
    %17 = arith.addf %6, %16 : vector<128x32xf32>
    %c4 = arith.constant 4 : index
    %c0_15 = arith.constant 0 : index
    %c0_16 = arith.constant 0 : index
    %18 = vector.load %arg2[%c4, %c0_15, %c0_16] : memref<9x128x32xbf16, #tpu.memory_space<vmem>>, vector<1x128x32xbf16>
    %19 = vector.shape_cast %18 : vector<1x128x32xbf16> to vector<128x32xbf16>
    %cst_17 = arith.constant dense<0.000000e+00> : vector<128x32xf32>
    %20 = tpu.matmul %13, %19, %cst_17 {dimension_numbers = #tpu.dot_dimension_numbers<[1], [0], [0], [1], [0, 0, 1, 1], [], []>} : vector<128x128xbf16>, vector<128x32xbf16>, vector<128x32xf32> -> vector<128x32xf32>
    %21 = arith.addf %9, %20 : vector<128x32xf32>
    %c5 = arith.constant 5 : index
    %c0_18 = arith.constant 0 : index
    %c0_19 = arith.constant 0 : index
    %22 = vector.load %arg2[%c5, %c0_18, %c0_19] : memref<9x128x32xbf16, #tpu.memory_space<vmem>>, vector<1x128x32xbf16>
    %23 = vector.shape_cast %22 : vector<1x128x32xbf16> to vector<128x32xbf16>
    %cst_20 = arith.constant dense<0.000000e+00> : vector<128x32xf32>
    %24 = tpu.matmul %13, %23, %cst_20 {dimension_numbers = #tpu.dot_dimension_numbers<[1], [0], [0], [1], [0, 0, 1, 1], [], []>} : vector<128x128xbf16>, vector<128x32xbf16>, vector<128x32xf32> -> vector<128x32xf32>
    %25 = arith.addf %12, %24 : vector<128x32xf32>
    %26 = vector.extract_strided_slice %2 {offsets = [32, 0], sizes = [128, 128], strides = [1, 1]} : vector<160x128xbf16> to vector<128x128xbf16>
    %c6 = arith.constant 6 : index
    %c0_21 = arith.constant 0 : index
    %c0_22 = arith.constant 0 : index
    %27 = vector.load %arg2[%c6, %c0_21, %c0_22] : memref<9x128x32xbf16, #tpu.memory_space<vmem>>, vector<1x128x32xbf16>
    %28 = vector.shape_cast %27 : vector<1x128x32xbf16> to vector<128x32xbf16>
    %cst_23 = arith.constant dense<0.000000e+00> : vector<128x32xf32>
    %29 = tpu.matmul %26, %28, %cst_23 {dimension_numbers = #tpu.dot_dimension_numbers<[1], [0], [0], [1], [0, 0, 1, 1], [], []>} : vector<128x128xbf16>, vector<128x32xbf16>, vector<128x32xf32> -> vector<128x32xf32>
    %30 = arith.addf %17, %29 : vector<128x32xf32>
    %c7 = arith.constant 7 : index
    %c0_24 = arith.constant 0 : index
    %c0_25 = arith.constant 0 : index
    %31 = vector.load %arg2[%c7, %c0_24, %c0_25] : memref<9x128x32xbf16, #tpu.memory_space<vmem>>, vector<1x128x32xbf16>
    %32 = vector.shape_cast %31 : vector<1x128x32xbf16> to vector<128x32xbf16>
    %cst_26 = arith.constant dense<0.000000e+00> : vector<128x32xf32>
    %33 = tpu.matmul %26, %32, %cst_26 {dimension_numbers = #tpu.dot_dimension_numbers<[1], [0], [0], [1], [0, 0, 1, 1], [], []>} : vector<128x128xbf16>, vector<128x32xbf16>, vector<128x32xf32> -> vector<128x32xf32>
    %34 = arith.addf %21, %33 : vector<128x32xf32>
    %c8 = arith.constant 8 : index
    %c0_27 = arith.constant 0 : index
    %c0_28 = arith.constant 0 : index
    %35 = vector.load %arg2[%c8, %c0_27, %c0_28] : memref<9x128x32xbf16, #tpu.memory_space<vmem>>, vector<1x128x32xbf16>
    %36 = vector.shape_cast %35 : vector<1x128x32xbf16> to vector<128x32xbf16>
    %cst_29 = arith.constant dense<0.000000e+00> : vector<128x32xf32>
    %37 = tpu.matmul %26, %36, %cst_29 {dimension_numbers = #tpu.dot_dimension_numbers<[1], [0], [0], [1], [0, 0, 1, 1], [], []>} : vector<128x128xbf16>, vector<128x32xbf16>, vector<128x32xf32> -> vector<128x32xf32>
    %38 = arith.addf %25, %37 : vector<128x32xf32>
    %39 = vector.shape_cast %30 : vector<128x32xf32> to vector<8x16x32xf32>
    %40 = vector.extract_strided_slice %39 {offsets = [0, 0, 0], sizes = [8, 8, 32], strides = [1, 1, 1]} : vector<8x16x32xf32> to vector<8x8x32xf32>
    %41 = vector.shape_cast %34 : vector<128x32xf32> to vector<8x16x32xf32>
    %42 = vector.extract_strided_slice %41 {offsets = [0, 1, 0], sizes = [8, 8, 32], strides = [1, 1, 1]} : vector<8x16x32xf32> to vector<8x8x32xf32>
    %43 = arith.addf %40, %42 : vector<8x8x32xf32>
    %44 = vector.shape_cast %38 : vector<128x32xf32> to vector<8x16x32xf32>
    %45 = vector.extract_strided_slice %44 {offsets = [0, 2, 0], sizes = [8, 8, 32], strides = [1, 1, 1]} : vector<8x16x32xf32> to vector<8x8x32xf32>
    %46 = arith.addf %43, %45 : vector<8x8x32xf32>
    %47 = vector.shape_cast %46 : vector<8x8x32xf32> to vector<1x8x8x32xf32>
    %c0_30 = arith.constant 0 : index
    %c0_31 = arith.constant 0 : index
    %c0_32 = arith.constant 0 : index
    %c0_33 = arith.constant 0 : index
    %48 = vector.load %arg3[%c0_30, %c0_31, %c0_32, %c0_33] : memref<1x8x8x32xf32, #tpu.memory_space<vmem>>, vector<1x8x8x32xf32>
    tpu.vector_store %arg3[%c0_30, %c0_31, %c0_32, %c0_33], %47 {strides = array<i32>} : memref<1x8x8x32xf32, #tpu.memory_space<vmem>>, vector<1x8x8x32xf32>,
    return
  }
  func.func @transform_0(%arg0: i32) -> (i32, i32, i32, i32) {
    %c0_i32 = arith.constant 0 : i32
    %c0_i32_0 = arith.constant 0 : i32
    %c0_i32_1 = arith.constant 0 : i32
    %c0_i32_2 = arith.constant 0 : i32
    return %arg0, %c0_i32, %c0_i32_0, %c0_i32_1 : i32, i32, i32, i32
  }
  func.func @transform_1(%arg0: i32) -> (i32, i32, i32) {
    %c0_i32 = arith.constant 0 : i32
    %c0_i32_0 = arith.constant 0 : i32
    %c0_i32_1 = arith.constant 0 : i32
    %c0_i32_2 = arith.constant 0 : i32
    return %c0_i32, %c0_i32_0, %c0_i32_1 : i32, i32, i32
  }
  func.func @transform_2(%arg0: i32) -> (i32, i32, i32, i32) {
    %c0_i32 = arith.constant 0 : i32
    %c0_i32_0 = arith.constant 0 : i32
    %c0_i32_1 = arith.constant 0 : i32
    %c0_i32_2 = arith.constant 0 : i32
    return %arg0, %c0_i32, %c0_i32_0, %c0_i32_1 : i32, i32, i32, i32
  }
}

module attributes {stable_mosaic.version = 11 : i64} {
  func.func @_mm_kernel(%arg0: i32, %arg1: i32, %arg2: i32, %arg3: memref<128x128xf32, #tpu.memory_space<vmem>>, %arg4: memref<128x128xbf16, #tpu.memory_space<vmem>>, %arg5: memref<1x128xf32, #tpu.memory_space<vmem>>, %arg6: memref<1x128xf32, #tpu.memory_space<vmem>>, %arg7: memref<128x128xf32, #tpu.memory_space<vmem>>, %arg8: memref<128x128xf32, #tpu.memory_space<vmem>>) attributes {dimension_semantics = [#tpu.dimension_semantics<parallel>, #tpu.dimension_semantics<parallel>, #tpu.dimension_semantics<arbitrary>], iteration_bounds = array<i64: 1, 1, 1>, scalar_prefetch = 0 : i64, scratch_operands = 1 : i64, tpu.core_type = #tpu.core_type<tc>, window_params = [{transform_indices = @transform_0, window_bounds = array<i64: 128, 128>}, {transform_indices = @transform_1, window_bounds = array<i64: 128, 128>}, {transform_indices = @transform_2, window_bounds = array<i64: 1, 128>}, {transform_indices = @transform_3, window_bounds = array<i64: 1, 128>}, {transform_indices = @transform_4, window_bounds = array<i64: 128, 128>}]} {
    %c0_i32 = arith.constant 0 : i32
    %0 = arith.cmpi eq, %arg2, %c0_i32 : i32
    %1 = arith.extui %0 : i1 to i32
    %c0_i32_0 = arith.constant 0 : i32
    %2 = arith.cmpi ne, %1, %c0_i32_0 : i32
    scf.if %2 {
      %cst_15 = arith.constant 0.000000e+00 : f32
      %21 = vector.broadcast %cst_15 : f32 to vector<128x128xf32>
      %c0_16 = arith.constant 0 : index
      %c0_17 = arith.constant 0 : index
      %22 = vector.load %arg8[%c0_16, %c0_17] : memref<128x128xf32, #tpu.memory_space<vmem>>, vector<128x128xf32>
      tpu.vector_store %arg8[%c0_16, %c0_17], %21 {strides = array<i32>} : memref<128x128xf32, #tpu.memory_space<vmem>>, vector<128x128xf32>,
    } else {
    }
    %c0 = arith.constant 0 : index
    %c0_1 = arith.constant 0 : index
    %3 = vector.load %arg3[%c0, %c0_1] : memref<128x128xf32, #tpu.memory_space<vmem>>, vector<128x128xf32>
    %c0_2 = arith.constant 0 : index
    %c0_3 = arith.constant 0 : index
    %4 = vector.load %arg5[%c0_2, %c0_3] : memref<1x128xf32, #tpu.memory_space<vmem>>, vector<1x128xf32>
    %5 = vector.broadcast %4 : vector<1x128xf32> to vector<128x128xf32>
    %6 = arith.mulf %3, %5 : vector<128x128xf32>
    %c0_4 = arith.constant 0 : index
    %c0_5 = arith.constant 0 : index
    %7 = vector.load %arg6[%c0_4, %c0_5] : memref<1x128xf32, #tpu.memory_space<vmem>>, vector<1x128xf32>
    %8 = vector.broadcast %7 : vector<1x128xf32> to vector<128x128xf32>
    %9 = arith.addf %6, %8 : vector<128x128xf32>
    %cst = arith.constant 0.000000e+00 : f32
    %10 = vector.broadcast %cst : f32 to vector<128x128xf32>
    %11 = arith.maximumf %9, %10 : vector<128x128xf32>
    %12 = arith.truncf %11 : vector<128x128xf32> to vector<128x128xbf16>
    %c0_6 = arith.constant 0 : index
    %c0_7 = arith.constant 0 : index
    %13 = vector.load %arg8[%c0_6, %c0_7] : memref<128x128xf32, #tpu.memory_space<vmem>>, vector<128x128xf32>
    %c0_8 = arith.constant 0 : index
    %c0_9 = arith.constant 0 : index
    %14 = vector.load %arg4[%c0_8, %c0_9] : memref<128x128xbf16, #tpu.memory_space<vmem>>, vector<128x128xbf16>
    %cst_10 = arith.constant dense<0.000000e+00> : vector<128x128xf32>
    %15 = tpu.matmul %12, %14, %cst_10 {dimension_numbers = #tpu.dot_dimension_numbers<[1], [0], [0], [1], [0, 0, 1, 1], [], []>} : vector<128x128xbf16>, vector<128x128xbf16>, vector<128x128xf32> -> vector<128x128xf32>
    %16 = arith.addf %13, %15 : vector<128x128xf32>
    %c0_11 = arith.constant 0 : index
    %c0_12 = arith.constant 0 : index
    %17 = vector.load %arg8[%c0_11, %c0_12] : memref<128x128xf32, #tpu.memory_space<vmem>>, vector<128x128xf32>
    tpu.vector_store %arg8[%c0_11, %c0_12], %16 {strides = array<i32>} : memref<128x128xf32, #tpu.memory_space<vmem>>, vector<128x128xf32>,
    %c0_i32_13 = arith.constant 0 : i32
    %18 = arith.cmpi eq, %arg2, %c0_i32_13 : i32
    %19 = arith.extui %18 : i1 to i32
    %c0_i32_14 = arith.constant 0 : i32
    %20 = arith.cmpi ne, %19, %c0_i32_14 : i32
    scf.if %20 {
      %c0_15 = arith.constant 0 : index
      %c0_16 = arith.constant 0 : index
      %21 = vector.load %arg8[%c0_15, %c0_16] : memref<128x128xf32, #tpu.memory_space<vmem>>, vector<128x128xf32>
      %c0_17 = arith.constant 0 : index
      %c0_18 = arith.constant 0 : index
      %22 = vector.load %arg7[%c0_17, %c0_18] : memref<128x128xf32, #tpu.memory_space<vmem>>, vector<128x128xf32>
      tpu.vector_store %arg7[%c0_17, %c0_18], %21 {strides = array<i32>} : memref<128x128xf32, #tpu.memory_space<vmem>>, vector<128x128xf32>,
    } else {
    }
    return
  }
  func.func @transform_0(%arg0: i32, %arg1: i32, %arg2: i32) -> (i32, i32) {
    %c0_i32 = arith.constant 0 : i32
    return %arg0, %arg2 : i32, i32
  }
  func.func @transform_1(%arg0: i32, %arg1: i32, %arg2: i32) -> (i32, i32) {
    %c0_i32 = arith.constant 0 : i32
    return %arg2, %arg1 : i32, i32
  }
  func.func @transform_2(%arg0: i32, %arg1: i32, %arg2: i32) -> (i32, i32) {
    %c0_i32 = arith.constant 0 : i32
    %c0_i32_0 = arith.constant 0 : i32
    return %c0_i32, %arg2 : i32, i32
  }
  func.func @transform_3(%arg0: i32, %arg1: i32, %arg2: i32) -> (i32, i32) {
    %c0_i32 = arith.constant 0 : i32
    %c0_i32_0 = arith.constant 0 : i32
    return %c0_i32, %arg2 : i32, i32
  }
  func.func @transform_4(%arg0: i32, %arg1: i32, %arg2: i32) -> (i32, i32) {
    %c0_i32 = arith.constant 0 : i32
    return %arg0, %arg1 : i32, i32
  }
}

module attributes {stable_mosaic.version = 11 : i64} {
  func.func @_mm_kernel(%arg0: i32, %arg1: i32, %arg2: i32, %arg3: memref<32x128xf32, #tpu.memory_space<vmem>>, %arg4: memref<128x128xbf16, #tpu.memory_space<vmem>>, %arg5: memref<1x128xf32, #tpu.memory_space<vmem>>, %arg6: memref<1x128xf32, #tpu.memory_space<vmem>>, %arg7: memref<1x128xf32, #tpu.memory_space<vmem>>, %arg8: memref<32x128xbf16, #tpu.memory_space<vmem>>, %arg9: memref<32x128xf32, #tpu.memory_space<vmem>>) attributes {dimension_semantics = [#tpu.dimension_semantics<parallel>, #tpu.dimension_semantics<parallel>, #tpu.dimension_semantics<arbitrary>], iteration_bounds = array<i64: 1, 1, 1>, scalar_prefetch = 0 : i64, scratch_operands = 1 : i64, tpu.core_type = #tpu.core_type<tc>, window_params = [{transform_indices = @transform_0, window_bounds = array<i64: 32, 128>}, {transform_indices = @transform_1, window_bounds = array<i64: 128, 128>}, {transform_indices = @transform_2, window_bounds = array<i64: 1, 128>}, {transform_indices = @transform_3, window_bounds = array<i64: 1, 128>}, {transform_indices = @transform_4, window_bounds = array<i64: 1, 128>}, {transform_indices = @transform_5, window_bounds = array<i64: 32, 128>}]} {
    %c0_i32 = arith.constant 0 : i32
    %0 = arith.cmpi eq, %arg2, %c0_i32 : i32
    %1 = arith.extui %0 : i1 to i32
    %c0_i32_0 = arith.constant 0 : i32
    %2 = arith.cmpi ne, %1, %c0_i32_0 : i32
    scf.if %2 {
      %cst_15 = arith.constant 0.000000e+00 : f32
      %21 = vector.broadcast %cst_15 : f32 to vector<32x128xf32>
      %c0_16 = arith.constant 0 : index
      %c0_17 = arith.constant 0 : index
      %22 = vector.load %arg9[%c0_16, %c0_17] : memref<32x128xf32, #tpu.memory_space<vmem>>, vector<32x128xf32>
      tpu.vector_store %arg9[%c0_16, %c0_17], %21 {strides = array<i32>} : memref<32x128xf32, #tpu.memory_space<vmem>>, vector<32x128xf32>,
    } else {
    }
    %c0 = arith.constant 0 : index
    %c0_1 = arith.constant 0 : index
    %3 = vector.load %arg3[%c0, %c0_1] : memref<32x128xf32, #tpu.memory_space<vmem>>, vector<32x128xf32>
    %c0_2 = arith.constant 0 : index
    %c0_3 = arith.constant 0 : index
    %4 = vector.load %arg5[%c0_2, %c0_3] : memref<1x128xf32, #tpu.memory_space<vmem>>, vector<1x128xf32>
    %5 = vector.broadcast %4 : vector<1x128xf32> to vector<32x128xf32>
    %6 = arith.mulf %3, %5 : vector<32x128xf32>
    %c0_4 = arith.constant 0 : index
    %c0_5 = arith.constant 0 : index
    %7 = vector.load %arg6[%c0_4, %c0_5] : memref<1x128xf32, #tpu.memory_space<vmem>>, vector<1x128xf32>
    %8 = vector.broadcast %7 : vector<1x128xf32> to vector<32x128xf32>
    %9 = arith.addf %6, %8 : vector<32x128xf32>
    %cst = arith.constant 0.000000e+00 : f32
    %10 = vector.broadcast %cst : f32 to vector<32x128xf32>
    %11 = arith.maximumf %9, %10 : vector<32x128xf32>
    %12 = arith.truncf %11 : vector<32x128xf32> to vector<32x128xbf16>
    %c0_6 = arith.constant 0 : index
    %c0_7 = arith.constant 0 : index
    %13 = vector.load %arg9[%c0_6, %c0_7] : memref<32x128xf32, #tpu.memory_space<vmem>>, vector<32x128xf32>
    %c0_8 = arith.constant 0 : index
    %c0_9 = arith.constant 0 : index
    %14 = vector.load %arg4[%c0_8, %c0_9] : memref<128x128xbf16, #tpu.memory_space<vmem>>, vector<128x128xbf16>
    %cst_10 = arith.constant dense<0.000000e+00> : vector<32x128xf32>
    %15 = tpu.matmul %12, %14, %cst_10 {dimension_numbers = #tpu.dot_dimension_numbers<[1], [0], [0], [1], [0, 0, 1, 1], [], []>} : vector<32x128xbf16>, vector<128x128xbf16>, vector<32x128xf32> -> vector<32x128xf32>
    %16 = arith.addf %13, %15 : vector<32x128xf32>
    %c0_11 = arith.constant 0 : index
    %c0_12 = arith.constant 0 : index
    %17 = vector.load %arg9[%c0_11, %c0_12] : memref<32x128xf32, #tpu.memory_space<vmem>>, vector<32x128xf32>
    tpu.vector_store %arg9[%c0_11, %c0_12], %16 {strides = array<i32>} : memref<32x128xf32, #tpu.memory_space<vmem>>, vector<32x128xf32>,
    %c0_i32_13 = arith.constant 0 : i32
    %18 = arith.cmpi eq, %arg2, %c0_i32_13 : i32
    %19 = arith.extui %18 : i1 to i32
    %c0_i32_14 = arith.constant 0 : i32
    %20 = arith.cmpi ne, %19, %c0_i32_14 : i32
    scf.if %20 {
      %c0_15 = arith.constant 0 : index
      %c0_16 = arith.constant 0 : index
      %21 = vector.load %arg9[%c0_15, %c0_16] : memref<32x128xf32, #tpu.memory_space<vmem>>, vector<32x128xf32>
      %c0_17 = arith.constant 0 : index
      %c0_18 = arith.constant 0 : index
      %22 = vector.load %arg7[%c0_17, %c0_18] : memref<1x128xf32, #tpu.memory_space<vmem>>, vector<1x128xf32>
      %23 = vector.broadcast %22 : vector<1x128xf32> to vector<32x128xf32>
      %24 = arith.addf %21, %23 : vector<32x128xf32>
      %cst_19 = arith.constant 0.000000e+00 : f32
      %25 = vector.broadcast %cst_19 : f32 to vector<32x128xf32>
      %26 = arith.maximumf %24, %25 : vector<32x128xf32>
      %27 = arith.truncf %26 : vector<32x128xf32> to vector<32x128xbf16>
      %c0_20 = arith.constant 0 : index
      %c0_21 = arith.constant 0 : index
      %28 = vector.load %arg8[%c0_20, %c0_21] : memref<32x128xbf16, #tpu.memory_space<vmem>>, vector<32x128xbf16>
      tpu.vector_store %arg8[%c0_20, %c0_21], %27 {strides = array<i32>} : memref<32x128xbf16, #tpu.memory_space<vmem>>, vector<32x128xbf16>,
    } else {
    }
    return
  }
  func.func @transform_0(%arg0: i32, %arg1: i32, %arg2: i32) -> (i32, i32) {
    %c0_i32 = arith.constant 0 : i32
    return %arg0, %arg2 : i32, i32
  }
  func.func @transform_1(%arg0: i32, %arg1: i32, %arg2: i32) -> (i32, i32) {
    %c0_i32 = arith.constant 0 : i32
    return %arg2, %arg1 : i32, i32
  }
  func.func @transform_2(%arg0: i32, %arg1: i32, %arg2: i32) -> (i32, i32) {
    %c0_i32 = arith.constant 0 : i32
    %c0_i32_0 = arith.constant 0 : i32
    return %c0_i32, %arg2 : i32, i32
  }
  func.func @transform_3(%arg0: i32, %arg1: i32, %arg2: i32) -> (i32, i32) {
    %c0_i32 = arith.constant 0 : i32
    %c0_i32_0 = arith.constant 0 : i32
    return %c0_i32, %arg2 : i32, i32
  }
  func.func @transform_4(%arg0: i32, %arg1: i32, %arg2: i32) -> (i32, i32) {
    %c0_i32 = arith.constant 0 : i32
    %c0_i32_0 = arith.constant 0 : i32
    return %c0_i32, %arg1 : i32, i32
  }
  func.func @transform_5(%arg0: i32, %arg1: i32, %arg2: i32) -> (i32, i32) {
    %c0_i32 = arith.constant 0 : i32
    return %arg0, %arg1 : i32, i32
  }
}

module attributes {stable_mosaic.version = 11 : i64} {
  func.func @_conv3x3_kernel(%arg0: i32, %arg1: memref<1x6x16x128xbf16, #tpu.memory_space<vmem>>, %arg2: memref<9x128x32xbf16, #tpu.memory_space<vmem>>, %arg3: memref<1x4x4x32xf32, #tpu.memory_space<vmem>>) attributes {dimension_semantics = [#tpu.dimension_semantics<parallel>], iteration_bounds = array<i64: 2>, scalar_prefetch = 0 : i64, scratch_operands = 0 : i64, tpu.core_type = #tpu.core_type<tc>, window_params = [{transform_indices = @transform_0, window_bounds = array<i64: 1, 6, 16, 128>}, {pipeline_mode = #tpu.pipeline_mode<synchronous>, transform_indices = @transform_1, window_bounds = array<i64: 9, 128, 32>}, {transform_indices = @transform_2, window_bounds = array<i64: 1, 4, 4, 32>}]} {
    %c0 = arith.constant 0 : index
    %c0_0 = arith.constant 0 : index
    %c0_1 = arith.constant 0 : index
    %c0_2 = arith.constant 0 : index
    %0 = vector.load %arg1[%c0, %c0_0, %c0_1, %c0_2] : memref<1x6x16x128xbf16, #tpu.memory_space<vmem>>, vector<1x6x16x128xbf16>
    %1 = vector.shape_cast %0 : vector<1x6x16x128xbf16> to vector<6x16x128xbf16>
    %2 = vector.shape_cast %1 : vector<6x16x128xbf16> to vector<96x128xbf16>
    %3 = vector.extract_strided_slice %2 {offsets = [0, 0], sizes = [64, 128], strides = [1, 1]} : vector<96x128xbf16> to vector<64x128xbf16>
    %c0_3 = arith.constant 0 : index
    %c0_4 = arith.constant 0 : index
    %c0_5 = arith.constant 0 : index
    %4 = vector.load %arg2[%c0_3, %c0_4, %c0_5] : memref<9x128x32xbf16, #tpu.memory_space<vmem>>, vector<1x128x32xbf16>
    %5 = vector.shape_cast %4 : vector<1x128x32xbf16> to vector<128x32xbf16>
    %cst = arith.constant dense<0.000000e+00> : vector<64x32xf32>
    %6 = tpu.matmul %3, %5, %cst {dimension_numbers = #tpu.dot_dimension_numbers<[1], [0], [0], [1], [0, 0, 1, 1], [], []>} : vector<64x128xbf16>, vector<128x32xbf16>, vector<64x32xf32> -> vector<64x32xf32>
    %c1 = arith.constant 1 : index
    %c0_6 = arith.constant 0 : index
    %c0_7 = arith.constant 0 : index
    %7 = vector.load %arg2[%c1, %c0_6, %c0_7] : memref<9x128x32xbf16, #tpu.memory_space<vmem>>, vector<1x128x32xbf16>
    %8 = vector.shape_cast %7 : vector<1x128x32xbf16> to vector<128x32xbf16>
    %cst_8 = arith.constant dense<0.000000e+00> : vector<64x32xf32>
    %9 = tpu.matmul %3, %8, %cst_8 {dimension_numbers = #tpu.dot_dimension_numbers<[1], [0], [0], [1], [0, 0, 1, 1], [], []>} : vector<64x128xbf16>, vector<128x32xbf16>, vector<64x32xf32> -> vector<64x32xf32>
    %c2 = arith.constant 2 : index
    %c0_9 = arith.constant 0 : index
    %c0_10 = arith.constant 0 : index
    %10 = vector.load %arg2[%c2, %c0_9, %c0_10] : memref<9x128x32xbf16, #tpu.memory_space<vmem>>, vector<1x128x32xbf16>
    %11 = vector.shape_cast %10 : vector<1x128x32xbf16> to vector<128x32xbf16>
    %cst_11 = arith.constant dense<0.000000e+00> : vector<64x32xf32>
    %12 = tpu.matmul %3, %11, %cst_11 {dimension_numbers = #tpu.dot_dimension_numbers<[1], [0], [0], [1], [0, 0, 1, 1], [], []>} : vector<64x128xbf16>, vector<128x32xbf16>, vector<64x32xf32> -> vector<64x32xf32>
    %13 = vector.extract_strided_slice %2 {offsets = [16, 0], sizes = [64, 128], strides = [1, 1]} : vector<96x128xbf16> to vector<64x128xbf16>
    %c3 = arith.constant 3 : index
    %c0_12 = arith.constant 0 : index
    %c0_13 = arith.constant 0 : index
    %14 = vector.load %arg2[%c3, %c0_12, %c0_13] : memref<9x128x32xbf16, #tpu.memory_space<vmem>>, vector<1x128x32xbf16>
    %15 = vector.shape_cast %14 : vector<1x128x32xbf16> to vector<128x32xbf16>
    %cst_14 = arith.constant dense<0.000000e+00> : vector<64x32xf32>
    %16 = tpu.matmul %13, %15, %cst_14 {dimension_numbers = #tpu.dot_dimension_numbers<[1], [0], [0], [1], [0, 0, 1, 1], [], []>} : vector<64x128xbf16>, vector<128x32xbf16>, vector<64x32xf32> -> vector<64x32xf32>
    %17 = arith.addf %6, %16 : vector<64x32xf32>
    %c4 = arith.constant 4 : index
    %c0_15 = arith.constant 0 : index
    %c0_16 = arith.constant 0 : index
    %18 = vector.load %arg2[%c4, %c0_15, %c0_16] : memref<9x128x32xbf16, #tpu.memory_space<vmem>>, vector<1x128x32xbf16>
    %19 = vector.shape_cast %18 : vector<1x128x32xbf16> to vector<128x32xbf16>
    %cst_17 = arith.constant dense<0.000000e+00> : vector<64x32xf32>
    %20 = tpu.matmul %13, %19, %cst_17 {dimension_numbers = #tpu.dot_dimension_numbers<[1], [0], [0], [1], [0, 0, 1, 1], [], []>} : vector<64x128xbf16>, vector<128x32xbf16>, vector<64x32xf32> -> vector<64x32xf32>
    %21 = arith.addf %9, %20 : vector<64x32xf32>
    %c5 = arith.constant 5 : index
    %c0_18 = arith.constant 0 : index
    %c0_19 = arith.constant 0 : index
    %22 = vector.load %arg2[%c5, %c0_18, %c0_19] : memref<9x128x32xbf16, #tpu.memory_space<vmem>>, vector<1x128x32xbf16>
    %23 = vector.shape_cast %22 : vector<1x128x32xbf16> to vector<128x32xbf16>
    %cst_20 = arith.constant dense<0.000000e+00> : vector<64x32xf32>
    %24 = tpu.matmul %13, %23, %cst_20 {dimension_numbers = #tpu.dot_dimension_numbers<[1], [0], [0], [1], [0, 0, 1, 1], [], []>} : vector<64x128xbf16>, vector<128x32xbf16>, vector<64x32xf32> -> vector<64x32xf32>
    %25 = arith.addf %12, %24 : vector<64x32xf32>
    %26 = vector.extract_strided_slice %2 {offsets = [32, 0], sizes = [64, 128], strides = [1, 1]} : vector<96x128xbf16> to vector<64x128xbf16>
    %c6 = arith.constant 6 : index
    %c0_21 = arith.constant 0 : index
    %c0_22 = arith.constant 0 : index
    %27 = vector.load %arg2[%c6, %c0_21, %c0_22] : memref<9x128x32xbf16, #tpu.memory_space<vmem>>, vector<1x128x32xbf16>
    %28 = vector.shape_cast %27 : vector<1x128x32xbf16> to vector<128x32xbf16>
    %cst_23 = arith.constant dense<0.000000e+00> : vector<64x32xf32>
    %29 = tpu.matmul %26, %28, %cst_23 {dimension_numbers = #tpu.dot_dimension_numbers<[1], [0], [0], [1], [0, 0, 1, 1], [], []>} : vector<64x128xbf16>, vector<128x32xbf16>, vector<64x32xf32> -> vector<64x32xf32>
    %30 = arith.addf %17, %29 : vector<64x32xf32>
    %c7 = arith.constant 7 : index
    %c0_24 = arith.constant 0 : index
    %c0_25 = arith.constant 0 : index
    %31 = vector.load %arg2[%c7, %c0_24, %c0_25] : memref<9x128x32xbf16, #tpu.memory_space<vmem>>, vector<1x128x32xbf16>
    %32 = vector.shape_cast %31 : vector<1x128x32xbf16> to vector<128x32xbf16>
    %cst_26 = arith.constant dense<0.000000e+00> : vector<64x32xf32>
    %33 = tpu.matmul %26, %32, %cst_26 {dimension_numbers = #tpu.dot_dimension_numbers<[1], [0], [0], [1], [0, 0, 1, 1], [], []>} : vector<64x128xbf16>, vector<128x32xbf16>, vector<64x32xf32> -> vector<64x32xf32>
    %34 = arith.addf %21, %33 : vector<64x32xf32>
    %c8 = arith.constant 8 : index
    %c0_27 = arith.constant 0 : index
    %c0_28 = arith.constant 0 : index
    %35 = vector.load %arg2[%c8, %c0_27, %c0_28] : memref<9x128x32xbf16, #tpu.memory_space<vmem>>, vector<1x128x32xbf16>
    %36 = vector.shape_cast %35 : vector<1x128x32xbf16> to vector<128x32xbf16>
    %cst_29 = arith.constant dense<0.000000e+00> : vector<64x32xf32>
    %37 = tpu.matmul %26, %36, %cst_29 {dimension_numbers = #tpu.dot_dimension_numbers<[1], [0], [0], [1], [0, 0, 1, 1], [], []>} : vector<64x128xbf16>, vector<128x32xbf16>, vector<64x32xf32> -> vector<64x32xf32>
    %38 = arith.addf %25, %37 : vector<64x32xf32>
    %39 = vector.shape_cast %30 : vector<64x32xf32> to vector<4x16x32xf32>
    %40 = vector.extract_strided_slice %39 {offsets = [0, 0, 0], sizes = [4, 4, 32], strides = [1, 1, 1]} : vector<4x16x32xf32> to vector<4x4x32xf32>
    %41 = vector.shape_cast %34 : vector<64x32xf32> to vector<4x16x32xf32>
    %42 = vector.extract_strided_slice %41 {offsets = [0, 1, 0], sizes = [4, 4, 32], strides = [1, 1, 1]} : vector<4x16x32xf32> to vector<4x4x32xf32>
    %43 = arith.addf %40, %42 : vector<4x4x32xf32>
    %44 = vector.shape_cast %38 : vector<64x32xf32> to vector<4x16x32xf32>
    %45 = vector.extract_strided_slice %44 {offsets = [0, 2, 0], sizes = [4, 4, 32], strides = [1, 1, 1]} : vector<4x16x32xf32> to vector<4x4x32xf32>
    %46 = arith.addf %43, %45 : vector<4x4x32xf32>
    %47 = vector.shape_cast %46 : vector<4x4x32xf32> to vector<1x4x4x32xf32>
    %c0_30 = arith.constant 0 : index
    %c0_31 = arith.constant 0 : index
    %c0_32 = arith.constant 0 : index
    %c0_33 = arith.constant 0 : index
    %48 = vector.load %arg3[%c0_30, %c0_31, %c0_32, %c0_33] : memref<1x4x4x32xf32, #tpu.memory_space<vmem>>, vector<1x4x4x32xf32>
    tpu.vector_store %arg3[%c0_30, %c0_31, %c0_32, %c0_33], %47 {strides = array<i32>} : memref<1x4x4x32xf32, #tpu.memory_space<vmem>>, vector<1x4x4x32xf32>,
    return
  }
  func.func @transform_0(%arg0: i32) -> (i32, i32, i32, i32) {
    %c0_i32 = arith.constant 0 : i32
    %c0_i32_0 = arith.constant 0 : i32
    %c0_i32_1 = arith.constant 0 : i32
    %c0_i32_2 = arith.constant 0 : i32
    return %arg0, %c0_i32, %c0_i32_0, %c0_i32_1 : i32, i32, i32, i32
  }
  func.func @transform_1(%arg0: i32) -> (i32, i32, i32) {
    %c0_i32 = arith.constant 0 : i32
    %c0_i32_0 = arith.constant 0 : i32
    %c0_i32_1 = arith.constant 0 : i32
    %c0_i32_2 = arith.constant 0 : i32
    return %c0_i32, %c0_i32_0, %c0_i32_1 : i32, i32, i32
  }
  func.func @transform_2(%arg0: i32) -> (i32, i32, i32, i32) {
    %c0_i32 = arith.constant 0 : i32
    %c0_i32_0 = arith.constant 0 : i32
    %c0_i32_1 = arith.constant 0 : i32
    %c0_i32_2 = arith.constant 0 : i32
    return %arg0, %c0_i32, %c0_i32_0, %c0_i32_1 : i32, i32, i32, i32
  }
}

module attributes {stable_mosaic.version = 11 : i64} {
  func.func @_mm_kernel(%arg0: i32, %arg1: i32, %arg2: i32, %arg3: memref<32x128xf32, #tpu.memory_space<vmem>>, %arg4: memref<128x128xbf16, #tpu.memory_space<vmem>>, %arg5: memref<1x128xf32, #tpu.memory_space<vmem>>, %arg6: memref<1x128xf32, #tpu.memory_space<vmem>>, %arg7: memref<32x128xf32, #tpu.memory_space<vmem>>, %arg8: memref<32x128xf32, #tpu.memory_space<vmem>>) attributes {dimension_semantics = [#tpu.dimension_semantics<parallel>, #tpu.dimension_semantics<parallel>, #tpu.dimension_semantics<arbitrary>], iteration_bounds = array<i64: 1, 1, 1>, scalar_prefetch = 0 : i64, scratch_operands = 1 : i64, tpu.core_type = #tpu.core_type<tc>, window_params = [{transform_indices = @transform_0, window_bounds = array<i64: 32, 128>}, {transform_indices = @transform_1, window_bounds = array<i64: 128, 128>}, {transform_indices = @transform_2, window_bounds = array<i64: 1, 128>}, {transform_indices = @transform_3, window_bounds = array<i64: 1, 128>}, {transform_indices = @transform_4, window_bounds = array<i64: 32, 128>}]} {
    %c0_i32 = arith.constant 0 : i32
    %0 = arith.cmpi eq, %arg2, %c0_i32 : i32
    %1 = arith.extui %0 : i1 to i32
    %c0_i32_0 = arith.constant 0 : i32
    %2 = arith.cmpi ne, %1, %c0_i32_0 : i32
    scf.if %2 {
      %cst_15 = arith.constant 0.000000e+00 : f32
      %21 = vector.broadcast %cst_15 : f32 to vector<32x128xf32>
      %c0_16 = arith.constant 0 : index
      %c0_17 = arith.constant 0 : index
      %22 = vector.load %arg8[%c0_16, %c0_17] : memref<32x128xf32, #tpu.memory_space<vmem>>, vector<32x128xf32>
      tpu.vector_store %arg8[%c0_16, %c0_17], %21 {strides = array<i32>} : memref<32x128xf32, #tpu.memory_space<vmem>>, vector<32x128xf32>,
    } else {
    }
    %c0 = arith.constant 0 : index
    %c0_1 = arith.constant 0 : index
    %3 = vector.load %arg3[%c0, %c0_1] : memref<32x128xf32, #tpu.memory_space<vmem>>, vector<32x128xf32>
    %c0_2 = arith.constant 0 : index
    %c0_3 = arith.constant 0 : index
    %4 = vector.load %arg5[%c0_2, %c0_3] : memref<1x128xf32, #tpu.memory_space<vmem>>, vector<1x128xf32>
    %5 = vector.broadcast %4 : vector<1x128xf32> to vector<32x128xf32>
    %6 = arith.mulf %3, %5 : vector<32x128xf32>
    %c0_4 = arith.constant 0 : index
    %c0_5 = arith.constant 0 : index
    %7 = vector.load %arg6[%c0_4, %c0_5] : memref<1x128xf32, #tpu.memory_space<vmem>>, vector<1x128xf32>
    %8 = vector.broadcast %7 : vector<1x128xf32> to vector<32x128xf32>
    %9 = arith.addf %6, %8 : vector<32x128xf32>
    %cst = arith.constant 0.000000e+00 : f32
    %10 = vector.broadcast %cst : f32 to vector<32x128xf32>
    %11 = arith.maximumf %9, %10 : vector<32x128xf32>
    %12 = arith.truncf %11 : vector<32x128xf32> to vector<32x128xbf16>
    %c0_6 = arith.constant 0 : index
    %c0_7 = arith.constant 0 : index
    %13 = vector.load %arg8[%c0_6, %c0_7] : memref<32x128xf32, #tpu.memory_space<vmem>>, vector<32x128xf32>
    %c0_8 = arith.constant 0 : index
    %c0_9 = arith.constant 0 : index
    %14 = vector.load %arg4[%c0_8, %c0_9] : memref<128x128xbf16, #tpu.memory_space<vmem>>, vector<128x128xbf16>
    %cst_10 = arith.constant dense<0.000000e+00> : vector<32x128xf32>
    %15 = tpu.matmul %12, %14, %cst_10 {dimension_numbers = #tpu.dot_dimension_numbers<[1], [0], [0], [1], [0, 0, 1, 1], [], []>} : vector<32x128xbf16>, vector<128x128xbf16>, vector<32x128xf32> -> vector<32x128xf32>
    %16 = arith.addf %13, %15 : vector<32x128xf32>
    %c0_11 = arith.constant 0 : index
    %c0_12 = arith.constant 0 : index
    %17 = vector.load %arg8[%c0_11, %c0_12] : memref<32x128xf32, #tpu.memory_space<vmem>>, vector<32x128xf32>
    tpu.vector_store %arg8[%c0_11, %c0_12], %16 {strides = array<i32>} : memref<32x128xf32, #tpu.memory_space<vmem>>, vector<32x128xf32>,
    %c0_i32_13 = arith.constant 0 : i32
    %18 = arith.cmpi eq, %arg2, %c0_i32_13 : i32
    %19 = arith.extui %18 : i1 to i32
    %c0_i32_14 = arith.constant 0 : i32
    %20 = arith.cmpi ne, %19, %c0_i32_14 : i32
    scf.if %20 {
      %c0_15 = arith.constant 0 : index
      %c0_16 = arith.constant 0 : index
      %21 = vector.load %arg8[%c0_15, %c0_16] : memref<32x128xf32, #tpu.memory_space<vmem>>, vector<32x128xf32>
      %c0_17 = arith.constant 0 : index
      %c0_18 = arith.constant 0 : index
      %22 = vector.load %arg7[%c0_17, %c0_18] : memref<32x128xf32, #tpu.memory_space<vmem>>, vector<32x128xf32>
      tpu.vector_store %arg7[%c0_17, %c0_18], %21 {strides = array<i32>} : memref<32x128xf32, #tpu.memory_space<vmem>>, vector<32x128xf32>,
    } else {
    }
    return
  }
  func.func @transform_0(%arg0: i32, %arg1: i32, %arg2: i32) -> (i32, i32) {
    %c0_i32 = arith.constant 0 : i32
    return %arg0, %arg2 : i32, i32
  }
  func.func @transform_1(%arg0: i32, %arg1: i32, %arg2: i32) -> (i32, i32) {
    %c0_i32 = arith.constant 0 : i32
    return %arg2, %arg1 : i32, i32
  }
  func.func @transform_2(%arg0: i32, %arg1: i32, %arg2: i32) -> (i32, i32) {
    %c0_i32 = arith.constant 0 : i32
    %c0_i32_0 = arith.constant 0 : i32
    return %c0_i32, %arg2 : i32, i32
  }
  func.func @transform_3(%arg0: i32, %arg1: i32, %arg2: i32) -> (i32, i32) {
    %c0_i32 = arith.constant 0 : i32
    %c0_i32_0 = arith.constant 0 : i32
    return %c0_i32, %arg2 : i32, i32
  }
  func.func @transform_4(%arg0: i32, %arg1: i32, %arg2: i32) -> (i32, i32) {
    %c0_i32 = arith.constant 0 : i32
    return %arg0, %arg1 : i32, i32
  }
}

module attributes {stable_mosaic.version = 11 : i64} {
  func.func @_conv3x3_kernel(%arg0: i32, %arg1: memref<1x4x16x128xbf16, #tpu.memory_space<vmem>>, %arg2: memref<9x128x32xbf16, #tpu.memory_space<vmem>>, %arg3: memref<1x2x2x32xf32, #tpu.memory_space<vmem>>) attributes {dimension_semantics = [#tpu.dimension_semantics<parallel>], iteration_bounds = array<i64: 2>, scalar_prefetch = 0 : i64, scratch_operands = 0 : i64, tpu.core_type = #tpu.core_type<tc>, window_params = [{transform_indices = @transform_0, window_bounds = array<i64: 1, 4, 16, 128>}, {pipeline_mode = #tpu.pipeline_mode<synchronous>, transform_indices = @transform_1, window_bounds = array<i64: 9, 128, 32>}, {transform_indices = @transform_2, window_bounds = array<i64: 1, 2, 2, 32>}]} {
    %c0 = arith.constant 0 : index
    %c0_0 = arith.constant 0 : index
    %c0_1 = arith.constant 0 : index
    %c0_2 = arith.constant 0 : index
    %0 = vector.load %arg1[%c0, %c0_0, %c0_1, %c0_2] : memref<1x4x16x128xbf16, #tpu.memory_space<vmem>>, vector<1x4x16x128xbf16>
    %1 = vector.shape_cast %0 : vector<1x4x16x128xbf16> to vector<4x16x128xbf16>
    %2 = vector.shape_cast %1 : vector<4x16x128xbf16> to vector<64x128xbf16>
    %3 = vector.extract_strided_slice %2 {offsets = [0, 0], sizes = [32, 128], strides = [1, 1]} : vector<64x128xbf16> to vector<32x128xbf16>
    %c0_3 = arith.constant 0 : index
    %c0_4 = arith.constant 0 : index
    %c0_5 = arith.constant 0 : index
    %4 = vector.load %arg2[%c0_3, %c0_4, %c0_5] : memref<9x128x32xbf16, #tpu.memory_space<vmem>>, vector<1x128x32xbf16>
    %5 = vector.shape_cast %4 : vector<1x128x32xbf16> to vector<128x32xbf16>
    %cst = arith.constant dense<0.000000e+00> : vector<32x32xf32>
    %6 = tpu.matmul %3, %5, %cst {dimension_numbers = #tpu.dot_dimension_numbers<[1], [0], [0], [1], [0, 0, 1, 1], [], []>} : vector<32x128xbf16>, vector<128x32xbf16>, vector<32x32xf32> -> vector<32x32xf32>
    %c1 = arith.constant 1 : index
    %c0_6 = arith.constant 0 : index
    %c0_7 = arith.constant 0 : index
    %7 = vector.load %arg2[%c1, %c0_6, %c0_7] : memref<9x128x32xbf16, #tpu.memory_space<vmem>>, vector<1x128x32xbf16>
    %8 = vector.shape_cast %7 : vector<1x128x32xbf16> to vector<128x32xbf16>
    %cst_8 = arith.constant dense<0.000000e+00> : vector<32x32xf32>
    %9 = tpu.matmul %3, %8, %cst_8 {dimension_numbers = #tpu.dot_dimension_numbers<[1], [0], [0], [1], [0, 0, 1, 1], [], []>} : vector<32x128xbf16>, vector<128x32xbf16>, vector<32x32xf32> -> vector<32x32xf32>
    %c2 = arith.constant 2 : index
    %c0_9 = arith.constant 0 : index
    %c0_10 = arith.constant 0 : index
    %10 = vector.load %arg2[%c2, %c0_9, %c0_10] : memref<9x128x32xbf16, #tpu.memory_space<vmem>>, vector<1x128x32xbf16>
    %11 = vector.shape_cast %10 : vector<1x128x32xbf16> to vector<128x32xbf16>
    %cst_11 = arith.constant dense<0.000000e+00> : vector<32x32xf32>
    %12 = tpu.matmul %3, %11, %cst_11 {dimension_numbers = #tpu.dot_dimension_numbers<[1], [0], [0], [1], [0, 0, 1, 1], [], []>} : vector<32x128xbf16>, vector<128x32xbf16>, vector<32x32xf32> -> vector<32x32xf32>
    %13 = vector.extract_strided_slice %2 {offsets = [16, 0], sizes = [32, 128], strides = [1, 1]} : vector<64x128xbf16> to vector<32x128xbf16>
    %c3 = arith.constant 3 : index
    %c0_12 = arith.constant 0 : index
    %c0_13 = arith.constant 0 : index
    %14 = vector.load %arg2[%c3, %c0_12, %c0_13] : memref<9x128x32xbf16, #tpu.memory_space<vmem>>, vector<1x128x32xbf16>
    %15 = vector.shape_cast %14 : vector<1x128x32xbf16> to vector<128x32xbf16>
    %cst_14 = arith.constant dense<0.000000e+00> : vector<32x32xf32>
    %16 = tpu.matmul %13, %15, %cst_14 {dimension_numbers = #tpu.dot_dimension_numbers<[1], [0], [0], [1], [0, 0, 1, 1], [], []>} : vector<32x128xbf16>, vector<128x32xbf16>, vector<32x32xf32> -> vector<32x32xf32>
    %17 = arith.addf %6, %16 : vector<32x32xf32>
    %c4 = arith.constant 4 : index
    %c0_15 = arith.constant 0 : index
    %c0_16 = arith.constant 0 : index
    %18 = vector.load %arg2[%c4, %c0_15, %c0_16] : memref<9x128x32xbf16, #tpu.memory_space<vmem>>, vector<1x128x32xbf16>
    %19 = vector.shape_cast %18 : vector<1x128x32xbf16> to vector<128x32xbf16>
    %cst_17 = arith.constant dense<0.000000e+00> : vector<32x32xf32>
    %20 = tpu.matmul %13, %19, %cst_17 {dimension_numbers = #tpu.dot_dimension_numbers<[1], [0], [0], [1], [0, 0, 1, 1], [], []>} : vector<32x128xbf16>, vector<128x32xbf16>, vector<32x32xf32> -> vector<32x32xf32>
    %21 = arith.addf %9, %20 : vector<32x32xf32>
    %c5 = arith.constant 5 : index
    %c0_18 = arith.constant 0 : index
    %c0_19 = arith.constant 0 : index
    %22 = vector.load %arg2[%c5, %c0_18, %c0_19] : memref<9x128x32xbf16, #tpu.memory_space<vmem>>, vector<1x128x32xbf16>
    %23 = vector.shape_cast %22 : vector<1x128x32xbf16> to vector<128x32xbf16>
    %cst_20 = arith.constant dense<0.000000e+00> : vector<32x32xf32>
    %24 = tpu.matmul %13, %23, %cst_20 {dimension_numbers = #tpu.dot_dimension_numbers<[1], [0], [0], [1], [0, 0, 1, 1], [], []>} : vector<32x128xbf16>, vector<128x32xbf16>, vector<32x32xf32> -> vector<32x32xf32>
    %25 = arith.addf %12, %24 : vector<32x32xf32>
    %26 = vector.extract_strided_slice %2 {offsets = [32, 0], sizes = [32, 128], strides = [1, 1]} : vector<64x128xbf16> to vector<32x128xbf16>
    %c6 = arith.constant 6 : index
    %c0_21 = arith.constant 0 : index
    %c0_22 = arith.constant 0 : index
    %27 = vector.load %arg2[%c6, %c0_21, %c0_22] : memref<9x128x32xbf16, #tpu.memory_space<vmem>>, vector<1x128x32xbf16>
    %28 = vector.shape_cast %27 : vector<1x128x32xbf16> to vector<128x32xbf16>
    %cst_23 = arith.constant dense<0.000000e+00> : vector<32x32xf32>
    %29 = tpu.matmul %26, %28, %cst_23 {dimension_numbers = #tpu.dot_dimension_numbers<[1], [0], [0], [1], [0, 0, 1, 1], [], []>} : vector<32x128xbf16>, vector<128x32xbf16>, vector<32x32xf32> -> vector<32x32xf32>
    %30 = arith.addf %17, %29 : vector<32x32xf32>
    %c7 = arith.constant 7 : index
    %c0_24 = arith.constant 0 : index
    %c0_25 = arith.constant 0 : index
    %31 = vector.load %arg2[%c7, %c0_24, %c0_25] : memref<9x128x32xbf16, #tpu.memory_space<vmem>>, vector<1x128x32xbf16>
    %32 = vector.shape_cast %31 : vector<1x128x32xbf16> to vector<128x32xbf16>
    %cst_26 = arith.constant dense<0.000000e+00> : vector<32x32xf32>
    %33 = tpu.matmul %26, %32, %cst_26 {dimension_numbers = #tpu.dot_dimension_numbers<[1], [0], [0], [1], [0, 0, 1, 1], [], []>} : vector<32x128xbf16>, vector<128x32xbf16>, vector<32x32xf32> -> vector<32x32xf32>
    %34 = arith.addf %21, %33 : vector<32x32xf32>
    %c8 = arith.constant 8 : index
    %c0_27 = arith.constant 0 : index
    %c0_28 = arith.constant 0 : index
    %35 = vector.load %arg2[%c8, %c0_27, %c0_28] : memref<9x128x32xbf16, #tpu.memory_space<vmem>>, vector<1x128x32xbf16>
    %36 = vector.shape_cast %35 : vector<1x128x32xbf16> to vector<128x32xbf16>
    %cst_29 = arith.constant dense<0.000000e+00> : vector<32x32xf32>
    %37 = tpu.matmul %26, %36, %cst_29 {dimension_numbers = #tpu.dot_dimension_numbers<[1], [0], [0], [1], [0, 0, 1, 1], [], []>} : vector<32x128xbf16>, vector<128x32xbf16>, vector<32x32xf32> -> vector<32x32xf32>
    %38 = arith.addf %25, %37 : vector<32x32xf32>
    %39 = vector.shape_cast %30 : vector<32x32xf32> to vector<2x16x32xf32>
    %40 = vector.extract_strided_slice %39 {offsets = [0, 0, 0], sizes = [2, 2, 32], strides = [1, 1, 1]} : vector<2x16x32xf32> to vector<2x2x32xf32>
    %41 = vector.shape_cast %34 : vector<32x32xf32> to vector<2x16x32xf32>
    %42 = vector.extract_strided_slice %41 {offsets = [0, 1, 0], sizes = [2, 2, 32], strides = [1, 1, 1]} : vector<2x16x32xf32> to vector<2x2x32xf32>
    %43 = arith.addf %40, %42 : vector<2x2x32xf32>
    %44 = vector.shape_cast %38 : vector<32x32xf32> to vector<2x16x32xf32>
    %45 = vector.extract_strided_slice %44 {offsets = [0, 2, 0], sizes = [2, 2, 32], strides = [1, 1, 1]} : vector<2x16x32xf32> to vector<2x2x32xf32>
    %46 = arith.addf %43, %45 : vector<2x2x32xf32>
    %47 = vector.shape_cast %46 : vector<2x2x32xf32> to vector<1x2x2x32xf32>
    %c0_30 = arith.constant 0 : index
    %c0_31 = arith.constant 0 : index
    %c0_32 = arith.constant 0 : index
    %c0_33 = arith.constant 0 : index
    %48 = vector.load %arg3[%c0_30, %c0_31, %c0_32, %c0_33] : memref<1x2x2x32xf32, #tpu.memory_space<vmem>>, vector<1x2x2x32xf32>
    tpu.vector_store %arg3[%c0_30, %c0_31, %c0_32, %c0_33], %47 {strides = array<i32>} : memref<1x2x2x32xf32, #tpu.memory_space<vmem>>, vector<1x2x2x32xf32>,
    return
  }
  func.func @transform_0(%arg0: i32) -> (i32, i32, i32, i32) {
    %c0_i32 = arith.constant 0 : i32
    %c0_i32_0 = arith.constant 0 : i32
    %c0_i32_1 = arith.constant 0 : i32
    %c0_i32_2 = arith.constant 0 : i32
    return %arg0, %c0_i32, %c0_i32_0, %c0_i32_1 : i32, i32, i32, i32
  }
  func.func @transform_1(%arg0: i32) -> (i32, i32, i32) {
    %c0_i32 = arith.constant 0 : i32
    %c0_i32_0 = arith.constant 0 : i32
    %c0_i32_1 = arith.constant 0 : i32
    %c0_i32_2 = arith.constant 0 : i32
    return %c0_i32, %c0_i32_0, %c0_i32_1 : i32, i32, i32
  }
  func.func @transform_2(%arg0: i32) -> (i32, i32, i32, i32) {
    %c0_i32 = arith.constant 0 : i32
    %c0_i32_0 = arith.constant 0 : i32
    %c0_i32_1 = arith.constant 0 : i32
    %c0_i32_2 = arith.constant 0 : i32
    return %arg0, %c0_i32, %c0_i32_0, %c0_i32_1 : i32, i32, i32, i32
  }
}

module attributes {stable_mosaic.version = 11 : i64} {
  func.func @_mm_kernel(%arg0: i32, %arg1: i32, %arg2: i32, %arg3: memref<8x128xf32, #tpu.memory_space<vmem>>, %arg4: memref<128x128xbf16, #tpu.memory_space<vmem>>, %arg5: memref<1x128xf32, #tpu.memory_space<vmem>>, %arg6: memref<1x128xf32, #tpu.memory_space<vmem>>, %arg7: memref<1x128xf32, #tpu.memory_space<vmem>>, %arg8: memref<8x128xbf16, #tpu.memory_space<vmem>>, %arg9: memref<8x128xf32, #tpu.memory_space<vmem>>) attributes {dimension_semantics = [#tpu.dimension_semantics<parallel>, #tpu.dimension_semantics<parallel>, #tpu.dimension_semantics<arbitrary>], iteration_bounds = array<i64: 1, 1, 1>, scalar_prefetch = 0 : i64, scratch_operands = 1 : i64, tpu.core_type = #tpu.core_type<tc>, window_params = [{transform_indices = @transform_0, window_bounds = array<i64: 8, 128>}, {transform_indices = @transform_1, window_bounds = array<i64: 128, 128>}, {transform_indices = @transform_2, window_bounds = array<i64: 1, 128>}, {transform_indices = @transform_3, window_bounds = array<i64: 1, 128>}, {transform_indices = @transform_4, window_bounds = array<i64: 1, 128>}, {transform_indices = @transform_5, window_bounds = array<i64: 8, 128>}]} {
    %c0_i32 = arith.constant 0 : i32
    %0 = arith.cmpi eq, %arg2, %c0_i32 : i32
    %1 = arith.extui %0 : i1 to i32
    %c0_i32_0 = arith.constant 0 : i32
    %2 = arith.cmpi ne, %1, %c0_i32_0 : i32
    scf.if %2 {
      %cst_15 = arith.constant 0.000000e+00 : f32
      %21 = vector.broadcast %cst_15 : f32 to vector<8x128xf32>
      %c0_16 = arith.constant 0 : index
      %c0_17 = arith.constant 0 : index
      %22 = vector.load %arg9[%c0_16, %c0_17] : memref<8x128xf32, #tpu.memory_space<vmem>>, vector<8x128xf32>
      tpu.vector_store %arg9[%c0_16, %c0_17], %21 {strides = array<i32>} : memref<8x128xf32, #tpu.memory_space<vmem>>, vector<8x128xf32>,
    } else {
    }
    %c0 = arith.constant 0 : index
    %c0_1 = arith.constant 0 : index
    %3 = vector.load %arg3[%c0, %c0_1] : memref<8x128xf32, #tpu.memory_space<vmem>>, vector<8x128xf32>
    %c0_2 = arith.constant 0 : index
    %c0_3 = arith.constant 0 : index
    %4 = vector.load %arg5[%c0_2, %c0_3] : memref<1x128xf32, #tpu.memory_space<vmem>>, vector<1x128xf32>
    %5 = vector.broadcast %4 : vector<1x128xf32> to vector<8x128xf32>
    %6 = arith.mulf %3, %5 : vector<8x128xf32>
    %c0_4 = arith.constant 0 : index
    %c0_5 = arith.constant 0 : index
    %7 = vector.load %arg6[%c0_4, %c0_5] : memref<1x128xf32, #tpu.memory_space<vmem>>, vector<1x128xf32>
    %8 = vector.broadcast %7 : vector<1x128xf32> to vector<8x128xf32>
    %9 = arith.addf %6, %8 : vector<8x128xf32>
    %cst = arith.constant 0.000000e+00 : f32
    %10 = vector.broadcast %cst : f32 to vector<8x128xf32>
    %11 = arith.maximumf %9, %10 : vector<8x128xf32>
    %12 = arith.truncf %11 : vector<8x128xf32> to vector<8x128xbf16>
    %c0_6 = arith.constant 0 : index
    %c0_7 = arith.constant 0 : index
    %13 = vector.load %arg9[%c0_6, %c0_7] : memref<8x128xf32, #tpu.memory_space<vmem>>, vector<8x128xf32>
    %c0_8 = arith.constant 0 : index
    %c0_9 = arith.constant 0 : index
    %14 = vector.load %arg4[%c0_8, %c0_9] : memref<128x128xbf16, #tpu.memory_space<vmem>>, vector<128x128xbf16>
    %cst_10 = arith.constant dense<0.000000e+00> : vector<8x128xf32>
    %15 = tpu.matmul %12, %14, %cst_10 {dimension_numbers = #tpu.dot_dimension_numbers<[1], [0], [0], [1], [0, 0, 1, 1], [], []>} : vector<8x128xbf16>, vector<128x128xbf16>, vector<8x128xf32> -> vector<8x128xf32>
    %16 = arith.addf %13, %15 : vector<8x128xf32>
    %c0_11 = arith.constant 0 : index
    %c0_12 = arith.constant 0 : index
    %17 = vector.load %arg9[%c0_11, %c0_12] : memref<8x128xf32, #tpu.memory_space<vmem>>, vector<8x128xf32>
    tpu.vector_store %arg9[%c0_11, %c0_12], %16 {strides = array<i32>} : memref<8x128xf32, #tpu.memory_space<vmem>>, vector<8x128xf32>,
    %c0_i32_13 = arith.constant 0 : i32
    %18 = arith.cmpi eq, %arg2, %c0_i32_13 : i32
    %19 = arith.extui %18 : i1 to i32
    %c0_i32_14 = arith.constant 0 : i32
    %20 = arith.cmpi ne, %19, %c0_i32_14 : i32
    scf.if %20 {
      %c0_15 = arith.constant 0 : index
      %c0_16 = arith.constant 0 : index
      %21 = vector.load %arg9[%c0_15, %c0_16] : memref<8x128xf32, #tpu.memory_space<vmem>>, vector<8x128xf32>
      %c0_17 = arith.constant 0 : index
      %c0_18 = arith.constant 0 : index
      %22 = vector.load %arg7[%c0_17, %c0_18] : memref<1x128xf32, #tpu.memory_space<vmem>>, vector<1x128xf32>
      %23 = vector.broadcast %22 : vector<1x128xf32> to vector<8x128xf32>
      %24 = arith.addf %21, %23 : vector<8x128xf32>
      %cst_19 = arith.constant 0.000000e+00 : f32
      %25 = vector.broadcast %cst_19 : f32 to vector<8x128xf32>
      %26 = arith.maximumf %24, %25 : vector<8x128xf32>
      %27 = arith.truncf %26 : vector<8x128xf32> to vector<8x128xbf16>
      %c0_20 = arith.constant 0 : index
      %c0_21 = arith.constant 0 : index
      %28 = vector.load %arg8[%c0_20, %c0_21] : memref<8x128xbf16, #tpu.memory_space<vmem>>, vector<8x128xbf16>
      tpu.vector_store %arg8[%c0_20, %c0_21], %27 {strides = array<i32>} : memref<8x128xbf16, #tpu.memory_space<vmem>>, vector<8x128xbf16>,
    } else {
    }
    return
  }
  func.func @transform_0(%arg0: i32, %arg1: i32, %arg2: i32) -> (i32, i32) {
    %c0_i32 = arith.constant 0 : i32
    return %arg0, %arg2 : i32, i32
  }
  func.func @transform_1(%arg0: i32, %arg1: i32, %arg2: i32) -> (i32, i32) {
    %c0_i32 = arith.constant 0 : i32
    return %arg2, %arg1 : i32, i32
  }
  func.func @transform_2(%arg0: i32, %arg1: i32, %arg2: i32) -> (i32, i32) {
    %c0_i32 = arith.constant 0 : i32
    %c0_i32_0 = arith.constant 0 : i32
    return %c0_i32, %arg2 : i32, i32
  }
  func.func @transform_3(%arg0: i32, %arg1: i32, %arg2: i32) -> (i32, i32) {
    %c0_i32 = arith.constant 0 : i32
    %c0_i32_0 = arith.constant 0 : i32
    return %c0_i32, %arg2 : i32, i32
  }
  func.func @transform_4(%arg0: i32, %arg1: i32, %arg2: i32) -> (i32, i32) {
    %c0_i32 = arith.constant 0 : i32
    %c0_i32_0 = arith.constant 0 : i32
    return %c0_i32, %arg1 : i32, i32
  }
  func.func @transform_5(%arg0: i32, %arg1: i32, %arg2: i32) -> (i32, i32) {
    %c0_i32 = arith.constant 0 : i32
    return %arg0, %arg1 : i32, i32
  }
}

module attributes {stable_mosaic.version = 11 : i64} {
  func.func @_head_kernel(%arg0: i32, %arg1: memref<1x4x128xf32, #tpu.memory_space<vmem>>, %arg2: memref<1x1x128xf32, #tpu.memory_space<vmem>>, %arg3: memref<1x1x128xf32, #tpu.memory_space<vmem>>, %arg4: memref<128x128xf32, #tpu.memory_space<vmem>>, %arg5: memref<1x128xf32, #tpu.memory_space<vmem>>, %arg6: memref<1x4x128xf32, #tpu.memory_space<vmem>>, %arg7: memref<1x1x128xf32, #tpu.memory_space<vmem>>, %arg8: memref<1x1x128xf32, #tpu.memory_space<vmem>>) attributes {dimension_semantics = [#tpu.dimension_semantics<parallel>], iteration_bounds = array<i64: 2>, scalar_prefetch = 0 : i64, scratch_operands = 0 : i64, tpu.core_type = #tpu.core_type<tc>, window_params = [{transform_indices = @transform_0, window_bounds = array<i64: 1, 4, 128>}, {pipeline_mode = #tpu.pipeline_mode<synchronous>, transform_indices = @transform_1, window_bounds = array<i64: 1, 1, 128>}, {pipeline_mode = #tpu.pipeline_mode<synchronous>, transform_indices = @transform_2, window_bounds = array<i64: 1, 1, 128>}, {pipeline_mode = #tpu.pipeline_mode<synchronous>, transform_indices = @transform_3, window_bounds = array<i64: 128, 128>}, {pipeline_mode = #tpu.pipeline_mode<synchronous>, transform_indices = @transform_4, window_bounds = array<i64: 1, 128>}, {transform_indices = @transform_5, window_bounds = array<i64: 1, 4, 128>}, {transform_indices = @transform_6, window_bounds = array<i64: 1, 1, 128>}, {transform_indices = @transform_7, window_bounds = array<i64: 1, 1, 128>}]} {
    %c0 = arith.constant 0 : index
    %c0_0 = arith.constant 0 : index
    %c0_1 = arith.constant 0 : index
    %0 = vector.load %arg1[%c0, %c0_0, %c0_1] : memref<1x4x128xf32, #tpu.memory_space<vmem>>, vector<1x4x128xf32>
    %c0_2 = arith.constant 0 : index
    %c0_3 = arith.constant 0 : index
    %c0_4 = arith.constant 0 : index
    %1 = vector.load %arg2[%c0_2, %c0_3, %c0_4] : memref<1x1x128xf32, #tpu.memory_space<vmem>>, vector<1x1x128xf32>
    %2 = vector.broadcast %1 : vector<1x1x128xf32> to vector<1x4x128xf32>
    %3 = arith.mulf %0, %2 : vector<1x4x128xf32>
    %c0_5 = arith.constant 0 : index
    %c0_6 = arith.constant 0 : index
    %c0_7 = arith.constant 0 : index
    %4 = vector.load %arg3[%c0_5, %c0_6, %c0_7] : memref<1x1x128xf32, #tpu.memory_space<vmem>>, vector<1x1x128xf32>
    %5 = vector.broadcast %4 : vector<1x1x128xf32> to vector<1x4x128xf32>
    %6 = arith.addf %3, %5 : vector<1x4x128xf32>
    %c0_8 = arith.constant 0 : index
    %c0_9 = arith.constant 0 : index
    %c0_10 = arith.constant 0 : index
    %7 = vector.load %arg6[%c0_8, %c0_9, %c0_10] : memref<1x4x128xf32, #tpu.memory_space<vmem>>, vector<1x4x128xf32>
    tpu.vector_store %arg6[%c0_8, %c0_9, %c0_10], %6 {strides = array<i32>} : memref<1x4x128xf32, #tpu.memory_space<vmem>>, vector<1x4x128xf32>,
    %cst = arith.constant dense<0.000000e+00> : vector<1x128xf32>
    %8 = vector.multi_reduction <add>, %6, %cst [1] : vector<1x4x128xf32> to vector<1x128xf32>
    %cst_11 = arith.constant 4.000000e+00 : f32
    %9 = vector.broadcast %cst_11 : f32 to vector<1x128xf32>
    %10 = arith.divf %8, %9 : vector<1x128xf32>
    %c0_12 = arith.constant 0 : index
    %c0_13 = arith.constant 0 : index
    %11 = vector.load %arg4[%c0_12, %c0_13] : memref<128x128xf32, #tpu.memory_space<vmem>>, vector<128x128xf32>
    %cst_14 = arith.constant dense<0.000000e+00> : vector<1x128xf32>
    %12 = tpu.matmul %10, %11, %cst_14 {dimension_numbers = #tpu.dot_dimension_numbers<[1], [0], [0], [1], [0, 0, 1, 1], [], []>} : vector<1x128xf32>, vector<128x128xf32>, vector<1x128xf32> -> vector<1x128xf32>
    %c0_15 = arith.constant 0 : index
    %c0_16 = arith.constant 0 : index
    %13 = vector.load %arg5[%c0_15, %c0_16] : memref<1x128xf32, #tpu.memory_space<vmem>>, vector<1x128xf32>
    %14 = arith.addf %12, %13 : vector<1x128xf32>
    %15 = vector.shape_cast %14 : vector<1x128xf32> to vector<1x1x128xf32>
    %c0_17 = arith.constant 0 : index
    %c0_18 = arith.constant 0 : index
    %c0_19 = arith.constant 0 : index
    %16 = vector.load %arg7[%c0_17, %c0_18, %c0_19] : memref<1x1x128xf32, #tpu.memory_space<vmem>>, vector<1x1x128xf32>
    tpu.vector_store %arg7[%c0_17, %c0_18, %c0_19], %15 {strides = array<i32>} : memref<1x1x128xf32, #tpu.memory_space<vmem>>, vector<1x1x128xf32>,
    %cst_20 = arith.constant 0.000000e+00 : f32
    %17 = vector.broadcast %cst_20 : f32 to vector<1x128xf32>
    %18 = arith.cmpf oge, %14, %17 : vector<1x128xf32>
    %cst_21 = arith.constant 0.000000e+00 : f32
    %19 = vector.broadcast %cst_21 : f32 to vector<1x128xf32>
    %20 = arith.subf %19, %14 : vector<1x128xf32>
    %21 = arith.select %18, %20, %14 : vector<1x128xi1>, vector<1x128xf32>
    %22 = math.exp %21 : vector<1x128xf32>
    %cst_22 = arith.constant 0.000000e+00 : f32
    %23 = vector.broadcast %cst_22 : f32 to vector<1x128xf32>
    %24 = arith.cmpf oge, %14, %23 : vector<1x128xf32>
    %cst_23 = arith.constant 1.000000e+00 : f32
    %25 = vector.broadcast %cst_23 : f32 to vector<1x128xf32>
    %26 = arith.addf %25, %22 : vector<1x128xf32>
    %cst_24 = arith.constant 1.000000e+00 : f32
    %27 = vector.broadcast %cst_24 : f32 to vector<1x128xf32>
    %28 = arith.divf %27, %26 : vector<1x128xf32>
    %cst_25 = arith.constant 1.000000e+00 : f32
    %29 = vector.broadcast %cst_25 : f32 to vector<1x128xf32>
    %30 = arith.addf %29, %22 : vector<1x128xf32>
    %31 = arith.divf %22, %30 : vector<1x128xf32>
    %32 = arith.select %24, %28, %31 : vector<1x128xi1>, vector<1x128xf32>
    %33 = vector.shape_cast %32 : vector<1x128xf32> to vector<1x1x128xf32>
    %c0_26 = arith.constant 0 : index
    %c0_27 = arith.constant 0 : index
    %c0_28 = arith.constant 0 : index
    %34 = vector.load %arg8[%c0_26, %c0_27, %c0_28] : memref<1x1x128xf32, #tpu.memory_space<vmem>>, vector<1x1x128xf32>
    tpu.vector_store %arg8[%c0_26, %c0_27, %c0_28], %33 {strides = array<i32>} : memref<1x1x128xf32, #tpu.memory_space<vmem>>, vector<1x1x128xf32>,
    return
  }
  func.func @transform_0(%arg0: i32) -> (i32, i32, i32) {
    %c0_i32 = arith.constant 0 : i32
    %c0_i32_0 = arith.constant 0 : i32
    %c0_i32_1 = arith.constant 0 : i32
    return %arg0, %c0_i32, %c0_i32_0 : i32, i32, i32
  }
  func.func @transform_1(%arg0: i32) -> (i32, i32, i32) {
    %c0_i32 = arith.constant 0 : i32
    %c0_i32_0 = arith.constant 0 : i32
    %c0_i32_1 = arith.constant 0 : i32
    %c0_i32_2 = arith.constant 0 : i32
    return %c0_i32, %c0_i32_0, %c0_i32_1 : i32, i32, i32
  }
  func.func @transform_2(%arg0: i32) -> (i32, i32, i32) {
    %c0_i32 = arith.constant 0 : i32
    %c0_i32_0 = arith.constant 0 : i32
    %c0_i32_1 = arith.constant 0 : i32
    %c0_i32_2 = arith.constant 0 : i32
    return %c0_i32, %c0_i32_0, %c0_i32_1 : i32, i32, i32
  }
  func.func @transform_3(%arg0: i32) -> (i32, i32) {
    %c0_i32 = arith.constant 0 : i32
    %c0_i32_0 = arith.constant 0 : i32
    %c0_i32_1 = arith.constant 0 : i32
    return %c0_i32, %c0_i32_0 : i32, i32
  }
  func.func @transform_4(%arg0: i32) -> (i32, i32) {
    %c0_i32 = arith.constant 0 : i32
    %c0_i32_0 = arith.constant 0 : i32
    %c0_i32_1 = arith.constant 0 : i32
    return %c0_i32, %c0_i32_0 : i32, i32
  }
  func.func @transform_5(%arg0: i32) -> (i32, i32, i32) {
    %c0_i32 = arith.constant 0 : i32
    %c0_i32_0 = arith.constant 0 : i32
    %c0_i32_1 = arith.constant 0 : i32
    return %arg0, %c0_i32, %c0_i32_0 : i32, i32, i32
  }
  func.func @transform_6(%arg0: i32) -> (i32, i32, i32) {
    %c0_i32 = arith.constant 0 : i32
    %c0_i32_0 = arith.constant 0 : i32
    %c0_i32_1 = arith.constant 0 : i32
    return %arg0, %c0_i32, %c0_i32_0 : i32, i32, i32
  }
  func.func @transform_7(%arg0: i32) -> (i32, i32, i32) {
    %c0_i32 = arith.constant 0 : i32
    %c0_i32_0 = arith.constant 0 : i32
    %c0_i32_1 = arith.constant 0 : i32
    return %arg0, %c0_i32, %c0_i32_0 : i32, i32, i32
  }
}

</mosaic_0001>

<bundles_post_ra>
// kernel: heatmap_forward.21
= control target key start
LH: loop header
LB: loop body
LE: loop exit
PB: predicated region body
PF: predicated region fallthrough
CT: control target
= control target key end

     0   :  { %s1457_s12 = smov 0   ;;  %s1459_s13 = smov 0   ;;  %s1650_s0 = inlined_call_operand.vmem [shape: bf16[2048,256], index: 0, kind: input, shape index: {}]   ;;  %s1651_s1 = inlined_call_operand.vmem [shape: bf16[256,128], index: 1, kind: input, shape index: {}]   ;;  %s1652_s2 = inlined_call_operand.vmem [shape: f32[1,128], index: 2, kind: input, shape index: {}]   ;;  %s1653_s3 = inlined_call_operand.vmem [shape: f32[2048,128], index: 3, kind: output, shape index: {}]  }
   0x1   :  { %s1461_s14 = smov 0  }
   0x2 LB: > { %s32_s15 = sadd.s32 1, %s1431_s13  ;;  %p1139_p0 = scmp.ge.s32.totalorder %s1435_s14, 1  ;;  %s1435_s14 = sphi %s1461_s14, %s13_s14   ;;  %s1431_s13 = sphi %s1459_s13, %s1655_s13   ;;  %s1427_s12 = sphi %s1457_s12, %s1654_s12  }
   0x3   : > { %p34_p1 = scmp.ge.s32.totalorder %s32_s15, 8  ;;  %p191_p2 = scmp.lt.s32.totalorder %s1435_s14, 9 }
   0x5   : > { %s1657_s15 = smov (%p34_p1, %s32_s15), 0  ;;  %p192_p3 = pnand %p1139_p0, %p191_p2 }
   0x6   : > { %s1140_s18 = sshll.u32 (!%p192_p3), %s1427_s12, 5 }
   0x7   : > { %195 = sbr.rel (%p192_p3) target bundleno = 307 (0x133), region = 32  ;;  %p236_p4 = scmp.lt.s32.totalorder (!%p192_p3), %s1140_s18, 255 }
   0xc   : > { %v1349_v0 = vld [vmem:[%s1651_s1 + $0x78] sm:$0xff]   ;;  %v1351_v2 = vld [vmem:[%s1651_s1 + $0x70] sm:$0xff]   ;;  %v1353_v4 = vld [vmem:[%s1651_s1 + $0x68] sm:$0xff]   ;;  %s1659_s18 = smov (!%p236_p4, %s1140_s18), 255 }
   0xd   : > { %v1350_v1 = vld [vmem:[%s1651_s1 + $0x38] sm:$0xff]   ;;  %1197 = vmatprep.subr.bf16.mxu0 %v1349_v0  ;;  %1309 = vmatprep.subr.bf16.mxu1 %v1349_v0  ;;  %v1352_v3 = vld [vmem:[%s1651_s1 + $0x30] sm:$0xff]   ;;  %v1354_v5 = vld [vmem:[%s1651_s1 + $0x28] sm:$0xff]   ;;  %s1196_s6 = sshll.u32 %s1659_s18, 3 }
   0xe   : > { %1198 = vmatpush3.bf16.msra.mxu0 %v1350_v1  ;;  %1317 = vmatpush3.bf16.msra.mxu1 %v1350_v1  ;;  %v1355_v6 = vld [vmem:[%s1651_s1 + $0x60] sm:$0xff]   ;;  %v1357_v8 = vld [vmem:[%s1651_s1 + $0x58] sm:$0xff]   ;;  %s1510_s11 = scalar_lea.vmem %s1650_s0, %s1196_s6  ;;  %v1359_v10 = vld [vmem:[%s1651_s1 + $0x50] sm:$0xff]   ;;  %s1577_s8 = scalar_lea.vmem %s1653_s3, %s1196_s6 }
   0xf   : > { %1199 = vmatprep.subr.bf16.mxu0 %v1351_v2  ;;  %1310 = vmatprep.subr.bf16.mxu1 %v1351_v2  ;;  %v1356_v7 = vld [vmem:[%s1651_s1 + $0x20] sm:$0xff]   ;;  %v1358_v9 = vld [vmem:[%s1651_s1 + $0x18] sm:$0xff]   ;;  %v1360_v13 = vld [vmem:[%s1651_s1 + $0x10] sm:$0xff]  }
  0x10   : > { %v1367_v11 = vld [vmem:[%s1510_s11 + $0x4] ss:$8 sps:$4 sm:$0xff]   ;;  %v1365_v18 = vld [vmem:[%s1510_s11] ss:$8 sps:$4 sm:$0xff]   ;;  %v1371_v20 = vld [vmem:[%s1510_s11 + $0x14] ss:$8 sps:$4 sm:$0xff]  }
  0x11   : > { %v1370_v12 = vld [vmem:[%s1510_s11 + $0x84] ss:$8 sps:$4 sm:$0xff]   ;;  %688 = vmatprep.mubr.bf16.mxu0 %v1367_v11  ;;  %v1368_v19 = vld [vmem:[%s1510_s11 + $0x80] ss:$8 sps:$4 sm:$0xff]   ;;  %v1373_v21 = vld [vmem:[%s1510_s11 + $0x94] ss:$8 sps:$4 sm:$0xff]  }
  0x12   : > { %1200 = vmatpush3.bf16.msra.mxu0 %v1352_v3  ;;  %1318 = vmatpush3.bf16.msra.mxu1 %v1352_v3  ;;  %v1361_v14 = vld [vmem:[%s1651_s1 + $0x48] sm:$0xff]   ;;  %v1363_v16 = vld [vmem:[%s1651_s1 + $0x40] sm:$0xff]   ;;  %v1375_v22 = vld [vmem:[%s1510_s11 + $0x10] ss:$8 sps:$4 sm:$0xff]  }
  0x13   : > { %1201 = vmatprep.subr.bf16.mxu0 %v1353_v4  ;;  %1311 = vmatprep.subr.bf16.mxu1 %v1353_v4  ;;  %v1362_v15 = vld [vmem:[%s1651_s1 + $0x8] sm:$0xff]   ;;  %v1364_v17 = vld [vmem:[%s1651_s1] sm:$0xff]   ;;  %v1376_v23 = vld [vmem:[%s1510_s11 + $0x90] ss:$8 sps:$4 sm:$0xff]  }
  0x14   : > { %752 = vmatprep.mubr.bf16.mxu1 %v1370_v12  ;;  %v1377_v24 = vld [vmem:[%s1510_s11 + $0x24] ss:$8 sps:$4 sm:$0xff]   ;;  %v1381_v26 = vld [vmem:[%s1510_s11 + $0x20] ss:$8 sps:$4 sm:$0xff]   ;;  %v1383_v28 = vld [vmem:[%s1510_s11 + $0x34] ss:$8 sps:$4 sm:$0xff]  }
  0x15   : > { %v1379_v25 = vld [vmem:[%s1510_s11 + $0xa4] ss:$8 sps:$4 sm:$0xff]   ;;  %v1382_v27 = vld [vmem:[%s1510_s11 + $0xa0] ss:$8 sps:$4 sm:$0xff]   ;;  %v1385_v29 = vld [vmem:[%s1510_s11 + $0xb4] ss:$8 sps:$4 sm:$0xff]  }
  0x16   : > { %1202 = vmatpush3.bf16.msra.mxu0 %v1354_v5  ;;  %1319 = vmatpush3.bf16.msra.mxu1 %v1354_v5  ;;  %v1387_v30 = vld [vmem:[%s1510_s11 + $0x30] ss:$8 sps:$4 sm:$0xff]   ;;  %v1389_v32 = vld [vmem:[%s1510_s11 + $0x44] ss:$8 sps:$4 sm:$0xff]   ;;  %v1393_v34 = vld [vmem:[%s1510_s11 + $0x40] ss:$8 sps:$4 sm:$0xff]  }
  0x17   : > { %1203 = vmatprep.subr.bf16.mxu0 %v1355_v6  ;;  %1312 = vmatprep.subr.bf16.mxu1 %v1355_v6  ;;  %v1388_v31 = vld [vmem:[%s1510_s11 + $0xb0] ss:$8 sps:$4 sm:$0xff]   ;;  %v1391_v33 = vld [vmem:[%s1510_s11 + $0xc4] ss:$8 sps:$4 sm:$0xff]   ;;  %v1394_v35 = vld [vmem:[%s1510_s11 + $0xc0] ss:$8 sps:$4 sm:$0xff]  }
  0x18   : > { %v1395_v36 = vld [vmem:[%s1510_s11 + $0x54] ss:$8 sps:$4 sm:$0xff]   ;;  %v1399_v38 = vld [vmem:[%s1510_s11 + $0x50] ss:$8 sps:$4 sm:$0xff]   ;;  %v1401_v40 = vld [vmem:[%s1510_s11 + $0x64] ss:$8 sps:$4 sm:$0xff]  }
  0x19   : > { %v1397_v37 = vld [vmem:[%s1510_s11 + $0xd4] ss:$8 sps:$4 sm:$0xff]   ;;  %v1400_v39 = vld [vmem:[%s1510_s11 + $0xd0] ss:$8 sps:$4 sm:$0xff]   ;;  %v1403_v41 = vld [vmem:[%s1510_s11 + $0xe4] ss:$8 sps:$4 sm:$0xff]  }
  0x1a   : > { %1204 = vmatpush3.bf16.msra.mxu0 %v1356_v7  ;;  %1320 = vmatpush3.bf16.msra.mxu1 %v1356_v7  ;;  %v1405_v42 = vld [vmem:[%s1510_s11 + $0x60] ss:$8 sps:$4 sm:$0xff]   ;;  %v1407_v44 = vld [vmem:[%s1510_s11 + $0x74] ss:$8 sps:$4 sm:$0xff]   ;;  %v1411_v46 = vld [vmem:[%s1510_s11 + $0x70] ss:$8 sps:$4 sm:$0xff]  }
  0x1b   : > { %1205 = vmatprep.subr.bf16.mxu0 %v1357_v8  ;;  %1313 = vmatprep.subr.bf16.mxu1 %v1357_v8  ;;  %v1406_v43 = vld [vmem:[%s1510_s11 + $0xe0] ss:$8 sps:$4 sm:$0xff]   ;;  %v1409_v45 = vld [vmem:[%s1510_s11 + $0xf4] ss:$8 sps:$4 sm:$0xff]   ;;  %v1412_v47 = vld [vmem:[%s1510_s11 + $0xf0] ss:$8 sps:$4 sm:$0xff]  }
  0x1c   : > { %v1568_v51 = vld [vmem:[%s1652_s2] ss:$0 sm:$0xff] }
  0x1e   : > { %1206 = vmatpush3.bf16.msra.mxu0 %v1358_v9  ;;  %1321 = vmatpush3.bf16.msra.mxu1 %v1358_v9 }
  0x1f   : > { %1207 = vmatprep.subr.bf16.mxu0 %v1359_v10  ;;  %1314 = vmatprep.subr.bf16.mxu1 %v1359_v10 }
  0x22   : > { %1208 = vmatpush3.bf16.msra.mxu0 %v1360_v13  ;;  %1322 = vmatpush3.bf16.msra.mxu1 %v1360_v13 }
  0x23   : > { %1209 = vmatprep.subr.bf16.mxu0 %v1361_v14  ;;  %1315 = vmatprep.subr.bf16.mxu1 %v1361_v14 }
  0x26   : > { %1210 = vmatpush3.bf16.msra.mxu0 %v1362_v15  ;;  %1323 = vmatpush3.bf16.msra.mxu1 %v1362_v15 }
  0x27   : > { %1211 = vmatprep.subr.bf16.mxu0 %v1363_v16  ;;  %1316 = vmatprep.subr.bf16.mxu1 %v1363_v16 }
  0x2a   : > { %1212 = vmatpush3.bf16.msra.mxu0 %v1364_v17  ;;  %1324 = vmatpush3.bf16.msra.mxu1 %v1364_v17 }
  0x2d   : > { %689 = vmatmul.mubr.bf16.vlgmr.msra.gmra.mxu0 %v1365_v18  ;;  %753 = vmatmul.mubr.bf16.vlgmr.msra.gmra.mxu1 %v1368_v19 }
  0x2e   : > { %696 = vmatprep.mubr.bf16.mxu0 %v1371_v20  ;;  %760 = vmatprep.mubr.bf16.mxu1 %v1373_v21 }
  0x35   : > { %697 = vmatmul.mubr.bf16.gmra.mxu0 %v1375_v22  ;;  %761 = vmatmul.mubr.bf16.gmra.mxu1 %v1376_v23 }
  0x36   : > { %704 = vmatprep.mubr.bf16.mxu0 %v1377_v24  ;;  %768 = vmatprep.mubr.bf16.mxu1 %v1379_v25 }
  0x3d   : > { %705 = vmatmul.mubr.bf16.gmra.mxu0 %v1381_v26  ;;  %769 = vmatmul.mubr.bf16.gmra.mxu1 %v1382_v27 }
  0x3e   : > { %712 = vmatprep.mubr.bf16.mxu0 %v1383_v28  ;;  %776 = vmatprep.mubr.bf16.mxu1 %v1385_v29 }
  0x45   : > { %713 = vmatmul.mubr.bf16.gmra.mxu0 %v1387_v30  ;;  %777 = vmatmul.mubr.bf16.gmra.mxu1 %v1388_v31 }
  0x46   : > { %720 = vmatprep.mubr.bf16.mxu0 %v1389_v32  ;;  %784 = vmatprep.mubr.bf16.mxu1 %v1391_v33 }
  0x4d   : > { %721 = vmatmul.mubr.bf16.gmra.mxu0 %v1393_v34  ;;  %785 = vmatmul.mubr.bf16.gmra.mxu1 %v1394_v35 }
  0x4e   : > { %728 = vmatprep.mubr.bf16.mxu0 %v1395_v36  ;;  %792 = vmatprep.mubr.bf16.mxu1 %v1397_v37 }
  0x55   : > { %729 = vmatmul.mubr.bf16.gmra.mxu0 %v1399_v38  ;;  %793 = vmatmul.mubr.bf16.gmra.mxu1 %v1400_v39 }
  0x56   : > { %736 = vmatprep.mubr.bf16.mxu0 %v1401_v40  ;;  %800 = vmatprep.mubr.bf16.mxu1 %v1403_v41 }
  0x5d   : > { %737 = vmatmul.mubr.bf16.gmra.mxu0 %v1405_v42  ;;  %801 = vmatmul.mubr.bf16.gmra.mxu1 %v1406_v43 }
  0x5e   : > { %744 = vmatprep.mubr.bf16.mxu0 %v1407_v44  ;;  %808 = vmatprep.mubr.bf16.mxu1 %v1409_v45 }
  0x65   : > { %745 = vmatmul.mubr.bf16.gmra.mxu0 %v1411_v46  ;;  %809 = vmatmul.mubr.bf16.gmra.mxu1 %v1412_v47 }
  0xed   : > { %v1213_v48 = vpop.f32.mrf.mxu0  ;;  %v1261_v49 = vpop.f32.mrf.mxu1 }
  0xef   : > { %v1214_v50 = vpop.f32.mrf.mxu0  ;;  %v1262_v52 = vpop.f32.mrf.mxu1 }
  0xf0   : > { %v1215_v53 = vadd.f32 %v1214_v50, %v1213_v48  ;;  %v1263_v54 = vadd.f32 %v1262_v52, %v1261_v49 }
  0xf1   : > { %v1216_v55 = vpop.f32.mrf.mxu0  ;;  %v1264_v56 = vpop.f32.mrf.mxu1 }
  0xf2   : > { %v923_v57 = vadd.f32 %v1215_v53, %v1568_v51  ;;  %v939_v58 = vadd.f32 %v1263_v54, %v1568_v51 }
  0xf3   : > { %v1217_v59 = vpop.f32.mrf.mxu0  ;;  %v1265_v60 = vpop.f32.mrf.mxu1 }
  0xf4   : > { %v955_v61 = vmax.f32 %v923_v57, 0.0  ;;  %v971_v62 = vmax.f32 %v939_v58, 0.0  ;;  %v1218_v63 = vadd.f32 %v1217_v59, %v1216_v55  ;;  %v1266_v0 = vadd.f32 %v1265_v60, %v1264_v56 }
  0xf5   : > { %v1219_v1 = vpop.f32.mrf.mxu0  ;;  %v1267_v2 = vpop.f32.mrf.mxu1 }
  0xf6   : > { %987 = vst [vmem:[%s1577_s8] sm:$0xff] %v955_v61  ;;  %1003 = vst [vmem:[%s1577_s8 + $0x80] sm:$0xff] %v971_v62  ;;  %v924_v3 = vadd.f32 %v1218_v63, %v1568_v51  ;;  %v940_v4 = vadd.f32 %v1266_v0, %v1568_v51 }
  0xf7   : > { %v1220_v5 = vpop.f32.mrf.mxu0  ;;  %v1268_v6 = vpop.f32.mrf.mxu1 }
  0xf8   : > { %v956_v7 = vmax.f32 %v924_v3, 0.0  ;;  %v972_v8 = vmax.f32 %v940_v4, 0.0  ;;  %v1221_v9 = vadd.f32 %v1220_v5, %v1219_v1  ;;  %v1269_v10 = vadd.f32 %v1268_v6, %v1267_v2 }
  0xf9   : > { %v1222_v11 = vpop.f32.mrf.mxu0  ;;  %v1270_v12 = vpop.f32.mrf.mxu1 }
  0xfa   : > { %988 = vst [vmem:[%s1577_s8 + $0x8] sm:$0xff] %v956_v7  ;;  %1004 = vst [vmem:[%s1577_s8 + $0x88] sm:$0xff] %v972_v8  ;;  %v925_v13 = vadd.f32 %v1221_v9, %v1568_v51  ;;  %v941_v14 = vadd.f32 %v1269_v10, %v1568_v51 }
  0xfb   : > { %v1223_v15 = vpop.f32.mrf.mxu0  ;;  %v1271_v16 = vpop.f32.mrf.mxu1 }
  0xfc   : > { %v957_v17 = vmax.f32 %v925_v13, 0.0  ;;  %v973_v18 = vmax.f32 %v941_v14, 0.0  ;;  %v1224_v19 = vadd.f32 %v1223_v15, %v1222_v11  ;;  %v1272_v20 = vadd.f32 %v1271_v16, %v1270_v12 }
  0xfd   : > { %v1225_v21 = vpop.f32.mrf.mxu0  ;;  %v1273_v22 = vpop.f32.mrf.mxu1 }
  0xfe   : > { %989 = vst [vmem:[%s1577_s8 + $0x10] sm:$0xff] %v957_v17  ;;  %1005 = vst [vmem:[%s1577_s8 + $0x90] sm:$0xff] %v973_v18  ;;  %v926_v23 = vadd.f32 %v1224_v19, %v1568_v51  ;;  %v942_v24 = vadd.f32 %v1272_v20, %v1568_v51 }
  0xff   : > { %v1226_v25 = vpop.f32.mrf.mxu0  ;;  %v1274_v26 = vpop.f32.mrf.mxu1 }
 0x100   : > { %v958_v27 = vmax.f32 %v926_v23, 0.0  ;;  %v974_v28 = vmax.f32 %v942_v24, 0.0  ;;  %v1227_v29 = vadd.f32 %v1226_v25, %v1225_v21  ;;  %v1275_v30 = vadd.f32 %v1274_v26, %v1273_v22 }
 0x101   : > { %v1228_v31 = vpop.f32.mrf.mxu0  ;;  %v1276_v32 = vpop.f32.mrf.mxu1 }
 0x102   : > { %990 = vst [vmem:[%s1577_s8 + $0x18] sm:$0xff] %v958_v27  ;;  %1006 = vst [vmem:[%s1577_s8 + $0x98] sm:$0xff] %v974_v28  ;;  %v927_v33 = vadd.f32 %v1227_v29, %v1568_v51  ;;  %v943_v34 = vadd.f32 %v1275_v30, %v1568_v51 }
 0x103   : > { %v1229_v35 = vpop.f32.mrf.mxu0  ;;  %v1277_v36 = vpop.f32.mrf.mxu1 }
 0x104   : > { %v959_v37 = vmax.f32 %v927_v33, 0.0  ;;  %v975_v38 = vmax.f32 %v943_v34, 0.0  ;;  %v1230_v39 = vadd.f32 %v1229_v35, %v1228_v31  ;;  %v1278_v40 = vadd.f32 %v1277_v36, %v1276_v32 }
 0x105   : > { %v1231_v41 = vpop.f32.mrf.mxu0  ;;  %v1279_v42 = vpop.f32.mrf.mxu1 }
 0x106   : > { %991 = vst [vmem:[%s1577_s8 + $0x20] sm:$0xff] %v959_v37  ;;  %1007 = vst [vmem:[%s1577_s8 + $0xa0] sm:$0xff] %v975_v38  ;;  %v928_v43 = vadd.f32 %v1230_v39, %v1568_v51  ;;  %v944_v44 = vadd.f32 %v1278_v40, %v1568_v51 }
 0x107   : > { %v1232_v45 = vpop.f32.mrf.mxu0  ;;  %v1280_v46 = vpop.f32.mrf.mxu1 }
 0x108   : > { %v960_v47 = vmax.f32 %v928_v43, 0.0  ;;  %v976_v48 = vmax.f32 %v944_v44, 0.0  ;;  %v1233_v49 = vadd.f32 %v1232_v45, %v1231_v41  ;;  %v1281_v50 = vadd.f32 %v1280_v46, %v1279_v42 }
 0x109   : > { %v1234_v52 = vpop.f32.mrf.mxu0  ;;  %v1282_v53 = vpop.f32.mrf.mxu1 }
 0x10a   : > { %992 = vst [vmem:[%s1577_s8 + $0x28] sm:$0xff] %v960_v47  ;;  %1008 = vst [vmem:[%s1577_s8 + $0xa8] sm:$0xff] %v976_v48  ;;  %v929_v54 = vadd.f32 %v1233_v49, %v1568_v51  ;;  %v945_v55 = vadd.f32 %v1281_v50, %v1568_v51 }
 0x10b   : > { %v1235_v56 = vpop.f32.mrf.mxu0  ;;  %v1283_v57 = vpop.f32.mrf.mxu1 }
 0x10c   : > { %v961_v58 = vmax.f32 %v929_v54, 0.0  ;;  %v977_v59 = vmax.f32 %v945_v55, 0.0  ;;  %v1236_v60 = vadd.f32 %v1235_v56, %v1234_v52  ;;  %v1284_v61 = vadd.f32 %v1283_v57, %v1282_v53 }
 0x10d   : > { %v1237_v62 = vpop.f32.mrf.mxu0  ;;  %v1285_v63 = vpop.f32.mrf.mxu1 }
 0x10e   : > { %993 = vst [vmem:[%s1577_s8 + $0x30] sm:$0xff] %v961_v58  ;;  %1009 = vst [vmem:[%s1577_s8 + $0xb0] sm:$0xff] %v977_v59  ;;  %v930_v0 = vadd.f32 %v1236_v60, %v1568_v51  ;;  %v946_v1 = vadd.f32 %v1284_v61, %v1568_v51 }
 0x10f   : > { %v1238_v2 = vpop.f32.mrf.mxu0  ;;  %v1286_v3 = vpop.f32.mrf.mxu1 }
 0x110   : > { %v962_v4 = vmax.f32 %v930_v0, 0.0  ;;  %v978_v5 = vmax.f32 %v946_v1, 0.0  ;;  %v1239_v6 = vadd.f32 %v1238_v2, %v1237_v62  ;;  %v1287_v7 = vadd.f32 %v1286_v3, %v1285_v63 }
 0x111   : > { %v1240_v8 = vpop.f32.mrf.mxu0  ;;  %v1288_v9 = vpop.f32.mrf.mxu1 }
 0x112   : > { %994 = vst [vmem:[%s1577_s8 + $0x38] sm:$0xff] %v962_v4  ;;  %1010 = vst [vmem:[%s1577_s8 + $0xb8] sm:$0xff] %v978_v5  ;;  %v931_v10 = vadd.f32 %v1239_v6, %v1568_v51  ;;  %v947_v11 = vadd.f32 %v1287_v7, %v1568_v51 }
 0x113   : > { %v1241_v12 = vpop.f32.mrf.mxu0  ;;  %v1289_v13 = vpop.f32.mrf.mxu1 }
 0x114   : > { %v963_v14 = vmax.f32 %v931_v10, 0.0  ;;  %v979_v15 = vmax.f32 %v947_v11, 0.0  ;;  %v1242_v16 = vadd.f32 %v1241_v12, %v1240_v8  ;;  %v1290_v17 = vadd.f32 %v1289_v13, %v1288_v9 }
 0x115   : > { %v1243_v18 = vpop.f32.mrf.mxu0  ;;  %v1291_v19 = vpop.f32.mrf.mxu1 }
 0x116   : > { %995 = vst [vmem:[%s1577_s8 + $0x40] sm:$0xff] %v963_v14  ;;  %1011 = vst [vmem:[%s1577_s8 + $0xc0] sm:$0xff] %v979_v15  ;;  %v932_v20 = vadd.f32 %v1242_v16, %v1568_v51  ;;  %v948_v21 = vadd.f32 %v1290_v17, %v1568_v51 }
 0x117   : > { %v1244_v22 = vpop.f32.mrf.mxu0  ;;  %v1292_v23 = vpop.f32.mrf.mxu1 }
 0x118   : > { %v964_v24 = vmax.f32 %v932_v20, 0.0  ;;  %v980_v25 = vmax.f32 %v948_v21, 0.0  ;;  %v1245_v26 = vadd.f32 %v1244_v22, %v1243_v18  ;;  %v1293_v27 = vadd.f32 %v1292_v23, %v1291_v19 }
 0x119   : > { %v1246_v28 = vpop.f32.mrf.mxu0  ;;  %v1294_v29 = vpop.f32.mrf.mxu1 }
 0x11a   : > { %996 = vst [vmem:[%s1577_s8 + $0x48] sm:$0xff] %v964_v24  ;;  %1012 = vst [vmem:[%s1577_s8 + $0xc8] sm:$0xff] %v980_v25  ;;  %v933_v30 = vadd.f32 %v1245_v26, %v1568_v51  ;;  %v949_v31 = vadd.f32 %v1293_v27, %v1568_v51 }
 0x11b   : > { %v1247_v32 = vpop.f32.mrf.mxu0  ;;  %v1295_v33 = vpop.f32.mrf.mxu1 }
 0x11c   : > { %v965_v34 = vmax.f32 %v933_v30, 0.0  ;;  %v981_v35 = vmax.f32 %v949_v31, 0.0  ;;  %v1248_v36 = vadd.f32 %v1247_v32, %v1246_v28  ;;  %v1296_v37 = vadd.f32 %v1295_v33, %v1294_v29 }
 0x11d   : > { %v1249_v38 = vpop.f32.mrf.mxu0  ;;  %v1297_v39 = vpop.f32.mrf.mxu1 }
 0x11e   : > { %997 = vst [vmem:[%s1577_s8 + $0x50] sm:$0xff] %v965_v34  ;;  %1013 = vst [vmem:[%s1577_s8 + $0xd0] sm:$0xff] %v981_v35  ;;  %v934_v40 = vadd.f32 %v1248_v36, %v1568_v51  ;;  %v950_v41 = vadd.f32 %v1296_v37, %v1568_v51 }
 0x11f   : > { %v1250_v42 = vpop.f32.mrf.mxu0  ;;  %v1298_v43 = vpop.f32.mrf.mxu1 }
 0x120   : > { %v966_v44 = vmax.f32 %v934_v40, 0.0  ;;  %v982_v45 = vmax.f32 %v950_v41, 0.0  ;;  %v1251_v46 = vadd.f32 %v1250_v42, %v1249_v38  ;;  %v1299_v47 = vadd.f32 %v1298_v43, %v1297_v39 }
 0x121   : > { %v1252_v48 = vpop.f32.mrf.mxu0  ;;  %v1300_v49 = vpop.f32.mrf.mxu1 }
 0x122   : > { %998 = vst [vmem:[%s1577_s8 + $0x58] sm:$0xff] %v966_v44  ;;  %1014 = vst [vmem:[%s1577_s8 + $0xd8] sm:$0xff] %v982_v45  ;;  %v935_v50 = vadd.f32 %v1251_v46, %v1568_v51  ;;  %v951_v52 = vadd.f32 %v1299_v47, %v1568_v51 }
 0x123   : > { %v1253_v53 = vpop.f32.mrf.mxu0  ;;  %v1301_v54 = vpop.f32.mrf.mxu1 }
 0x124   : > { %v967_v55 = vmax.f32 %v935_v50, 0.0  ;;  %v983_v56 = vmax.f32 %v951_v52, 0.0  ;;  %v1254_v57 = vadd.f32 %v1253_v53, %v1252_v48  ;;  %v1302_v58 = vadd.f32 %v1301_v54, %v1300_v49 }
 0x125   : > { %v1255_v59 = vpop.f32.mrf.mxu0  ;;  %v1303_v60 = vpop.f32.mrf.mxu1 }
 0x126   : > { %999 = vst [vmem:[%s1577_s8 + $0x60] sm:$0xff] %v967_v55  ;;  %1015 = vst [vmem:[%s1577_s8 + $0xe0] sm:$0xff] %v983_v56  ;;  %v936_v61 = vadd.f32 %v1254_v57, %v1568_v51  ;;  %v952_v62 = vadd.f32 %v1302_v58, %v1568_v51 }
 0x127   : > { %v1256_v63 = vpop.f32.mrf.mxu0  ;;  %v1304_v0 = vpop.f32.mrf.mxu1 }
 0x128   : > { %v968_v1 = vmax.f32 %v936_v61, 0.0  ;;  %v984_v2 = vmax.f32 %v952_v62, 0.0  ;;  %v1257_v3 = vadd.f32 %v1256_v63, %v1255_v59  ;;  %v1305_v4 = vadd.f32 %v1304_v0, %v1303_v60 }
 0x129   : > { %v1258_v5 = vpop.f32.mrf.mxu0  ;;  %v1306_v6 = vpop.f32.mrf.mxu1 }
 0x12a   : > { %1000 = vst [vmem:[%s1577_s8 + $0x68] sm:$0xff] %v968_v1  ;;  %1016 = vst [vmem:[%s1577_s8 + $0xe8] sm:$0xff] %v984_v2  ;;  %v937_v7 = vadd.f32 %v1257_v3, %v1568_v51  ;;  %v953_v8 = vadd.f32 %v1305_v4, %v1568_v51 }
 0x12b   : > { %v1259_v9 = vpop.f32.mrf.mxu0  ;;  %v1307_v10 = vpop.f32.mrf.mxu1 }
 0x12c   : > { %v969_v11 = vmax.f32 %v937_v7, 0.0  ;;  %v985_v12 = vmax.f32 %v953_v8, 0.0  ;;  %v1260_v13 = vadd.f32 %v1259_v9, %v1258_v5  ;;  %v1308_v14 = vadd.f32 %v1307_v10, %v1306_v6 }
 0x12e   : > { %1001 = vst [vmem:[%s1577_s8 + $0x70] sm:$0xff] %v969_v11  ;;  %1017 = vst [vmem:[%s1577_s8 + $0xf0] sm:$0xff] %v985_v12  ;;  %v938_v15 = vadd.f32 %v1260_v13, %v1568_v51  ;;  %v954_v16 = vadd.f32 %v1308_v14, %v1568_v51 }
 0x130   : > { %v970_v17 = vmax.f32 %v938_v15, 0.0  ;;  %v986_v18 = vmax.f32 %v954_v16, 0.0 }
 0x132   : > { %1002 = vst [vmem:[%s1577_s8 + $0x78] sm:$0xff] %v970_v17  ;;  %1018 = vst [vmem:[%s1577_s8 + $0xf8] sm:$0xff] %v986_v18 }
 0x133 PF: > { %s13_s14 = sadd.s32 1, %s1435_s14   ;;  %s1654_s12 = smov %s1431_s13 }
 0x134   : > { %p10_p5 = scmp.ge.s32.totalorder %s13_s14, 10   ;;  %s1655_s13 = smov %s1657_s15 }
 0x136   :  { %12 = sbr.rel (!%p10_p5) target bundleno = 2 (0x2), region = 76 }

// kernel: heatmap_forward.22
= control target key start
LH: loop header
LB: loop body
LE: loop exit
PB: predicated region body
PF: predicated region fallthrough
CT: control target
= control target key end

     0   :  { %s1617_s18 = smov 0   ;;  %s1619_s19 = smov 0   ;;  %s1841_s0 = inlined_call_operand.vmem [shape: f32[512,128], index: 0, kind: input, shape index: {}]   ;;  %s1842_s1 = inlined_call_operand.vmem [shape: bf16[128,128], index: 1, kind: input, shape index: {}]   ;;  %s1843_s2 = inlined_call_operand.vmem [shape: f32[1,128], index: 2, kind: input, shape index: {}]   ;;  %s1844_s3 = inlined_call_operand.vmem [shape: f32[1,128], index: 3, kind: input, shape index: {}]   ;;  %s1845_s4 = inlined_call_operand.vmem [shape: f32[1,128], index: 4, kind: input, shape index: {}]   ;;  %s1846_s5 = inlined_call_operand.vmem [shape: bf16[512,128], index: 5, kind: output, shape index: {}]  }
   0x1   :  { %s1621_s20 = smov 0  }
   0x2 LB: > { %s34_s21 = sadd.s32 1, %s1581_s19  ;;  %p1266_p0 = scmp.ge.s32.totalorder %s1585_s20, 1  ;;  %s1585_s20 = sphi %s1621_s20, %s15_s20   ;;  %s1581_s19 = sphi %s1619_s19, %s1848_s19   ;;  %s1577_s18 = sphi %s1617_s18, %s1847_s18  }
   0x3   : > { %p36_p1 = scmp.ge.s32.totalorder %s34_s21, 2  ;;  %p254_p2 = scmp.lt.s32.totalorder %s1585_s20, 3 }
   0x5   : > { %s1850_s21 = smov (%p36_p1, %s34_s21), 0  ;;  %p255_p3 = pnand %p1266_p0, %p254_p2 }
   0x6   : > { %s1267_s24 = sshll.u32 (!%p255_p3), %s1577_s18, 5 }
   0x7   : > { %258 = sbr.rel (%p255_p3) target bundleno = 275 (0x113), region = 40  ;;  %p306_p4 = scmp.lt.s32.totalorder (!%p255_p3), %s1267_s24, 63 }
   0xc   : > { %v1555_v0 = vld [vmem:[%s1842_s1 + $0x38] sm:$0xff]   ;;  %v1556_v1 = vld [vmem:[%s1842_s1 + $0x30] sm:$0xff]   ;;  %s1852_s24 = smov (!%p306_p4, %s1267_s24), 63  ;;  %v1557_v2 = vld [vmem:[%s1842_s1 + $0x28] sm:$0xff]  }
   0xd   : > { %1467 = vmatprep.subr.bf16.mxu0 %v1555_v0  ;;  %1515 = vmatprep.subr.bf16.mxu1 %v1555_v0  ;;  %s1268_s29 = sshll.u32 %s1852_s24, 3  ;;  %v1558_v3 = vld [vmem:[%s1842_s1 + $0x20] sm:$0xff]   ;;  %v1559_v16 = vld [vmem:[%s1842_s1 + $0x18] sm:$0xff]   ;;  %v1560_v30 = vld [vmem:[%s1842_s1 + $0x10] sm:$0xff]   ;;  %s1270_s28 = sshll.u32 %s1852_s24, 2 }
   0xe   : > { %1468 = vmatpush3.bf16.msra.mxu0 %v1555_v0  ;;  %1523 = vmatpush3.bf16.msra.mxu1 %v1555_v0  ;;  %s1650_s7 = scalar_lea.vmem %s1841_s0, %s1268_s29  ;;  %v1660_v6 = vld [vmem:[%s1843_s2] ss:$0 sm:$0xff]  ;;  %v1561_v42 = vld [vmem:[%s1842_s1 + $0x8] sm:$0xff]   ;;  %s1790_s24 = scalar_lea.vmem %s1846_s5, %s1270_s28 }
   0xf   : > { %1469 = vmatprep.subr.bf16.mxu0 %v1556_v1  ;;  %1516 = vmatprep.subr.bf16.mxu1 %v1556_v1  ;;  %v378_v4 = vld [vmem:[%s1650_s7] sm:$0xff]  ;;  %v379_v5 = vld [vmem:[%s1650_s7 + $0x8] sm:$0xff]  ;;  %v380_v21 = vld [vmem:[%s1650_s7 + $0x10] sm:$0xff] }
  0x10   : > { %v417_v7 = vmul.f32 %v1660_v6, %v378_v4  ;;  %v418_v8 = vmul.f32 %v1660_v6, %v379_v5  ;;  %v1667_v9 = vld [vmem:[%s1844_s3] ss:$0 sm:$0xff]  ;;  %v395_v11 = vld [vmem:[%s1650_s7 + $0x88] sm:$0xff]  ;;  %v381_v24 = vld [vmem:[%s1650_s7 + $0x18] sm:$0xff]  ;;  %v419_v32 = vmul.f32 %v1660_v6, %v380_v21 }
  0x11   : > { %v394_v10 = vld [vmem:[%s1650_s7 + $0x80] sm:$0xff]  ;;  %v434_v13 = vmul.f32 %v1660_v6, %v395_v11  ;;  %v396_v25 = vld [vmem:[%s1650_s7 + $0x90] sm:$0xff]  ;;  %v397_v26 = vld [vmem:[%s1650_s7 + $0x98] sm:$0xff]  ;;  %v420_v35 = vmul.f32 %v1660_v6, %v381_v24 }
  0x12   : > { %1470 = vmatpush3.bf16.msra.mxu0 %v1556_v1  ;;  %1524 = vmatpush3.bf16.msra.mxu1 %v1556_v1  ;;  %v433_v12 = vmul.f32 %v1660_v6, %v394_v10  ;;  %v456_v14 = vadd.f32 %v1667_v9, %v417_v7  ;;  %v457_v15 = vadd.f32 %v1667_v9, %v418_v8  ;;  %v382_v28 = vld [vmem:[%s1650_s7 + $0x20] sm:$0xff]  ;;  %v383_v29 = vld [vmem:[%s1650_s7 + $0x28] sm:$0xff]  ;;  %v384_v44 = vld [vmem:[%s1650_s7 + $0x30] sm:$0xff] }
  0x13   : > { %1471 = vmatprep.subr.bf16.mxu0 %v1557_v2  ;;  %1517 = vmatprep.subr.bf16.mxu1 %v1557_v2  ;;  %v473_v18 = vadd.f32 %v1667_v9, %v434_v13  ;;  %v398_v33 = vld [vmem:[%s1650_s7 + $0xa0] sm:$0xff]  ;;  %v399_v34 = vld [vmem:[%s1650_s7 + $0xa8] sm:$0xff]  ;;  %v435_v36 = vmul.f32 %v1660_v6, %v396_v25  ;;  %v436_v37 = vmul.f32 %v1660_v6, %v397_v26  ;;  %v385_v48 = vld [vmem:[%s1650_s7 + $0x38] sm:$0xff] }
  0x14   : > { %v472_v17 = vadd.f32 %v1667_v9, %v433_v12  ;;  %v488_v19 = vmax.f32 %v456_v14, 0.0  ;;  %v489_v20 = vmax.f32 %v457_v15, 0.0  ;;  %v421_v38 = vmul.f32 %v1660_v6, %v382_v28  ;;  %v400_v49 = vld [vmem:[%s1650_s7 + $0xb0] sm:$0xff]  ;;  %v401_v50 = vld [vmem:[%s1650_s7 + $0xb8] sm:$0xff]  ;;  %v386_v53 = vld [vmem:[%s1650_s7 + $0x40] sm:$0xff] }
  0x15   : > { %v505_v23 = vmax.f32 %v473_v18, 0.0  ;;  %v422_v39 = vmul.f32 %v1660_v6, %v383_v29  ;;  %v437_v40 = vmul.f32 %v1660_v6, %v398_v33  ;;  %v438_v41 = vmul.f32 %v1660_v6, %v399_v34  ;;  %v387_v57 = vld [vmem:[%s1650_s7 + $0x48] sm:$0xff]  ;;  %v402_v58 = vld [vmem:[%s1650_s7 + $0xc0] sm:$0xff]  ;;  %v389_v25 = vld [vmem:[%s1650_s7 + $0x58] sm:$0xff] }
  0x16   : > { %1472 = vmatpush3.bf16.msra.mxu0 %v1557_v2  ;;  %1525 = vmatpush3.bf16.msra.mxu1 %v1557_v2  ;;  %v504_v22 = vmax.f32 %v472_v17, 0.0  ;;  %v520_v27 = vpack.c.bf16 %v489_v20, %v488_v19  ;;  %v458_v43 = vadd.f32 %v1667_v9, %v419_v32  ;;  %v459_v45 = vadd.f32 %v1667_v9, %v420_v35  ;;  %v403_v59 = vld [vmem:[%s1650_s7 + $0xc8] sm:$0xff]  ;;  %v1562_v60 = vld [vmem:[%s1842_s1] sm:$0xff]   ;;  %v388_v20 = vld [vmem:[%s1650_s7 + $0x50] sm:$0xff] }
  0x17   : > { %1473 = vmatprep.subr.bf16.mxu0 %v1558_v3  ;;  %1518 = vmatprep.subr.bf16.mxu1 %v1558_v3  ;;  %v474_v46 = vadd.f32 %v1667_v9, %v435_v36  ;;  %v475_v47 = vadd.f32 %v1667_v9, %v436_v37  ;;  %v460_v51 = vadd.f32 %v1667_v9, %v421_v38  ;;  %v404_v26 = vld [vmem:[%s1650_s7 + $0xd0] sm:$0xff]  ;;  %v391_v36 = vld [vmem:[%s1650_s7 + $0x68] sm:$0xff]  ;;  %v406_v37 = vld [vmem:[%s1650_s7 + $0xe0] sm:$0xff] }
  0x18   : > { %v528_v31 = vpack.c.bf16 %v505_v23, %v504_v22  ;;  %1483 = vmatprep.mubr.bf16.mxu0 %v520_v27  ;;  %v461_v52 = vadd.f32 %v1667_v9, %v422_v39  ;;  %v476_v54 = vadd.f32 %v1667_v9, %v437_v40  ;;  %v477_v55 = vadd.f32 %v1667_v9, %v438_v41  ;;  %v405_v27 = vld [vmem:[%s1650_s7 + $0xd8] sm:$0xff]  ;;  %v407_v38 = vld [vmem:[%s1650_s7 + $0xe8] sm:$0xff] }
  0x19   : > { %v423_v56 = vmul.f32 %v1660_v6, %v384_v44  ;;  %v490_v61 = vmax.f32 %v458_v43, 0.0  ;;  %v424_v62 = vmul.f32 %v1660_v6, %v385_v48  ;;  %v439_v63 = vmul.f32 %v1660_v6, %v400_v49 }
  0x1a   : > { %1474 = vmatpush3.bf16.msra.mxu0 %v1558_v3  ;;  %1526 = vmatpush3.bf16.msra.mxu1 %v1558_v3  ;;  %v440_v0 = vmul.f32 %v1660_v6, %v401_v50  ;;  %v491_v1 = vmax.f32 %v459_v45, 0.0  ;;  %v506_v2 = vmax.f32 %v474_v46, 0.0  ;;  %v507_v3 = vmax.f32 %v475_v47, 0.0 }
  0x1b   : > { %1475 = vmatprep.subr.bf16.mxu0 %v1559_v16  ;;  %1519 = vmatprep.subr.bf16.mxu1 %v1559_v16  ;;  %v425_v4 = vmul.f32 %v1660_v6, %v386_v53  ;;  %v492_v5 = vmax.f32 %v460_v51, 0.0  ;;  %v426_v7 = vmul.f32 %v1660_v6, %v387_v57  ;;  %v441_v8 = vmul.f32 %v1660_v6, %v402_v58  ;;  %v392_v58 = vld [vmem:[%s1650_s7 + $0x70] sm:$0xff] }
  0x1c   : > { %1499 = vmatprep.mubr.bf16.mxu1 %v528_v31  ;;  %v442_v10 = vmul.f32 %v1660_v6, %v403_v59  ;;  %v493_v11 = vmax.f32 %v461_v52, 0.0  ;;  %v508_v12 = vmax.f32 %v476_v54, 0.0  ;;  %v509_v13 = vmax.f32 %v477_v55, 0.0  ;;  %v390_v31 = vld [vmem:[%s1650_s7 + $0x60] sm:$0xff] }
  0x1d   : > { %v462_v14 = vadd.f32 %v1667_v9, %v423_v56  ;;  %v463_v15 = vadd.f32 %v1667_v9, %v424_v62  ;;  %v479_v17 = vadd.f32 %v1667_v9, %v440_v0  ;;  %v521_v18 = vpack.c.bf16 %v491_v1, %v490_v61  ;;  %v408_v0 = vld [vmem:[%s1650_s7 + $0xf0] sm:$0xff]  ;;  %v409_v1 = vld [vmem:[%s1650_s7 + $0xf8] sm:$0xff] }
  0x1e   : > { %1476 = vmatpush3.bf16.msra.mxu0 %v1559_v16  ;;  %1527 = vmatpush3.bf16.msra.mxu1 %v1559_v16  ;;  %v478_v16 = vadd.f32 %v1667_v9, %v439_v63  ;;  %v464_v19 = vadd.f32 %v1667_v9, %v425_v4  ;;  %v529_v21 = vpack.c.bf16 %v507_v3, %v506_v2  ;;  %v393_v63 = vld [vmem:[%s1650_s7 + $0x78] sm:$0xff] }
  0x1f   : > { %1477 = vmatprep.subr.bf16.mxu0 %v1560_v30  ;;  %1520 = vmatprep.subr.bf16.mxu1 %v1560_v30  ;;  %v465_v22 = vadd.f32 %v1667_v9, %v426_v7  ;;  %v480_v23 = vadd.f32 %v1667_v9, %v441_v8  ;;  %v481_v24 = vadd.f32 %v1667_v9, %v442_v10  ;;  %v495_v32 = vmax.f32 %v463_v15, 0.0 }
  0x20   : > { %v522_v28 = vpack.c.bf16 %v493_v11, %v492_v5  ;;  %v530_v29 = vpack.c.bf16 %v509_v13, %v508_v12  ;;  %v510_v33 = vmax.f32 %v478_v16, 0.0  ;;  %v511_v34 = vmax.f32 %v479_v17, 0.0 }
  0x21   : > { %v427_v35 = vmul.f32 %v1660_v6, %v388_v20  ;;  %v496_v39 = vmax.f32 %v464_v19, 0.0  ;;  %v428_v40 = vmul.f32 %v1660_v6, %v389_v25  ;;  %v443_v41 = vmul.f32 %v1660_v6, %v404_v26 }
  0x22   : > { %1478 = vmatpush3.bf16.msra.mxu0 %v1560_v30  ;;  %1528 = vmatpush3.bf16.msra.mxu1 %v1560_v30  ;;  %v494_v30 = vmax.f32 %v462_v14, 0.0  ;;  %v497_v43 = vmax.f32 %v465_v22, 0.0  ;;  %v512_v44 = vmax.f32 %v480_v23, 0.0  ;;  %v513_v45 = vmax.f32 %v481_v24, 0.0 }
  0x23   : > { %1479 = vmatprep.subr.bf16.mxu0 %v1561_v42  ;;  %1521 = vmatprep.subr.bf16.mxu1 %v1561_v42  ;;  %v429_v46 = vmul.f32 %v1660_v6, %v390_v31  ;;  %v430_v47 = vmul.f32 %v1660_v6, %v391_v36  ;;  %v445_v48 = vmul.f32 %v1660_v6, %v406_v37 }
  0x24   : > { %v446_v49 = vmul.f32 %v1660_v6, %v407_v38  ;;  %v466_v50 = vadd.f32 %v1667_v9, %v427_v35  ;;  %v467_v51 = vadd.f32 %v1667_v9, %v428_v40  ;;  %v482_v52 = vadd.f32 %v1667_v9, %v443_v41 }
  0x25   : > { %v523_v54 = vpack.c.bf16 %v495_v32, %v494_v30  ;;  %v531_v55 = vpack.c.bf16 %v511_v34, %v510_v33  ;;  %v524_v56 = vpack.c.bf16 %v497_v43, %v496_v39  ;;  %v532_v57 = vpack.c.bf16 %v513_v45, %v512_v44 }
  0x26   : > { %1480 = vmatpush3.bf16.msra.mxu0 %v1561_v42  ;;  %1529 = vmatpush3.bf16.msra.mxu1 %v1561_v42  ;;  %v444_v42 = vmul.f32 %v1660_v6, %v405_v27  ;;  %v468_v59 = vadd.f32 %v1667_v9, %v429_v46  ;;  %v484_v61 = vadd.f32 %v1667_v9, %v445_v48  ;;  %v498_v2 = vmax.f32 %v466_v50, 0.0 }
  0x27   : > { %1481 = vmatprep.subr.bf16.mxu0 %v1562_v60  ;;  %1522 = vmatprep.subr.bf16.mxu1 %v1562_v60  ;;  %v485_v62 = vadd.f32 %v1667_v9, %v446_v49  ;;  %v499_v3 = vmax.f32 %v467_v51, 0.0  ;;  %v514_v4 = vmax.f32 %v482_v52, 0.0  ;;  %v431_v7 = vmul.f32 %v1660_v6, %v392_v58 }
  0x28   : > { %v483_v53 = vadd.f32 %v1667_v9, %v444_v42  ;;  %v432_v8 = vmul.f32 %v1660_v6, %v393_v63  ;;  %v447_v10 = vmul.f32 %v1660_v6, %v408_v0  ;;  %v448_v11 = vmul.f32 %v1660_v6, %v409_v1 }
  0x29   : > { %v500_v12 = vmax.f32 %v468_v59, 0.0  ;;  %v516_v14 = vmax.f32 %v484_v61, 0.0  ;;  %v517_v15 = vmax.f32 %v485_v62, 0.0  ;;  %v525_v16 = vpack.c.bf16 %v499_v3, %v498_v2 }
  0x2a   : > { %1482 = vmatpush3.bf16.msra.mxu0 %v1562_v60  ;;  %1530 = vmatpush3.bf16.msra.mxu1 %v1562_v60  ;;  %v469_v60 = vadd.f32 %v1667_v9, %v430_v47  ;;  %v515_v5 = vmax.f32 %v483_v53, 0.0  ;;  %v471_v19 = vadd.f32 %v1667_v9, %v432_v8  ;;  %v486_v20 = vadd.f32 %v1667_v9, %v447_v10 }
  0x2b   : > { %v534_v23 = vpack.c.bf16 %v517_v15, %v516_v14 }
  0x2c   : > { %v501_v13 = vmax.f32 %v469_v60, 0.0  ;;  %v533_v17 = vpack.c.bf16 %v515_v5, %v514_v4  ;;  %v503_v24 = vmax.f32 %v471_v19, 0.0  ;;  %v518_v25 = vmax.f32 %v486_v20, 0.0 }
  0x2d   : > { %1484 = vmatmul.mubr.bf16.vlgmr.msra.gmra.mxu0 %v521_v18  ;;  %1500 = vmatmul.mubr.bf16.vlgmr.msra.gmra.mxu1 %v529_v21  ;;  %v470_v18 = vadd.f32 %v1667_v9, %v431_v7  ;;  %v487_v21 = vadd.f32 %v1667_v9, %v448_v11 }
  0x2e   : > { %1487 = vmatprep.mubr.bf16.mxu0 %v522_v28  ;;  %1503 = vmatprep.mubr.bf16.mxu1 %v530_v29  ;;  %v526_v22 = vpack.c.bf16 %v501_v13, %v500_v12  ;;  %v1776_v29 = vld [vmem:[%s1845_s4] ss:$0 sm:$0xff] }
  0x2f   : > { %v502_v6 = vmax.f32 %v470_v18, 0.0  ;;  %v519_v26 = vmax.f32 %v487_v21, 0.0 }
  0x31   : > { %v527_v27 = vpack.c.bf16 %v503_v24, %v502_v6  ;;  %v535_v28 = vpack.c.bf16 %v519_v26, %v518_v25 }
  0x35   : > { %1488 = vmatmul.mubr.bf16.gmra.mxu0 %v523_v54  ;;  %1504 = vmatmul.mubr.bf16.gmra.mxu1 %v531_v55 }
  0x36   : > { %1491 = vmatprep.mubr.bf16.mxu0 %v524_v56  ;;  %1507 = vmatprep.mubr.bf16.mxu1 %v532_v57 }
  0x3d   : > { %1492 = vmatmul.mubr.bf16.gmra.mxu0 %v525_v16  ;;  %1508 = vmatmul.mubr.bf16.gmra.mxu1 %v533_v17 }
  0x3e   : > { %1495 = vmatprep.mubr.bf16.mxu0 %v526_v22  ;;  %1511 = vmatprep.mubr.bf16.mxu1 %v534_v23 }
  0x45   : > { %1496 = vmatmul.mubr.bf16.gmra.mxu0 %v527_v27  ;;  %1512 = vmatmul.mubr.bf16.gmra.mxu1 %v535_v28 }
  0xed   : > { %v1485_v9 = vpop.f32.mrf.mxu0  ;;  %v1501_v30 = vpop.f32.mrf.mxu1 }
  0xee   : > { %v901_v31 = vadd.f32 %v1485_v9, %v1776_v29  ;;  %v917_v32 = vadd.f32 %v1501_v30, %v1776_v29 }
  0xef   : > { %v666_v33 = vpop.f32.mrf.mxu0  ;;  %v730_v34 = vpop.f32.mrf.mxu1 }
  0xf0   : > { %v899_v35 = vadd.f32 %v1776_v29, %v666_v33  ;;  %v915_v36 = vadd.f32 %v1776_v29, %v730_v34  ;;  %v933_v41 = vmax.f32 %v901_v31, 0.0  ;;  %v949_v42 = vmax.f32 %v917_v32, 0.0 }
  0xf1   : > { %v1486_v37 = vpop.f32.mrf.mxu0  ;;  %v1502_v38 = vpop.f32.mrf.mxu1 }
  0xf2   : > { %v902_v39 = vadd.f32 %v1486_v37, %v1776_v29  ;;  %v918_v40 = vadd.f32 %v1502_v38, %v1776_v29  ;;  %v931_v49 = vmax.f32 %v899_v35, 0.0  ;;  %v947_v50 = vmax.f32 %v915_v36, 0.0 }
  0xf3   : > { %v669_v43 = vpop.f32.mrf.mxu0  ;;  %v733_v44 = vpop.f32.mrf.mxu1 }
  0xf4   : > { %v934_v45 = vmax.f32 %v902_v39, 0.0  ;;  %v950_v46 = vmax.f32 %v918_v40, 0.0  ;;  %v900_v47 = vadd.f32 %v1776_v29, %v669_v43  ;;  %v916_v48 = vadd.f32 %v1776_v29, %v733_v44 }
  0xf5   : > { %v1489_v51 = vpop.f32.mrf.mxu0  ;;  %v1505_v52 = vpop.f32.mrf.mxu1 }
  0xf6   : > { %v1356_v53 = vpack.c.bf16 %v934_v45, %v933_v41  ;;  %v1396_v54 = vpack.c.bf16 %v950_v46, %v949_v42  ;;  %v932_v55 = vmax.f32 %v900_v47, 0.0  ;;  %v948_v56 = vmax.f32 %v916_v48, 0.0 }
  0xf7   : > { %v905_v57 = vadd.f32 %v1489_v51, %v1776_v29  ;;  %v921_v58 = vadd.f32 %v1505_v52, %v1776_v29  ;;  %v682_v59 = vpop.f32.mrf.mxu0  ;;  %v746_v60 = vpop.f32.mrf.mxu1 }
  0xf8   : > { %1428 = vst [vmem:[%s1790_s24 + $0x8] sm:$0xff] %v1356_v53   ;;  %1436 = vst [vmem:[%s1790_s24 + $0x48] sm:$0xff] %v1396_v54   ;;  %v1351_v61 = vpack.c.bf16 %v932_v55, %v931_v49  ;;  %v1391_v62 = vpack.c.bf16 %v948_v56, %v947_v50  ;;  %v903_v63 = vadd.f32 %v1776_v29, %v682_v59 }
  0xf9   : > { %v919_v0 = vadd.f32 %v1776_v29, %v746_v60  ;;  %v1490_v1 = vpop.f32.mrf.mxu0  ;;  %v1506_v2 = vpop.f32.mrf.mxu1  ;;  %v937_v5 = vmax.f32 %v905_v57, 0.0  ;;  %v953_v7 = vmax.f32 %v921_v58, 0.0 }
  0xfa   : > { %1352 = vst [vmem:[%s1790_s24] sm:$0xff] %v1351_v61   ;;  %1435 = vst [vmem:[%s1790_s24 + $0x40] sm:$0xff] %v1391_v62   ;;  %v906_v3 = vadd.f32 %v1490_v1, %v1776_v29  ;;  %v922_v4 = vadd.f32 %v1506_v2, %v1776_v29  ;;  %v935_v15 = vmax.f32 %v903_v63, 0.0 }
  0xfb   : > { %v685_v8 = vpop.f32.mrf.mxu0  ;;  %v749_v10 = vpop.f32.mrf.mxu1  ;;  %v951_v16 = vmax.f32 %v919_v0, 0.0 }
  0xfc   : > { %v938_v11 = vmax.f32 %v906_v3, 0.0  ;;  %v954_v12 = vmax.f32 %v922_v4, 0.0  ;;  %v904_v13 = vadd.f32 %v1776_v29, %v685_v8  ;;  %v920_v14 = vadd.f32 %v1776_v29, %v749_v10 }
  0xfd   : > { %v1493_v17 = vpop.f32.mrf.mxu0  ;;  %v1509_v18 = vpop.f32.mrf.mxu1 }
  0xfe   : > { %v1366_v19 = vpack.c.bf16 %v938_v11, %v937_v5  ;;  %v1406_v20 = vpack.c.bf16 %v954_v12, %v953_v7  ;;  %v936_v21 = vmax.f32 %v904_v13, 0.0  ;;  %v952_v22 = vmax.f32 %v920_v14, 0.0 }
  0xff   : > { %v909_v23 = vadd.f32 %v1493_v17, %v1776_v29  ;;  %v925_v6 = vadd.f32 %v1509_v18, %v1776_v29  ;;  %v698_v24 = vpop.f32.mrf.mxu0  ;;  %v762_v25 = vpop.f32.mrf.mxu1 }
 0x100   : > { %1430 = vst [vmem:[%s1790_s24 + $0x18] sm:$0xff] %v1366_v19   ;;  %1438 = vst [vmem:[%s1790_s24 + $0x58] sm:$0xff] %v1406_v20   ;;  %v1361_v26 = vpack.c.bf16 %v936_v21, %v935_v15  ;;  %v1401_v27 = vpack.c.bf16 %v952_v22, %v951_v16  ;;  %v907_v28 = vadd.f32 %v1776_v29, %v698_v24 }
 0x101   : > { %v923_v9 = vadd.f32 %v1776_v29, %v762_v25  ;;  %v1494_v30 = vpop.f32.mrf.mxu0  ;;  %v1510_v31 = vpop.f32.mrf.mxu1  ;;  %v941_v34 = vmax.f32 %v909_v23, 0.0  ;;  %v957_v35 = vmax.f32 %v925_v6, 0.0 }
 0x102   : > { %1429 = vst [vmem:[%s1790_s24 + $0x10] sm:$0xff] %v1361_v26   ;;  %1437 = vst [vmem:[%s1790_s24 + $0x50] sm:$0xff] %v1401_v27   ;;  %v910_v32 = vadd.f32 %v1494_v30, %v1776_v29  ;;  %v926_v33 = vadd.f32 %v1510_v31, %v1776_v29  ;;  %v939_v42 = vmax.f32 %v907_v28, 0.0 }
 0x103   : > { %v701_v36 = vpop.f32.mrf.mxu0  ;;  %v765_v37 = vpop.f32.mrf.mxu1  ;;  %v955_v43 = vmax.f32 %v923_v9, 0.0 }
 0x104   : > { %v942_v38 = vmax.f32 %v910_v32, 0.0  ;;  %v958_v39 = vmax.f32 %v926_v33, 0.0  ;;  %v908_v40 = vadd.f32 %v1776_v29, %v701_v36  ;;  %v924_v41 = vadd.f32 %v1776_v29, %v765_v37 }
 0x105   : > { %v1497_v44 = vpop.f32.mrf.mxu0  ;;  %v1513_v45 = vpop.f32.mrf.mxu1 }
 0x106   : > { %v1376_v46 = vpack.c.bf16 %v942_v38, %v941_v34  ;;  %v1416_v47 = vpack.c.bf16 %v958_v39, %v957_v35  ;;  %v940_v48 = vmax.f32 %v908_v40, 0.0  ;;  %v956_v49 = vmax.f32 %v924_v41, 0.0 }
 0x107   : > { %v913_v50 = vadd.f32 %v1497_v44, %v1776_v29  ;;  %v929_v51 = vadd.f32 %v1513_v45, %v1776_v29  ;;  %v714_v52 = vpop.f32.mrf.mxu0  ;;  %v778_v53 = vpop.f32.mrf.mxu1 }
 0x108   : > { %1432 = vst [vmem:[%s1790_s24 + $0x28] sm:$0xff] %v1376_v46   ;;  %1440 = vst [vmem:[%s1790_s24 + $0x68] sm:$0xff] %v1416_v47   ;;  %v1371_v54 = vpack.c.bf16 %v940_v48, %v939_v42  ;;  %v1411_v55 = vpack.c.bf16 %v956_v49, %v955_v43  ;;  %v911_v56 = vadd.f32 %v1776_v29, %v714_v52 }
 0x109   : > { %v927_v57 = vadd.f32 %v1776_v29, %v778_v53  ;;  %v1498_v58 = vpop.f32.mrf.mxu0  ;;  %v1514_v59 = vpop.f32.mrf.mxu1  ;;  %v945_v62 = vmax.f32 %v913_v50, 0.0  ;;  %v961_v63 = vmax.f32 %v929_v51, 0.0 }
 0x10a   : > { %1431 = vst [vmem:[%s1790_s24 + $0x20] sm:$0xff] %v1371_v54   ;;  %1439 = vst [vmem:[%s1790_s24 + $0x60] sm:$0xff] %v1411_v55   ;;  %v914_v60 = vadd.f32 %v1498_v58, %v1776_v29  ;;  %v930_v61 = vadd.f32 %v1514_v59, %v1776_v29  ;;  %v943_v7 = vmax.f32 %v911_v56, 0.0 }
 0x10b   : > { %v717_v0 = vpop.f32.mrf.mxu0  ;;  %v781_v1 = vpop.f32.mrf.mxu1  ;;  %v959_v8 = vmax.f32 %v927_v57, 0.0 }
 0x10c   : > { %v946_v2 = vmax.f32 %v914_v60, 0.0  ;;  %v962_v3 = vmax.f32 %v930_v61, 0.0  ;;  %v912_v4 = vadd.f32 %v1776_v29, %v717_v0  ;;  %v928_v5 = vadd.f32 %v1776_v29, %v781_v1 }
 0x10e   : > { %v1386_v10 = vpack.c.bf16 %v946_v2, %v945_v62  ;;  %v1426_v11 = vpack.c.bf16 %v962_v3, %v961_v63  ;;  %v944_v12 = vmax.f32 %v912_v4, 0.0  ;;  %v960_v13 = vmax.f32 %v928_v5, 0.0 }
 0x110   : > { %1434 = vst [vmem:[%s1790_s24 + $0x38] sm:$0xff] %v1386_v10   ;;  %1442 = vst [vmem:[%s1790_s24 + $0x78] sm:$0xff] %v1426_v11   ;;  %v1381_v14 = vpack.c.bf16 %v944_v12, %v943_v7  ;;  %v1421_v15 = vpack.c.bf16 %v960_v13, %v959_v8 }
 0x112   : > { %1433 = vst [vmem:[%s1790_s24 + $0x30] sm:$0xff] %v1381_v14   ;;  %1441 = vst [vmem:[%s1790_s24 + $0x70] sm:$0xff] %v1421_v15  }
 0x113 PF: > { %s15_s20 = sadd.s32 1, %s1585_s20   ;;  %s1847_s18 = smov %s1581_s19 }
 0x114   : > { %p12_p5 = scmp.ge.s32.totalorder %s15_s20, 4   ;;  %s1848_s19 = smov %s1850_s21 }
 0x116   :  { %14 = sbr.rel (!%p12_p5) target bundleno = 2 (0x2), region = 90 }

// kernel: heatmap_forward.26
= control target key start
LH: loop header
LB: loop body
LE: loop exit
PB: predicated region body
PF: predicated region fallthrough
CT: control target
= control target key end

     0   :  { %s1199_s15 = smov 0   ;;  %s1201_s16 = smov 0   ;;  %s1405_s0 = inlined_call_operand.vmem [shape: f32[512,128], index: 0, kind: input, shape index: {}]   ;;  %s1406_s1 = inlined_call_operand.vmem [shape: bf16[128,128], index: 1, kind: input, shape index: {}]   ;;  %s1407_s2 = inlined_call_operand.vmem [shape: f32[1,128], index: 2, kind: input, shape index: {}]   ;;  %s1408_s3 = inlined_call_operand.vmem [shape: f32[1,128], index: 3, kind: input, shape index: {}]   ;;  %s1409_s4 = inlined_call_operand.vmem [shape: f32[512,128], index: 4, kind: output, shape index: {}]  }
   0x1   :  { %s1203_s17 = smov 0  }
   0x2 LB: > { %s33_s18 = sadd.s32 1, %s1168_s16  ;;  %p1013_p0 = scmp.ge.s32.totalorder %s1172_s17, 1  ;;  %s1172_s17 = sphi %s1203_s17, %s14_s17   ;;  %s1168_s16 = sphi %s1201_s16, %s1411_s16   ;;  %s1164_s15 = sphi %s1199_s15, %s1410_s15  }
   0x3   : > { %p35_p1 = scmp.ge.s32.totalorder %s33_s18, 2  ;;  %p221_p2 = scmp.lt.s32.totalorder %s1172_s17, 3 }
   0x5   : > { %s1413_s18 = smov (%p35_p1, %s33_s18), 0  ;;  %p222_p3 = pnand %p1013_p0, %p221_p2 }
   0x6   : > { %s1014_s21 = sshll.u32 (!%p222_p3), %s1164_s15, 5 }
   0x7   : > { %225 = sbr.rel (%p222_p3) target bundleno = 269 (0x10d), region = 36  ;;  %p268_p4 = scmp.lt.s32.totalorder (!%p222_p3), %s1014_s21, 63 }
   0xc   : > { %v1142_v0 = vld [vmem:[%s1406_s1 + $0x38] sm:$0xff]   ;;  %v1143_v1 = vld [vmem:[%s1406_s1 + $0x30] sm:$0xff]   ;;  %s1415_s21 = smov (!%p268_p4, %s1014_s21), 63  ;;  %v1144_v2 = vld [vmem:[%s1406_s1 + $0x28] sm:$0xff]  }
   0xd   : > { %1054 = vmatprep.subr.bf16.mxu0 %v1142_v0  ;;  %1102 = vmatprep.subr.bf16.mxu1 %v1142_v0  ;;  %s1015_s26 = sshll.u32 %s1415_s21, 3  ;;  %v1145_v3 = vld [vmem:[%s1406_s1 + $0x20] sm:$0xff]   ;;  %v1146_v16 = vld [vmem:[%s1406_s1 + $0x18] sm:$0xff]   ;;  %v1147_v30 = vld [vmem:[%s1406_s1 + $0x10] sm:$0xff]  }
   0xe   : > { %1055 = vmatpush3.bf16.msra.mxu0 %v1142_v0  ;;  %1110 = vmatpush3.bf16.msra.mxu1 %v1142_v0  ;;  %s1234_s29 = scalar_lea.vmem %s1405_s0, %s1015_s26  ;;  %v1244_v6 = vld [vmem:[%s1407_s2] ss:$0 sm:$0xff]  ;;  %v1148_v42 = vld [vmem:[%s1406_s1 + $0x8] sm:$0xff]   ;;  %s1362_s24 = scalar_lea.vmem %s1409_s4, %s1015_s26 }
   0xf   : > { %1056 = vmatprep.subr.bf16.mxu0 %v1143_v1  ;;  %1103 = vmatprep.subr.bf16.mxu1 %v1143_v1  ;;  %v337_v4 = vld [vmem:[%s1234_s29] sm:$0xff]  ;;  %v338_v5 = vld [vmem:[%s1234_s29 + $0x8] sm:$0xff]  ;;  %v339_v21 = vld [vmem:[%s1234_s29 + $0x10] sm:$0xff] }
  0x10   : > { %v376_v7 = vmul.f32 %v1244_v6, %v337_v4  ;;  %v377_v8 = vmul.f32 %v1244_v6, %v338_v5  ;;  %v1251_v9 = vld [vmem:[%s1408_s3] ss:$0 sm:$0xff]  ;;  %v354_v11 = vld [vmem:[%s1234_s29 + $0x88] sm:$0xff]  ;;  %v340_v24 = vld [vmem:[%s1234_s29 + $0x18] sm:$0xff]  ;;  %v378_v32 = vmul.f32 %v1244_v6, %v339_v21 }
  0x11   : > { %v353_v10 = vld [vmem:[%s1234_s29 + $0x80] sm:$0xff]  ;;  %v393_v13 = vmul.f32 %v1244_v6, %v354_v11  ;;  %v355_v25 = vld [vmem:[%s1234_s29 + $0x90] sm:$0xff]  ;;  %v356_v26 = vld [vmem:[%s1234_s29 + $0x98] sm:$0xff]  ;;  %v379_v35 = vmul.f32 %v1244_v6, %v340_v24 }
  0x12   : > { %1057 = vmatpush3.bf16.msra.mxu0 %v1143_v1  ;;  %1111 = vmatpush3.bf16.msra.mxu1 %v1143_v1  ;;  %v392_v12 = vmul.f32 %v1244_v6, %v353_v10  ;;  %v415_v14 = vadd.f32 %v1251_v9, %v376_v7  ;;  %v416_v15 = vadd.f32 %v1251_v9, %v377_v8  ;;  %v341_v28 = vld [vmem:[%s1234_s29 + $0x20] sm:$0xff]  ;;  %v342_v29 = vld [vmem:[%s1234_s29 + $0x28] sm:$0xff]  ;;  %v343_v44 = vld [vmem:[%s1234_s29 + $0x30] sm:$0xff] }
  0x13   : > { %1058 = vmatprep.subr.bf16.mxu0 %v1144_v2  ;;  %1104 = vmatprep.subr.bf16.mxu1 %v1144_v2  ;;  %v432_v18 = vadd.f32 %v1251_v9, %v393_v13  ;;  %v357_v33 = vld [vmem:[%s1234_s29 + $0xa0] sm:$0xff]  ;;  %v358_v34 = vld [vmem:[%s1234_s29 + $0xa8] sm:$0xff]  ;;  %v394_v36 = vmul.f32 %v1244_v6, %v355_v25  ;;  %v395_v37 = vmul.f32 %v1244_v6, %v356_v26  ;;  %v344_v48 = vld [vmem:[%s1234_s29 + $0x38] sm:$0xff] }
  0x14   : > { %v431_v17 = vadd.f32 %v1251_v9, %v392_v12  ;;  %v447_v19 = vmax.f32 %v415_v14, 0.0  ;;  %v448_v20 = vmax.f32 %v416_v15, 0.0  ;;  %v380_v38 = vmul.f32 %v1244_v6, %v341_v28  ;;  %v359_v49 = vld [vmem:[%s1234_s29 + $0xb0] sm:$0xff]  ;;  %v360_v50 = vld [vmem:[%s1234_s29 + $0xb8] sm:$0xff]  ;;  %v345_v53 = vld [vmem:[%s1234_s29 + $0x40] sm:$0xff] }
  0x15   : > { %v464_v23 = vmax.f32 %v432_v18, 0.0  ;;  %v381_v39 = vmul.f32 %v1244_v6, %v342_v29  ;;  %v396_v40 = vmul.f32 %v1244_v6, %v357_v33  ;;  %v397_v41 = vmul.f32 %v1244_v6, %v358_v34  ;;  %v346_v57 = vld [vmem:[%s1234_s29 + $0x48] sm:$0xff]  ;;  %v361_v58 = vld [vmem:[%s1234_s29 + $0xc0] sm:$0xff]  ;;  %v348_v25 = vld [vmem:[%s1234_s29 + $0x58] sm:$0xff] }
  0x16   : > { %1059 = vmatpush3.bf16.msra.mxu0 %v1144_v2  ;;  %1112 = vmatpush3.bf16.msra.mxu1 %v1144_v2  ;;  %v463_v22 = vmax.f32 %v431_v17, 0.0  ;;  %v479_v27 = vpack.c.bf16 %v448_v20, %v447_v19  ;;  %v417_v43 = vadd.f32 %v1251_v9, %v378_v32  ;;  %v418_v45 = vadd.f32 %v1251_v9, %v379_v35  ;;  %v362_v59 = vld [vmem:[%s1234_s29 + $0xc8] sm:$0xff]  ;;  %v1149_v60 = vld [vmem:[%s1406_s1] sm:$0xff]   ;;  %v347_v20 = vld [vmem:[%s1234_s29 + $0x50] sm:$0xff] }
  0x17   : > { %1060 = vmatprep.subr.bf16.mxu0 %v1145_v3  ;;  %1105 = vmatprep.subr.bf16.mxu1 %v1145_v3  ;;  %v433_v46 = vadd.f32 %v1251_v9, %v394_v36  ;;  %v434_v47 = vadd.f32 %v1251_v9, %v395_v37  ;;  %v419_v51 = vadd.f32 %v1251_v9, %v380_v38  ;;  %v363_v26 = vld [vmem:[%s1234_s29 + $0xd0] sm:$0xff]  ;;  %v350_v36 = vld [vmem:[%s1234_s29 + $0x68] sm:$0xff]  ;;  %v365_v37 = vld [vmem:[%s1234_s29 + $0xe0] sm:$0xff] }
  0x18   : > { %v487_v31 = vpack.c.bf16 %v464_v23, %v463_v22  ;;  %1070 = vmatprep.mubr.bf16.mxu0 %v479_v27  ;;  %v420_v52 = vadd.f32 %v1251_v9, %v381_v39  ;;  %v435_v54 = vadd.f32 %v1251_v9, %v396_v40  ;;  %v436_v55 = vadd.f32 %v1251_v9, %v397_v41  ;;  %v364_v27 = vld [vmem:[%s1234_s29 + $0xd8] sm:$0xff]  ;;  %v366_v38 = vld [vmem:[%s1234_s29 + $0xe8] sm:$0xff] }
  0x19   : > { %v382_v56 = vmul.f32 %v1244_v6, %v343_v44  ;;  %v449_v61 = vmax.f32 %v417_v43, 0.0  ;;  %v383_v62 = vmul.f32 %v1244_v6, %v344_v48  ;;  %v398_v63 = vmul.f32 %v1244_v6, %v359_v49 }
  0x1a   : > { %1061 = vmatpush3.bf16.msra.mxu0 %v1145_v3  ;;  %1113 = vmatpush3.bf16.msra.mxu1 %v1145_v3  ;;  %v399_v0 = vmul.f32 %v1244_v6, %v360_v50  ;;  %v450_v1 = vmax.f32 %v418_v45, 0.0  ;;  %v465_v2 = vmax.f32 %v433_v46, 0.0  ;;  %v466_v3 = vmax.f32 %v434_v47, 0.0 }
  0x1b   : > { %1062 = vmatprep.subr.bf16.mxu0 %v1146_v16  ;;  %1106 = vmatprep.subr.bf16.mxu1 %v1146_v16  ;;  %v384_v4 = vmul.f32 %v1244_v6, %v345_v53  ;;  %v451_v5 = vmax.f32 %v419_v51, 0.0  ;;  %v385_v7 = vmul.f32 %v1244_v6, %v346_v57  ;;  %v400_v8 = vmul.f32 %v1244_v6, %v361_v58  ;;  %v351_v58 = vld [vmem:[%s1234_s29 + $0x70] sm:$0xff] }
  0x1c   : > { %1086 = vmatprep.mubr.bf16.mxu1 %v487_v31  ;;  %v401_v10 = vmul.f32 %v1244_v6, %v362_v59  ;;  %v452_v11 = vmax.f32 %v420_v52, 0.0  ;;  %v467_v12 = vmax.f32 %v435_v54, 0.0  ;;  %v468_v13 = vmax.f32 %v436_v55, 0.0  ;;  %v349_v31 = vld [vmem:[%s1234_s29 + $0x60] sm:$0xff] }
  0x1d   : > { %v421_v14 = vadd.f32 %v1251_v9, %v382_v56  ;;  %v422_v15 = vadd.f32 %v1251_v9, %v383_v62  ;;  %v438_v17 = vadd.f32 %v1251_v9, %v399_v0  ;;  %v480_v18 = vpack.c.bf16 %v450_v1, %v449_v61  ;;  %v367_v0 = vld [vmem:[%s1234_s29 + $0xf0] sm:$0xff]  ;;  %v368_v1 = vld [vmem:[%s1234_s29 + $0xf8] sm:$0xff] }
  0x1e   : > { %1063 = vmatpush3.bf16.msra.mxu0 %v1146_v16  ;;  %1114 = vmatpush3.bf16.msra.mxu1 %v1146_v16  ;;  %v437_v16 = vadd.f32 %v1251_v9, %v398_v63  ;;  %v423_v19 = vadd.f32 %v1251_v9, %v384_v4  ;;  %v488_v21 = vpack.c.bf16 %v466_v3, %v465_v2  ;;  %v352_v63 = vld [vmem:[%s1234_s29 + $0x78] sm:$0xff] }
  0x1f   : > { %1064 = vmatprep.subr.bf16.mxu0 %v1147_v30  ;;  %1107 = vmatprep.subr.bf16.mxu1 %v1147_v30  ;;  %v424_v22 = vadd.f32 %v1251_v9, %v385_v7  ;;  %v439_v23 = vadd.f32 %v1251_v9, %v400_v8  ;;  %v440_v24 = vadd.f32 %v1251_v9, %v401_v10  ;;  %v454_v32 = vmax.f32 %v422_v15, 0.0 }
  0x20   : > { %v481_v28 = vpack.c.bf16 %v452_v11, %v451_v5  ;;  %v489_v29 = vpack.c.bf16 %v468_v13, %v467_v12  ;;  %v469_v33 = vmax.f32 %v437_v16, 0.0  ;;  %v470_v34 = vmax.f32 %v438_v17, 0.0 }
  0x21   : > { %v386_v35 = vmul.f32 %v1244_v6, %v347_v20  ;;  %v455_v39 = vmax.f32 %v423_v19, 0.0  ;;  %v387_v40 = vmul.f32 %v1244_v6, %v348_v25  ;;  %v402_v41 = vmul.f32 %v1244_v6, %v363_v26 }
  0x22   : > { %1065 = vmatpush3.bf16.msra.mxu0 %v1147_v30  ;;  %1115 = vmatpush3.bf16.msra.mxu1 %v1147_v30  ;;  %v453_v30 = vmax.f32 %v421_v14, 0.0  ;;  %v456_v43 = vmax.f32 %v424_v22, 0.0  ;;  %v471_v44 = vmax.f32 %v439_v23, 0.0  ;;  %v472_v45 = vmax.f32 %v440_v24, 0.0 }
  0x23   : > { %1066 = vmatprep.subr.bf16.mxu0 %v1148_v42  ;;  %1108 = vmatprep.subr.bf16.mxu1 %v1148_v42  ;;  %v388_v46 = vmul.f32 %v1244_v6, %v349_v31  ;;  %v389_v47 = vmul.f32 %v1244_v6, %v350_v36  ;;  %v404_v48 = vmul.f32 %v1244_v6, %v365_v37 }
  0x24   : > { %v405_v49 = vmul.f32 %v1244_v6, %v366_v38  ;;  %v425_v50 = vadd.f32 %v1251_v9, %v386_v35  ;;  %v426_v51 = vadd.f32 %v1251_v9, %v387_v40  ;;  %v441_v52 = vadd.f32 %v1251_v9, %v402_v41 }
  0x25   : > { %v482_v54 = vpack.c.bf16 %v454_v32, %v453_v30  ;;  %v490_v55 = vpack.c.bf16 %v470_v34, %v469_v33  ;;  %v483_v56 = vpack.c.bf16 %v456_v43, %v455_v39  ;;  %v491_v57 = vpack.c.bf16 %v472_v45, %v471_v44 }
  0x26   : > { %1067 = vmatpush3.bf16.msra.mxu0 %v1148_v42  ;;  %1116 = vmatpush3.bf16.msra.mxu1 %v1148_v42  ;;  %v403_v42 = vmul.f32 %v1244_v6, %v364_v27  ;;  %v427_v59 = vadd.f32 %v1251_v9, %v388_v46  ;;  %v443_v61 = vadd.f32 %v1251_v9, %v404_v48  ;;  %v457_v2 = vmax.f32 %v425_v50, 0.0 }
  0x27   : > { %1068 = vmatprep.subr.bf16.mxu0 %v1149_v60  ;;  %1109 = vmatprep.subr.bf16.mxu1 %v1149_v60  ;;  %v444_v62 = vadd.f32 %v1251_v9, %v405_v49  ;;  %v458_v3 = vmax.f32 %v426_v51, 0.0  ;;  %v473_v4 = vmax.f32 %v441_v52, 0.0  ;;  %v390_v7 = vmul.f32 %v1244_v6, %v351_v58 }
  0x28   : > { %v442_v53 = vadd.f32 %v1251_v9, %v403_v42  ;;  %v391_v8 = vmul.f32 %v1244_v6, %v352_v63  ;;  %v406_v10 = vmul.f32 %v1244_v6, %v367_v0  ;;  %v407_v11 = vmul.f32 %v1244_v6, %v368_v1 }
  0x29   : > { %v459_v12 = vmax.f32 %v427_v59, 0.0  ;;  %v475_v14 = vmax.f32 %v443_v61, 0.0  ;;  %v476_v15 = vmax.f32 %v444_v62, 0.0  ;;  %v484_v16 = vpack.c.bf16 %v458_v3, %v457_v2 }
  0x2a   : > { %1069 = vmatpush3.bf16.msra.mxu0 %v1149_v60  ;;  %1117 = vmatpush3.bf16.msra.mxu1 %v1149_v60  ;;  %v428_v60 = vadd.f32 %v1251_v9, %v389_v47  ;;  %v474_v5 = vmax.f32 %v442_v53, 0.0  ;;  %v430_v19 = vadd.f32 %v1251_v9, %v391_v8  ;;  %v445_v20 = vadd.f32 %v1251_v9, %v406_v10 }
  0x2b   : > { %v493_v23 = vpack.c.bf16 %v476_v15, %v475_v14 }
  0x2c   : > { %v460_v13 = vmax.f32 %v428_v60, 0.0  ;;  %v492_v17 = vpack.c.bf16 %v474_v5, %v473_v4  ;;  %v462_v24 = vmax.f32 %v430_v19, 0.0  ;;  %v477_v25 = vmax.f32 %v445_v20, 0.0 }
  0x2d   : > { %1071 = vmatmul.mubr.bf16.vlgmr.msra.gmra.mxu0 %v480_v18  ;;  %1087 = vmatmul.mubr.bf16.vlgmr.msra.gmra.mxu1 %v488_v21  ;;  %v429_v18 = vadd.f32 %v1251_v9, %v390_v7  ;;  %v446_v21 = vadd.f32 %v1251_v9, %v407_v11 }
  0x2e   : > { %1074 = vmatprep.mubr.bf16.mxu0 %v481_v28  ;;  %1090 = vmatprep.mubr.bf16.mxu1 %v489_v29  ;;  %v485_v22 = vpack.c.bf16 %v460_v13, %v459_v12 }
  0x2f   : > { %v461_v6 = vmax.f32 %v429_v18, 0.0  ;;  %v478_v26 = vmax.f32 %v446_v21, 0.0 }
  0x31   : > { %v486_v27 = vpack.c.bf16 %v462_v24, %v461_v6  ;;  %v494_v28 = vpack.c.bf16 %v478_v26, %v477_v25 }
  0x35   : > { %1075 = vmatmul.mubr.bf16.gmra.mxu0 %v482_v54  ;;  %1091 = vmatmul.mubr.bf16.gmra.mxu1 %v490_v55 }
  0x36   : > { %1078 = vmatprep.mubr.bf16.mxu0 %v483_v56  ;;  %1094 = vmatprep.mubr.bf16.mxu1 %v491_v57 }
  0x3d   : > { %1079 = vmatmul.mubr.bf16.gmra.mxu0 %v484_v16  ;;  %1095 = vmatmul.mubr.bf16.gmra.mxu1 %v492_v17 }
  0x3e   : > { %1082 = vmatprep.mubr.bf16.mxu0 %v485_v22  ;;  %1098 = vmatprep.mubr.bf16.mxu1 %v493_v23 }
  0x45   : > { %1083 = vmatmul.mubr.bf16.gmra.mxu0 %v486_v27  ;;  %1099 = vmatmul.mubr.bf16.gmra.mxu1 %v494_v28 }
  0xed   : > { %v1072_v9 = vpop.f32.mrf.mxu0  ;;  %v1088_v29 = vpop.f32.mrf.mxu1 }
  0xee   : > { %853 = vst [vmem:[%s1362_s24 + $0x10] sm:$0xff] %v1072_v9  ;;  %869 = vst [vmem:[%s1362_s24 + $0x90] sm:$0xff] %v1088_v29 }
  0xef   : > { %v625_v30 = vpop.f32.mrf.mxu0  ;;  %v689_v31 = vpop.f32.mrf.mxu1 }
  0xf0   : > { %851 = vst [vmem:[%s1362_s24] sm:$0xff] %v625_v30  ;;  %867 = vst [vmem:[%s1362_s24 + $0x80] sm:$0xff] %v689_v31 }
  0xf1   : > { %v1073_v32 = vpop.f32.mrf.mxu0  ;;  %v1089_v33 = vpop.f32.mrf.mxu1 }
  0xf2   : > { %854 = vst [vmem:[%s1362_s24 + $0x18] sm:$0xff] %v1073_v32  ;;  %870 = vst [vmem:[%s1362_s24 + $0x98] sm:$0xff] %v1089_v33 }
  0xf3   : > { %v628_v34 = vpop.f32.mrf.mxu0  ;;  %v692_v35 = vpop.f32.mrf.mxu1 }
  0xf4   : > { %852 = vst [vmem:[%s1362_s24 + $0x8] sm:$0xff] %v628_v34  ;;  %868 = vst [vmem:[%s1362_s24 + $0x88] sm:$0xff] %v692_v35 }
  0xf5   : > { %v1076_v36 = vpop.f32.mrf.mxu0  ;;  %v1092_v37 = vpop.f32.mrf.mxu1 }
  0xf6   : > { %857 = vst [vmem:[%s1362_s24 + $0x30] sm:$0xff] %v1076_v36  ;;  %873 = vst [vmem:[%s1362_s24 + $0xb0] sm:$0xff] %v1092_v37 }
  0xf7   : > { %v641_v38 = vpop.f32.mrf.mxu0  ;;  %v705_v39 = vpop.f32.mrf.mxu1 }
  0xf8   : > { %855 = vst [vmem:[%s1362_s24 + $0x20] sm:$0xff] %v641_v38  ;;  %871 = vst [vmem:[%s1362_s24 + $0xa0] sm:$0xff] %v705_v39 }
  0xf9   : > { %v1077_v40 = vpop.f32.mrf.mxu0  ;;  %v1093_v41 = vpop.f32.mrf.mxu1 }
  0xfa   : > { %858 = vst [vmem:[%s1362_s24 + $0x38] sm:$0xff] %v1077_v40  ;;  %874 = vst [vmem:[%s1362_s24 + $0xb8] sm:$0xff] %v1093_v41 }
  0xfb   : > { %v644_v42 = vpop.f32.mrf.mxu0  ;;  %v708_v43 = vpop.f32.mrf.mxu1 }
  0xfc   : > { %856 = vst [vmem:[%s1362_s24 + $0x28] sm:$0xff] %v644_v42  ;;  %872 = vst [vmem:[%s1362_s24 + $0xa8] sm:$0xff] %v708_v43 }
  0xfd   : > { %v1080_v44 = vpop.f32.mrf.mxu0  ;;  %v1096_v45 = vpop.f32.mrf.mxu1 }
  0xfe   : > { %861 = vst [vmem:[%s1362_s24 + $0x50] sm:$0xff] %v1080_v44  ;;  %877 = vst [vmem:[%s1362_s24 + $0xd0] sm:$0xff] %v1096_v45 }
  0xff   : > { %v657_v46 = vpop.f32.mrf.mxu0  ;;  %v721_v47 = vpop.f32.mrf.mxu1 }
 0x100   : > { %859 = vst [vmem:[%s1362_s24 + $0x40] sm:$0xff] %v657_v46  ;;  %875 = vst [vmem:[%s1362_s24 + $0xc0] sm:$0xff] %v721_v47 }
 0x101   : > { %v1081_v48 = vpop.f32.mrf.mxu0  ;;  %v1097_v49 = vpop.f32.mrf.mxu1 }
 0x102   : > { %862 = vst [vmem:[%s1362_s24 + $0x58] sm:$0xff] %v1081_v48  ;;  %878 = vst [vmem:[%s1362_s24 + $0xd8] sm:$0xff] %v1097_v49 }
 0x103   : > { %v660_v50 = vpop.f32.mrf.mxu0  ;;  %v724_v51 = vpop.f32.mrf.mxu1 }
 0x104   : > { %860 = vst [vmem:[%s1362_s24 + $0x48] sm:$0xff] %v660_v50  ;;  %876 = vst [vmem:[%s1362_s24 + $0xc8] sm:$0xff] %v724_v51 }
 0x105   : > { %v1084_v52 = vpop.f32.mrf.mxu0  ;;  %v1100_v53 = vpop.f32.mrf.mxu1 }
 0x106   : > { %865 = vst [vmem:[%s1362_s24 + $0x70] sm:$0xff] %v1084_v52  ;;  %881 = vst [vmem:[%s1362_s24 + $0xf0] sm:$0xff] %v1100_v53 }
 0x107   : > { %v673_v54 = vpop.f32.mrf.mxu0  ;;  %v737_v55 = vpop.f32.mrf.mxu1 }
 0x108   : > { %863 = vst [vmem:[%s1362_s24 + $0x60] sm:$0xff] %v673_v54  ;;  %879 = vst [vmem:[%s1362_s24 + $0xe0] sm:$0xff] %v737_v55 }
 0x109   : > { %v1085_v56 = vpop.f32.mrf.mxu0  ;;  %v1101_v57 = vpop.f32.mrf.mxu1 }
 0x10a   : > { %866 = vst [vmem:[%s1362_s24 + $0x78] sm:$0xff] %v1085_v56  ;;  %882 = vst [vmem:[%s1362_s24 + $0xf8] sm:$0xff] %v1101_v57 }
 0x10b   : > { %v676_v58 = vpop.f32.mrf.mxu0  ;;  %v740_v59 = vpop.f32.mrf.mxu1 }
 0x10c   : > { %864 = vst [vmem:[%s1362_s24 + $0x68] sm:$0xff] %v676_v58  ;;  %880 = vst [vmem:[%s1362_s24 + $0xe8] sm:$0xff] %v740_v59 }
 0x10d PF: > { %s14_s17 = sadd.s32 1, %s1172_s17   ;;  %s1410_s15 = smov %s1168_s16 }
 0x10e   : > { %p11_p5 = scmp.ge.s32.totalorder %s14_s17, 4   ;;  %s1411_s16 = smov %s1413_s18 }
 0x110   :  { %13 = sbr.rel (!%p11_p5) target bundleno = 2 (0x2), region = 83 }

// kernel: heatmap_forward.23
= control target key start
LH: loop header
LB: loop body
LE: loop exit
PB: predicated region body
PF: predicated region fallthrough
CT: control target
= control target key end

     0   :  { %s5543_s9 = smov 0   ;;  %s7270_s0 = inlined_call_operand.vmem [shape: bf16[2,18,32,128], index: 0, kind: input, shape index: {}]   ;;  %s7271_s1 = inlined_call_operand.vmem [shape: bf16[9,128,32], index: 1, kind: input, shape index: {}]   ;;  %s7272_s2 = inlined_call_operand.vmem [shape: f32[2,16,16,32], index: 2, kind: output, shape index: {}]  }
   0x1 LB: > { %s4028_s10 = sadd.s32 4294967295, %s5526_s9   ;;  %p4032_p0 = scmp.ge.s32.totalorder %s5526_s9, 1  ;;  %s5526_s9 = sphi %s5543_s9, %s12_s9  }
   0x2   : > { %p112_p1 = scmp.lt.s32.totalorder %s5526_s9, 3 }
   0x4   : > { %p113_p2 = pnand %p4032_p0, %p112_p1 }
   0x6   : > { %116 = sbr.rel (%p113_p2) target bundleno = 821 (0x335), region = 28 }
   0xb   : > { %v5380_v0 = vld [vmem:[%s7271_s1 + $0xf8] sm:$0xff]   ;;  %p134_p3 = scmp.lt.s32.totalorder %s4028_s10, 1  ;;  %v5381_v1 = vld [vmem:[%s7271_s1 + $0xf0] sm:$0xff]   ;;  %v5382_v2 = vld [vmem:[%s7271_s1 + $0xe8] sm:$0xff]   ;;  %vm3602_vm0 = vcmask 1046528   ;;  %vm3795_vm1 = vcmask 1045504  }
   0xc   : > { %4635 = vmatprep.subr.bf16.mxu0 %v5380_v0  ;;  %5355 = vmatprep.subr.bf16.mxu1 %v5380_v0  ;;  %v5383_v3 = vld [vmem:[%s7271_s1 + $0xe0] sm:$0xff]   ;;  %v5384_v6 = vld [vmem:[%s7271_s1 + $0xd8] sm:$0xff]   ;;  %v5385_v7 = vld [vmem:[%s7271_s1 + $0xd0] sm:$0xff]   ;;  %vm3940_vm2 = vcmask 261120  }
   0xd   : > { %s7692_s10 = smov (!%p134_p3, %s4028_s10), 1  ;;  %4636 = vmatpush3.bf16.msra.mxu0 %v5380_v0  ;;  %5363 = vmatpush3.bf16.msra.mxu1 %v5380_v0  ;;  %v5386_v8 = vld [vmem:[%s7271_s1 + $0xc8] sm:$0xff]   ;;  %v5387_v9 = vld [vmem:[%s7271_s1 + $0xc0] sm:$0xff]   ;;  %v5392_v10 = vld [vmem:[%s7271_s1 + $0x38] sm:$0xff]  }
   0xe   : > { %4637 = vmatprep.subr.bf16.mxu0 %v5381_v1  ;;  %5356 = vmatprep.subr.bf16.mxu1 %v5381_v1  ;;  %s5371_s17 = smul.u32 288, %s7692_s10  ;;  %v5393_v12 = vld [vmem:[%s7271_s1 + $0x138] sm:$0xff]   ;;  %v5398_v16 = vld [vmem:[%s7271_s1 + $0x30] sm:$0xff]   ;;  %v5404_v18 = vld [vmem:[%s7271_s1 + $0x28] sm:$0xff]  }
   0xf   : > { %v5399_v17 = vld [vmem:[%s7271_s1 + $0x130] sm:$0xff]   ;;  %v5405_v20 = vld [vmem:[%s7271_s1 + $0x128] sm:$0xff]   ;;  %v5410_v24 = vld [vmem:[%s7271_s1 + $0x20] sm:$0xff]  }
  0x10   : > { %s5566_s20 = scalar_lea.vmem %s7270_s0, %s5371_s17  ;;  %v5411_v25 = vld [vmem:[%s7271_s1 + $0x120] sm:$0xff]   ;;  %v5416_v28 = vld [vmem:[%s7271_s1 + $0x18] sm:$0xff]   ;;  %v5422_v32 = vld [vmem:[%s7271_s1 + $0x10] sm:$0xff]  }
  0x11   : > { %4638 = vmatpush3.bf16.msra.mxu0 %v5381_v1  ;;  %5364 = vmatpush3.bf16.msra.mxu1 %v5381_v1  ;;  %v5572_v4 = vld [vmem:[%s5566_s20 + $0x10] sm:$0xff]   ;;  %v5595_v11 = vld [vmem:[%s5566_s20 + $0x18] sm:$0xff]   ;;  %v5604_v14 = vld [vmem:[%s5566_s20 + $0x20] sm:$0xff]  }
  0x12   : > { %4639 = vmatprep.subr.bf16.mxu0 %v5382_v2  ;;  %5357 = vmatprep.subr.bf16.mxu1 %v5382_v2  ;;  %v5575_v5 = vld [vmem:[%s5566_s20 + $0x90] sm:$0xff]   ;;  %v5601_v13 = vld [vmem:[%s5566_s20 + $0x98] sm:$0xff]   ;;  %v5607_v15 = vld [vmem:[%s5566_s20 + $0xa0] sm:$0xff]  }
  0x13   : > { %4651 = vmatprep.mubr.bf16.mxu0 %v5572_v4  ;;  %4683 = vmatprep.mubr.bf16.mxu1 %v5575_v5  ;;  %v5623_v19 = vld [vmem:[%s5566_s20 + $0x28] sm:$0xff]   ;;  %v5632_v22 = vld [vmem:[%s5566_s20 + $0x30] sm:$0xff]   ;;  %v5648_v26 = vld [vmem:[%s5566_s20 + $0x38] sm:$0xff]  }
  0x14   : > { %v5629_v21 = vld [vmem:[%s5566_s20 + $0xa8] sm:$0xff]   ;;  %v5635_v23 = vld [vmem:[%s5566_s20 + $0xb0] sm:$0xff]   ;;  %v5651_v27 = vld [vmem:[%s5566_s20 + $0xb8] sm:$0xff]  }
  0x15   : > { %4640 = vmatpush3.bf16.msra.mxu0 %v5382_v2  ;;  %5365 = vmatpush3.bf16.msra.mxu1 %v5382_v2  ;;  %v5417_v29 = vld [vmem:[%s7271_s1 + $0x118] sm:$0xff]   ;;  %v5660_v30 = vld [vmem:[%s5566_s20 + $0x40] sm:$0xff]   ;;  %v5423_v33 = vld [vmem:[%s7271_s1 + $0x110] sm:$0xff]  }
  0x16   : > { %4641 = vmatprep.subr.bf16.mxu0 %v5383_v3  ;;  %5358 = vmatprep.subr.bf16.mxu1 %v5383_v3  ;;  %v5663_v31 = vld [vmem:[%s5566_s20 + $0xc0] sm:$0xff]   ;;  %v5676_v34 = vld [vmem:[%s5566_s20 + $0x48] sm:$0xff]   ;;  %v5688_v38 = vld [vmem:[%s5566_s20 + $0x50] sm:$0xff]  }
  0x17   : > { %v5679_v35 = vld [vmem:[%s5566_s20 + $0xc8] sm:$0xff]   ;;  %v5691_v39 = vld [vmem:[%s5566_s20 + $0xd0] sm:$0xff]   ;;  %v5434_v40 = vld [vmem:[%s7271_s1] sm:$0xff]  }
  0x18   : > { %v5428_v36 = vld [vmem:[%s7271_s1 + $0x8] sm:$0xff]   ;;  %v5435_v41 = vld [vmem:[%s7271_s1 + $0x100] sm:$0xff]   ;;  %v5704_v42 = vld [vmem:[%s5566_s20 + $0x58] sm:$0xff]  }
  0x19   : > { %4642 = vmatpush3.bf16.msra.mxu0 %v5383_v3  ;;  %5366 = vmatpush3.bf16.msra.mxu1 %v5383_v3  ;;  %v5429_v37 = vld [vmem:[%s7271_s1 + $0x108] sm:$0xff]   ;;  %v5707_v43 = vld [vmem:[%s5566_s20 + $0xd8] sm:$0xff]   ;;  %v5716_v46 = vld [vmem:[%s5566_s20 + $0x60] sm:$0xff]  }
  0x1a   : > { %4643 = vmatprep.subr.bf16.mxu0 %v5384_v6  ;;  %5359 = vmatprep.subr.bf16.mxu1 %v5384_v6  ;;  %v5438_v44 = vld [vmem:[%s7271_s1 + $0x78] sm:$0xff]   ;;  %v5719_v47 = vld [vmem:[%s5566_s20 + $0xe0] sm:$0xff]   ;;  %v5726_v48 = vld [vmem:[%s5566_s20 + $0x68] sm:$0xff]  }
  0x1b   : > { %v5439_v45 = vld [vmem:[%s7271_s1 + $0x178] sm:$0xff]   ;;  %v5729_v49 = vld [vmem:[%s5566_s20 + $0xe8] sm:$0xff]   ;;  %v5732_v50 = vld [vmem:[%s5566_s20 + $0x70] sm:$0xff]  }
  0x1c   : > { %v5735_v51 = vld [vmem:[%s5566_s20 + $0xf0] sm:$0xff]   ;;  %v5742_v52 = vld [vmem:[%s5566_s20 + $0x78] sm:$0xff]   ;;  %v5748_v54 = vld [vmem:[%s5566_s20 + $0x80] sm:$0xff]  }
  0x1d   : > { %4644 = vmatpush3.bf16.msra.mxu0 %v5384_v6  ;;  %5367 = vmatpush3.bf16.msra.mxu1 %v5384_v6  ;;  %v5745_v53 = vld [vmem:[%s5566_s20 + $0xf8] sm:$0xff]   ;;  %v5751_v55 = vld [vmem:[%s5566_s20 + $0x100] sm:$0xff]   ;;  %v5758_v56 = vld [vmem:[%s5566_s20 + $0x88] sm:$0xff]  }
  0x1e   : > { %4645 = vmatprep.subr.bf16.mxu0 %v5385_v7  ;;  %5360 = vmatprep.subr.bf16.mxu1 %v5385_v7  ;;  %v5761_v57 = vld [vmem:[%s5566_s20 + $0x108] sm:$0xff]   ;;  %v5764_v58 = vld [vmem:[%s5566_s20] sm:$0xff]   ;;  %v5440_v60 = vld [vmem:[%s7271_s1 + $0x70] sm:$0xff]  }
  0x1f   : > { %v5771_v59 = vld [vmem:[%s5566_s20 + $0x8] sm:$0xff]   ;;  %v5441_v61 = vld [vmem:[%s7271_s1 + $0x170] sm:$0xff]   ;;  %v5444_v0 = vld [vmem:[%s7271_s1 + $0x60] sm:$0xff]  }
  0x20   : > { %v5442_v62 = vld [vmem:[%s7271_s1 + $0x68] sm:$0xff]   ;;  %v5445_v1 = vld [vmem:[%s7271_s1 + $0x160] sm:$0xff]   ;;  %v5446_v2 = vld [vmem:[%s7271_s1 + $0x58] sm:$0xff]  }
  0x21   : > { %4646 = vmatpush3.bf16.msra.mxu0 %v5385_v7  ;;  %5368 = vmatpush3.bf16.msra.mxu1 %v5385_v7  ;;  %v5443_v63 = vld [vmem:[%s7271_s1 + $0x168] sm:$0xff]   ;;  %v5447_v3 = vld [vmem:[%s7271_s1 + $0x158] sm:$0xff]   ;;  %v5448_v6 = vld [vmem:[%s7271_s1 + $0x50] sm:$0xff]  }
  0x22   : > { %4647 = vmatprep.subr.bf16.mxu0 %v5386_v8  ;;  %5361 = vmatprep.subr.bf16.mxu1 %v5386_v8  ;;  %v5449_v7 = vld [vmem:[%s7271_s1 + $0x150] sm:$0xff]  }
  0x25   : > { %4648 = vmatpush3.bf16.msra.mxu0 %v5386_v8  ;;  %5369 = vmatpush3.bf16.msra.mxu1 %v5386_v8  ;;  %v5450_v8 = vld [vmem:[%s7271_s1 + $0x48] sm:$0xff]  }
  0x26   : > { %4649 = vmatprep.subr.bf16.mxu0 %v5387_v9  ;;  %5362 = vmatprep.subr.bf16.mxu1 %v5387_v9 }
  0x29   : > { %4650 = vmatpush3.bf16.msra.mxu0 %v5387_v9  ;;  %5370 = vmatpush3.bf16.msra.mxu1 %v5387_v9  ;;  %v5451_v9 = vld [vmem:[%s7271_s1 + $0x148] sm:$0xff]  }
  0x2a   : > { %4715 = vmatprep.subr.bf16.mxu1 %v5392_v10  ;;  %4795 = vmatprep.subr.bf16.mxu0 %v5393_v12 }
  0x2c   : > { %4652 = vmatmul.mubr.bf16.vlgmr.msra.gmra.mxu0 %v5595_v11  ;;  %4684 = vmatmul.mubr.bf16.vlgmr.msra.gmra.mxu1 %v5601_v13 }
  0x2d   : > { %4716 = vmatpush3.bf16.msra.mxu1 %v5392_v10  ;;  %4796 = vmatpush3.bf16.msra.mxu0 %v5393_v12  ;;  %v5452_v10 = vld [vmem:[%s7271_s1 + $0x40] sm:$0xff]  }
  0x2e   : > { %4655 = vmatprep.mubr.bf16.mxu0 %v5604_v14  ;;  %4687 = vmatprep.mubr.bf16.mxu1 %v5607_v15  ;;  %v5453_v12 = vld [vmem:[%s7271_s1 + $0x140] sm:$0xff]  }
  0x2f   : > { %4717 = vmatprep.subr.bf16.mxu1 %v5398_v16  ;;  %4797 = vmatprep.subr.bf16.mxu0 %v5399_v17 }
  0x31   : > { %4718 = vmatpush3.bf16.msra.mxu1 %v5398_v16  ;;  %4798 = vmatpush3.bf16.msra.mxu0 %v5399_v17  ;;  %v5454_v16 = vld [vmem:[%s7271_s1 + $0xb8] sm:$0xff]  }
  0x32   : > { %4719 = vmatprep.subr.bf16.mxu1 %v5404_v18  ;;  %4799 = vmatprep.subr.bf16.mxu0 %v5405_v20  ;;  %v5455_v17 = vld [vmem:[%s7271_s1 + $0x1b8] sm:$0xff]  }
  0x34   : > { %4656 = vmatmul.mubr.bf16.gmra.mxu0 %v5623_v19  ;;  %4688 = vmatmul.mubr.bf16.gmra.mxu1 %v5629_v21 }
  0x35   : > { %4659 = vmatprep.mubr.bf16.mxu0 %v5632_v22  ;;  %4691 = vmatprep.mubr.bf16.mxu1 %v5635_v23 }
  0x36   : > { %4720 = vmatpush3.bf16.msra.mxu1 %v5404_v18  ;;  %4800 = vmatpush3.bf16.msra.mxu0 %v5405_v20 }
  0x37   : > { %4721 = vmatprep.subr.bf16.mxu1 %v5410_v24  ;;  %4801 = vmatprep.subr.bf16.mxu0 %v5411_v25 }
  0x3a   : > { %4722 = vmatpush3.bf16.msra.mxu1 %v5410_v24  ;;  %4802 = vmatpush3.bf16.msra.mxu0 %v5411_v25  ;;  %v5458_v24 = vld [vmem:[%s7271_s1 + $0xa8] sm:$0xff]  }
  0x3b   : > { %4723 = vmatprep.subr.bf16.mxu1 %v5416_v28  ;;  %4803 = vmatprep.subr.bf16.mxu0 %v5417_v29  ;;  %v5459_v25 = vld [vmem:[%s7271_s1 + $0x1a8] sm:$0xff]  }
  0x3c   : > { %4660 = vmatmul.mubr.bf16.gmra.mxu0 %v5648_v26  ;;  %4692 = vmatmul.mubr.bf16.gmra.mxu1 %v5651_v27 }
  0x3d   : > { %4663 = vmatprep.mubr.bf16.mxu0 %v5660_v30  ;;  %4695 = vmatprep.mubr.bf16.mxu1 %v5663_v31 }
  0x3e   : > { %4724 = vmatpush3.bf16.msra.mxu1 %v5416_v28  ;;  %4804 = vmatpush3.bf16.msra.mxu0 %v5417_v29 }
  0x3f   : > { %4725 = vmatprep.subr.bf16.mxu1 %v5422_v32  ;;  %4805 = vmatprep.subr.bf16.mxu0 %v5423_v33 }
  0x42   : > { %4726 = vmatpush3.bf16.msra.mxu1 %v5422_v32  ;;  %4806 = vmatpush3.bf16.msra.mxu0 %v5423_v33 }
  0x43   : > { %4727 = vmatprep.subr.bf16.mxu1 %v5428_v36  ;;  %4807 = vmatprep.subr.bf16.mxu0 %v5429_v37 }
  0x44   : > { %4664 = vmatmul.mubr.bf16.gmra.mxu0 %v5676_v34  ;;  %4696 = vmatmul.mubr.bf16.gmra.mxu1 %v5679_v35 }
  0x45   : > { %4667 = vmatprep.mubr.bf16.mxu0 %v5688_v38  ;;  %4699 = vmatprep.mubr.bf16.mxu1 %v5691_v39 }
  0x46   : > { %4728 = vmatpush3.bf16.msra.mxu1 %v5428_v36  ;;  %4808 = vmatpush3.bf16.msra.mxu0 %v5429_v37  ;;  %v5461_v36 = vld [vmem:[%s7271_s1 + $0x1a0] sm:$0xff]  }
  0x47   : > { %4729 = vmatprep.subr.bf16.mxu1 %v5434_v40  ;;  %4809 = vmatprep.subr.bf16.mxu0 %v5435_v41 }
  0x4a   : > { %4730 = vmatpush3.bf16.msra.mxu1 %v5434_v40  ;;  %4810 = vmatpush3.bf16.msra.mxu0 %v5435_v41 }
  0x4b   : > { %4875 = vmatprep.subr.bf16.mxu1 %v5438_v44  ;;  %4955 = vmatprep.subr.bf16.mxu0 %v5439_v45 }
  0x4c   : > { %4668 = vmatmul.mubr.bf16.gmra.mxu0 %v5704_v42  ;;  %4700 = vmatmul.mubr.bf16.gmra.mxu1 %v5707_v43 }
  0x4d   : > { %4671 = vmatprep.mubr.bf16.mxu0 %v5716_v46  ;;  %4703 = vmatprep.mubr.bf16.mxu1 %v5719_v47 }
  0x54   : > { %4672 = vmatmul.mubr.bf16.gmra.mxu0 %v5726_v48  ;;  %4704 = vmatmul.mubr.bf16.gmra.mxu1 %v5729_v49 }
  0x55   : > { %4675 = vmatprep.mubr.bf16.mxu0 %v5732_v50  ;;  %4707 = vmatprep.mubr.bf16.mxu1 %v5735_v51 }
  0x5c   : > { %4676 = vmatmul.mubr.bf16.gmra.mxu0 %v5742_v52  ;;  %4708 = vmatmul.mubr.bf16.gmra.mxu1 %v5745_v53 }
  0x5d   : > { %4679 = vmatprep.mubr.bf16.mxu0 %v5748_v54  ;;  %4711 = vmatprep.mubr.bf16.mxu1 %v5751_v55 }
  0x64   : > { %4680 = vmatmul.mubr.bf16.gmra.mxu0 %v5758_v56  ;;  %4712 = vmatmul.mubr.bf16.gmra.mxu1 %v5761_v57 }
  0x65   : > { %4731 = vmatprep.mubr.bf16.mxu1 %v5764_v58  ;;  %4811 = vmatprep.mubr.bf16.mxu0 %v5572_v4 }
  0x6c   : > { %4732 = vmatmul.mubr.bf16.vlgmr.msra.gmra.mxu1 %v5771_v59  ;;  %4812 = vmatmul.mubr.bf16.vlgmr.msra.gmra.mxu0 %v5595_v11 }
  0x6d   : > { %4876 = vmatpush3.bf16.msra.mxu1 %v5438_v44  ;;  %4956 = vmatpush3.bf16.msra.mxu0 %v5439_v45  ;;  %v5462_v45 = vld [vmem:[%s7271_s1 + $0x98] sm:$0xff]  }
  0x6e   : > { %4735 = vmatprep.mubr.bf16.mxu1 %v5572_v4  ;;  %4815 = vmatprep.mubr.bf16.mxu0 %v5604_v14 }
  0x6f   : > { %4877 = vmatprep.subr.bf16.mxu1 %v5440_v60  ;;  %4957 = vmatprep.subr.bf16.mxu0 %v5441_v61 }
  0x71   : > { %4878 = vmatpush3.bf16.msra.mxu1 %v5440_v60  ;;  %4958 = vmatpush3.bf16.msra.mxu0 %v5441_v61 }
  0x72   : > { %4879 = vmatprep.subr.bf16.mxu1 %v5442_v62  ;;  %4959 = vmatprep.subr.bf16.mxu0 %v5443_v63 }
  0x74   : > { %4736 = vmatmul.mubr.bf16.gmra.mxu1 %v5595_v11  ;;  %4816 = vmatmul.mubr.bf16.gmra.mxu0 %v5623_v19 }
  0x75   : > { %4739 = vmatprep.mubr.bf16.mxu1 %v5604_v14  ;;  %4819 = vmatprep.mubr.bf16.mxu0 %v5632_v22 }
  0x76   : > { %4880 = vmatpush3.bf16.msra.mxu1 %v5442_v62  ;;  %4960 = vmatpush3.bf16.msra.mxu0 %v5443_v63  ;;  %v5464_v63 = vld [vmem:[%s7271_s1 + $0x90] sm:$0xff]  }
  0x77   : > { %4881 = vmatprep.subr.bf16.mxu1 %v5444_v0  ;;  %4961 = vmatprep.subr.bf16.mxu0 %v5445_v1 }
  0x7a   : > { %4882 = vmatpush3.bf16.msra.mxu1 %v5444_v0  ;;  %4962 = vmatpush3.bf16.msra.mxu0 %v5445_v1  ;;  %v5465_v0 = vld [vmem:[%s7271_s1 + $0x190] sm:$0xff]  }
  0x7b   : > { %4883 = vmatprep.subr.bf16.mxu1 %v5446_v2  ;;  %4963 = vmatprep.subr.bf16.mxu0 %v5447_v3 }
  0x7c   : > { %4740 = vmatmul.mubr.bf16.gmra.mxu1 %v5623_v19  ;;  %4820 = vmatmul.mubr.bf16.gmra.mxu0 %v5648_v26 }
  0x7d   : > { %4743 = vmatprep.mubr.bf16.mxu1 %v5632_v22  ;;  %4823 = vmatprep.mubr.bf16.mxu0 %v5660_v30 }
  0x7e   : > { %4884 = vmatpush3.bf16.msra.mxu1 %v5446_v2  ;;  %4964 = vmatpush3.bf16.msra.mxu0 %v5447_v3 }
  0x7f   : > { %4885 = vmatprep.subr.bf16.mxu1 %v5448_v6  ;;  %4965 = vmatprep.subr.bf16.mxu0 %v5449_v7 }
  0x82   : > { %4886 = vmatpush3.bf16.msra.mxu1 %v5448_v6  ;;  %4966 = vmatpush3.bf16.msra.mxu0 %v5449_v7  ;;  %v5466_v7 = vld [vmem:[%s7271_s1 + $0x88] sm:$0xff]  }
  0x83   : > { %4887 = vmatprep.subr.bf16.mxu1 %v5450_v8  ;;  %4967 = vmatprep.subr.bf16.mxu0 %v5451_v9 }
  0x84   : > { %4744 = vmatmul.mubr.bf16.gmra.mxu1 %v5648_v26  ;;  %4824 = vmatmul.mubr.bf16.gmra.mxu0 %v5676_v34 }
  0x85   : > { %4747 = vmatprep.mubr.bf16.mxu1 %v5660_v30  ;;  %4827 = vmatprep.mubr.bf16.mxu0 %v5688_v38 }
  0x86   : > { %4888 = vmatpush3.bf16.msra.mxu1 %v5450_v8  ;;  %4968 = vmatpush3.bf16.msra.mxu0 %v5451_v9 }
  0x87   : > { %4889 = vmatprep.subr.bf16.mxu1 %v5452_v10  ;;  %4969 = vmatprep.subr.bf16.mxu0 %v5453_v12 }
  0x8a   : > { %4890 = vmatpush3.bf16.msra.mxu1 %v5452_v10  ;;  %4970 = vmatpush3.bf16.msra.mxu0 %v5453_v12  ;;  %v5468_v12 = vld [vmem:[%s7271_s1 + $0x80] sm:$0xff]  }
  0x8b   : > { %5035 = vmatprep.subr.bf16.mxu1 %v5454_v16  ;;  %5115 = vmatprep.subr.bf16.mxu0 %v5455_v17 }
  0x8c   : > { %4748 = vmatmul.mubr.bf16.gmra.mxu1 %v5676_v34  ;;  %4828 = vmatmul.mubr.bf16.gmra.mxu0 %v5704_v42 }
  0x8d   : > { %4751 = vmatprep.mubr.bf16.mxu1 %v5688_v38  ;;  %4831 = vmatprep.mubr.bf16.mxu0 %v5716_v46 }
  0x94   : > { %4752 = vmatmul.mubr.bf16.gmra.mxu1 %v5704_v42  ;;  %4832 = vmatmul.mubr.bf16.gmra.mxu0 %v5726_v48 }
  0x95   : > { %4755 = vmatprep.mubr.bf16.mxu1 %v5716_v46  ;;  %4835 = vmatprep.mubr.bf16.mxu0 %v5732_v50 }
  0x9c   : > { %4756 = vmatmul.mubr.bf16.gmra.mxu1 %v5726_v48  ;;  %4836 = vmatmul.mubr.bf16.gmra.mxu0 %v5742_v52 }
  0x9d   : > { %4759 = vmatprep.mubr.bf16.mxu1 %v5732_v50  ;;  %4839 = vmatprep.mubr.bf16.mxu0 %v5748_v54 }
  0xa4   : > { %4760 = vmatmul.mubr.bf16.gmra.mxu1 %v5742_v52  ;;  %4840 = vmatmul.mubr.bf16.gmra.mxu0 %v5758_v56 }
  0xa5   : > { %4763 = vmatprep.mubr.bf16.mxu1 %v5748_v54  ;;  %4843 = vmatprep.mubr.bf16.mxu0 %v5575_v5 }
  0xac   : > { %4764 = vmatmul.mubr.bf16.gmra.mxu1 %v5758_v56  ;;  %4844 = vmatmul.mubr.bf16.gmra.mxu0 %v5601_v13 }
  0xad   : > { %4767 = vmatprep.mubr.bf16.mxu1 %v5575_v5  ;;  %4847 = vmatprep.mubr.bf16.mxu0 %v5607_v15  ;;  %v5456_v5 = vld [vmem:[%s7271_s1 + $0xb0] sm:$0xff]  }
  0xb4   : > { %4768 = vmatmul.mubr.bf16.gmra.mxu1 %v5601_v13  ;;  %4848 = vmatmul.mubr.bf16.gmra.mxu0 %v5629_v21  ;;  %v5457_v13 = vld [vmem:[%s7271_s1 + $0x1b0] sm:$0xff]  }
  0xb5   : > { %4771 = vmatprep.mubr.bf16.mxu1 %v5607_v15  ;;  %4851 = vmatprep.mubr.bf16.mxu0 %v5635_v23 }
  0xbc   : > { %4772 = vmatmul.mubr.bf16.gmra.mxu1 %v5629_v21  ;;  %4852 = vmatmul.mubr.bf16.gmra.mxu0 %v5651_v27 }
  0xbd   : > { %4775 = vmatprep.mubr.bf16.mxu1 %v5635_v23  ;;  %4855 = vmatprep.mubr.bf16.mxu0 %v5663_v31 }
  0xc4   : > { %4776 = vmatmul.mubr.bf16.gmra.mxu1 %v5651_v27  ;;  %4856 = vmatmul.mubr.bf16.gmra.mxu0 %v5679_v35 }
  0xc5   : > { %4779 = vmatprep.mubr.bf16.mxu1 %v5663_v31  ;;  %4859 = vmatprep.mubr.bf16.mxu0 %v5691_v39 }
  0xcc   : > { %4780 = vmatmul.mubr.bf16.gmra.mxu1 %v5679_v35  ;;  %4860 = vmatmul.mubr.bf16.gmra.mxu0 %v5707_v43 }
  0xcd   : > { %4783 = vmatprep.mubr.bf16.mxu1 %v5691_v39  ;;  %4863 = vmatprep.mubr.bf16.mxu0 %v5719_v47 }
  0xd4   : > { %4784 = vmatmul.mubr.bf16.gmra.mxu1 %v5707_v43  ;;  %4864 = vmatmul.mubr.bf16.gmra.mxu0 %v5729_v49 }
  0xd5   : > { %4787 = vmatprep.mubr.bf16.mxu1 %v5719_v47  ;;  %4867 = vmatprep.mubr.bf16.mxu0 %v5735_v51 }
  0xdc   : > { %4788 = vmatmul.mubr.bf16.gmra.mxu1 %v5729_v49  ;;  %4868 = vmatmul.mubr.bf16.gmra.mxu0 %v5745_v53 }
  0xdd   : > { %4791 = vmatprep.mubr.bf16.mxu1 %v5735_v51  ;;  %4871 = vmatprep.mubr.bf16.mxu0 %v5751_v55 }
  0xe4   : > { %4792 = vmatmul.mubr.bf16.gmra.mxu1 %v5745_v53  ;;  %4872 = vmatmul.mubr.bf16.gmra.mxu0 %v5761_v57 }
  0xe5   : > { %4891 = vmatprep.mubr.bf16.mxu1 %v5764_v58  ;;  %4971 = vmatprep.mubr.bf16.mxu0 %v5572_v4 }
  0xec   : > { %v4653_v15 = vpop.f32.mrf.mxu0  ;;  %v4685_v18 = vpop.f32.mrf.mxu1  ;;  %4892 = vmatmul.mubr.bf16.vlgmr.msra.gmra.mxu1 %v5771_v59  ;;  %4972 = vmatmul.mubr.bf16.vlgmr.msra.gmra.mxu0 %v5595_v11 }
  0xed   : > { %5036 = vmatpush3.bf16.msra.mxu1 %v5454_v16  ;;  %5116 = vmatpush3.bf16.msra.mxu0 %v5455_v17  ;;  %v5469_v16 = vld [vmem:[%s7271_s1 + $0x180] sm:$0xff]   ;;  %v5974_v18 = vld [vmem:[%s7271_s1 + $0x1f8] sm:$0xff]  }
  0xee   : > { %v5893_v20 = vpop.f32.mrf.mxu0  ;;  %v5895_v21 = vpop.f32.mrf.mxu1  ;;  %4895 = vmatprep.mubr.bf16.mxu1 %v5572_v4  ;;  %4975 = vmatprep.mubr.bf16.mxu0 %v5604_v14  ;;  %v5460_v4 = vld [vmem:[%s7271_s1 + $0xa0] sm:$0xff]  }
  0xef   : > { %5037 = vmatprep.subr.bf16.mxu1 %v5456_v5  ;;  %5117 = vmatprep.subr.bf16.mxu0 %v5457_v13 }
  0xf0   : > { %v4654_v28 = vpop.f32.mrf.mxu0  ;;  %v4686_v29 = vpop.f32.mrf.mxu1 }
  0xf1   : > { %5038 = vmatpush3.bf16.msra.mxu1 %v5456_v5  ;;  %5118 = vmatpush3.bf16.msra.mxu0 %v5457_v13 }
  0xf2   : > { %v5905_v32 = vpop.f32.mrf.mxu0  ;;  %v5907_v33 = vpop.f32.mrf.mxu1  ;;  %5039 = vmatprep.subr.bf16.mxu1 %v5458_v24  ;;  %5119 = vmatprep.subr.bf16.mxu0 %v5459_v25 }
  0xf4   : > { %v4657_v37 = vpop.f32.mrf.mxu0  ;;  %v4689_v40 = vpop.f32.mrf.mxu1  ;;  %4896 = vmatmul.mubr.bf16.gmra.mxu1 %v5595_v11  ;;  %4976 = vmatmul.mubr.bf16.gmra.mxu0 %v5623_v19  ;;  %v5463_v11 = vld [vmem:[%s7271_s1 + $0x198] sm:$0xff]  }
  0xf5   : > { %4899 = vmatprep.mubr.bf16.mxu1 %v5604_v14  ;;  %4979 = vmatprep.mubr.bf16.mxu0 %v5632_v22 }
  0xf6   : > { %v5919_v41 = vpop.f32.mrf.mxu0  ;;  %v5921_v44 = vpop.f32.mrf.mxu1  ;;  %5040 = vmatpush3.bf16.msra.mxu1 %v5458_v24  ;;  %5120 = vmatpush3.bf16.msra.mxu0 %v5459_v25 }
  0xf7   : > { %5041 = vmatprep.subr.bf16.mxu1 %v5460_v4  ;;  %5121 = vmatprep.subr.bf16.mxu0 %v5461_v36 }
  0xf8   : > { %v4658_v60 = vpop.f32.mrf.mxu0  ;;  %v4690_v14 = vpop.f32.mrf.mxu1 }
  0xfa   : > { %v5929_v61 = vpop.f32.mrf.mxu0  ;;  %v5931_v62 = vpop.f32.mrf.mxu1  ;;  %5042 = vmatpush3.bf16.msra.mxu1 %v5460_v4  ;;  %5122 = vmatpush3.bf16.msra.mxu0 %v5461_v36 }
  0xfb   : > { %5043 = vmatprep.subr.bf16.mxu1 %v5462_v45  ;;  %5123 = vmatprep.subr.bf16.mxu0 %v5463_v11 }
  0xfc   : > { %v4661_v1 = vpop.f32.mrf.mxu0  ;;  %v4693_v2 = vpop.f32.mrf.mxu1  ;;  %4900 = vmatmul.mubr.bf16.gmra.mxu1 %v5623_v19  ;;  %4980 = vmatmul.mubr.bf16.gmra.mxu0 %v5648_v26  ;;  %v5467_v19 = vld [vmem:[%s7271_s1 + $0x188] sm:$0xff]  }
  0xfd   : > { %4903 = vmatprep.mubr.bf16.mxu1 %v5632_v22  ;;  %4983 = vmatprep.mubr.bf16.mxu0 %v5660_v30 }
  0xfe   : > { %v5943_v3 = vpop.f32.mrf.mxu0  ;;  %v5945_v6 = vpop.f32.mrf.mxu1  ;;  %5044 = vmatpush3.bf16.msra.mxu1 %v5462_v45  ;;  %5124 = vmatpush3.bf16.msra.mxu0 %v5463_v11 }
  0xff   : > { %7273 = vst [vmem:[#allocation2_spill] sm:$0xff] %v5945_v6  ;;  %5045 = vmatprep.subr.bf16.mxu1 %v5464_v63  ;;  %5125 = vmatprep.subr.bf16.mxu0 %v5465_v0 }
 0x100   : > { %v4662_v8 = vpop.f32.mrf.mxu0  ;;  %v4694_v22 = vpop.f32.mrf.mxu1 }
 0x102   : > { %v5953_v9 = vpop.f32.mrf.mxu0  ;;  %v5955_v10 = vpop.f32.mrf.mxu1  ;;  %5046 = vmatpush3.bf16.msra.mxu1 %v5464_v63  ;;  %5126 = vmatpush3.bf16.msra.mxu0 %v5465_v0 }
 0x103   : > { %7274 = vst [vmem:[#allocation3_spill] sm:$0xff] %v5955_v10  ;;  %5047 = vmatprep.subr.bf16.mxu1 %v5466_v7  ;;  %5127 = vmatprep.subr.bf16.mxu0 %v5467_v19 }
 0x104   : > { %v4665_v17 = vpop.f32.mrf.mxu0  ;;  %v4697_v5 = vpop.f32.mrf.mxu1  ;;  %4904 = vmatmul.mubr.bf16.gmra.mxu1 %v5648_v26  ;;  %4984 = vmatmul.mubr.bf16.gmra.mxu0 %v5676_v34  ;;  %v5979_v26 = vld [vmem:[%s7271_s1 + $0x238] sm:$0xff]  }
 0x105   : > { %4907 = vmatprep.mubr.bf16.mxu1 %v5660_v30  ;;  %4987 = vmatprep.mubr.bf16.mxu0 %v5688_v38 }
 0x106   : > { %v5967_v13 = vpop.f32.mrf.mxu0  ;;  %v5969_v15 = vpop.f32.mrf.mxu1  ;;  %5048 = vmatpush3.bf16.msra.mxu1 %v5466_v7  ;;  %5128 = vmatpush3.bf16.msra.mxu0 %v5467_v19 }
 0x107   : > { %7275 = vst [vmem:[#allocation4_spill] sm:$0xff] %v5969_v15  ;;  %5049 = vmatprep.subr.bf16.mxu1 %v5468_v12  ;;  %5129 = vmatprep.subr.bf16.mxu0 %v5469_v16  ;;  %v6486_v15 = vld [vmem:[%s5566_s20 + $0xf8] sm:$0xff]  }
 0x108   : > { %v4666_v30 = vpop.f32.mrf.mxu0  ;;  %v4698_v24 = vpop.f32.mrf.mxu1 }
 0x10a   : > { %v5981_v25 = vpop.f32.mrf.mxu0  ;;  %v5983_v28 = vpop.f32.mrf.mxu1  ;;  %5050 = vmatpush3.bf16.msra.mxu1 %v5468_v12  ;;  %5130 = vmatpush3.bf16.msra.mxu0 %v5469_v16 }
 0x10b   : > { %7276 = vst [vmem:[#allocation5_spill] sm:$0xff] %v5983_v28  ;;  %5195 = vmatprep.subr.bf16.mxu1 %v5974_v18  ;;  %5275 = vmatprep.subr.bf16.mxu0 %v5979_v26  ;;  %v6464_v28 = vld [vmem:[%s5566_s20 + $0xe8] sm:$0xff]  }
 0x10c   : > { %v4669_v29 = vpop.f32.mrf.mxu0  ;;  %v4701_v4 = vpop.f32.mrf.mxu1  ;;  %4908 = vmatmul.mubr.bf16.gmra.mxu1 %v5676_v34  ;;  %4988 = vmatmul.mubr.bf16.gmra.mxu0 %v5704_v42 }
 0x10d   : > { %4911 = vmatprep.mubr.bf16.mxu1 %v5688_v38  ;;  %4991 = vmatprep.mubr.bf16.mxu0 %v5716_v46 }
 0x10e   : > { %v5991_v36 = vpop.f32.mrf.mxu0  ;;  %v5993_v37 = vpop.f32.mrf.mxu1 }
 0x10f   : > { %7277 = vst [vmem:[#allocation6_spill] sm:$0xff] %v5993_v37  ;;  %v6442_v37 = vld [vmem:[%s5566_s20 + $0xd8] sm:$0xff]  }
 0x110   : > { %v4670_v40 = vpop.f32.mrf.mxu0  ;;  %v4702_v45 = vpop.f32.mrf.mxu1 }
 0x112   : > { %v5995_v11 = vpop.f32.mrf.mxu0  ;;  %v5997_v60 = vpop.f32.mrf.mxu1 }
 0x113   : > { %7278 = vst [vmem:[#allocation7_spill] sm:$0xff] %v5997_v60  ;;  %v6420_v60 = vld [vmem:[%s5566_s20 + $0xc8] sm:$0xff]  }
 0x114   : > { %v4673_v14 = vpop.f32.mrf.mxu0  ;;  %v4705_v63 = vpop.f32.mrf.mxu1  ;;  %4912 = vmatmul.mubr.bf16.gmra.mxu1 %v5704_v42  ;;  %4992 = vmatmul.mubr.bf16.gmra.mxu0 %v5726_v48 }
 0x115   : > { %4915 = vmatprep.mubr.bf16.mxu1 %v5716_v46  ;;  %4995 = vmatprep.mubr.bf16.mxu0 %v5732_v50  ;;  %v6047_v63 = vld [vmem:[%s5566_s20 + $0xa0] sm:$0xff]  }
 0x116   : > { %v6003_v34 = vpop.f32.mrf.mxu0  ;;  %v6005_v38 = vpop.f32.mrf.mxu1 }
 0x117   : > { %7279 = vst [vmem:[#allocation8_spill] sm:$0xff] %v6005_v38  ;;  %v6398_v38 = vld [vmem:[%s5566_s20 + $0xb8] sm:$0xff]  }
 0x118   : > { %v4674_v0 = vpop.f32.mrf.mxu0  ;;  %v4706_v1 = vpop.f32.mrf.mxu1 }
 0x11a   : > { %v6007_v2 = vpop.f32.mrf.mxu0  ;;  %v6009_v7 = vpop.f32.mrf.mxu1 }
 0x11b   : > { %7280 = vst [vmem:[#allocation9_spill] sm:$0xff] %v6009_v7  ;;  %v6349_v7 = vld [vmem:[%s5566_s20 + $0x88] sm:$0xff]  }
 0x11c   : > { %v4677_v19 = vpop.f32.mrf.mxu0  ;;  %v4709_v8 = vpop.f32.mrf.mxu1  ;;  %4916 = vmatmul.mubr.bf16.gmra.mxu1 %v5726_v48  ;;  %4996 = vmatmul.mubr.bf16.gmra.mxu0 %v5742_v52  ;;  %v6027_v48 = vld [vmem:[%s5566_s20 + $0x90] sm:$0xff]  }
 0x11d   : > { %4919 = vmatprep.mubr.bf16.mxu1 %v5732_v50  ;;  %4999 = vmatprep.mubr.bf16.mxu0 %v5748_v54 }
 0x11e   : > { %v6015_v42 = vpop.f32.mrf.mxu0  ;;  %v6017_v46 = vpop.f32.mrf.mxu1 }
 0x11f   : > { %7281 = vst [vmem:[#allocation10_spill] sm:$0xff] %v6017_v46 }
 0x120   : > { %v4678_v22 = vpop.f32.mrf.mxu0  ;;  %v4710_v12 = vpop.f32.mrf.mxu1 }
 0x122   : > { %v6019_v16 = vpop.f32.mrf.mxu0  ;;  %v6021_v17 = vpop.f32.mrf.mxu1 }
 0x123   : > { %7282 = vst [vmem:[#allocation11_spill] sm:$0xff] %v6021_v17 }
 0x124   : > { %v4681_v5 = vpop.f32.mrf.mxu0  ;;  %v4713_v30 = vpop.f32.mrf.mxu1  ;;  %4920 = vmatmul.mubr.bf16.gmra.mxu1 %v5742_v52  ;;  %5000 = vmatmul.mubr.bf16.gmra.mxu0 %v5758_v56 }
 0x125   : > { %4923 = vmatprep.mubr.bf16.mxu1 %v5748_v54  ;;  %5003 = vmatprep.mubr.bf16.mxu0 %v6027_v48  ;;  %v6042_v54 = vld [vmem:[%s5566_s20 + $0x98] sm:$0xff]  }
 0x126   : > { %v6030_v50 = vpop.f32.mrf.mxu0  ;;  %v6032_v24 = vpop.f32.mrf.mxu1 }
 0x127   : > { %7283 = vst [vmem:[#allocation12_spill] sm:$0xff] %v6032_v24  ;;  %v6334_v24 = vld [vmem:[%s5566_s20 + $0x80] sm:$0xff]  }
 0x128   : > { %v4682_v29 = vpop.f32.mrf.mxu0  ;;  %v4714_v4 = vpop.f32.mrf.mxu1 }
 0x129   : > { %v6064_v4 = vld [vmem:[%s5566_s20 + $0xa8] sm:$0xff]  }
 0x12a   : > { %v6034_v40 = vpop.f32.mrf.mxu0  ;;  %v6036_v45 = vpop.f32.mrf.mxu1 }
 0x12b   : > { %7284 = vst [vmem:[#allocation13_spill] sm:$0xff] %v6036_v45  ;;  %v6329_v45 = vld [vmem:[%s5566_s20 + $0x78] sm:$0xff]  }
 0x12c   : > { %v4733_v52 = vpop.f32.mrf.mxu1  ;;  %v6038_v14 = vpop.f32.mrf.mxu0  ;;  %4924 = vmatmul.mubr.bf16.gmra.mxu1 %v5758_v56  ;;  %5004 = vmatmul.mubr.bf16.gmra.mxu0 %v6042_v54 }
 0x12d   : > { %7285 = vst [vmem:[#allocation14_spill] sm:$0xff] %v6038_v14  ;;  %4927 = vmatprep.mubr.bf16.mxu1 %v6027_v48  ;;  %5007 = vmatprep.mubr.bf16.mxu0 %v6047_v63 }
 0x12e   : > { %v875_v0 = vpop.f32.mrf.mxu1  ;;  %v6050_v1 = vpop.f32.mrf.mxu0 }
 0x12f   : > { %7286 = vst [vmem:[#allocation15_spill] sm:$0xff] %v6050_v1  ;;  %v6053_v19 = vadd.f32 %v875_v0, %v5893_v20 }
 0x130   : > { %v4734_v8 = vpop.f32.mrf.mxu1  ;;  %v4814_v22 = vpop.f32.mrf.mxu0 }
 0x132   : > { %v878_v56 = vpop.f32.mrf.mxu1  ;;  %v6055_v12 = vpop.f32.mrf.mxu0 }
 0x133   : > { %7287 = vst [vmem:[#allocation16_spill] sm:$0xff] %v6055_v12  ;;  %v6058_v5 = vadd.f32 %v878_v56, %v5905_v32 }
 0x134   : > { %v4737_v30 = vpop.f32.mrf.mxu1  ;;  %v6060_v29 = vpop.f32.mrf.mxu0  ;;  %4928 = vmatmul.mubr.bf16.gmra.mxu1 %v6042_v54  ;;  %5008 = vmatmul.mubr.bf16.gmra.mxu0 %v6064_v4 }
 0x135   : > { %7288 = vst [vmem:[#allocation17_spill] sm:$0xff] %v6060_v29  ;;  %4931 = vmatprep.mubr.bf16.mxu1 %v6047_v63  ;;  %5011 = vmatprep.mubr.bf16.mxu0 %v5635_v23  ;;  %v6084_v23 = vld [vmem:[%s5566_s20 + $0xb0] sm:$0xff]  }
 0x136   : > { %v889_v20 = vpop.f32.mrf.mxu1  ;;  %v6069_v52 = vpop.f32.mrf.mxu0 }
 0x137   : > { %7289 = vst [vmem:[#allocation18_spill] sm:$0xff] %v6069_v52  ;;  %v6072_v32 = vadd.f32 %v889_v20, %v5919_v41 }
 0x138   : > { %v4738_v0 = vpop.f32.mrf.mxu1  ;;  %v4818_v8 = vpop.f32.mrf.mxu0 }
 0x13a   : > { %v892_v22 = vpop.f32.mrf.mxu1  ;;  %v6074_v56 = vpop.f32.mrf.mxu0 }
 0x13b   : > { %7290 = vst [vmem:[#allocation19_spill] sm:$0xff] %v6074_v56  ;;  %v6077_v30 = vadd.f32 %v892_v22, %v5929_v61 }
 0x13c   : > { %v4741_v29 = vpop.f32.mrf.mxu1  ;;  %v6079_v12 = vpop.f32.mrf.mxu0  ;;  %4932 = vmatmul.mubr.bf16.gmra.mxu1 %v6064_v4  ;;  %5012 = vmatmul.mubr.bf16.gmra.mxu0 %v5651_v27 }
 0x13d   : > { %7291 = vst [vmem:[#allocation20_spill] sm:$0xff] %v6079_v12  ;;  %4935 = vmatprep.mubr.bf16.mxu1 %v6084_v23  ;;  %5015 = vmatprep.mubr.bf16.mxu0 %v5663_v31 }
 0x13e   : > { %v903_v41 = vpop.f32.mrf.mxu1  ;;  %v6088_v20 = vpop.f32.mrf.mxu0 }
 0x13f   : > { %7292 = vst [vmem:[#allocation21_spill] sm:$0xff] %v6088_v20  ;;  %v6091_v0 = vadd.f32 %v903_v41, %v5943_v3 }
 0x140   : > { %v4742_v61 = vpop.f32.mrf.mxu1  ;;  %v4822_v29 = vpop.f32.mrf.mxu0 }
 0x142   : > { %v906_v8 = vpop.f32.mrf.mxu1  ;;  %v6093_v22 = vpop.f32.mrf.mxu0 }
 0x143   : > { %7293 = vst [vmem:[#allocation22_spill] sm:$0xff] %v6093_v22  ;;  %v6096_v12 = vadd.f32 %v906_v8, %v5953_v9 }
 0x144   : > { %v4745_v56 = vpop.f32.mrf.mxu1  ;;  %v6098_v52 = vpop.f32.mrf.mxu0  ;;  %4936 = vmatmul.mubr.bf16.gmra.mxu1 %v5651_v27  ;;  %5016 = vmatmul.mubr.bf16.gmra.mxu0 %v5679_v35 }
 0x145   : > { %7294 = vst [vmem:[#allocation23_spill] sm:$0xff] %v6098_v52  ;;  %4939 = vmatprep.mubr.bf16.mxu1 %v5663_v31  ;;  %5019 = vmatprep.mubr.bf16.mxu0 %v5691_v39 }
 0x146   : > { %v917_v3 = vpop.f32.mrf.mxu1  ;;  %v6104_v41 = vpop.f32.mrf.mxu0 }
 0x147   : > { %7295 = vst [vmem:[#allocation24_spill] sm:$0xff] %v6104_v41  ;;  %v6107_v61 = vadd.f32 %v917_v3, %v5967_v13 }
 0x148   : > { %v4746_v29 = vpop.f32.mrf.mxu1  ;;  %v4826_v9 = vpop.f32.mrf.mxu0 }
 0x14a   : > { %v920_v8 = vpop.f32.mrf.mxu1  ;;  %v6109_v56 = vpop.f32.mrf.mxu0 }
 0x14b   : > { %7296 = vst [vmem:[#allocation25_spill] sm:$0xff] %v6109_v56  ;;  %v6112_v52 = vadd.f32 %v920_v8, %v5981_v25 }
 0x14c   : > { %v4749_v27 = vpop.f32.mrf.mxu1  ;;  %v6114_v22 = vpop.f32.mrf.mxu0  ;;  %4940 = vmatmul.mubr.bf16.gmra.mxu1 %v5679_v35  ;;  %5020 = vmatmul.mubr.bf16.gmra.mxu0 %v5707_v43 }
 0x14d   : > { %7297 = vst [vmem:[#allocation26_spill] sm:$0xff] %v6114_v22  ;;  %4943 = vmatprep.mubr.bf16.mxu1 %v5691_v39  ;;  %5023 = vmatprep.mubr.bf16.mxu0 %v5719_v47 }
 0x14e   : > { %v931_v31 = vpop.f32.mrf.mxu1  ;;  %v6120_v13 = vpop.f32.mrf.mxu0 }
 0x14f   : > { %7298 = vst [vmem:[#allocation27_spill] sm:$0xff] %v6120_v13  ;;  %v6123_v3 = vadd.f32 %v931_v31, %v5991_v36 }
 0x150   : > { %v4750_v29 = vpop.f32.mrf.mxu1  ;;  %v4830_v25 = vpop.f32.mrf.mxu0 }
 0x152   : > { %v934_v9 = vpop.f32.mrf.mxu1  ;;  %v6125_v8 = vpop.f32.mrf.mxu0 }
 0x153   : > { %7299 = vst [vmem:[#allocation28_spill] sm:$0xff] %v6125_v8  ;;  %v6128_v27 = vadd.f32 %v934_v9, %v5995_v11 }
 0x154   : > { %v4753_v35 = vpop.f32.mrf.mxu1  ;;  %v6130_v22 = vpop.f32.mrf.mxu0  ;;  %4944 = vmatmul.mubr.bf16.gmra.mxu1 %v5707_v43  ;;  %5024 = vmatmul.mubr.bf16.gmra.mxu0 %v5729_v49 }
 0x155   : > { %7300 = vst [vmem:[#allocation29_spill] sm:$0xff] %v6130_v22  ;;  %4947 = vmatprep.mubr.bf16.mxu1 %v5719_v47  ;;  %5027 = vmatprep.mubr.bf16.mxu0 %v5735_v51 }
 0x156   : > { %v945_v39 = vpop.f32.mrf.mxu1  ;;  %v6136_v36 = vpop.f32.mrf.mxu0 }
 0x157   : > { %7301 = vst [vmem:[#allocation30_spill] sm:$0xff] %v6136_v36  ;;  %v6139_v31 = vadd.f32 %v945_v39, %v6003_v34 }
 0x158   : > { %v4754_v29 = vpop.f32.mrf.mxu1  ;;  %v4834_v11 = vpop.f32.mrf.mxu0 }
 0x15a   : > { %v948_v25 = vpop.f32.mrf.mxu1  ;;  %v6141_v9 = vpop.f32.mrf.mxu0 }
 0x15b   : > { %7302 = vst [vmem:[#allocation31_spill] sm:$0xff] %v6141_v9  ;;  %v6144_v35 = vadd.f32 %v948_v25, %v6007_v2 }
 0x15c   : > { %v4757_v43 = vpop.f32.mrf.mxu1  ;;  %v6146_v22 = vpop.f32.mrf.mxu0  ;;  %4948 = vmatmul.mubr.bf16.gmra.mxu1 %v5729_v49  ;;  %5028 = vmatmul.mubr.bf16.gmra.mxu0 %v5745_v53 }
 0x15d   : > { %7303 = vst [vmem:[#allocation32_spill] sm:$0xff] %v6146_v22  ;;  %4951 = vmatprep.mubr.bf16.mxu1 %v5735_v51  ;;  %5031 = vmatprep.mubr.bf16.mxu0 %v5751_v55  ;;  %v6168_v51 = vld [vmem:[%s5566_s20 + $0x20] sm:$0xff]  }
 0x15e   : > { %v959_v47 = vpop.f32.mrf.mxu1  ;;  %v6152_v34 = vpop.f32.mrf.mxu0 }
 0x15f   : > { %7304 = vst [vmem:[#allocation33_spill] sm:$0xff] %v6152_v34  ;;  %v6155_v39 = vadd.f32 %v959_v47, %v6015_v42 }
 0x160   : > { %v4758_v2 = vpop.f32.mrf.mxu1  ;;  %v4838_v29 = vpop.f32.mrf.mxu0 }
 0x162   : > { %v962_v11 = vpop.f32.mrf.mxu1  ;;  %v6157_v25 = vpop.f32.mrf.mxu0 }
 0x163   : > { %7305 = vst [vmem:[#allocation34_spill] sm:$0xff] %v6157_v25  ;;  %v6160_v49 = vadd.f32 %v962_v11, %v6019_v16  ;;  %v5473_v11 = vld [vmem:[%s7271_s1 + $0x230] sm:$0xff]  }
 0x164   : > { %v4761_v43 = vpop.f32.mrf.mxu1  ;;  %v6162_v22 = vpop.f32.mrf.mxu0  ;;  %4952 = vmatmul.mubr.bf16.gmra.mxu1 %v5745_v53  ;;  %5032 = vmatmul.mubr.bf16.gmra.mxu0 %v5761_v57 }
 0x165   : > { %7306 = vst [vmem:[#allocation35_spill] sm:$0xff] %v6162_v22  ;;  %5051 = vmatprep.mubr.bf16.mxu1 %v5764_v58  ;;  %5131 = vmatprep.mubr.bf16.mxu0 %v6168_v51  ;;  %v5472_v58 = vld [vmem:[%s7271_s1 + $0x1f0] sm:$0xff]  }
 0x166   : > { %v973_v55 = vpop.f32.mrf.mxu1  ;;  %v6171_v42 = vpop.f32.mrf.mxu0 }
 0x167   : > { %7307 = vst [vmem:[#allocation36_spill] sm:$0xff] %v6171_v42  ;;  %v6174_v16 = vadd.f32 %v973_v55, %v6030_v50  ;;  %v6191_v55 = vld [vmem:[%s5566_s20 + $0x28] sm:$0xff]  }
 0x168   : > { %v4762_v47 = vpop.f32.mrf.mxu1  ;;  %v4842_v2 = vpop.f32.mrf.mxu0 }
 0x169   : > { %v5495_v2 = vld [vmem:[%s5566_s20 + $0x10] sm:$0xff]  }
 0x16a   : > { %v976_v29 = vpop.f32.mrf.mxu1  ;;  %v6176_v53 = vpop.f32.mrf.mxu0 }
 0x16b   : > { %7308 = vst [vmem:[#allocation37_spill] sm:$0xff] %v6176_v53  ;;  %v6179_v57 = vadd.f32 %v976_v29, %v6034_v40  ;;  %v6202_v29 = vld [vmem:[%s5566_s20 + $0x30] sm:$0xff]   ;;  %v5477_v53 = vld [vmem:[%s7271_s1 + $0x220] sm:$0xff]  }
 0x16c   : > { %v4765_v50 = vpop.f32.mrf.mxu1  ;;  %v6187_v43 = vpop.f32.mrf.mxu0  ;;  %5052 = vmatmul.mubr.bf16.vlgmr.msra.gmra.mxu1 %v5771_v59  ;;  %5132 = vmatmul.mubr.bf16.vlgmr.msra.gmra.mxu0 %v6191_v55  ;;  %v5474_v59 = vld [vmem:[%s7271_s1 + $0x1e8] sm:$0xff]  }
 0x16d   : > { %7309 = vst [vmem:[#allocation38_spill] sm:$0xff] %v6187_v43  ;;  %5196 = vmatpush3.bf16.msra.mxu1 %v5974_v18  ;;  %5276 = vmatpush3.bf16.msra.mxu0 %v5979_v26  ;;  %v5475_v18 = vld [vmem:[%s7271_s1 + $0x228] sm:$0xff]   ;;  %v5476_v43 = vld [vmem:[%s7271_s1 + $0x1e0] sm:$0xff]  }
 0x16e   : > { %v6196_v40 = vpop.f32.mrf.mxu1  ;;  %v6198_v47 = vpop.f32.mrf.mxu0  ;;  %5055 = vmatprep.mubr.bf16.mxu1 %v5495_v2  ;;  %5135 = vmatprep.mubr.bf16.mxu0 %v6202_v29 }
 0x16f   : > { %7310 = vst [vmem:[#allocation39_spill] sm:$0xff] %v6198_v47  ;;  %5197 = vmatprep.subr.bf16.mxu1 %v5472_v58  ;;  %5277 = vmatprep.subr.bf16.mxu0 %v5473_v11 }
 0x170   : > { %v4766_v26 = vpop.f32.mrf.mxu1  ;;  %v4846_v50 = vpop.f32.mrf.mxu0 }
 0x171   : > { %5198 = vmatpush3.bf16.msra.mxu1 %v5472_v58  ;;  %5278 = vmatpush3.bf16.msra.mxu0 %v5473_v11  ;;  %v5497_v50 = vld [vmem:[%s5566_s20 + $0x18] sm:$0xff]   ;;  %v6230_v11 = vld [vmem:[%s5566_s20 + $0x40] sm:$0xff]  }
 0x172   : > { %v6211_v2 = vpop.f32.mrf.mxu1  ;;  %v6213_v47 = vpop.f32.mrf.mxu0  ;;  %5199 = vmatprep.subr.bf16.mxu1 %v5474_v59  ;;  %5279 = vmatprep.subr.bf16.mxu0 %v5475_v18  ;;  %v6225_v58 = vld [vmem:[%s5566_s20 + $0x38] sm:$0xff]  }
 0x173   : > { %7311 = vst [vmem:[#allocation40_spill] sm:$0xff] %v6213_v47 }
 0x174   : > { %v4769_v42 = vpop.f32.mrf.mxu1  ;;  %v6221_v26 = vpop.f32.mrf.mxu0  ;;  %5056 = vmatmul.mubr.bf16.gmra.mxu1 %v5497_v50  ;;  %5136 = vmatmul.mubr.bf16.gmra.mxu0 %v6225_v58  ;;  %v5479_v50 = vld [vmem:[%s7271_s1 + $0x218] sm:$0xff]  }
 0x175   : > { %7312 = vst [vmem:[#allocation41_spill] sm:$0xff] %v6221_v26  ;;  %5059 = vmatprep.mubr.bf16.mxu1 %v6168_v51  ;;  %5139 = vmatprep.mubr.bf16.mxu0 %v6230_v11  ;;  %v5478_v42 = vld [vmem:[%s7271_s1 + $0x1d8] sm:$0xff]  }
 0x176   : > { %v6233_v47 = vpop.f32.mrf.mxu1  ;;  %v6235_v22 = vpop.f32.mrf.mxu0  ;;  %5200 = vmatpush3.bf16.msra.mxu1 %v5474_v59  ;;  %5280 = vmatpush3.bf16.msra.mxu0 %v5475_v18  ;;  %v5480_v59 = vld [vmem:[%s7271_s1 + $0x1d0] sm:$0xff]  }
 0x177   : > { %7313 = vst [vmem:[#allocation42_spill] sm:$0xff] %v6235_v22  ;;  %5201 = vmatprep.subr.bf16.mxu1 %v5476_v43  ;;  %5281 = vmatprep.subr.bf16.mxu0 %v5477_v53  ;;  %v5481_v18 = vld [vmem:[%s7271_s1 + $0x210] sm:$0xff]  }
 0x178   : > { %v4770_v26 = vpop.f32.mrf.mxu1  ;;  %v4850_v25 = vpop.f32.mrf.mxu0 }
 0x179   : > { %v6257_v25 = vld [vmem:[%s5566_s20 + $0x48] sm:$0xff]  }
 0x17a   : > { %v6243_v34 = vpop.f32.mrf.mxu1  ;;  %v6245_v9 = vpop.f32.mrf.mxu0  ;;  %5202 = vmatpush3.bf16.msra.mxu1 %v5476_v43  ;;  %5282 = vmatpush3.bf16.msra.mxu0 %v5477_v53  ;;  %v6262_v53 = vld [vmem:[%s5566_s20 + $0x50] sm:$0xff]  }
 0x17b   : > { %7314 = vst [vmem:[#allocation43_spill] sm:$0xff] %v6245_v9  ;;  %5203 = vmatprep.subr.bf16.mxu1 %v5478_v42  ;;  %5283 = vmatprep.subr.bf16.mxu0 %v5479_v50 }
 0x17c   : > { %v4773_v22 = vpop.f32.mrf.mxu1  ;;  %v6253_v26 = vpop.f32.mrf.mxu0  ;;  %5060 = vmatmul.mubr.bf16.gmra.mxu1 %v6191_v55  ;;  %5140 = vmatmul.mubr.bf16.gmra.mxu0 %v6257_v25 }
 0x17d   : > { %7315 = vst [vmem:[#allocation44_spill] sm:$0xff] %v6253_v26  ;;  %5063 = vmatprep.mubr.bf16.mxu1 %v6202_v29  ;;  %5143 = vmatprep.mubr.bf16.mxu0 %v6262_v53  ;;  %v5482_v22 = vld [vmem:[%s7271_s1 + $0x1c8] sm:$0xff]  }
 0x17e   : > { %v6265_v43 = vpop.f32.mrf.mxu1  ;;  %v6267_v9 = vpop.f32.mrf.mxu0  ;;  %5204 = vmatpush3.bf16.msra.mxu1 %v5478_v42  ;;  %5284 = vmatpush3.bf16.msra.mxu0 %v5479_v50  ;;  %v5483_v26 = vld [vmem:[%s7271_s1 + $0x208] sm:$0xff]   ;;  %v5484_v42 = vld [vmem:[%s7271_s1 + $0x1c0] sm:$0xff]  }
 0x17f   : > { %7316 = vst [vmem:[#allocation45_spill] sm:$0xff] %v6265_v43  ;;  %7317 = vst [vmem:[#allocation46_spill] sm:$0xff] %v6267_v9  ;;  %5205 = vmatprep.subr.bf16.mxu1 %v5480_v59  ;;  %5285 = vmatprep.subr.bf16.mxu0 %v5481_v18  ;;  %v5485_v50 = vld [vmem:[%s7271_s1 + $0x200] sm:$0xff]   ;;  %v6511_v43 = vld [vmem:[%s5566_s20 + $0x108] sm:$0xff]  }
 0x180   : > { %v4774_v36 = vpop.f32.mrf.mxu1  ;;  %v4854_v8 = vpop.f32.mrf.mxu0 }
 0x181   : > { %v6289_v8 = vld [vmem:[%s5566_s20 + $0x58] sm:$0xff]  }
 0x182   : > { %v6275_v13 = vpop.f32.mrf.mxu1  ;;  %v6277_v56 = vpop.f32.mrf.mxu0  ;;  %5206 = vmatpush3.bf16.msra.mxu1 %v5480_v59  ;;  %5286 = vmatpush3.bf16.msra.mxu0 %v5481_v18  ;;  %v6294_v59 = vld [vmem:[%s5566_s20 + $0x60] sm:$0xff]  }
 0x183   : > { %7318 = vst [vmem:[#allocation47_spill] sm:$0xff] %v6275_v13  ;;  %7319 = vst [vmem:[#allocation48_spill] sm:$0xff] %v6277_v56  ;;  %5207 = vmatprep.subr.bf16.mxu1 %v5482_v22  ;;  %5287 = vmatprep.subr.bf16.mxu0 %v5483_v26 }
 0x184   : > { %v4777_v9 = vpop.f32.mrf.mxu1  ;;  %v6285_v36 = vpop.f32.mrf.mxu0  ;;  %5064 = vmatmul.mubr.bf16.gmra.mxu1 %v6225_v58  ;;  %5144 = vmatmul.mubr.bf16.gmra.mxu0 %v6289_v8 }
 0x185   : > { %7320 = vst [vmem:[#allocation49_spill] sm:$0xff] %v6285_v36  ;;  %5067 = vmatprep.mubr.bf16.mxu1 %v6230_v11  ;;  %5147 = vmatprep.mubr.bf16.mxu0 %v6294_v59 }
 0x186   : > { %v6297_v18 = vpop.f32.mrf.mxu1  ;;  %v6299_v56 = vpop.f32.mrf.mxu0  ;;  %5208 = vmatpush3.bf16.msra.mxu1 %v5482_v22  ;;  %5288 = vmatpush3.bf16.msra.mxu0 %v5483_v26  ;;  %v6314_v26 = vld [vmem:[%s5566_s20 + $0x70] sm:$0xff]  }
 0x187   : > { %7321 = vst [vmem:[#allocation50_spill] sm:$0xff] %v6297_v18  ;;  %7322 = vst [vmem:[#allocation51_spill] sm:$0xff] %v6299_v56  ;;  %5209 = vmatprep.subr.bf16.mxu1 %v5484_v42  ;;  %5289 = vmatprep.subr.bf16.mxu0 %v5485_v50  ;;  %v6309_v56 = vld [vmem:[%s5566_s20 + $0x68] sm:$0xff]  }
 0x188   : > { %v4778_v9 = vpop.f32.mrf.mxu1  ;;  %v4858_v36 = vpop.f32.mrf.mxu0 }
 0x18a   : > { %v6301_v41 = vpop.f32.mrf.mxu1  ;;  %v6303_v20 = vpop.f32.mrf.mxu0  ;;  %5210 = vmatpush3.bf16.msra.mxu1 %v5484_v42  ;;  %5290 = vmatpush3.bf16.msra.mxu0 %v5485_v50 }
 0x18b   : > { %7323 = vst [vmem:[#allocation52_spill] sm:$0xff] %v6301_v41  ;;  %7324 = vst [vmem:[#allocation53_spill] sm:$0xff] %v6303_v20 }
 0x18c   : > { %v4781_v1 = vpop.f32.mrf.mxu1  ;;  %v6305_v14 = vpop.f32.mrf.mxu0  ;;  %5068 = vmatmul.mubr.bf16.gmra.mxu1 %v6257_v25  ;;  %5148 = vmatmul.mubr.bf16.gmra.mxu0 %v6309_v56 }
 0x18d   : > { %7325 = vst [vmem:[#allocation54_spill] sm:$0xff] %v6305_v14  ;;  %5071 = vmatprep.mubr.bf16.mxu1 %v6262_v53  ;;  %5151 = vmatprep.mubr.bf16.mxu0 %v6314_v26 }
 0x18e   : > { %v6317_v22 = vpop.f32.mrf.mxu1  ;;  %v6319_v42 = vpop.f32.mrf.mxu0 }
 0x18f   : > { %7326 = vst [vmem:[#allocation55_spill] sm:$0xff] %v6317_v22  ;;  %7327 = vst [vmem:[#allocation56_spill] sm:$0xff] %v6319_v42 }
 0x190   : > { %v4782_v1 = vpop.f32.mrf.mxu1  ;;  %v4862_v50 = vpop.f32.mrf.mxu0 }
 0x192   : > { %v6321_v36 = vpop.f32.mrf.mxu1  ;;  %v6323_v9 = vpop.f32.mrf.mxu0 }
 0x193   : > { %7328 = vst [vmem:[#allocation57_spill] sm:$0xff] %v6321_v36  ;;  %7329 = vst [vmem:[#allocation58_spill] sm:$0xff] %v6323_v9 }
 0x194   : > { %v4785_v14 = vpop.f32.mrf.mxu1  ;;  %v6325_v20 = vpop.f32.mrf.mxu0  ;;  %5072 = vmatmul.mubr.bf16.gmra.mxu1 %v6289_v8  ;;  %5152 = vmatmul.mubr.bf16.gmra.mxu0 %v6329_v45 }
 0x195   : > { %7330 = vst [vmem:[#allocation59_spill] sm:$0xff] %v6325_v20  ;;  %5075 = vmatprep.mubr.bf16.mxu1 %v6294_v59  ;;  %5155 = vmatprep.mubr.bf16.mxu0 %v6334_v24 }
 0x196   : > { %v6337_v1 = vpop.f32.mrf.mxu1  ;;  %v6339_v50 = vpop.f32.mrf.mxu0 }
 0x197   : > { %7331 = vst [vmem:[#allocation60_spill] sm:$0xff] %v6337_v1  ;;  %7332 = vst [vmem:[#allocation61_spill] sm:$0xff] %v6339_v50 }
 0x198   : > { %v4786_v14 = vpop.f32.mrf.mxu1  ;;  %v4866_v9 = vpop.f32.mrf.mxu0 }
 0x19a   : > { %v6341_v20 = vpop.f32.mrf.mxu1  ;;  %v6343_v42 = vpop.f32.mrf.mxu0 }
 0x19b   : > { %7333 = vst [vmem:[#allocation62_spill] sm:$0xff] %v6341_v20  ;;  %7334 = vst [vmem:[#allocation63_spill] sm:$0xff] %v6343_v42 }
 0x19c   : > { %v4789_v17 = vpop.f32.mrf.mxu1  ;;  %v6345_v46 = vpop.f32.mrf.mxu0  ;;  %5076 = vmatmul.mubr.bf16.gmra.mxu1 %v6309_v56  ;;  %5156 = vmatmul.mubr.bf16.gmra.mxu0 %v6349_v7 }
 0x19d   : > { %7335 = vst [vmem:[#allocation64_spill] sm:$0xff] %v6345_v46  ;;  %5079 = vmatprep.mubr.bf16.mxu1 %v6314_v26  ;;  %5159 = vmatprep.mubr.bf16.mxu0 %v6027_v48 }
 0x19e   : > { %v6354_v50 = vpop.f32.mrf.mxu1  ;;  %v6356_v9 = vpop.f32.mrf.mxu0 }
 0x19f   : > { %7336 = vst [vmem:[#allocation65_spill] sm:$0xff] %v6354_v50  ;;  %7337 = vst [vmem:[#allocation66_spill] sm:$0xff] %v6356_v9 }
 0x1a0   : > { %v4790_v14 = vpop.f32.mrf.mxu1  ;;  %v4870_v20 = vpop.f32.mrf.mxu0 }
 0x1a2   : > { %v6358_v42 = vpop.f32.mrf.mxu1  ;;  %v6360_v17 = vpop.f32.mrf.mxu0 }
 0x1a3   : > { %7338 = vst [vmem:[#allocation67_spill] sm:$0xff] %v6358_v42  ;;  %7339 = vst [vmem:[#allocation68_spill] sm:$0xff] %v6360_v17 }
 0x1a4   : > { %v4793_v46 = vpop.f32.mrf.mxu1  ;;  %v6362_v1 = vpop.f32.mrf.mxu0  ;;  %5080 = vmatmul.mubr.bf16.gmra.mxu1 %v6329_v45  ;;  %5160 = vmatmul.mubr.bf16.gmra.mxu0 %v6042_v54 }
 0x1a5   : > { %7340 = vst [vmem:[#allocation69_spill] sm:$0xff] %v6362_v1  ;;  %5083 = vmatprep.mubr.bf16.mxu1 %v6334_v24  ;;  %5163 = vmatprep.mubr.bf16.mxu0 %v6047_v63 }
 0x1a6   : > { %v6368_v50 = vpop.f32.mrf.mxu1  ;;  %v6370_v9 = vpop.f32.mrf.mxu0 }
 0x1a7   : > { %7341 = vst [vmem:[#allocation70_spill] sm:$0xff] %v6368_v50  ;;  %7342 = vst [vmem:[#allocation71_spill] sm:$0xff] %v6370_v9 }
 0x1a8   : > { %v4794_v20 = vpop.f32.mrf.mxu1  ;;  %v4874_v14 = vpop.f32.mrf.mxu0 }
 0x1aa   : > { %v6372_v42 = vpop.f32.mrf.mxu1  ;;  %v6374_v17 = vpop.f32.mrf.mxu0 }
 0x1ab   : > { %7343 = vst [vmem:[#allocation72_spill] sm:$0xff] %v6372_v42  ;;  %7344 = vst [vmem:[#allocation73_spill] sm:$0xff] %v6374_v17 }
 0x1ac   : > { %v6376_v46 = vpop.f32.mrf.mxu1  ;;  %v6378_v1 = vpop.f32.mrf.mxu0  ;;  %5084 = vmatmul.mubr.bf16.gmra.mxu1 %v6349_v7  ;;  %5164 = vmatmul.mubr.bf16.gmra.mxu0 %v6064_v4 }
 0x1ad   : > { %7345 = vst [vmem:[#allocation74_spill] sm:$0xff] %v6376_v46  ;;  %7346 = vst [vmem:[#allocation75_spill] sm:$0xff] %v6378_v1  ;;  %5087 = vmatprep.mubr.bf16.mxu1 %v6027_v48  ;;  %5167 = vmatprep.mubr.bf16.mxu0 %v6084_v23 }
 0x1ae   : > { %v6384_v20 = vpop.f32.mrf.mxu1  ;;  %v6386_v14 = vpop.f32.mrf.mxu0 }
 0x1af   : > { %7347 = vst [vmem:[#allocation76_spill] sm:$0xff] %v6384_v20  ;;  %7348 = vst [vmem:[#allocation77_spill] sm:$0xff] %v6386_v14 }
 0x1b0   : > { %v4894_v9 = vpop.f32.mrf.mxu1  ;;  %v4974_v17 = vpop.f32.mrf.mxu0 }
 0x1b1   : > { %v6403_v9 = vld [vmem:[%s5566_s20 + $0xc0] sm:$0xff]  }
 0x1b2   : > { %v6388_v42 = vpop.f32.mrf.mxu1  ;;  %v6390_v46 = vpop.f32.mrf.mxu0 }
 0x1b3   : > { %7349 = vst [vmem:[#allocation78_spill] sm:$0xff] %v6388_v42  ;;  %7350 = vst [vmem:[#allocation79_spill] sm:$0xff] %v6390_v46 }
 0x1b4   : > { %v6392_v1 = vpop.f32.mrf.mxu1  ;;  %v6394_v50 = vpop.f32.mrf.mxu0  ;;  %5088 = vmatmul.mubr.bf16.gmra.mxu1 %v6042_v54  ;;  %5168 = vmatmul.mubr.bf16.gmra.mxu0 %v6398_v38 }
 0x1b5   : > { %7351 = vst [vmem:[#allocation80_spill] sm:$0xff] %v6392_v1  ;;  %7352 = vst [vmem:[#allocation81_spill] sm:$0xff] %v6394_v50  ;;  %5091 = vmatprep.mubr.bf16.mxu1 %v6047_v63  ;;  %5171 = vmatprep.mubr.bf16.mxu0 %v6403_v9 }
 0x1b6   : > { %v6406_v17 = vpop.f32.mrf.mxu1  ;;  %v6408_v46 = vpop.f32.mrf.mxu0 }
 0x1b7   : > { %7353 = vst [vmem:[#allocation82_spill] sm:$0xff] %v6406_v17  ;;  %7354 = vst [vmem:[#allocation83_spill] sm:$0xff] %v6408_v46 }
 0x1b8   : > { %v4898_v1 = vpop.f32.mrf.mxu1  ;;  %v4978_v50 = vpop.f32.mrf.mxu0 }
 0x1b9   : > { %v6425_v1 = vld [vmem:[%s5566_s20 + $0xd0] sm:$0xff]  }
 0x1ba   : > { %v6410_v42 = vpop.f32.mrf.mxu1  ;;  %v6412_v14 = vpop.f32.mrf.mxu0 }
 0x1bb   : > { %7355 = vst [vmem:[#allocation84_spill] sm:$0xff] %v6410_v42  ;;  %7356 = vst [vmem:[#allocation85_spill] sm:$0xff] %v6412_v14 }
 0x1bc   : > { %v6414_v20 = vpop.f32.mrf.mxu1  ;;  %v6416_v36 = vpop.f32.mrf.mxu0  ;;  %5092 = vmatmul.mubr.bf16.gmra.mxu1 %v6064_v4  ;;  %5172 = vmatmul.mubr.bf16.gmra.mxu0 %v6420_v60 }
 0x1bd   : > { %7357 = vst [vmem:[#allocation86_spill] sm:$0xff] %v6414_v20  ;;  %7358 = vst [vmem:[#allocation87_spill] sm:$0xff] %v6416_v36  ;;  %5095 = vmatprep.mubr.bf16.mxu1 %v6084_v23  ;;  %5175 = vmatprep.mubr.bf16.mxu0 %v6425_v1 }
 0x1be   : > { %v6428_v50 = vpop.f32.mrf.mxu1  ;;  %v6430_v14 = vpop.f32.mrf.mxu0 }
 0x1bf   : > { %7359 = vst [vmem:[#allocation88_spill] sm:$0xff] %v6428_v50  ;;  %7360 = vst [vmem:[#allocation89_spill] sm:$0xff] %v6430_v14 }
 0x1c0   : > { %v4902_v20 = vpop.f32.mrf.mxu1  ;;  %v4982_v36 = vpop.f32.mrf.mxu0 }
 0x1c1   : > { %v6447_v20 = vld [vmem:[%s5566_s20 + $0xe0] sm:$0xff]  }
 0x1c2   : > { %v6432_v46 = vpop.f32.mrf.mxu1  ;;  %v6434_v42 = vpop.f32.mrf.mxu0 }
 0x1c3   : > { %7361 = vst [vmem:[#allocation90_spill] sm:$0xff] %v6432_v46  ;;  %7362 = vst [vmem:[#allocation91_spill] sm:$0xff] %v6434_v42 }
 0x1c4   : > { %v6436_v17 = vpop.f32.mrf.mxu1  ;;  %v6438_v22 = vpop.f32.mrf.mxu0  ;;  %5096 = vmatmul.mubr.bf16.gmra.mxu1 %v6398_v38  ;;  %5176 = vmatmul.mubr.bf16.gmra.mxu0 %v6442_v37 }
 0x1c5   : > { %7363 = vst [vmem:[#allocation92_spill] sm:$0xff] %v6436_v17  ;;  %7364 = vst [vmem:[#allocation93_spill] sm:$0xff] %v6438_v22  ;;  %5099 = vmatprep.mubr.bf16.mxu1 %v6403_v9  ;;  %5179 = vmatprep.mubr.bf16.mxu0 %v6447_v20 }
 0x1c6   : > { %v6450_v36 = vpop.f32.mrf.mxu1  ;;  %v6452_v42 = vpop.f32.mrf.mxu0 }
 0x1c7   : > { %7365 = vst [vmem:[#allocation94_spill] sm:$0xff] %v6450_v36  ;;  %7366 = vst [vmem:[#allocation95_spill] sm:$0xff] %v6452_v42 }
 0x1c8   : > { %v4906_v17 = vpop.f32.mrf.mxu1  ;;  %v4986_v22 = vpop.f32.mrf.mxu0 }
 0x1c9   : > { %v6469_v17 = vld [vmem:[%s5566_s20 + $0xf0] sm:$0xff]  }
 0x1ca   : > { %v6454_v46 = vpop.f32.mrf.mxu1  ;;  %v6456_v14 = vpop.f32.mrf.mxu0 }
 0x1cb   : > { %7367 = vst [vmem:[#allocation96_spill] sm:$0xff] %v6454_v46  ;;  %7368 = vst [vmem:[#allocation97_spill] sm:$0xff] %v6456_v14 }
 0x1cc   : > { %v6458_v50 = vpop.f32.mrf.mxu1  ;;  %v6460_v41 = vpop.f32.mrf.mxu0  ;;  %5100 = vmatmul.mubr.bf16.gmra.mxu1 %v6420_v60  ;;  %5180 = vmatmul.mubr.bf16.gmra.mxu0 %v6464_v28 }
 0x1cd   : > { %7369 = vst [vmem:[#allocation98_spill] sm:$0xff] %v6458_v50  ;;  %7370 = vst [vmem:[#allocation99_spill] sm:$0xff] %v6460_v41  ;;  %5103 = vmatprep.mubr.bf16.mxu1 %v6425_v1  ;;  %5183 = vmatprep.mubr.bf16.mxu0 %v6469_v17 }
 0x1ce   : > { %v6472_v22 = vpop.f32.mrf.mxu1  ;;  %v6474_v14 = vpop.f32.mrf.mxu0 }
 0x1cf   : > { %7371 = vst [vmem:[#allocation100_spill] sm:$0xff] %v6472_v22  ;;  %7372 = vst [vmem:[#allocation101_spill] sm:$0xff] %v6474_v14 }
 0x1d0   : > { %v4910_v50 = vpop.f32.mrf.mxu1  ;;  %v4990_v41 = vpop.f32.mrf.mxu0 }
 0x1d1   : > { %v6491_v50 = vld [vmem:[%s5566_s20 + $0x100] sm:$0xff]  }
 0x1d2   : > { %v6476_v46 = vpop.f32.mrf.mxu1  ;;  %v6478_v42 = vpop.f32.mrf.mxu0 }
 0x1d3   : > { %7373 = vst [vmem:[#allocation102_spill] sm:$0xff] %v6476_v46  ;;  %7374 = vst [vmem:[#allocation103_spill] sm:$0xff] %v6478_v42  ;;  %v6499_v46 = vld [vmem:[%s5566_s20 + $0x110] sm:$0xff]  }
 0x1d4   : > { %v6480_v36 = vpop.f32.mrf.mxu1  ;;  %v6482_v18 = vpop.f32.mrf.mxu0  ;;  %5104 = vmatmul.mubr.bf16.gmra.mxu1 %v6442_v37  ;;  %5184 = vmatmul.mubr.bf16.gmra.mxu0 %v6486_v15 }
 0x1d5   : > { %7375 = vst [vmem:[#allocation104_spill] sm:$0xff] %v6480_v36  ;;  %7376 = vst [vmem:[#allocation105_spill] sm:$0xff] %v6482_v18  ;;  %5107 = vmatprep.mubr.bf16.mxu1 %v6447_v20  ;;  %5187 = vmatprep.mubr.bf16.mxu0 %v6491_v50 }
 0x1d6   : > { %v6494_v41 = vpop.f32.mrf.mxu1  ;;  %v6496_v42 = vpop.f32.mrf.mxu0 }
 0x1d7   : > { %7377 = vst [vmem:[#allocation106_spill] sm:$0xff] %v6494_v41  ;;  %7378 = vst [vmem:[#allocation107_spill] sm:$0xff] %v6496_v42  ;;  %v6521_v42 = vld [vmem:[%s5566_s20 + $0x118] sm:$0xff]   ;;  %s4274_s20 = sshll.u32 %s7692_s10, 8 }
 0x1d8   : > { %v4914_v36 = vpop.f32.mrf.mxu1  ;;  %v4994_v18 = vpop.f32.mrf.mxu0  ;;  %s6943_s7 = scalar_lea.vmem %s7272_s2, %s4274_s20 }
 0x1da   : > { %v6501_v14 = vpop.f32.mrf.mxu1  ;;  %v6503_v22 = vpop.f32.mrf.mxu0 }
 0x1db   : > { %7379 = vst [vmem:[#allocation108_spill] sm:$0xff] %v6501_v14  ;;  %7380 = vst [vmem:[#allocation109_spill] sm:$0xff] %v6503_v22 }
 0x1dc   : > { %v6505_v13 = vpop.f32.mrf.mxu1  ;;  %v6507_v10 = vpop.f32.mrf.mxu0  ;;  %5108 = vmatmul.mubr.bf16.gmra.mxu1 %v6464_v28  ;;  %5188 = vmatmul.mubr.bf16.gmra.mxu0 %v6511_v43 }
 0x1dd   : > { %7381 = vst [vmem:[#allocation110_spill] sm:$0xff] %v6505_v13  ;;  %7382 = vst [vmem:[#allocation111_spill] sm:$0xff] %v6507_v10  ;;  %5111 = vmatprep.mubr.bf16.mxu1 %v6469_v17  ;;  %5191 = vmatprep.mubr.bf16.mxu0 %v6499_v46 }
 0x1de   : > { %v6516_v18 = vpop.f32.mrf.mxu1  ;;  %v6518_v36 = vpop.f32.mrf.mxu0 }
 0x1df   : > { %7383 = vst [vmem:[#allocation112_spill] sm:$0xff] %v6516_v18  ;;  %7384 = vst [vmem:[#allocation113_spill] sm:$0xff] %v6518_v36 }
 0x1e0   : > { %v4918_v14 = vpop.f32.mrf.mxu1  ;;  %v4998_v22 = vpop.f32.mrf.mxu0 }
 0x1e2   : > { %v6523_v13 = vpop.f32.mrf.mxu1  ;;  %v6525_v10 = vpop.f32.mrf.mxu0 }
 0x1e3   : > { %7385 = vst [vmem:[#allocation114_spill] sm:$0xff] %v6523_v13  ;;  %7386 = vst [vmem:[#allocation115_spill] sm:$0xff] %v6525_v10 }
 0x1e4   : > { %v6527_v41 = vpop.f32.mrf.mxu1  ;;  %v6529_v6 = vpop.f32.mrf.mxu0  ;;  %5112 = vmatmul.mubr.bf16.gmra.mxu1 %v6486_v15  ;;  %5192 = vmatmul.mubr.bf16.gmra.mxu0 %v6521_v42 }
 0x1e5   : > { %7387 = vst [vmem:[#allocation116_spill] sm:$0xff] %v6527_v41  ;;  %7388 = vst [vmem:[#allocation117_spill] sm:$0xff] %v6529_v6  ;;  %5211 = vmatprep.mubr.bf16.mxu1 %v6168_v51  ;;  %5291 = vmatprep.mubr.bf16.mxu0 %v6168_v51 }
 0x1e6   : > { %v6535_v14 = vpop.f32.mrf.mxu1  ;;  %v6537_v22 = vpop.f32.mrf.mxu0 }
 0x1e7   : > { %7389 = vst [vmem:[#allocation118_spill] sm:$0xff] %v6537_v22 }
 0x1e8   : > { %v4922_v36 = vpop.f32.mrf.mxu1  ;;  %v5002_v13 = vpop.f32.mrf.mxu0 }
 0x1ea   : > { %v6539_v18 = vpop.f32.mrf.mxu1  ;;  %v6541_v10 = vpop.f32.mrf.mxu0 }
 0x1eb   : > { %7390 = vst [vmem:[#allocation119_spill] sm:$0xff] %v6539_v18  ;;  %7391 = vst [vmem:[#allocation120_spill] sm:$0xff] %v6541_v10 }
 0x1ec   : > { %v6543_v41 = vpop.f32.mrf.mxu1  ;;  %v6545_v6 = vpop.f32.mrf.mxu0  ;;  %5212 = vmatmul.mubr.bf16.vlgmr.msra.gmra.mxu1 %v6191_v55  ;;  %5292 = vmatmul.mubr.bf16.vlgmr.msra.gmra.mxu0 %v6191_v55 }
 0x1ed   : > { %7392 = vst [vmem:[#allocation121_spill] sm:$0xff] %v6543_v41  ;;  %7393 = vst [vmem:[#allocation122_spill] sm:$0xff] %v6545_v6  ;;  %5215 = vmatprep.mubr.bf16.mxu1 %v6202_v29  ;;  %5295 = vmatprep.mubr.bf16.mxu0 %v6202_v29 }
 0x1ee   : > { %v6551_v51 = vpop.f32.mrf.mxu1  ;;  %v6553_v36 = vpop.f32.mrf.mxu0 }
 0x1ef   : > { %7394 = vst [vmem:[#allocation123_spill] sm:$0xff] %v6551_v51  ;;  %7395 = vst [vmem:[#allocation124_spill] sm:$0xff] %v6553_v36  ;;  %v7516_v51 = vld [vmem:[#allocation80_spill] sm:$0xff] }
 0x1f0   : > { %v4926_v13 = vpop.f32.mrf.mxu1  ;;  %v5006_v18 = vpop.f32.mrf.mxu0 }
 0x1f2   : > { %v6555_v22 = vpop.f32.mrf.mxu1  ;;  %v6557_v10 = vpop.f32.mrf.mxu0 }
 0x1f3   : > { %7396 = vst [vmem:[#allocation125_spill] sm:$0xff] %v6555_v22  ;;  %7397 = vst [vmem:[#allocation126_spill] sm:$0xff] %v6557_v10 }
 0x1f4   : > { %v6559_v41 = vpop.f32.mrf.mxu1  ;;  %v6561_v6 = vpop.f32.mrf.mxu0  ;;  %5216 = vmatmul.mubr.bf16.gmra.mxu1 %v6225_v58  ;;  %5296 = vmatmul.mubr.bf16.gmra.mxu0 %v6225_v58 }
 0x1f5   : > { %7398 = vst [vmem:[#allocation127_spill] sm:$0xff] %v6559_v41  ;;  %7399 = vst [vmem:[#allocation128_spill] sm:$0xff] %v6561_v6  ;;  %5219 = vmatprep.mubr.bf16.mxu1 %v6230_v11  ;;  %5299 = vmatprep.mubr.bf16.mxu0 %v6230_v11 }
 0x1f6   : > { %v6567_v55 = vpop.f32.mrf.mxu1  ;;  %v6569_v29 = vpop.f32.mrf.mxu0 }
 0x1f7   : > { %7400 = vst [vmem:[#allocation129_spill] sm:$0xff] %v6567_v55  ;;  %7401 = vst [vmem:[#allocation130_spill] sm:$0xff] %v6569_v29 }
 0x1f8   : > { %v4930_v18 = vpop.f32.mrf.mxu1  ;;  %v5010_v13 = vpop.f32.mrf.mxu0 }
 0x1fa   : > { %v6571_v22 = vpop.f32.mrf.mxu1  ;;  %v6573_v10 = vpop.f32.mrf.mxu0 }
 0x1fb   : > { %7402 = vst [vmem:[#allocation131_spill] sm:$0xff] %v6571_v22  ;;  %7403 = vst [vmem:[#allocation132_spill] sm:$0xff] %v6573_v10 }
 0x1fc   : > { %v6575_v41 = vpop.f32.mrf.mxu1  ;;  %v6577_v6 = vpop.f32.mrf.mxu0  ;;  %5220 = vmatmul.mubr.bf16.gmra.mxu1 %v6257_v25  ;;  %5300 = vmatmul.mubr.bf16.gmra.mxu0 %v6257_v25 }
 0x1fd   : > { %7404 = vst [vmem:[#allocation133_spill] sm:$0xff] %v6575_v41  ;;  %7405 = vst [vmem:[#allocation134_spill] sm:$0xff] %v6577_v6  ;;  %5223 = vmatprep.mubr.bf16.mxu1 %v6262_v53  ;;  %5303 = vmatprep.mubr.bf16.mxu0 %v6262_v53 }
 0x1fe   : > { %v6583_v58 = vpop.f32.mrf.mxu1  ;;  %v6585_v11 = vpop.f32.mrf.mxu0 }
 0x1ff   : > { %7406 = vst [vmem:[#allocation135_spill] sm:$0xff] %v6583_v58  ;;  %7407 = vst [vmem:[#allocation136_spill] sm:$0xff] %v6585_v11 }
 0x200   : > { %v4934_v18 = vpop.f32.mrf.mxu1  ;;  %v5014_v13 = vpop.f32.mrf.mxu0 }
 0x202   : > { %v6587_v22 = vpop.f32.mrf.mxu1  ;;  %v6589_v10 = vpop.f32.mrf.mxu0 }
 0x203   : > { %7408 = vst [vmem:[#allocation137_spill] sm:$0xff] %v6587_v22  ;;  %7409 = vst [vmem:[#allocation138_spill] sm:$0xff] %v6589_v10 }
 0x204   : > { %v6591_v41 = vpop.f32.mrf.mxu1  ;;  %v6593_v6 = vpop.f32.mrf.mxu0  ;;  %5224 = vmatmul.mubr.bf16.gmra.mxu1 %v6289_v8  ;;  %5304 = vmatmul.mubr.bf16.gmra.mxu0 %v6289_v8 }
 0x205   : > { %7410 = vst [vmem:[#allocation139_spill] sm:$0xff] %v6591_v41  ;;  %7411 = vst [vmem:[#allocation140_spill] sm:$0xff] %v6593_v6  ;;  %5227 = vmatprep.mubr.bf16.mxu1 %v6294_v59  ;;  %5307 = vmatprep.mubr.bf16.mxu0 %v6294_v59 }
 0x206   : > { %v6599_v25 = vpop.f32.mrf.mxu1  ;;  %v6601_v53 = vpop.f32.mrf.mxu0 }
 0x207   : > { %7412 = vst [vmem:[#allocation141_spill] sm:$0xff] %v6599_v25  ;;  %7413 = vst [vmem:[#allocation142_spill] sm:$0xff] %v6601_v53 }
 0x208   : > { %v4938_v18 = vpop.f32.mrf.mxu1  ;;  %v5018_v13 = vpop.f32.mrf.mxu0 }
 0x20a   : > { %v6603_v22 = vpop.f32.mrf.mxu1  ;;  %v6605_v10 = vpop.f32.mrf.mxu0 }
 0x20b   : > { %7414 = vst [vmem:[#allocation143_spill] sm:$0xff] %v6603_v22  ;;  %7415 = vst [vmem:[#allocation144_spill] sm:$0xff] %v6605_v10 }
 0x20c   : > { %v6607_v41 = vpop.f32.mrf.mxu1  ;;  %v6609_v6 = vpop.f32.mrf.mxu0  ;;  %5228 = vmatmul.mubr.bf16.gmra.mxu1 %v6309_v56  ;;  %5308 = vmatmul.mubr.bf16.gmra.mxu0 %v6309_v56 }
 0x20d   : > { %7416 = vst [vmem:[#allocation145_spill] sm:$0xff] %v6607_v41  ;;  %7417 = vst [vmem:[#allocation146_spill] sm:$0xff] %v6609_v6  ;;  %5231 = vmatprep.mubr.bf16.mxu1 %v6314_v26  ;;  %5311 = vmatprep.mubr.bf16.mxu0 %v6314_v26 }
 0x20e   : > { %v6615_v8 = vpop.f32.mrf.mxu1  ;;  %v6617_v59 = vpop.f32.mrf.mxu0 }
 0x20f   : > { %7418 = vst [vmem:[#allocation147_spill] sm:$0xff] %v6615_v8  ;;  %7419 = vst [vmem:[#allocation148_spill] sm:$0xff] %v6617_v59 }
 0x210   : > { %v4942_v18 = vpop.f32.mrf.mxu1  ;;  %v5022_v13 = vpop.f32.mrf.mxu0 }
 0x212   : > { %v6619_v22 = vpop.f32.mrf.mxu1  ;;  %v6621_v10 = vpop.f32.mrf.mxu0 }
 0x213   : > { %7420 = vst [vmem:[#allocation149_spill] sm:$0xff] %v6619_v22  ;;  %7421 = vst [vmem:[#allocation150_spill] sm:$0xff] %v6621_v10 }
 0x214   : > { %v6623_v41 = vpop.f32.mrf.mxu1  ;;  %v6625_v6 = vpop.f32.mrf.mxu0  ;;  %5232 = vmatmul.mubr.bf16.gmra.mxu1 %v6329_v45  ;;  %5312 = vmatmul.mubr.bf16.gmra.mxu0 %v6329_v45 }
 0x215   : > { %7422 = vst [vmem:[#allocation151_spill] sm:$0xff] %v6623_v41  ;;  %7423 = vst [vmem:[#allocation152_spill] sm:$0xff] %v6625_v6  ;;  %5235 = vmatprep.mubr.bf16.mxu1 %v6334_v24  ;;  %5315 = vmatprep.mubr.bf16.mxu0 %v6334_v24 }
 0x216   : > { %v6631_v56 = vpop.f32.mrf.mxu1  ;;  %v6633_v26 = vpop.f32.mrf.mxu0 }
 0x217   : > { %7424 = vst [vmem:[#allocation153_spill] sm:$0xff] %v6631_v56  ;;  %7425 = vst [vmem:[#allocation154_spill] sm:$0xff] %v6633_v26 }
 0x218   : > { %v4946_v18 = vpop.f32.mrf.mxu1  ;;  %v5026_v13 = vpop.f32.mrf.mxu0 }
 0x21a   : > { %v6635_v22 = vpop.f32.mrf.mxu1  ;;  %v6637_v10 = vpop.f32.mrf.mxu0 }
 0x21b   : > { %7426 = vst [vmem:[#allocation155_spill] sm:$0xff] %v6635_v22  ;;  %7427 = vst [vmem:[#allocation156_spill] sm:$0xff] %v6637_v10 }
 0x21c   : > { %v6639_v41 = vpop.f32.mrf.mxu1  ;;  %v6641_v6 = vpop.f32.mrf.mxu0  ;;  %5236 = vmatmul.mubr.bf16.gmra.mxu1 %v6349_v7  ;;  %5316 = vmatmul.mubr.bf16.gmra.mxu0 %v6349_v7 }
 0x21d   : > { %7428 = vst [vmem:[#allocation157_spill] sm:$0xff] %v6639_v41  ;;  %7429 = vst [vmem:[#allocation158_spill] sm:$0xff] %v6641_v6  ;;  %5239 = vmatprep.mubr.bf16.mxu1 %v6027_v48  ;;  %5319 = vmatprep.mubr.bf16.mxu0 %v6027_v48 }
 0x21e   : > { %v6647_v24 = vpop.f32.mrf.mxu1  ;;  %v6649_v45 = vpop.f32.mrf.mxu0 }
 0x21f   : > { %7430 = vst [vmem:[#allocation159_spill] sm:$0xff] %v6647_v24  ;;  %7431 = vst [vmem:[#allocation160_spill] sm:$0xff] %v6649_v45 }
 0x220   : > { %v4950_v18 = vpop.f32.mrf.mxu1  ;;  %v5030_v13 = vpop.f32.mrf.mxu0 }
 0x222   : > { %v6651_v22 = vpop.f32.mrf.mxu1  ;;  %v6653_v10 = vpop.f32.mrf.mxu0 }
 0x223   : > { %7432 = vst [vmem:[#allocation161_spill] sm:$0xff] %v6651_v22  ;;  %7433 = vst [vmem:[#allocation162_spill] sm:$0xff] %v6653_v10 }
 0x224   : > { %v6655_v41 = vpop.f32.mrf.mxu1  ;;  %v6657_v6 = vpop.f32.mrf.mxu0  ;;  %5240 = vmatmul.mubr.bf16.gmra.mxu1 %v6042_v54  ;;  %5320 = vmatmul.mubr.bf16.gmra.mxu0 %v6042_v54 }
 0x225   : > { %7434 = vst [vmem:[#allocation163_spill] sm:$0xff] %v6655_v41  ;;  %7435 = vst [vmem:[#allocation164_spill] sm:$0xff] %v6657_v6  ;;  %5243 = vmatprep.mubr.bf16.mxu1 %v6047_v63  ;;  %5323 = vmatprep.mubr.bf16.mxu0 %v6047_v63 }
 0x226   : > { %v6663_v7 = vpop.f32.mrf.mxu1  ;;  %v6665_v48 = vpop.f32.mrf.mxu0 }
 0x227   : > { %7436 = vst [vmem:[#allocation165_spill] sm:$0xff] %v6663_v7  ;;  %7437 = vst [vmem:[#allocation166_spill] sm:$0xff] %v6665_v48 }
 0x228   : > { %v4954_v18 = vpop.f32.mrf.mxu1  ;;  %v5034_v13 = vpop.f32.mrf.mxu0 }
 0x22a   : > { %v6667_v22 = vpop.f32.mrf.mxu1  ;;  %v6669_v10 = vpop.f32.mrf.mxu0 }
 0x22b   : > { %7438 = vst [vmem:[#allocation167_spill] sm:$0xff] %v6667_v22  ;;  %7439 = vst [vmem:[#allocation168_spill] sm:$0xff] %v6669_v10 }
 0x22c   : > { %v6671_v41 = vpop.f32.mrf.mxu1  ;;  %v5133_v6 = vpop.f32.mrf.mxu0  ;;  %5244 = vmatmul.mubr.bf16.gmra.mxu1 %v6064_v4  ;;  %5324 = vmatmul.mubr.bf16.gmra.mxu0 %v6064_v4 }
 0x22d   : > { %5247 = vmatprep.mubr.bf16.mxu1 %v6084_v23  ;;  %5327 = vmatprep.mubr.bf16.mxu0 %v6084_v23 }
 0x22e   : > { %v6677_v54 = vpop.f32.mrf.mxu1  ;;  %v2527_v63 = vpop.f32.mrf.mxu0 }
 0x22f   : > { %v6680_v18 = vadd.f32 %v2527_v63, %v6053_v19 }
 0x230   : > { %v5054_v13 = vpop.f32.mrf.mxu1  ;;  %v5134_v22 = vpop.f32.mrf.mxu0 }
 0x232   : > { %v6682_v10 = vpop.f32.mrf.mxu1  ;;  %v2530_v48 = vpop.f32.mrf.mxu0 }
 0x233   : > { %v6685_v6 = vadd.f32 %v2530_v48, %v6058_v5 }
 0x234   : > { %v6687_v7 = vpop.f32.mrf.mxu1  ;;  %v5137_v4 = vpop.f32.mrf.mxu0  ;;  %5248 = vmatmul.mubr.bf16.gmra.mxu1 %v6398_v38  ;;  %5328 = vmatmul.mubr.bf16.gmra.mxu0 %v6398_v38 }
 0x235   : > { %5251 = vmatprep.mubr.bf16.mxu1 %v6403_v9  ;;  %5331 = vmatprep.mubr.bf16.mxu0 %v6403_v9 }
 0x236   : > { %v6693_v19 = vpop.f32.mrf.mxu1  ;;  %v2541_v23 = vpop.f32.mrf.mxu0 }
 0x237   : > { %v6696_v22 = vadd.f32 %v2541_v23, %v6072_v32 }
 0x238   : > { %v5058_v63 = vpop.f32.mrf.mxu1  ;;  %v5138_v5 = vpop.f32.mrf.mxu0 }
 0x23a   : > { %v6698_v48 = vpop.f32.mrf.mxu1  ;;  %v2544_v13 = vpop.f32.mrf.mxu0 }
 0x23b   : > { %v6701_v4 = vadd.f32 %v2544_v13, %v6077_v30 }
 0x23c   : > { %v6703_v45 = vpop.f32.mrf.mxu1  ;;  %v5141_v38 = vpop.f32.mrf.mxu0  ;;  %5252 = vmatmul.mubr.bf16.gmra.mxu1 %v6420_v60  ;;  %5332 = vmatmul.mubr.bf16.gmra.mxu0 %v6420_v60 }
 0x23d   : > { %5255 = vmatprep.mubr.bf16.mxu1 %v6425_v1  ;;  %5335 = vmatprep.mubr.bf16.mxu0 %v6425_v1 }
 0x23e   : > { %v6709_v32 = vpop.f32.mrf.mxu1  ;;  %v2555_v9 = vpop.f32.mrf.mxu0 }
 0x23f   : > { %v6712_v23 = vadd.f32 %v2555_v9, %v6091_v0 }
 0x240   : > { %v5062_v63 = vpop.f32.mrf.mxu1  ;;  %v5142_v30 = vpop.f32.mrf.mxu0 }
 0x242   : > { %v6714_v5 = vpop.f32.mrf.mxu1  ;;  %v2558_v13 = vpop.f32.mrf.mxu0 }
 0x243   : > { %v6717_v38 = vadd.f32 %v2558_v13, %v6096_v12 }
 0x244   : > { %v6719_v24 = vpop.f32.mrf.mxu1  ;;  %v5145_v60 = vpop.f32.mrf.mxu0  ;;  %5256 = vmatmul.mubr.bf16.gmra.mxu1 %v6442_v37  ;;  %5336 = vmatmul.mubr.bf16.gmra.mxu0 %v6442_v37 }
 0x245   : > { %5259 = vmatprep.mubr.bf16.mxu1 %v6447_v20  ;;  %5339 = vmatprep.mubr.bf16.mxu0 %v6447_v20 }
 0x246   : > { %v6725_v0 = vpop.f32.mrf.mxu1  ;;  %v2569_v1 = vpop.f32.mrf.mxu0 }
 0x247   : > { %v6728_v9 = vadd.f32 %v2569_v1, %v6107_v61 }
 0x248   : > { %v5066_v63 = vpop.f32.mrf.mxu1  ;;  %v5146_v12 = vpop.f32.mrf.mxu0 }
 0x24a   : > { %v6730_v30 = vpop.f32.mrf.mxu1  ;;  %v2572_v13 = vpop.f32.mrf.mxu0 }
 0x24b   : > { %v6733_v60 = vadd.f32 %v2572_v13, %v6112_v52 }
 0x24c   : > { %v6735_v26 = vpop.f32.mrf.mxu1  ;;  %v5149_v37 = vpop.f32.mrf.mxu0  ;;  %5260 = vmatmul.mubr.bf16.gmra.mxu1 %v6464_v28  ;;  %5340 = vmatmul.mubr.bf16.gmra.mxu0 %v6464_v28 }
 0x24d   : > { %5263 = vmatprep.mubr.bf16.mxu1 %v6469_v17  ;;  %5343 = vmatprep.mubr.bf16.mxu0 %v6469_v17 }
 0x24e   : > { %v6741_v61 = vpop.f32.mrf.mxu1  ;;  %v2583_v20 = vpop.f32.mrf.mxu0 }
 0x24f   : > { %v6744_v1 = vadd.f32 %v2583_v20, %v6123_v3 }
 0x250   : > { %v5070_v63 = vpop.f32.mrf.mxu1  ;;  %v5150_v52 = vpop.f32.mrf.mxu0 }
 0x252   : > { %v6746_v12 = vpop.f32.mrf.mxu1  ;;  %v2586_v13 = vpop.f32.mrf.mxu0 }
 0x253   : > { %v6749_v37 = vadd.f32 %v2586_v13, %v6128_v27 }
 0x254   : > { %v6751_v56 = vpop.f32.mrf.mxu1  ;;  %v5153_v28 = vpop.f32.mrf.mxu0  ;;  %5264 = vmatmul.mubr.bf16.gmra.mxu1 %v6486_v15  ;;  %5344 = vmatmul.mubr.bf16.gmra.mxu0 %v6486_v15 }
 0x255   : > { %5267 = vmatprep.mubr.bf16.mxu1 %v6491_v50  ;;  %5347 = vmatprep.mubr.bf16.mxu0 %v6491_v50 }
 0x256   : > { %v6757_v3 = vpop.f32.mrf.mxu1  ;;  %v2597_v17 = vpop.f32.mrf.mxu0 }
 0x257   : > { %v6760_v20 = vadd.f32 %v2597_v17, %v6139_v31 }
 0x258   : > { %v5074_v63 = vpop.f32.mrf.mxu1  ;;  %v5154_v27 = vpop.f32.mrf.mxu0 }
 0x25a   : > { %v6762_v52 = vpop.f32.mrf.mxu1  ;;  %v2600_v13 = vpop.f32.mrf.mxu0 }
 0x25b   : > { %v6765_v28 = vadd.f32 %v2600_v13, %v6144_v35 }
 0x25c   : > { %v6767_v59 = vpop.f32.mrf.mxu1  ;;  %v5157_v15 = vpop.f32.mrf.mxu0  ;;  %5268 = vmatmul.mubr.bf16.gmra.mxu1 %v6511_v43  ;;  %5348 = vmatmul.mubr.bf16.gmra.mxu0 %v6511_v43 }
 0x25d   : > { %5271 = vmatprep.mubr.bf16.mxu1 %v6499_v46  ;;  %5351 = vmatprep.mubr.bf16.mxu0 %v6499_v46 }
 0x25e   : > { %v6773_v31 = vpop.f32.mrf.mxu1  ;;  %v2611_v50 = vpop.f32.mrf.mxu0 }
 0x25f   : > { %v6776_v17 = vadd.f32 %v2611_v50, %v6155_v39 }
 0x260   : > { %v5078_v63 = vpop.f32.mrf.mxu1  ;;  %v5158_v35 = vpop.f32.mrf.mxu0 }
 0x262   : > { %v6778_v27 = vpop.f32.mrf.mxu1  ;;  %v2614_v13 = vpop.f32.mrf.mxu0 }
 0x263   : > { %v6781_v15 = vadd.f32 %v2614_v13, %v6160_v49 }
 0x264   : > { %v6783_v8 = vpop.f32.mrf.mxu1  ;;  %v5161_v43 = vpop.f32.mrf.mxu0  ;;  %5272 = vmatmul.mubr.bf16.gmra.mxu1 %v6521_v42  ;;  %5352 = vmatmul.mubr.bf16.gmra.mxu0 %v6521_v42  ;;  %v988_v42 = vadd.f32 %v6196_v40, %v5895_v21  ;;  %v1002_v21 = vadd.f32 %v6233_v47, %v5921_v44  ;;  %v7454_v44 = vld [vmem:[#allocation45_spill] sm:$0xff] }
 0x266   : > { %v6787_v46 = vpop.f32.mrf.mxu1  ;;  %v2625_v53 = vpop.f32.mrf.mxu0 }
 0x267   : > { %v6790_v39 = vadd.f32 %v2625_v53, %v6174_v16 }
 0x268   : > { %v5082_v50 = vpop.f32.mrf.mxu1  ;;  %v5162_v63 = vpop.f32.mrf.mxu0 }
 0x269   : > { %7440 = vst [vmem:[#allocation169_spill] sm:$0xff] %v6790_v39  ;;  %v991_v50 = vadd.f32 %v6211_v2, %v5907_v33  ;;  %v1005_v33 = vadd.f32 %v6243_v34, %v5931_v62  ;;  %v7458_v62 = vld [vmem:[#allocation47_spill] sm:$0xff] }
 0x26a   : > { %v6792_v35 = vpop.f32.mrf.mxu1  ;;  %v2628_v25 = vpop.f32.mrf.mxu0 }
 0x26b   : > { %v6795_v49 = vadd.f32 %v2628_v25, %v6179_v57 }
 0x26c   : > { %v6797_v13 = vpop.f32.mrf.mxu1  ;;  %v5165_v43 = vpop.f32.mrf.mxu0 }
 0x26d   : > { %7441 = vst [vmem:[#allocation170_spill] sm:$0xff] %v6795_v49  ;;  %7442 = vst [vmem:[#allocation171_spill] sm:$0xff] %v6797_v13  ;;  %v7513_v49 = vld [vmem:[#allocation78_spill] sm:$0xff]  ;;  %v7515_v13 = vld [vmem:[#allocation17_spill] sm:$0xff] }
 0x26e   : > { %v6801_v11 = vpop.f32.mrf.mxu1  ;;  %v2639_v58 = vpop.f32.mrf.mxu0 }
 0x26f   : > { %7443 = vst [vmem:[#allocation172_spill] sm:$0xff] %v6801_v11  ;;  %v6803_v29 = vadd.f32 %v2639_v58, %v988_v42  ;;  %v7514_v11 = vld [vmem:[#allocation79_spill] sm:$0xff] }
 0x270   : > { %v5086_v16 = vpop.f32.mrf.mxu1  ;;  %v5166_v53 = vpop.f32.mrf.mxu0 }
 0x271   : > { %7444 = vst [vmem:[#allocation173_spill] sm:$0xff] %v6803_v29  ;;  %v7453_v29 = vld [vmem:[#allocation2_spill] sm:$0xff] }
 0x272   : > { %v6807_v63 = vpop.f32.mrf.mxu1  ;;  %v2642_v57 = vpop.f32.mrf.mxu0  ;;  %v1016_v47 = vadd.f32 %v7454_v44, %v7453_v29  ;;  %v7463_v29 = vld [vmem:[#allocation50_spill] sm:$0xff] }
 0x273   : > { %7445 = vst [vmem:[#allocation174_spill] sm:$0xff] %v6807_v63  ;;  %v6809_v25 = vadd.f32 %v2642_v57, %v991_v50  ;;  %v7511_v63 = vld [vmem:[#allocation77_spill] sm:$0xff] }
 0x274   : > { %v6811_v55 = vpop.f32.mrf.mxu1  ;;  %v5169_v43 = vpop.f32.mrf.mxu0 }
 0x275   : > { %7446 = vst [vmem:[#allocation175_spill] sm:$0xff] %v6809_v25  ;;  %7447 = vst [vmem:[#allocation176_spill] sm:$0xff] %v6811_v55  ;;  %v7507_v55 = vld [vmem:[#allocation74_spill] sm:$0xff] }
 0x276   : > { %v6815_v40 = vpop.f32.mrf.mxu1  ;;  %v2653_v58 = vpop.f32.mrf.mxu0 }
 0x277   : > { %7448 = vst [vmem:[#allocation177_spill] sm:$0xff] %v6815_v40  ;;  %v6817_v42 = vadd.f32 %v2653_v58, %v1002_v21 }
 0x278   : > { %v5090_v16 = vpop.f32.mrf.mxu1  ;;  %v5170_v53 = vpop.f32.mrf.mxu0 }
 0x279   : > { %7449 = vst [vmem:[#allocation178_spill] sm:$0xff] %v6817_v42  ;;  %v7457_v42 = vld [vmem:[#allocation3_spill] sm:$0xff] }
 0x27a   : > { %v6821_v2 = vpop.f32.mrf.mxu1  ;;  %v2656_v50 = vpop.f32.mrf.mxu0  ;;  %v1019_v34 = vadd.f32 %v7458_v62, %v7457_v42  ;;  %v7467_v42 = vld [vmem:[#allocation52_spill] sm:$0xff] }
 0x27b   : > { %7450 = vst [vmem:[#allocation179_spill] sm:$0xff] %v6821_v2  ;;  %v6823_v57 = vadd.f32 %v2656_v50, %v1005_v33 }
 0x27c   : > { %v6825_v25 = vpop.f32.mrf.mxu1  ;;  %v5173_v43 = vpop.f32.mrf.mxu0 }
 0x27d   : > { %7451 = vst [vmem:[#allocation180_spill] sm:$0xff] %v6823_v57  ;;  %7452 = vst [vmem:[#allocation181_spill] sm:$0xff] %v6825_v25  ;;  %v7462_v25 = vld [vmem:[#allocation4_spill] sm:$0xff] }
 0x27e   : > { %v6829_v40 = vpop.f32.mrf.mxu1  ;;  %v2667_v21 = vpop.f32.mrf.mxu0  ;;  %v1030_v44 = vadd.f32 %v7463_v29, %v7462_v25  ;;  %v7472_v25 = vld [vmem:[#allocation55_spill] sm:$0xff] }
 0x27f   : > { %7455 = vst [vmem:[#allocation2_spill] sm:$0xff] %v6829_v40  ;;  %v6831_v58 = vadd.f32 %v2667_v21, %v1016_v47 }
 0x280   : > { %v5094_v16 = vpop.f32.mrf.mxu1  ;;  %v5174_v53 = vpop.f32.mrf.mxu0 }
 0x281   : > { %7456 = vst [vmem:[#allocation45_spill] sm:$0xff] %v6831_v58  ;;  %v7466_v58 = vld [vmem:[#allocation5_spill] sm:$0xff] }
 0x282   : > { %v6835_v2 = vpop.f32.mrf.mxu1  ;;  %v2670_v33 = vpop.f32.mrf.mxu0  ;;  %v1033_v62 = vadd.f32 %v7467_v42, %v7466_v58  ;;  %v7476_v58 = vld [vmem:[#allocation57_spill] sm:$0xff] }
 0x283   : > { %7459 = vst [vmem:[#allocation3_spill] sm:$0xff] %v6835_v2  ;;  %v6837_v50 = vadd.f32 %v2670_v33, %v1019_v34 }
 0x284   : > { %v6839_v57 = vpop.f32.mrf.mxu1  ;;  %v5177_v43 = vpop.f32.mrf.mxu0 }
 0x285   : > { %7460 = vst [vmem:[#allocation47_spill] sm:$0xff] %v6837_v50  ;;  %7461 = vst [vmem:[#allocation182_spill] sm:$0xff] %v6839_v57  ;;  %v7471_v57 = vld [vmem:[#allocation6_spill] sm:$0xff] }
 0x286   : > { %v6843_v40 = vpop.f32.mrf.mxu1  ;;  %v2681_v47 = vpop.f32.mrf.mxu0  ;;  %v1044_v29 = vadd.f32 %v7472_v25, %v7471_v57  ;;  %v7481_v57 = vld [vmem:[#allocation60_spill] sm:$0xff] }
 0x287   : > { %7464 = vst [vmem:[#allocation4_spill] sm:$0xff] %v6843_v40  ;;  %v6845_v21 = vadd.f32 %v2681_v47, %v1030_v44 }
 0x288   : > { %v5098_v16 = vpop.f32.mrf.mxu1  ;;  %v5178_v53 = vpop.f32.mrf.mxu0 }
 0x289   : > { %7465 = vst [vmem:[#allocation50_spill] sm:$0xff] %v6845_v21  ;;  %v7475_v21 = vld [vmem:[#allocation7_spill] sm:$0xff] }
 0x28a   : > { %v6849_v2 = vpop.f32.mrf.mxu1  ;;  %v2684_v34 = vpop.f32.mrf.mxu0  ;;  %v1047_v42 = vadd.f32 %v7476_v58, %v7475_v21  ;;  %v7485_v21 = vld [vmem:[#allocation62_spill] sm:$0xff] }
 0x28b   : > { %7468 = vst [vmem:[#allocation5_spill] sm:$0xff] %v6849_v2  ;;  %v6851_v33 = vadd.f32 %v2684_v34, %v1033_v62 }
 0x28c   : > { %v6853_v50 = vpop.f32.mrf.mxu1  ;;  %v5181_v43 = vpop.f32.mrf.mxu0 }
 0x28d   : > { %7469 = vst [vmem:[#allocation52_spill] sm:$0xff] %v6851_v33  ;;  %7470 = vst [vmem:[#allocation183_spill] sm:$0xff] %v6853_v50  ;;  %v7480_v50 = vld [vmem:[#allocation8_spill] sm:$0xff] }
 0x28e   : > { %v6857_v40 = vpop.f32.mrf.mxu1  ;;  %v2695_v44 = vpop.f32.mrf.mxu0  ;;  %v1058_v25 = vadd.f32 %v7481_v57, %v7480_v50  ;;  %v7490_v50 = vld [vmem:[#allocation65_spill] sm:$0xff] }
 0x28f   : > { %7473 = vst [vmem:[#allocation6_spill] sm:$0xff] %v6857_v40  ;;  %v6859_v47 = vadd.f32 %v2695_v44, %v1044_v29 }
 0x290   : > { %v5102_v16 = vpop.f32.mrf.mxu1  ;;  %v5182_v53 = vpop.f32.mrf.mxu0 }
 0x291   : > { %7474 = vst [vmem:[#allocation55_spill] sm:$0xff] %v6859_v47  ;;  %v7484_v47 = vld [vmem:[#allocation9_spill] sm:$0xff] }
 0x292   : > { %v6863_v2 = vpop.f32.mrf.mxu1  ;;  %v2698_v62 = vpop.f32.mrf.mxu0  ;;  %v1061_v58 = vadd.f32 %v7485_v21, %v7484_v47  ;;  %v7494_v47 = vld [vmem:[#allocation67_spill] sm:$0xff] }
 0x293   : > { %7477 = vst [vmem:[#allocation7_spill] sm:$0xff] %v6863_v2  ;;  %v6865_v34 = vadd.f32 %v2698_v62, %v1047_v42 }
 0x294   : > { %v6867_v33 = vpop.f32.mrf.mxu1  ;;  %v5185_v43 = vpop.f32.mrf.mxu0 }
 0x295   : > { %7478 = vst [vmem:[#allocation57_spill] sm:$0xff] %v6865_v34  ;;  %7479 = vst [vmem:[#allocation184_spill] sm:$0xff] %v6867_v33  ;;  %v7489_v33 = vld [vmem:[#allocation10_spill] sm:$0xff] }
 0x296   : > { %v6871_v40 = vpop.f32.mrf.mxu1  ;;  %v2709_v29 = vpop.f32.mrf.mxu0  ;;  %v1072_v57 = vadd.f32 %v7490_v50, %v7489_v33  ;;  %v7499_v33 = vld [vmem:[#allocation70_spill] sm:$0xff] }
 0x297   : > { %7482 = vst [vmem:[#allocation8_spill] sm:$0xff] %v6871_v40  ;;  %v6873_v44 = vadd.f32 %v2709_v29, %v1058_v25 }
 0x298   : > { %v5106_v16 = vpop.f32.mrf.mxu1  ;;  %v5186_v53 = vpop.f32.mrf.mxu0 }
 0x299   : > { %7483 = vst [vmem:[#allocation60_spill] sm:$0xff] %v6873_v44  ;;  %v7493_v44 = vld [vmem:[#allocation11_spill] sm:$0xff] }
 0x29a   : > { %v6877_v2 = vpop.f32.mrf.mxu1  ;;  %v2712_v42 = vpop.f32.mrf.mxu0  ;;  %v1075_v21 = vadd.f32 %v7494_v47, %v7493_v44  ;;  %v7503_v44 = vld [vmem:[#allocation72_spill] sm:$0xff] }
 0x29b   : > { %7486 = vst [vmem:[#allocation9_spill] sm:$0xff] %v6877_v2  ;;  %v6879_v62 = vadd.f32 %v2712_v42, %v1061_v58 }
 0x29c   : > { %v6881_v34 = vpop.f32.mrf.mxu1  ;;  %v5189_v43 = vpop.f32.mrf.mxu0 }
 0x29d   : > { %7487 = vst [vmem:[#allocation62_spill] sm:$0xff] %v6879_v62  ;;  %7488 = vst [vmem:[#allocation185_spill] sm:$0xff] %v6881_v34  ;;  %v7498_v34 = vld [vmem:[#allocation12_spill] sm:$0xff] }
 0x29e   : > { %v6885_v40 = vpop.f32.mrf.mxu1  ;;  %v2723_v25 = vpop.f32.mrf.mxu0  ;;  %v1086_v50 = vadd.f32 %v7499_v33, %v7498_v34  ;;  %v7508_v33 = vld [vmem:[#allocation75_spill] sm:$0xff] }
 0x29f   : > { %7491 = vst [vmem:[#allocation10_spill] sm:$0xff] %v6885_v40  ;;  %v6887_v29 = vadd.f32 %v2723_v25, %v1072_v57 }
 0x2a0   : > { %v5110_v16 = vpop.f32.mrf.mxu1  ;;  %v5190_v53 = vpop.f32.mrf.mxu0 }
 0x2a1   : > { %7492 = vst [vmem:[#allocation65_spill] sm:$0xff] %v6887_v29  ;;  %v7502_v29 = vld [vmem:[#allocation13_spill] sm:$0xff] }
 0x2a2   : > { %v6891_v2 = vpop.f32.mrf.mxu1  ;;  %v2726_v58 = vpop.f32.mrf.mxu0  ;;  %v1089_v47 = vadd.f32 %v7503_v44, %v7502_v29  ;;  %v2178_v29 = vadd.f32 %v6677_v54, %v7511_v63 }
 0x2a3   : > { %7495 = vst [vmem:[#allocation11_spill] sm:$0xff] %v6891_v2  ;;  %v6893_v42 = vadd.f32 %v2726_v58, %v1075_v21 }
 0x2a4   : > { %v6895_v62 = vpop.f32.mrf.mxu1  ;;  %v5193_v43 = vpop.f32.mrf.mxu0 }
 0x2a5   : > { %7496 = vst [vmem:[#allocation67_spill] sm:$0xff] %v6893_v42  ;;  %7497 = vst [vmem:[#allocation186_spill] sm:$0xff] %v6895_v62  ;;  %v7506_v62 = vld [vmem:[#allocation14_spill] sm:$0xff] }
 0x2a6   : > { %v6899_v40 = vpop.f32.mrf.mxu1  ;;  %v2737_v57 = vpop.f32.mrf.mxu0  ;;  %v1527_v34 = vadd.f32 %v7507_v55, %v7506_v62  ;;  %v2181_v55 = vadd.f32 %v6682_v10, %v7514_v11  ;;  %v7517_v11 = vld [vmem:[#allocation18_spill] sm:$0xff] }
 0x2a7   : > { %7500 = vst [vmem:[#allocation12_spill] sm:$0xff] %v6899_v40  ;;  %v6901_v25 = vadd.f32 %v2737_v57, %v1086_v50  ;;  %v2186_v40 = vadd.f32 %v6671_v41, %v7508_v33 }
 0x2a8   : > { %v5114_v16 = vpop.f32.mrf.mxu1  ;;  %v5194_v53 = vpop.f32.mrf.mxu0 }
 0x2a9   : > { %7501 = vst [vmem:[#allocation70_spill] sm:$0xff] %v6901_v25  ;;  %v7509_v16 = vld [vmem:[#allocation15_spill] sm:$0xff]  ;;  %v7510_v53 = vld [vmem:[#allocation76_spill] sm:$0xff] }
 0x2aa   : > { %v6905_v2 = vpop.f32.mrf.mxu1  ;;  %v2740_v21 = vpop.f32.mrf.mxu0  ;;  %v1519_v25 = vadd.f32 %v7510_v53, %v7509_v16  ;;  %v1542_v16 = vadd.f32 %v7516_v51, %v7515_v13  ;;  %v7521_v51 = vld [vmem:[#allocation81_spill] sm:$0xff] }
 0x2ab   : > { %7504 = vst [vmem:[#allocation13_spill] sm:$0xff] %v6905_v2  ;;  %v6907_v58 = vadd.f32 %v2740_v21, %v1089_v47 }
 0x2ac   : > { %v5213_v42 = vpop.f32.mrf.mxu1  ;;  %v5293_v43 = vpop.f32.mrf.mxu0 }
 0x2ad   : > { %7505 = vst [vmem:[#allocation72_spill] sm:$0xff] %v6907_v58  ;;  %v3122_v44 = vadd.f32 %v5213_v42, %v1527_v34  ;;  %v3508_v2 = vadd.f32 %v5293_v43, %v2186_v40  ;;  %v7512_v58 = vld [vmem:[#allocation16_spill] sm:$0xff] }
 0x2ae   : > { %v2881_v50 = vpop.f32.mrf.mxu1  ;;  %v3267_v57 = vpop.f32.mrf.mxu0  ;;  %v1522_v39 = vadd.f32 %v7513_v49, %v7512_v58 }
 0x2af   : > { %v3120_v62 = vadd.f32 %v2881_v50, %v1519_v25  ;;  %v3506_v41 = vadd.f32 %v3267_v57, %v2178_v29  ;;  %v3606_v63 = vrot.slane %v3122_v44, 1  ;;  %v3799_v40 = vrot.slane %v3508_v2, 2  ;;  %v7518_v25 = vld [vmem:[#allocation82_spill] sm:$0xff]  ;;  %v7519_v57 = vld [vmem:[#allocation19_spill] sm:$0xff]  ;;  %v7520_v29 = vld [vmem:[#allocation84_spill] sm:$0xff] }
 0x2b0   : > { %v5214_v47 = vpop.f32.mrf.mxu1  ;;  %v5294_v21 = vpop.f32.mrf.mxu0  ;;  %v1534_v50 = vadd.f32 %v7518_v25, %v7517_v11 }
 0x2b1   : > { %v3603_v49 = vrot.slane %v3120_v62, 1  ;;  %v3796_v58 = vrot.slane %v3506_v41, 2  ;;  %v1537_v47 = vadd.f32 %v7520_v29, %v7519_v57 }
 0x2b2   : > { %v2884_v33 = vpop.f32.mrf.mxu1  ;;  %v3270_v36 = vpop.f32.mrf.mxu0 }
 0x2b3   : > { %v3121_v53 = vadd.f32 %v2884_v33, %v1522_v39  ;;  %v3507_v54 = vadd.f32 %v3270_v36, %v2181_v55  ;;  %v2201_v39 = vadd.f32 %v6687_v7, %v7521_v51  ;;  %v7522_v36 = vld [vmem:[#allocation83_spill] sm:$0xff] }
 0x2b4   : > { %v5217_v42 = vpop.f32.mrf.mxu1  ;;  %v5297_v43 = vpop.f32.mrf.mxu0  ;;  %v2193_v13 = vadd.f32 %v6693_v19, %v7522_v36  ;;  %v7523_v19 = vld [vmem:[#allocation85_spill] sm:$0xff] }
 0x2b5   : > { %v3604_v34 = vrot.slane %v3121_v53, 1  ;;  %v3797_v10 = vrot.slane %v3507_v54, 2  ;;  %v3125_v54 = vadd.f32 %v5217_v42, %v1542_v16  ;;  %v3511_v7 = vadd.f32 %v5297_v43, %v2201_v39 }
 0x2b6   : > { %v2896_v2 = vpop.f32.mrf.mxu1  ;;  %v3282_v44 = vpop.f32.mrf.mxu0  ;;  %v2196_v57 = vadd.f32 %v6698_v48, %v7523_v19 }
 0x2b7   : > { %v3605_v21 = vsel %vm3602_vm0, %v3603_v49, %v3604_v34  ;;  %v3607_v55 = vsel %vm3602_vm0, %v3604_v34, %v3606_v63  ;;  %v3798_v62 = vsel %vm3795_vm1, %v3796_v58, %v3797_v10  ;;  %v3800_v41 = vsel %vm3795_vm1, %v3797_v10, %v3799_v40 }
 0x2b8   : > { %v3715_v33 = vadd.f32 %v3605_v21, %v6680_v18  ;;  %v3716_v53 = vadd.f32 %v3607_v55, %v6685_v6  ;;  %v5218_v11 = vpop.f32.mrf.mxu1  ;;  %v5298_v25 = vpop.f32.mrf.mxu0  ;;  %v3123_v63 = vadd.f32 %v2896_v2, %v1534_v50  ;;  %v3509_v40 = vadd.f32 %v3282_v44, %v2193_v13  ;;  %v7524_v50 = vld [vmem:[#allocation20_spill] sm:$0xff]  ;;  %v7525_v13 = vld [vmem:[#allocation86_spill] sm:$0xff]  ;;  %v7526_v44 = vld [vmem:[#allocation21_spill] sm:$0xff] }
 0x2b9   : > { %v3611_v48 = vrot.slane %v3125_v54, 1  ;;  %v3804_v58 = vrot.slane %v3511_v7, 2  ;;  %v1557_v2 = vadd.f32 %v7525_v13, %v7524_v50  ;;  %v7527_v21 = vld [vmem:[#allocation88_spill] sm:$0xff] }
 0x2ba   : > { %v3908_v18 = vadd.f32 %v3798_v62, %v3715_v33  ;;  %v3909_v49 = vadd.f32 %v3800_v41, %v3716_v53  ;;  %v2899_v6 = vpop.f32.mrf.mxu1  ;;  %v3285_v16 = vpop.f32.mrf.mxu0  ;;  %v3608_v29 = vrot.slane %v3123_v63, 1  ;;  %v3801_v51 = vrot.slane %v3509_v40, 2  ;;  %v7529_v41 = vld [vmem:[#allocation89_spill] sm:$0xff] }
 0x2bb   : > { %v3124_v42 = vadd.f32 %v2899_v6, %v1537_v47  ;;  %v3510_v43 = vadd.f32 %v3285_v16, %v2196_v57  ;;  %v1549_v55 = vadd.f32 %v7527_v21, %v7526_v44  ;;  %v7528_v47 = vld [vmem:[#allocation87_spill] sm:$0xff]  ;;  %v2208_v33 = vadd.f32 %v6709_v32, %v7529_v41  ;;  %v7531_v6 = vld [vmem:[#allocation90_spill] sm:$0xff]  ;;  %v7535_v41 = vld [vmem:[#allocation24_spill] sm:$0xff] }
 0x2bc   : > { %3941 = vst.msk [vmem:[%s6943_s7] sm:$0xff] %vm3940_vm2, %v3908_v18  ;;  %3942 = vst.msk [vmem:[%s6943_s7 + $0x8] sm:$0xff] %vm3940_vm2, %v3909_v49  ;;  %v5221_v34 = vpop.f32.mrf.mxu1  ;;  %v5301_v10 = vpop.f32.mrf.mxu0  ;;  %v2216_v62 = vadd.f32 %v6703_v45, %v7528_v47  ;;  %v7530_v49 = vld [vmem:[#allocation22_spill] sm:$0xff]  ;;  %v7534_v47 = vld [vmem:[#allocation92_spill] sm:$0xff] }
 0x2bd   : > { %v3609_v39 = vrot.slane %v3124_v42, 1  ;;  %v3802_v36 = vrot.slane %v3510_v43, 2  ;;  %v3128_v45 = vadd.f32 %v5221_v34, %v1557_v2  ;;  %v1552_v16 = vadd.f32 %v7531_v6, %v7530_v49  ;;  %v7532_v42 = vld [vmem:[#allocation91_spill] sm:$0xff] }
 0x2be   : > { %v2911_v53 = vpop.f32.mrf.mxu1  ;;  %v3297_v54 = vpop.f32.mrf.mxu0  ;;  %v3514_v40 = vadd.f32 %v5301_v10, %v2216_v62  ;;  %v2211_v43 = vadd.f32 %v6714_v5, %v7532_v42  ;;  %v7539_v42 = vld [vmem:[#allocation25_spill] sm:$0xff] }
 0x2bf   : > { %v3610_v7 = vsel %vm3602_vm0, %v3608_v29, %v3609_v39  ;;  %v3612_v11 = vsel %vm3602_vm0, %v3609_v39, %v3611_v48  ;;  %v3803_v25 = vsel %vm3795_vm1, %v3801_v51, %v3802_v36  ;;  %v3805_v19 = vsel %vm3795_vm1, %v3802_v36, %v3804_v58 }
 0x2c0   : > { %v3717_v57 = vadd.f32 %v3610_v7, %v6696_v22  ;;  %v3718_v63 = vadd.f32 %v3612_v11, %v6701_v4  ;;  %v5222_v18 = vpop.f32.mrf.mxu1  ;;  %v5302_v32 = vpop.f32.mrf.mxu0  ;;  %v3126_v48 = vadd.f32 %v2911_v53, %v1549_v55  ;;  %v3512_v29 = vadd.f32 %v3297_v54, %v2208_v33  ;;  %v7533_v55 = vld [vmem:[#allocation23_spill] sm:$0xff]  ;;  %v7536_v33 = vld [vmem:[#allocation94_spill] sm:$0xff]  ;;  %v7537_v54 = vld [vmem:[#allocation93_spill] sm:$0xff] }
 0x2c1   : > { %v3616_v4 = vrot.slane %v3128_v45, 1  ;;  %v3809_v34 = vrot.slane %v3514_v40, 2  ;;  %v1572_v62 = vadd.f32 %v7534_v47, %v7533_v55  ;;  %v1564_v53 = vadd.f32 %v7536_v33, %v7535_v41  ;;  %v7538_v11 = vld [vmem:[#allocation95_spill] sm:$0xff]  ;;  %v7542_v55 = vld [vmem:[#allocation26_spill] sm:$0xff]  ;;  %v7545_v33 = vld [vmem:[#allocation100_spill] sm:$0xff] }
 0x2c2   : > { %v3910_v51 = vadd.f32 %v3803_v25, %v3717_v57  ;;  %v3911_v58 = vadd.f32 %v3805_v19, %v3718_v63  ;;  %v2914_v39 = vpop.f32.mrf.mxu1  ;;  %v3300_v22 = vpop.f32.mrf.mxu0  ;;  %v3613_v2 = vrot.slane %v3126_v48, 1  ;;  %v3806_v44 = vrot.slane %v3512_v29, 2  ;;  %v7541_v29 = vld [vmem:[#allocation97_spill] sm:$0xff]  ;;  %v7543_v47 = vld [vmem:[#allocation98_spill] sm:$0xff]  ;;  %v7544_v41 = vld [vmem:[#allocation27_spill] sm:$0xff] }
 0x2c3   : > { %v3127_v36 = vadd.f32 %v2914_v39, %v1552_v16  ;;  %v3513_v50 = vadd.f32 %v3300_v22, %v2211_v43  ;;  %v2231_v7 = vadd.f32 %v6719_v24, %v7537_v54  ;;  %v2223_v25 = vadd.f32 %v6725_v0, %v7538_v11  ;;  %v7540_v43 = vld [vmem:[#allocation96_spill] sm:$0xff]  ;;  %v7546_v54 = vld [vmem:[#allocation99_spill] sm:$0xff]  ;;  %v7547_v11 = vld [vmem:[#allocation101_spill] sm:$0xff] }
 0x2c4   : > { %3943 = vst.msk [vmem:[%s6943_s7 + $0x10] sm:$0xff] %vm3940_vm2, %v3910_v51  ;;  %3944 = vst.msk [vmem:[%s6943_s7 + $0x18] sm:$0xff] %vm3940_vm2, %v3911_v58  ;;  %v5225_v10 = vpop.f32.mrf.mxu1  ;;  %v5305_v13 = vpop.f32.mrf.mxu0  ;;  %v1567_v48 = vadd.f32 %v7540_v43, %v7539_v42  ;;  %v2226_v51 = vadd.f32 %v6730_v30, %v7541_v29  ;;  %v7550_v43 = vld [vmem:[#allocation103_spill] sm:$0xff] }
 0x2c5   : > { %v3614_v21 = vrot.slane %v3127_v36, 1  ;;  %v3807_v5 = vrot.slane %v3513_v50, 2  ;;  %v3131_v24 = vadd.f32 %v5225_v10, %v1572_v62  ;;  %v3517_v6 = vadd.f32 %v5305_v13, %v2231_v7 }
 0x2c6   : > { %v2926_v19 = vpop.f32.mrf.mxu1  ;;  %v3312_v57 = vpop.f32.mrf.mxu0  ;;  %v1587_v62 = vadd.f32 %v7543_v47, %v7542_v55  ;;  %v2246_v7 = vadd.f32 %v6735_v26, %v7546_v54  ;;  %v7555_v47 = vld [vmem:[#allocation105_spill] sm:$0xff] }
 0x2c7   : > { %v3615_v63 = vsel %vm3602_vm0, %v3613_v2, %v3614_v21  ;;  %v3617_v45 = vsel %vm3602_vm0, %v3614_v21, %v3616_v4  ;;  %v3808_v40 = vsel %vm3795_vm1, %v3806_v44, %v3807_v5  ;;  %v3810_v18 = vsel %vm3795_vm1, %v3807_v5, %v3809_v34 }
 0x2c8   : > { %v3719_v32 = vadd.f32 %v3615_v63, %v6712_v23  ;;  %v3720_v49 = vadd.f32 %v3617_v45, %v6717_v38  ;;  %v5226_v16 = vpop.f32.mrf.mxu1  ;;  %v5306_v0 = vpop.f32.mrf.mxu0  ;;  %v3129_v58 = vadd.f32 %v2926_v19, %v1564_v53  ;;  %v3515_v39 = vadd.f32 %v3312_v57, %v2223_v25 }
 0x2c9   : > { %v3621_v38 = vrot.slane %v3131_v24, 1  ;;  %v3814_v10 = vrot.slane %v3517_v6, 2  ;;  %v1579_v53 = vadd.f32 %v7545_v33, %v7544_v41  ;;  %v2238_v25 = vadd.f32 %v6741_v61, %v7547_v11  ;;  %v7548_v16 = vld [vmem:[#allocation28_spill] sm:$0xff]  ;;  %v7549_v0 = vld [vmem:[#allocation102_spill] sm:$0xff]  ;;  %v7556_v41 = vld [vmem:[#allocation107_spill] sm:$0xff] }
 0x2ca   : > { %v3912_v22 = vadd.f32 %v3808_v40, %v3719_v32  ;;  %v3913_v36 = vadd.f32 %v3810_v18, %v3720_v49  ;;  %v2929_v50 = vpop.f32.mrf.mxu1  ;;  %v3315_v23 = vpop.f32.mrf.mxu0  ;;  %v3618_v44 = vrot.slane %v3129_v58, 1  ;;  %v3811_v21 = vrot.slane %v3515_v39, 2 }
 0x2cb   : > { %v3130_v4 = vadd.f32 %v2929_v50, %v1567_v48  ;;  %v3516_v34 = vadd.f32 %v3315_v23, %v2226_v51  ;;  %v1582_v42 = vadd.f32 %v7549_v0, %v7548_v16  ;;  %v2241_v48 = vadd.f32 %v6746_v12, %v7550_v43 }
 0x2cc   : > { %3945 = vst.msk [vmem:[%s6943_s7 + $0x20] sm:$0xff] %vm3940_vm2, %v3912_v22  ;;  %3946 = vst.msk [vmem:[%s6943_s7 + $0x28] sm:$0xff] %vm3940_vm2, %v3913_v36  ;;  %v5229_v13 = vpop.f32.mrf.mxu1  ;;  %v5309_v2 = vpop.f32.mrf.mxu0  ;;  %v2253_v33 = vadd.f32 %v6757_v3, %v7556_v41 }
 0x2cd   : > { %v3619_v5 = vrot.slane %v3130_v4, 1  ;;  %v3812_v30 = vrot.slane %v3516_v34, 2  ;;  %v3134_v26 = vadd.f32 %v5229_v13, %v1587_v62  ;;  %v3520_v24 = vadd.f32 %v5309_v2, %v2246_v7  ;;  %v7551_v2 = vld [vmem:[#allocation29_spill] sm:$0xff] }
 0x2ce   : > { %v2941_v19 = vpop.f32.mrf.mxu1  ;;  %v3327_v57 = vpop.f32.mrf.mxu0  ;;  %v2261_v62 = vadd.f32 %v6751_v56, %v7555_v47 }
 0x2cf   : > { %v3620_v63 = vsel %vm3602_vm0, %v3618_v44, %v3619_v5  ;;  %v3622_v45 = vsel %vm3602_vm0, %v3619_v5, %v3621_v38  ;;  %v3813_v40 = vsel %vm3795_vm1, %v3811_v21, %v3812_v30  ;;  %v3815_v18 = vsel %vm3795_vm1, %v3812_v30, %v3814_v10  ;;  %v7552_v44 = vld [vmem:[#allocation104_spill] sm:$0xff]  ;;  %v7553_v5 = vld [vmem:[#allocation30_spill] sm:$0xff] }
 0x2d0   : > { %v3721_v32 = vadd.f32 %v3620_v63, %v6728_v9  ;;  %v3722_v49 = vadd.f32 %v3622_v45, %v6733_v60  ;;  %v5230_v6 = vpop.f32.mrf.mxu1  ;;  %v5310_v61 = vpop.f32.mrf.mxu0  ;;  %v3132_v29 = vadd.f32 %v2941_v19, %v1579_v53  ;;  %v3518_v51 = vadd.f32 %v3327_v57, %v2238_v25  ;;  %v7554_v30 = vld [vmem:[#allocation106_spill] sm:$0xff] }
 0x2d1   : > { %v3626_v60 = vrot.slane %v3134_v26, 1  ;;  %v3819_v23 = vrot.slane %v3520_v24, 2  ;;  %v1602_v21 = vadd.f32 %v7552_v44, %v7551_v2  ;;  %v1594_v55 = vadd.f32 %v7554_v30, %v7553_v5  ;;  %v7559_v26 = vld [vmem:[#allocation109_spill] sm:$0xff] }
 0x2d2   : > { %v3914_v58 = vadd.f32 %v3813_v40, %v3721_v32  ;;  %v3915_v39 = vadd.f32 %v3815_v18, %v3722_v49  ;;  %v2944_v22 = vpop.f32.mrf.mxu1  ;;  %v3330_v9 = vpop.f32.mrf.mxu0  ;;  %v3623_v38 = vrot.slane %v3132_v29, 1  ;;  %v3816_v10 = vrot.slane %v3518_v51, 2  ;;  %v7557_v18 = vld [vmem:[#allocation31_spill] sm:$0xff]  ;;  %v7558_v32 = vld [vmem:[#allocation108_spill] sm:$0xff] }
 0x2d3   : > { %v3133_v36 = vadd.f32 %v2944_v22, %v1582_v42  ;;  %v3519_v50 = vadd.f32 %v3330_v9, %v2241_v48  ;;  %v1597_v49 = vadd.f32 %v7558_v32, %v7557_v18  ;;  %v2256_v24 = vadd.f32 %v6762_v52, %v7559_v26 }
 0x2d4   : > { %3947 = vst.msk [vmem:[%s6943_s7 + $0x30] sm:$0xff] %vm3940_vm2, %v3914_v58  ;;  %3948 = vst.msk [vmem:[%s6943_s7 + $0x38] sm:$0xff] %vm3940_vm2, %v3915_v39  ;;  %v5233_v4 = vpop.f32.mrf.mxu1  ;;  %v5313_v34 = vpop.f32.mrf.mxu0 }
 0x2d5   : > { %v3624_v13 = vrot.slane %v3133_v36, 1  ;;  %v3817_v12 = vrot.slane %v3519_v50, 2  ;;  %v3137_v56 = vadd.f32 %v5233_v4, %v1602_v21  ;;  %v3523_v45 = vadd.f32 %v5313_v34, %v2261_v62  ;;  %v7560_v36 = vld [vmem:[#allocation32_spill] sm:$0xff]  ;;  %v7561_v50 = vld [vmem:[#allocation110_spill] sm:$0xff] }
 0x2d6   : > { %v2956_v53 = vpop.f32.mrf.mxu1  ;;  %v3342_v54 = vpop.f32.mrf.mxu0  ;;  %v7563_v4 = vld [vmem:[#allocation112_spill] sm:$0xff] }
 0x2d7   : > { %v3625_v7 = vsel %vm3602_vm0, %v3623_v38, %v3624_v13  ;;  %v3627_v11 = vsel %vm3602_vm0, %v3624_v13, %v3626_v60  ;;  %v3818_v25 = vsel %vm3795_vm1, %v3816_v10, %v3817_v12  ;;  %v3820_v19 = vsel %vm3795_vm1, %v3817_v12, %v3819_v23  ;;  %v7562_v23 = vld [vmem:[#allocation33_spill] sm:$0xff]  ;;  %v7564_v38 = vld [vmem:[#allocation111_spill] sm:$0xff] }
 0x2d8   : > { %v3723_v57 = vadd.f32 %v3625_v7, %v6744_v1  ;;  %v3724_v63 = vadd.f32 %v3627_v11, %v6749_v37  ;;  %v5234_v40 = vpop.f32.mrf.mxu1  ;;  %v5314_v3 = vpop.f32.mrf.mxu0  ;;  %v3135_v6 = vadd.f32 %v2956_v53, %v1594_v55  ;;  %v3521_v61 = vadd.f32 %v3342_v54, %v2253_v33  ;;  %v7565_v13 = vld [vmem:[#allocation113_spill] sm:$0xff]  ;;  %v7566_v53 = vld [vmem:[#allocation34_spill] sm:$0xff]  ;;  %v7568_v11 = vld [vmem:[#allocation115_spill] sm:$0xff] }
 0x2d9   : > { %v3631_v37 = vrot.slane %v3137_v56, 1  ;;  %v3824_v29 = vrot.slane %v3523_v45, 2  ;;  %v1617_v60 = vadd.f32 %v7561_v50, %v7560_v36  ;;  %v1609_v34 = vadd.f32 %v7563_v4, %v7562_v23  ;;  %v7567_v54 = vld [vmem:[#allocation114_spill] sm:$0xff]  ;;  %v7574_v23 = vld [vmem:[#allocation37_spill] sm:$0xff]  ;;  %v7575_v4 = vld [vmem:[#allocation119_spill] sm:$0xff] }
 0x2da   : > { %v3916_v16 = vadd.f32 %v3818_v25, %v3723_v57  ;;  %v3917_v0 = vadd.f32 %v3820_v19, %v3724_v63  ;;  %v2959_v42 = vpop.f32.mrf.mxu1  ;;  %v3345_v1 = vpop.f32.mrf.mxu0  ;;  %v3628_v39 = vrot.slane %v3135_v6, 1  ;;  %v3821_v22 = vrot.slane %v3521_v61, 2  ;;  %v7569_v61 = vld [vmem:[#allocation35_spill] sm:$0xff] }
 0x2db   : > { %v3136_v43 = vadd.f32 %v2959_v42, %v1597_v49  ;;  %v3522_v48 = vadd.f32 %v3345_v1, %v2256_v24  ;;  %v2276_v10 = vadd.f32 %v6767_v59, %v7564_v38  ;;  %v2268_v12 = vadd.f32 %v6773_v31, %v7565_v13  ;;  %v7571_v42 = vld [vmem:[#allocation36_spill] sm:$0xff] }
 0x2dc   : > { %3949 = vst.msk [vmem:[%s6943_s7 + $0x40] sm:$0xff] %vm3940_vm2, %v3916_v16  ;;  %3950 = vst.msk [vmem:[%s6943_s7 + $0x48] sm:$0xff] %vm3940_vm2, %v3917_v0  ;;  %v5237_v51 = vpop.f32.mrf.mxu1  ;;  %v5317_v58 = vpop.f32.mrf.mxu0  ;;  %v1612_v7 = vadd.f32 %v7567_v54, %v7566_v53  ;;  %v2271_v25 = vadd.f32 %v6778_v27, %v7568_v11  ;;  %v7570_v16 = vld [vmem:[#allocation116_spill] sm:$0xff]  ;;  %v1624_v1 = vadd.f32 %v6535_v14, %v7571_v42  ;;  %v7578_v53 = vld [vmem:[#allocation121_spill] sm:$0xff] }
 0x2dd   : > { %v3629_v9 = vrot.slane %v3136_v43, 1  ;;  %v3822_v52 = vrot.slane %v3522_v48, 2  ;;  %v3140_v59 = vadd.f32 %v5237_v51, %v1617_v60  ;;  %v3526_v41 = vadd.f32 %v5317_v58, %v2276_v10  ;;  %v7572_v43 = vld [vmem:[#allocation117_spill] sm:$0xff]  ;;  %v7576_v38 = vld [vmem:[#allocation120_spill] sm:$0xff]  ;;  %v7580_v11 = vld [vmem:[#allocation123_spill] sm:$0xff] }
 0x2de   : > { %v2971_v2 = vpop.f32.mrf.mxu1  ;;  %v3357_v44 = vpop.f32.mrf.mxu0  ;;  %v1632_v0 = vadd.f32 %v7570_v16, %v7569_v61  ;;  %v2291_v48 = vadd.f32 %v6783_v8, %v7572_v43  ;;  %v2286_v10 = vadd.f32 %v6792_v35, %v7576_v38  ;;  %v7588_v43 = vld [vmem:[#allocation125_spill] sm:$0xff] }
 0x2df   : > { %v3630_v21 = vsel %vm3602_vm0, %v3628_v39, %v3629_v9  ;;  %v3632_v5 = vsel %vm3602_vm0, %v3629_v9, %v3631_v37  ;;  %v3823_v30 = vsel %vm3795_vm1, %v3821_v22, %v3822_v52  ;;  %v3825_v55 = vsel %vm3795_vm1, %v3822_v52, %v3824_v29  ;;  %v7573_v37 = vld [vmem:[#allocation118_spill] sm:$0xff] }
 0x2e0   : > { %v3725_v47 = vadd.f32 %v3630_v21, %v6760_v20  ;;  %v3726_v62 = vadd.f32 %v3632_v5, %v6765_v28  ;;  %v5238_v33 = vpop.f32.mrf.mxu1  ;;  %v5318_v31 = vpop.f32.mrf.mxu0  ;;  %v3138_v19 = vadd.f32 %v2971_v2, %v1609_v34  ;;  %v3524_v57 = vadd.f32 %v3357_v44, %v2268_v12 }
 0x2e1   : > { %v3636_v28 = vrot.slane %v3140_v59, 1  ;;  %v3829_v18 = vrot.slane %v3526_v41, 2  ;;  %v2283_v29 = vadd.f32 %v6787_v46, %v7573_v37  ;;  %v1627_v34 = vadd.f32 %v7575_v4, %v7574_v23  ;;  %v7577_v31 = vld [vmem:[#allocation38_spill] sm:$0xff] }
 0x2e2   : > { %v3918_v63 = vadd.f32 %v3823_v30, %v3725_v47  ;;  %v3919_v56 = vadd.f32 %v3825_v55, %v3726_v62  ;;  %v2974_v45 = vpop.f32.mrf.mxu1  ;;  %v3360_v20 = vpop.f32.mrf.mxu0  ;;  %v3633_v26 = vrot.slane %v3138_v19, 1  ;;  %v3826_v24 = vrot.slane %v3524_v57, 2  ;;  %v7581_v19 = vld [vmem:[#allocation122_spill] sm:$0xff]  ;;  %v7582_v57 = vld [vmem:[#allocation171_spill] sm:$0xff] }
 0x2e3   : > { %v3139_v40 = vadd.f32 %v2974_v45, %v1612_v7  ;;  %v3525_v3 = vadd.f32 %v3360_v20, %v2271_v25  ;;  %v1647_v54 = vadd.f32 %v7578_v53, %v7577_v31  ;;  %v7579_v7 = vld [vmem:[#allocation39_spill] sm:$0xff]  ;;  %v7584_v45 = vld [vmem:[#allocation172_spill] sm:$0xff]  ;;  %v7589_v37 = vld [vmem:[#allocation126_spill] sm:$0xff] }
 0x2e4   : > { %3951 = vst.msk [vmem:[%s6943_s7 + $0x50] sm:$0xff] %vm3940_vm2, %v3918_v63  ;;  %3952 = vst.msk [vmem:[%s6943_s7 + $0x58] sm:$0xff] %vm3940_vm2, %v3919_v56  ;;  %v5241_v32 = vpop.f32.mrf.mxu1  ;;  %v5321_v49 = vpop.f32.mrf.mxu0  ;;  %v1639_v25 = vadd.f32 %v7580_v11, %v7579_v7  ;;  %v2306_v63 = vadd.f32 %v7582_v57, %v7581_v19  ;;  %v7583_v56 = vld [vmem:[#allocation124_spill] sm:$0xff]  ;;  %v7600_v11 = vld [vmem:[#allocation175_spill] sm:$0xff] }
 0x2e5   : > { %v3634_v6 = vrot.slane %v3139_v40, 1  ;;  %v3827_v27 = vrot.slane %v3525_v3, 2  ;;  %v3143_v8 = vadd.f32 %v5241_v32, %v1632_v0  ;;  %v3529_v50 = vadd.f32 %v5321_v49, %v2291_v48 }
 0x2e6   : > { %v2986_v51 = vpop.f32.mrf.mxu1  ;;  %v3372_v58 = vpop.f32.mrf.mxu0  ;;  %v2298_v20 = vadd.f32 %v7584_v45, %v7583_v56  ;;  %v7601_v45 = vld [vmem:[#allocation43_spill] sm:$0xff] }
 0x2e7   : > { %v3635_v39 = vsel %vm3602_vm0, %v3633_v26, %v3634_v6  ;;  %v3637_v22 = vsel %vm3602_vm0, %v3634_v6, %v3636_v28  ;;  %v3828_v9 = vsel %vm3795_vm1, %v3826_v24, %v3827_v27  ;;  %v3830_v52 = vsel %vm3795_vm1, %v3827_v27, %v3829_v18  ;;  %v7585_v26 = vld [vmem:[#allocation169_spill] sm:$0xff]  ;;  %v7586_v6 = vld [vmem:[#allocation170_spill] sm:$0xff] }
 0x2e8   : > { %v3727_v36 = vadd.f32 %v3635_v39, %v6776_v17  ;;  %v3728_v14 = vadd.f32 %v3637_v22, %v6781_v15  ;;  %v5242_v60 = vpop.f32.mrf.mxu1  ;;  %v5322_v46 = vpop.f32.mrf.mxu0  ;;  %v3141_v13 = vadd.f32 %v2986_v51, %v1624_v1  ;;  %v3527_v12 = vadd.f32 %v3372_v58, %v2283_v29  ;;  %v7587_v1 = vld [vmem:[#allocation40_spill] sm:$0xff]  ;;  %v7590_v29 = vld [vmem:[#allocation174_spill] sm:$0xff] }
 0x2e9   : > { %v3641_v15 = vrot.slane %v3143_v8, 1  ;;  %v3834_v55 = vrot.slane %v3529_v50, 2  ;;  %v1642_v48 = vadd.f32 %v7588_v43, %v7587_v1  ;;  %v2301_v51 = vadd.f32 %v7590_v29, %v7589_v37 }
 0x2ea   : > { %v3920_v2 = vadd.f32 %v3828_v9, %v3727_v36  ;;  %v3921_v44 = vadd.f32 %v3830_v52, %v3728_v14  ;;  %v2989_v21 = vpop.f32.mrf.mxu1  ;;  %v3375_v17 = vpop.f32.mrf.mxu0  ;;  %v3638_v59 = vrot.slane %v3141_v13, 1  ;;  %v3831_v41 = vrot.slane %v3527_v12, 2  ;;  %v7591_v13 = vld [vmem:[#allocation41_spill] sm:$0xff]  ;;  %v7592_v12 = vld [vmem:[#allocation127_spill] sm:$0xff] }
 0x2eb   : > { %v3142_v5 = vadd.f32 %v2989_v21, %v1627_v34  ;;  %v3528_v30 = vadd.f32 %v3375_v17, %v2286_v10  ;;  %v7594_v21 = vld [vmem:[#allocation129_spill] sm:$0xff] }
 0x2ec   : > { %3953 = vst.msk [vmem:[%s6943_s7 + $0x60] sm:$0xff] %vm3940_vm2, %v3920_v2  ;;  %3954 = vst.msk [vmem:[%s6943_s7 + $0x68] sm:$0xff] %vm3940_vm2, %v3921_v44  ;;  %v5245_v47 = vpop.f32.mrf.mxu1  ;;  %v5325_v62 = vpop.f32.mrf.mxu0  ;;  %v1662_v2 = vadd.f32 %v7592_v12, %v7591_v13  ;;  %v7593_v44 = vld [vmem:[#allocation42_spill] sm:$0xff] }
 0x2ed   : > { %v3639_v33 = vrot.slane %v3142_v5, 1  ;;  %v3832_v35 = vrot.slane %v3528_v30, 2  ;;  %v3146_v61 = vadd.f32 %v5245_v47, %v1647_v54  ;;  %v3532_v16 = vadd.f32 %v5325_v62, %v2306_v63  ;;  %v7595_v5 = vld [vmem:[#allocation128_spill] sm:$0xff]  ;;  %v7598_v47 = vld [vmem:[#allocation177_spill] sm:$0xff] }
 0x2ee   : > { %v3001_v40 = vpop.f32.mrf.mxu1  ;;  %v3387_v3 = vpop.f32.mrf.mxu0  ;;  %v1654_v17 = vadd.f32 %v7594_v21, %v7593_v44  ;;  %v7596_v30 = vld [vmem:[#allocation176_spill] sm:$0xff]  ;;  %v7599_v54 = vld [vmem:[#allocation173_spill] sm:$0xff] }
 0x2ef   : > { %v3640_v28 = vsel %vm3602_vm0, %v3638_v59, %v3639_v33  ;;  %v3642_v18 = vsel %vm3602_vm0, %v3639_v33, %v3641_v15  ;;  %v3833_v32 = vsel %vm3795_vm1, %v3831_v41, %v3832_v35  ;;  %v3835_v49 = vsel %vm3795_vm1, %v3832_v35, %v3834_v55  ;;  %v7597_v55 = vld [vmem:[#allocation130_spill] sm:$0xff]  ;;  %v7614_v21 = vld [vmem:[#allocation180_spill] sm:$0xff] }
 0x2f0   : > { %v3729_v24 = vadd.f32 %v3640_v28, %v7585_v26  ;;  %v3730_v27 = vadd.f32 %v3642_v18, %v7586_v6  ;;  %v5246_v0 = vpop.f32.mrf.mxu1  ;;  %v5326_v42 = vpop.f32.mrf.mxu0  ;;  %v3144_v58 = vadd.f32 %v3001_v40, %v1639_v25  ;;  %v3530_v39 = vadd.f32 %v3387_v3, %v2298_v20  ;;  %v7602_v20 = vld [vmem:[#allocation131_spill] sm:$0xff]  ;;  %v7603_v3 = vld [vmem:[#allocation132_spill] sm:$0xff] }
 0x2f1   : > { %v3646_v50 = vrot.slane %v3146_v61, 1  ;;  %v3839_v60 = vrot.slane %v3532_v16, 2  ;;  %v2321_v15 = vadd.f32 %v7596_v30, %v7595_v5  ;;  %v2313_v62 = vadd.f32 %v7598_v47, %v7597_v55  ;;  %v7604_v28 = vld [vmem:[#allocation179_spill] sm:$0xff]  ;;  %v7615_v47 = vld [vmem:[#allocation48_spill] sm:$0xff] }
 0x2f2   : > { %v3922_v22 = vadd.f32 %v3833_v32, %v3729_v24  ;;  %v3923_v9 = vadd.f32 %v3835_v49, %v3730_v27  ;;  %v3004_v52 = vpop.f32.mrf.mxu1  ;;  %v3390_v36 = vpop.f32.mrf.mxu0  ;;  %v3643_v4 = vrot.slane %v3144_v58, 1  ;;  %v3836_v34 = vrot.slane %v3530_v39, 2  ;;  %v7605_v58 = vld [vmem:[#allocation44_spill] sm:$0xff]  ;;  %v7606_v39 = vld [vmem:[#allocation133_spill] sm:$0xff] }
 0x2f3   : > { %v3145_v14 = vadd.f32 %v3004_v52, %v1642_v48  ;;  %v3531_v8 = vadd.f32 %v3390_v36, %v2301_v51  ;;  %v1657_v40 = vadd.f32 %v7602_v20, %v7601_v45  ;;  %v2316_v18 = vadd.f32 %v7604_v28, %v7603_v3  ;;  %v7608_v52 = vld [vmem:[#allocation135_spill] sm:$0xff] }
 0x2f4   : > { %3955 = vst.msk [vmem:[%s6943_s7 + $0x70] sm:$0xff] %vm3940_vm2, %v3922_v22  ;;  %3956 = vst.msk [vmem:[%s6943_s7 + $0x78] sm:$0xff] %vm3940_vm2, %v3923_v9  ;;  %v5249_v46 = vpop.f32.mrf.mxu1  ;;  %v5329_v23 = vpop.f32.mrf.mxu0  ;;  %v1677_v22 = vadd.f32 %v7606_v39, %v7605_v58  ;;  %v7607_v9 = vld [vmem:[#allocation46_spill] sm:$0xff] }
 0x2f5   : > { %v3644_v38 = vrot.slane %v3145_v14, 1  ;;  %v3837_v10 = vrot.slane %v3531_v8, 2  ;;  %v3149_v19 = vadd.f32 %v5249_v46, %v1662_v2  ;;  %v3535_v57 = vadd.f32 %v5329_v23, %v2321_v15  ;;  %v7609_v14 = vld [vmem:[#allocation134_spill] sm:$0xff]  ;;  %v7610_v8 = vld [vmem:[#allocation181_spill] sm:$0xff] }
 0x2f6   : > { %v3016_v59 = vpop.f32.mrf.mxu1  ;;  %v3402_v41 = vpop.f32.mrf.mxu0  ;;  %v1669_v36 = vadd.f32 %v7608_v52, %v7607_v9  ;;  %v7612_v46 = vld [vmem:[#allocation2_spill] sm:$0xff]  ;;  %v7628_v52 = vld [vmem:[#allocation47_spill] sm:$0xff] }
 0x2f7   : > { %v3645_v33 = vsel %vm3602_vm0, %v3643_v4, %v3644_v38  ;;  %v3647_v35 = vsel %vm3602_vm0, %v3644_v38, %v3646_v50  ;;  %v3838_v31 = vsel %vm3795_vm1, %v3836_v34, %v3837_v10  ;;  %v3840_v53 = vsel %vm3795_vm1, %v3837_v10, %v3839_v60  ;;  %v7611_v60 = vld [vmem:[#allocation136_spill] sm:$0xff]  ;;  %v7613_v2 = vld [vmem:[#allocation178_spill] sm:$0xff] }
 0x2f8   : > { %v3731_v7 = vadd.f32 %v3645_v33, %v7599_v54  ;;  %v3732_v25 = vadd.f32 %v3647_v35, %v7600_v11  ;;  %v5250_v63 = vpop.f32.mrf.mxu1  ;;  %v5330_v56 = vpop.f32.mrf.mxu0  ;;  %v3147_v32 = vadd.f32 %v3016_v59, %v1654_v17  ;;  %v3533_v49 = vadd.f32 %v3402_v41, %v2313_v62  ;;  %v7616_v62 = vld [vmem:[#allocation137_spill] sm:$0xff]  ;;  %v7617_v41 = vld [vmem:[#allocation138_spill] sm:$0xff]  ;;  %v7618_v33 = vld [vmem:[#allocation3_spill] sm:$0xff] }
 0x2f9   : > { %v3651_v0 = vrot.slane %v3149_v19, 1  ;;  %v3844_v42 = vrot.slane %v3535_v57, 2  ;;  %v2336_v50 = vadd.f32 %v7610_v8, %v7609_v14  ;;  %v2328_v23 = vadd.f32 %v7612_v46, %v7611_v60  ;;  %v7629_v46 = vld [vmem:[#allocation53_spill] sm:$0xff] }
 0x2fa   : > { %v3924_v26 = vadd.f32 %v3838_v31, %v3731_v7  ;;  %v3925_v24 = vadd.f32 %v3840_v53, %v3732_v25  ;;  %v3019_v6 = vpop.f32.mrf.mxu1  ;;  %v3405_v27 = vpop.f32.mrf.mxu0  ;;  %v3648_v48 = vrot.slane %v3147_v32, 1  ;;  %v3841_v37 = vrot.slane %v3533_v49, 2  ;;  %v7619_v32 = vld [vmem:[#allocation49_spill] sm:$0xff]  ;;  %v7620_v49 = vld [vmem:[#allocation139_spill] sm:$0xff] }
 0x2fb   : > { %v3148_v61 = vadd.f32 %v3019_v6, %v1657_v40  ;;  %v3534_v16 = vadd.f32 %v3405_v27, %v2316_v18  ;;  %v1672_v59 = vadd.f32 %v7616_v62, %v7615_v47  ;;  %v2331_v35 = vadd.f32 %v7618_v33, %v7617_v41  ;;  %v7622_v6 = vld [vmem:[#allocation141_spill] sm:$0xff] }
 0x2fc   : > { %3957 = vst.msk [vmem:[%s6943_s7 + $0x80] sm:$0xff] %vm3940_vm2, %v3924_v26  ;;  %3958 = vst.msk [vmem:[%s6943_s7 + $0x88] sm:$0xff] %vm3940_vm2, %v3925_v24  ;;  %v5253_v1 = vpop.f32.mrf.mxu1  ;;  %v5333_v43 = vpop.f32.mrf.mxu0  ;;  %v1692_v26 = vadd.f32 %v7620_v49, %v7619_v32  ;;  %v7621_v24 = vld [vmem:[#allocation51_spill] sm:$0xff] }
 0x2fd   : > { %v3649_v29 = vrot.slane %v3148_v61, 1  ;;  %v3842_v51 = vrot.slane %v3534_v16, 2  ;;  %v3152_v5 = vadd.f32 %v5253_v1, %v1677_v22  ;;  %v3538_v30 = vadd.f32 %v5333_v43, %v2336_v50  ;;  %v7623_v61 = vld [vmem:[#allocation140_spill] sm:$0xff]  ;;  %v7624_v16 = vld [vmem:[#allocation182_spill] sm:$0xff]  ;;  %v7627_v22 = vld [vmem:[#allocation45_spill] sm:$0xff] }
 0x2fe   : > { %v3031_v4 = vpop.f32.mrf.mxu1  ;;  %v3417_v34 = vpop.f32.mrf.mxu0  ;;  %v1684_v27 = vadd.f32 %v7622_v6, %v7621_v24  ;;  %v7626_v1 = vld [vmem:[#allocation4_spill] sm:$0xff] }
 0x2ff   : > { %v3650_v38 = vsel %vm3602_vm0, %v3648_v48, %v3649_v29  ;;  %v3652_v10 = vsel %vm3602_vm0, %v3649_v29, %v3651_v0  ;;  %v3843_v13 = vsel %vm3795_vm1, %v3841_v37, %v3842_v51  ;;  %v3845_v12 = vsel %vm3795_vm1, %v3842_v51, %v3844_v42  ;;  %v7625_v42 = vld [vmem:[#allocation142_spill] sm:$0xff]  ;;  %v7642_v6 = vld [vmem:[#allocation52_spill] sm:$0xff] }
 0x300   : > { %v3733_v44 = vadd.f32 %v3650_v38, %v7613_v2  ;;  %v3734_v17 = vadd.f32 %v3652_v10, %v7614_v21  ;;  %v5254_v15 = vpop.f32.mrf.mxu1  ;;  %v5334_v55 = vpop.f32.mrf.mxu0  ;;  %v3150_v31 = vadd.f32 %v3031_v4, %v1669_v36  ;;  %v3536_v53 = vadd.f32 %v3417_v34, %v2328_v23  ;;  %v7630_v23 = vld [vmem:[#allocation143_spill] sm:$0xff]  ;;  %v7631_v34 = vld [vmem:[#allocation144_spill] sm:$0xff]  ;;  %v7632_v38 = vld [vmem:[#allocation5_spill] sm:$0xff] }
 0x301   : > { %v3656_v63 = vrot.slane %v3152_v5, 1  ;;  %v3849_v56 = vrot.slane %v3538_v30, 2  ;;  %v2351_v0 = vadd.f32 %v7624_v16, %v7623_v61  ;;  %v2343_v43 = vadd.f32 %v7626_v1, %v7625_v42  ;;  %v7643_v1 = vld [vmem:[#allocation58_spill] sm:$0xff] }
 0x302   : > { %v3926_v54 = vadd.f32 %v3843_v13, %v3733_v44  ;;  %v3927_v7 = vadd.f32 %v3845_v12, %v3734_v17  ;;  %v3034_v11 = vpop.f32.mrf.mxu1  ;;  %v3420_v25 = vpop.f32.mrf.mxu0  ;;  %v3653_v40 = vrot.slane %v3150_v31, 1  ;;  %v3846_v3 = vrot.slane %v3536_v53, 2  ;;  %v7633_v31 = vld [vmem:[#allocation54_spill] sm:$0xff]  ;;  %v7634_v53 = vld [vmem:[#allocation145_spill] sm:$0xff] }
 0x303   : > { %v3151_v19 = vadd.f32 %v3034_v11, %v1672_v59  ;;  %v3537_v57 = vadd.f32 %v3420_v25, %v2331_v35  ;;  %v1687_v4 = vadd.f32 %v7630_v23, %v7629_v46  ;;  %v2346_v10 = vadd.f32 %v7632_v38, %v7631_v34  ;;  %v7636_v11 = vld [vmem:[#allocation147_spill] sm:$0xff] }
 0x304   : > { %3959 = vst.msk [vmem:[%s6943_s7 + $0x90] sm:$0xff] %vm3940_vm2, %v3926_v54  ;;  %3960 = vst.msk [vmem:[%s6943_s7 + $0x98] sm:$0xff] %vm3940_vm2, %v3927_v7  ;;  %v5257_v45 = vpop.f32.mrf.mxu1  ;;  %v5337_v20 = vpop.f32.mrf.mxu0  ;;  %v1707_v54 = vadd.f32 %v7634_v53, %v7633_v31  ;;  %v7635_v7 = vld [vmem:[#allocation56_spill] sm:$0xff] }
 0x305   : > { %v3654_v28 = vrot.slane %v3151_v19, 1  ;;  %v3847_v18 = vrot.slane %v3537_v57, 2  ;;  %v3155_v14 = vadd.f32 %v5257_v45, %v1692_v26  ;;  %v3541_v8 = vadd.f32 %v5337_v20, %v2351_v0  ;;  %v7637_v19 = vld [vmem:[#allocation146_spill] sm:$0xff]  ;;  %v7638_v57 = vld [vmem:[#allocation183_spill] sm:$0xff] }
 0x306   : > { %v3046_v48 = vpop.f32.mrf.mxu1  ;;  %v3432_v37 = vpop.f32.mrf.mxu0  ;;  %v1699_v25 = vadd.f32 %v7636_v11, %v7635_v7  ;;  %v7640_v45 = vld [vmem:[#allocation6_spill] sm:$0xff]  ;;  %v7656_v11 = vld [vmem:[#allocation57_spill] sm:$0xff] }
 0x307   : > { %v3655_v29 = vsel %vm3602_vm0, %v3653_v40, %v3654_v28  ;;  %v3657_v51 = vsel %vm3602_vm0, %v3654_v28, %v3656_v63  ;;  %v3848_v58 = vsel %vm3795_vm1, %v3846_v3, %v3847_v18  ;;  %v3850_v39 = vsel %vm3795_vm1, %v3847_v18, %v3849_v56  ;;  %v7639_v56 = vld [vmem:[#allocation148_spill] sm:$0xff]  ;;  %v7641_v26 = vld [vmem:[#allocation50_spill] sm:$0xff] }
 0x308   : > { %v3735_v9 = vadd.f32 %v3655_v29, %v7627_v22  ;;  %v3736_v36 = vadd.f32 %v3657_v51, %v7628_v52  ;;  %v5258_v50 = vpop.f32.mrf.mxu1  ;;  %v5338_v60 = vpop.f32.mrf.mxu0  ;;  %v3153_v13 = vadd.f32 %v3046_v48, %v1684_v27  ;;  %v3539_v12 = vadd.f32 %v3432_v37, %v2343_v43  ;;  %v7644_v43 = vld [vmem:[#allocation149_spill] sm:$0xff]  ;;  %v7645_v37 = vld [vmem:[#allocation150_spill] sm:$0xff]  ;;  %v7646_v29 = vld [vmem:[#allocation7_spill] sm:$0xff] }
 0x309   : > { %v3661_v15 = vrot.slane %v3155_v14, 1  ;;  %v3854_v55 = vrot.slane %v3541_v8, 2  ;;  %v2366_v63 = vadd.f32 %v7638_v57, %v7637_v19  ;;  %v2358_v20 = vadd.f32 %v7640_v45, %v7639_v56  ;;  %v7657_v45 = vld [vmem:[#allocation63_spill] sm:$0xff] }
 0x30a   : > { %v3928_v2 = vadd.f32 %v3848_v58, %v3735_v9  ;;  %v3929_v44 = vadd.f32 %v3850_v39, %v3736_v36  ;;  %v3049_v21 = vpop.f32.mrf.mxu1  ;;  %v3435_v17 = vpop.f32.mrf.mxu0  ;;  %v3658_v59 = vrot.slane %v3153_v13, 1  ;;  %v3851_v41 = vrot.slane %v3539_v12, 2  ;;  %v7647_v13 = vld [vmem:[#allocation59_spill] sm:$0xff] }
 0x30b   : > { %v3154_v5 = vadd.f32 %v3049_v21, %v1687_v4  ;;  %v3540_v30 = vadd.f32 %v3435_v17, %v2346_v10  ;;  %v1702_v48 = vadd.f32 %v7644_v43, %v7643_v1  ;;  %v2361_v51 = vadd.f32 %v7646_v29, %v7645_v37  ;;  %v7648_v12 = vld [vmem:[#allocation151_spill] sm:$0xff]  ;;  %v7650_v21 = vld [vmem:[#allocation153_spill] sm:$0xff] }
 0x30c   : > { %3961 = vst.msk [vmem:[%s6943_s7 + $0xa0] sm:$0xff] %vm3940_vm2, %v3928_v2  ;;  %3962 = vst.msk [vmem:[%s6943_s7 + $0xa8] sm:$0xff] %vm3940_vm2, %v3929_v44  ;;  %v5261_v47 = vpop.f32.mrf.mxu1  ;;  %v5341_v62 = vpop.f32.mrf.mxu0  ;;  %v1722_v2 = vadd.f32 %v7648_v12, %v7647_v13  ;;  %v7649_v44 = vld [vmem:[#allocation61_spill] sm:$0xff] }
 0x30d   : > { %v3659_v33 = vrot.slane %v3154_v5, 1  ;;  %v3852_v35 = vrot.slane %v3540_v30, 2  ;;  %v3158_v61 = vadd.f32 %v5261_v47, %v1707_v54  ;;  %v3544_v16 = vadd.f32 %v5341_v62, %v2366_v63  ;;  %v7651_v5 = vld [vmem:[#allocation152_spill] sm:$0xff]  ;;  %v7655_v54 = vld [vmem:[#allocation55_spill] sm:$0xff] }
 0x30e   : > { %v3061_v40 = vpop.f32.mrf.mxu1  ;;  %v3447_v3 = vpop.f32.mrf.mxu0  ;;  %v1714_v17 = vadd.f32 %v7650_v21, %v7649_v44  ;;  %v7652_v30 = vld [vmem:[#allocation184_spill] sm:$0xff]  ;;  %v7670_v21 = vld [vmem:[#allocation62_spill] sm:$0xff] }
 0x30f   : > { %v3660_v28 = vsel %vm3602_vm0, %v3658_v59, %v3659_v33  ;;  %v3662_v18 = vsel %vm3602_vm0, %v3659_v33, %v3661_v15  ;;  %v3853_v32 = vsel %vm3795_vm1, %v3851_v41, %v3852_v35  ;;  %v3855_v49 = vsel %vm3795_vm1, %v3852_v35, %v3854_v55  ;;  %v7653_v55 = vld [vmem:[#allocation154_spill] sm:$0xff]  ;;  %v7654_v47 = vld [vmem:[#allocation8_spill] sm:$0xff] }
 0x310   : > { %v3737_v24 = vadd.f32 %v3660_v28, %v7641_v26  ;;  %v3738_v27 = vadd.f32 %v3662_v18, %v7642_v6  ;;  %v5262_v0 = vpop.f32.mrf.mxu1  ;;  %v5342_v42 = vpop.f32.mrf.mxu0  ;;  %v3156_v58 = vadd.f32 %v3061_v40, %v1699_v25  ;;  %v3542_v39 = vadd.f32 %v3447_v3, %v2358_v20  ;;  %v7658_v20 = vld [vmem:[#allocation155_spill] sm:$0xff]  ;;  %v7659_v3 = vld [vmem:[#allocation156_spill] sm:$0xff]  ;;  %v7660_v28 = vld [vmem:[#allocation9_spill] sm:$0xff] }
 0x311   : > { %v3666_v50 = vrot.slane %v3158_v61, 1  ;;  %v3859_v60 = vrot.slane %v3544_v16, 2  ;;  %v2381_v15 = vadd.f32 %v7652_v30, %v7651_v5  ;;  %v2373_v62 = vadd.f32 %v7654_v47, %v7653_v55  ;;  %v7671_v47 = vld [vmem:[#allocation68_spill] sm:$0xff] }
 0x312   : > { %v3930_v22 = vadd.f32 %v3853_v32, %v3737_v24  ;;  %v3931_v9 = vadd.f32 %v3855_v49, %v3738_v27  ;;  %v3064_v52 = vpop.f32.mrf.mxu1  ;;  %v3450_v36 = vpop.f32.mrf.mxu0  ;;  %v3663_v4 = vrot.slane %v3156_v58, 1  ;;  %v3856_v34 = vrot.slane %v3542_v39, 2  ;;  %v7661_v58 = vld [vmem:[#allocation64_spill] sm:$0xff]  ;;  %v7662_v39 = vld [vmem:[#allocation157_spill] sm:$0xff] }
 0x313   : > { %v3157_v14 = vadd.f32 %v3064_v52, %v1702_v48  ;;  %v3543_v8 = vadd.f32 %v3450_v36, %v2361_v51  ;;  %v1717_v40 = vadd.f32 %v7658_v20, %v7657_v45  ;;  %v2376_v18 = vadd.f32 %v7660_v28, %v7659_v3  ;;  %v7664_v52 = vld [vmem:[#allocation159_spill] sm:$0xff] }
 0x314   : > { %3963 = vst.msk [vmem:[%s6943_s7 + $0xb0] sm:$0xff] %vm3940_vm2, %v3930_v22  ;;  %3964 = vst.msk [vmem:[%s6943_s7 + $0xb8] sm:$0xff] %vm3940_vm2, %v3931_v9  ;;  %v5265_v46 = vpop.f32.mrf.mxu1  ;;  %v5345_v23 = vpop.f32.mrf.mxu0  ;;  %v1737_v22 = vadd.f32 %v7662_v39, %v7661_v58  ;;  %v7663_v9 = vld [vmem:[#allocation66_spill] sm:$0xff] }
 0x315   : > { %v3664_v38 = vrot.slane %v3157_v14, 1  ;;  %v3857_v10 = vrot.slane %v3543_v8, 2  ;;  %v3161_v19 = vadd.f32 %v5265_v46, %v1722_v2  ;;  %v3547_v57 = vadd.f32 %v5345_v23, %v2381_v15  ;;  %v7665_v14 = vld [vmem:[#allocation158_spill] sm:$0xff]  ;;  %v7666_v8 = vld [vmem:[#allocation185_spill] sm:$0xff]  ;;  %v7669_v2 = vld [vmem:[#allocation60_spill] sm:$0xff] }
 0x316   : > { %v3076_v59 = vpop.f32.mrf.mxu1  ;;  %v3462_v41 = vpop.f32.mrf.mxu0  ;;  %v1729_v36 = vadd.f32 %v7664_v52, %v7663_v9  ;;  %v7668_v46 = vld [vmem:[#allocation10_spill] sm:$0xff]  ;;  %v7684_v52 = vld [vmem:[#allocation67_spill] sm:$0xff] }
 0x317   : > { %v3665_v33 = vsel %vm3602_vm0, %v3663_v4, %v3664_v38  ;;  %v3667_v35 = vsel %vm3602_vm0, %v3664_v38, %v3666_v50  ;;  %v3858_v31 = vsel %vm3795_vm1, %v3856_v34, %v3857_v10  ;;  %v3860_v53 = vsel %vm3795_vm1, %v3857_v10, %v3859_v60  ;;  %v7667_v60 = vld [vmem:[#allocation160_spill] sm:$0xff] }
 0x318   : > { %v3739_v7 = vadd.f32 %v3665_v33, %v7655_v54  ;;  %v3740_v25 = vadd.f32 %v3667_v35, %v7656_v11  ;;  %v5266_v63 = vpop.f32.mrf.mxu1  ;;  %v5346_v56 = vpop.f32.mrf.mxu0  ;;  %v3159_v32 = vadd.f32 %v3076_v59, %v1714_v17  ;;  %v3545_v49 = vadd.f32 %v3462_v41, %v2373_v62  ;;  %v7672_v62 = vld [vmem:[#allocation161_spill] sm:$0xff]  ;;  %v7673_v41 = vld [vmem:[#allocation162_spill] sm:$0xff]  ;;  %v7674_v33 = vld [vmem:[#allocation11_spill] sm:$0xff] }
 0x319   : > { %v3671_v0 = vrot.slane %v3161_v19, 1  ;;  %v3864_v42 = vrot.slane %v3547_v57, 2  ;;  %v2396_v50 = vadd.f32 %v7666_v8, %v7665_v14  ;;  %v2388_v23 = vadd.f32 %v7668_v46, %v7667_v60  ;;  %v7685_v46 = vld [vmem:[#allocation73_spill] sm:$0xff] }
 0x31a   : > { %v3932_v26 = vadd.f32 %v3858_v31, %v3739_v7  ;;  %v3933_v24 = vadd.f32 %v3860_v53, %v3740_v25  ;;  %v3079_v6 = vpop.f32.mrf.mxu1  ;;  %v3465_v27 = vpop.f32.mrf.mxu0  ;;  %v3668_v48 = vrot.slane %v3159_v32, 1  ;;  %v3861_v37 = vrot.slane %v3545_v49, 2  ;;  %v7675_v32 = vld [vmem:[#allocation69_spill] sm:$0xff]  ;;  %v7676_v49 = vld [vmem:[#allocation163_spill] sm:$0xff] }
 0x31b   : > { %v3160_v61 = vadd.f32 %v3079_v6, %v1717_v40  ;;  %v3546_v16 = vadd.f32 %v3465_v27, %v2376_v18  ;;  %v1732_v59 = vadd.f32 %v7672_v62, %v7671_v47  ;;  %v2391_v35 = vadd.f32 %v7674_v33, %v7673_v41  ;;  %v7678_v6 = vld [vmem:[#allocation165_spill] sm:$0xff] }
 0x31c   : > { %3965 = vst.msk [vmem:[%s6943_s7 + $0xc0] sm:$0xff] %vm3940_vm2, %v3932_v26  ;;  %3966 = vst.msk [vmem:[%s6943_s7 + $0xc8] sm:$0xff] %vm3940_vm2, %v3933_v24  ;;  %v5269_v1 = vpop.f32.mrf.mxu1  ;;  %v5349_v43 = vpop.f32.mrf.mxu0  ;;  %v1752_v26 = vadd.f32 %v7676_v49, %v7675_v32  ;;  %v7677_v24 = vld [vmem:[#allocation71_spill] sm:$0xff] }
 0x31d   : > { %v3669_v29 = vrot.slane %v3160_v61, 1  ;;  %v3862_v51 = vrot.slane %v3546_v16, 2  ;;  %v3164_v5 = vadd.f32 %v5269_v1, %v1737_v22  ;;  %v3550_v30 = vadd.f32 %v5349_v43, %v2396_v50  ;;  %v7679_v61 = vld [vmem:[#allocation164_spill] sm:$0xff]  ;;  %v7680_v16 = vld [vmem:[#allocation186_spill] sm:$0xff]  ;;  %v7683_v22 = vld [vmem:[#allocation65_spill] sm:$0xff] }
 0x31e   : > { %v3091_v4 = vpop.f32.mrf.mxu1  ;;  %v3477_v34 = vpop.f32.mrf.mxu0  ;;  %v1744_v27 = vadd.f32 %v7678_v6, %v7677_v24  ;;  %v7682_v1 = vld [vmem:[#allocation12_spill] sm:$0xff] }
 0x31f   : > { %v3670_v38 = vsel %vm3602_vm0, %v3668_v48, %v3669_v29  ;;  %v3672_v10 = vsel %vm3602_vm0, %v3669_v29, %v3671_v0  ;;  %v3863_v13 = vsel %vm3795_vm1, %v3861_v37, %v3862_v51  ;;  %v3865_v12 = vsel %vm3795_vm1, %v3862_v51, %v3864_v42  ;;  %v7681_v42 = vld [vmem:[#allocation166_spill] sm:$0xff] }
 0x320   : > { %v3741_v44 = vadd.f32 %v3670_v38, %v7669_v2  ;;  %v3742_v17 = vadd.f32 %v3672_v10, %v7670_v21  ;;  %v5270_v15 = vpop.f32.mrf.mxu1  ;;  %v5350_v55 = vpop.f32.mrf.mxu0  ;;  %v3162_v31 = vadd.f32 %v3091_v4, %v1729_v36  ;;  %v3548_v53 = vadd.f32 %v3477_v34, %v2388_v23  ;;  %v7686_v23 = vld [vmem:[#allocation167_spill] sm:$0xff]  ;;  %v7687_v34 = vld [vmem:[#allocation168_spill] sm:$0xff]  ;;  %v7688_v38 = vld [vmem:[#allocation13_spill] sm:$0xff] }
 0x321   : > { %v3676_v63 = vrot.slane %v3164_v5, 1  ;;  %v3869_v56 = vrot.slane %v3550_v30, 2  ;;  %v2411_v0 = vadd.f32 %v7680_v16, %v7679_v61  ;;  %v2403_v43 = vadd.f32 %v7682_v1, %v7681_v42 }
 0x322   : > { %v3934_v54 = vadd.f32 %v3863_v13, %v3741_v44  ;;  %v3935_v7 = vadd.f32 %v3865_v12, %v3742_v17  ;;  %v3094_v11 = vpop.f32.mrf.mxu1  ;;  %v3480_v25 = vpop.f32.mrf.mxu0  ;;  %v3673_v40 = vrot.slane %v3162_v31, 1  ;;  %v3866_v3 = vrot.slane %v3548_v53, 2 }
 0x323   : > { %v3163_v19 = vadd.f32 %v3094_v11, %v1732_v59  ;;  %v3549_v57 = vadd.f32 %v3480_v25, %v2391_v35  ;;  %v1747_v4 = vadd.f32 %v7686_v23, %v7685_v46  ;;  %v2406_v10 = vadd.f32 %v7688_v38, %v7687_v34  ;;  %v7690_v11 = vld [vmem:[#allocation72_spill] sm:$0xff] }
 0x324   : > { %3967 = vst.msk [vmem:[%s6943_s7 + $0xd0] sm:$0xff] %vm3940_vm2, %v3934_v54  ;;  %3968 = vst.msk [vmem:[%s6943_s7 + $0xd8] sm:$0xff] %vm3940_vm2, %v3935_v7  ;;  %v5273_v45 = vpop.f32.mrf.mxu1  ;;  %v5353_v20 = vpop.f32.mrf.mxu0  ;;  %v7689_v54 = vld [vmem:[#allocation70_spill] sm:$0xff] }
 0x325   : > { %v3674_v28 = vrot.slane %v3163_v19, 1  ;;  %v3867_v18 = vrot.slane %v3549_v57, 2  ;;  %v3167_v14 = vadd.f32 %v5273_v45, %v1752_v26  ;;  %v3553_v8 = vadd.f32 %v5353_v20, %v2411_v0 }
 0x326   : > { %v3106_v48 = vpop.f32.mrf.mxu1  ;;  %v3492_v37 = vpop.f32.mrf.mxu0 }
 0x327   : > { %v3675_v29 = vsel %vm3602_vm0, %v3673_v40, %v3674_v28  ;;  %v3677_v51 = vsel %vm3602_vm0, %v3674_v28, %v3676_v63  ;;  %v3868_v58 = vsel %vm3795_vm1, %v3866_v3, %v3867_v18  ;;  %v3870_v39 = vsel %vm3795_vm1, %v3867_v18, %v3869_v56 }
 0x328   : > { %v3743_v9 = vadd.f32 %v3675_v29, %v7683_v22  ;;  %v3744_v36 = vadd.f32 %v3677_v51, %v7684_v52  ;;  %v5274_v50 = vpop.f32.mrf.mxu1  ;;  %v5354_v60 = vpop.f32.mrf.mxu0  ;;  %v3165_v13 = vadd.f32 %v3106_v48, %v1744_v27  ;;  %v3551_v12 = vadd.f32 %v3492_v37, %v2403_v43 }
 0x329   : > { %v3681_v15 = vrot.slane %v3167_v14, 1  ;;  %v3874_v55 = vrot.slane %v3553_v8, 2 }
 0x32a   : > { %v3936_v2 = vadd.f32 %v3868_v58, %v3743_v9  ;;  %v3937_v44 = vadd.f32 %v3870_v39, %v3744_v36  ;;  %v3109_v21 = vpop.f32.mrf.mxu1  ;;  %v3495_v17 = vpop.f32.mrf.mxu0  ;;  %v3678_v47 = vrot.slane %v3165_v13, 1  ;;  %v3871_v62 = vrot.slane %v3551_v12, 2 }
 0x32b   : > { %v3166_v5 = vadd.f32 %v3109_v21, %v1747_v4  ;;  %v3552_v30 = vadd.f32 %v3495_v17, %v2406_v10 }
 0x32c   : > { %3969 = vst.msk [vmem:[%s6943_s7 + $0xe0] sm:$0xff] %vm3940_vm2, %v3936_v2  ;;  %3970 = vst.msk [vmem:[%s6943_s7 + $0xe8] sm:$0xff] %vm3940_vm2, %v3937_v44 }
 0x32d   : > { %v3679_v59 = vrot.slane %v3166_v5, 1  ;;  %v3872_v41 = vrot.slane %v3552_v30, 2 }
 0x32f   : > { %v3680_v33 = vsel %vm3602_vm0, %v3678_v47, %v3679_v59  ;;  %v3682_v35 = vsel %vm3602_vm0, %v3679_v59, %v3681_v15  ;;  %v3873_v31 = vsel %vm3795_vm1, %v3871_v62, %v3872_v41  ;;  %v3875_v53 = vsel %vm3795_vm1, %v3872_v41, %v3874_v55 }
 0x330   : > { %v3745_v7 = vadd.f32 %v3680_v33, %v7689_v54  ;;  %v3746_v25 = vadd.f32 %v3682_v35, %v7690_v11 }
 0x332   : > { %v3938_v19 = vadd.f32 %v3873_v31, %v3745_v7  ;;  %v3939_v57 = vadd.f32 %v3875_v53, %v3746_v25 }
 0x334   : > { %3971 = vst.msk [vmem:[%s6943_s7 + $0xf0] sm:$0xff] %vm3940_vm2, %v3938_v19  ;;  %3972 = vst.msk [vmem:[%s6943_s7 + $0xf8] sm:$0xff] %vm3940_vm2, %v3939_v57 }
 0x335 PF: > { %s12_s9 = sadd.s32 1, %s5526_s9  }
 0x336   : > { %p9_p4 = scmp.ge.s32.totalorder %s12_s9, 4  }
 0x338   :  { %11 = sbr.rel (!%p9_p4) target bundleno = 1 (0x1), region = 66 }

// kernel: heatmap_forward.27
= control target key start
LH: loop header
LB: loop body
LE: loop exit
PB: predicated region body
PF: predicated region fallthrough
CT: control target
= control target key end

     0   :  { %s811_s1 = inlined_call_operand.vmem [shape: bf16[128,128], index: 1, kind: input, shape index: {}]   ;;  %s812_s0 = inlined_call_operand.vmem [shape: f32[128,128], index: 0, kind: input, shape index: {}]   ;;  %s813_s2 = inlined_call_operand.vmem [shape: f32[1,128], index: 2, kind: input, shape index: {}]   ;;  %s814_s3 = inlined_call_operand.vmem [shape: f32[1,128], index: 3, kind: input, shape index: {}]   ;;  %s815_s4 = inlined_call_operand.vmem [shape: f32[1,128], index: 4, kind: input, shape index: {}]   ;;  %s816_s5 = inlined_call_operand.vmem [shape: bf16[128,128], index: 5, kind: output, shape index: {}]  }
   0x1   :  { %v632_v0 = vld [vmem:[%s811_s1 + $0x38] sm:$0xff]   ;;  %v633_v1 = vld [vmem:[%s811_s1 + $0x30] sm:$0xff]   ;;  %v634_v2 = vld [vmem:[%s811_s1 + $0x28] sm:$0xff]  }
   0x2   :  { %584 = vmatprep.subr.bf16.mxu0 %v632_v0  ;;  %616 = vmatprep.subr.bf16.mxu1 %v632_v0  ;;  %v635_v3 = vld [vmem:[%s811_s1 + $0x20] sm:$0xff]   ;;  %v42_v5 = vld [vmem:[%s812_s0 + $0x8] sm:$0xff]  ;;  %v636_v16 = vld [vmem:[%s811_s1 + $0x18] sm:$0xff]  }
   0x3   :  { %585 = vmatpush3.bf16.msra.mxu0 %v632_v0  ;;  %624 = vmatpush3.bf16.msra.mxu1 %v632_v0  ;;  %v41_v4 = vld [vmem:[%s812_s0] sm:$0xff]  ;;  %v50_v11 = vld [vmem:[%s812_s0 + $0x48] sm:$0xff]  ;;  %v43_v21 = vld [vmem:[%s812_s0 + $0x10] sm:$0xff] }
   0x4   :  { %586 = vmatprep.subr.bf16.mxu0 %v633_v1  ;;  %617 = vmatprep.subr.bf16.mxu1 %v633_v1  ;;  %v691_v6 = vld [vmem:[%s813_s2] ss:$0 sm:$0xff]  ;;  %v44_v24 = vld [vmem:[%s812_s0 + $0x18] sm:$0xff]  ;;  %v51_v25 = vld [vmem:[%s812_s0 + $0x50] sm:$0xff] }
   0x5   :  { %v64_v7 = vmul.f32 %v691_v6, %v41_v4  ;;  %v65_v8 = vmul.f32 %v691_v6, %v42_v5  ;;  %v698_v9 = vld [vmem:[%s814_s3] ss:$0 sm:$0xff]  ;;  %v73_v13 = vmul.f32 %v691_v6, %v50_v11  ;;  %v52_v26 = vld [vmem:[%s812_s0 + $0x58] sm:$0xff]  ;;  %v637_v27 = vld [vmem:[%s811_s1 + $0x10] sm:$0xff]   ;;  %v66_v34 = vmul.f32 %v691_v6, %v43_v21 }
   0x6   :  { %v49_v10 = vld [vmem:[%s812_s0 + $0x40] sm:$0xff]  ;;  %v46_v31 = vld [vmem:[%s812_s0 + $0x28] sm:$0xff]  ;;  %v67_v35 = vmul.f32 %v691_v6, %v44_v24  ;;  %v74_v36 = vmul.f32 %v691_v6, %v51_v25  ;;  %v75_v37 = vmul.f32 %v691_v6, %v52_v26  ;;  %v47_v48 = vld [vmem:[%s812_s0 + $0x30] sm:$0xff] }
   0x7   :  { %587 = vmatpush3.bf16.msra.mxu0 %v633_v1  ;;  %625 = vmatpush3.bf16.msra.mxu1 %v633_v1  ;;  %v72_v12 = vmul.f32 %v691_v6, %v49_v10  ;;  %v87_v14 = vadd.f32 %v698_v9, %v64_v7  ;;  %v88_v15 = vadd.f32 %v698_v9, %v65_v8  ;;  %v45_v29 = vld [vmem:[%s812_s0 + $0x20] sm:$0xff]  ;;  %v54_v33 = vld [vmem:[%s812_s0 + $0x68] sm:$0xff]  ;;  %v48_v52 = vld [vmem:[%s812_s0 + $0x38] sm:$0xff] }
   0x8   :  { %588 = vmatprep.subr.bf16.mxu0 %v634_v2  ;;  %618 = vmatprep.subr.bf16.mxu1 %v634_v2  ;;  %v96_v18 = vadd.f32 %v698_v9, %v73_v13  ;;  %v53_v32 = vld [vmem:[%s812_s0 + $0x60] sm:$0xff]  ;;  %v68_v38 = vmul.f32 %v691_v6, %v45_v29  ;;  %v69_v39 = vmul.f32 %v691_v6, %v46_v31  ;;  %v638_v42 = vld [vmem:[%s811_s1 + $0x8] sm:$0xff]   ;;  %v55_v53 = vld [vmem:[%s812_s0 + $0x70] sm:$0xff] }
   0x9   :  { %v95_v17 = vadd.f32 %v698_v9, %v72_v12  ;;  %v103_v19 = vmax.f32 %v87_v14, 0.0  ;;  %v104_v20 = vmax.f32 %v88_v15, 0.0  ;;  %v76_v40 = vmul.f32 %v691_v6, %v53_v32  ;;  %v56_v54 = vld [vmem:[%s812_s0 + $0x78] sm:$0xff]  ;;  %v639_v55 = vld [vmem:[%s811_s1] sm:$0xff]  }
   0xa   :  { %v112_v23 = vmax.f32 %v96_v18, 0.0  ;;  %v77_v41 = vmul.f32 %v691_v6, %v54_v33  ;;  %v89_v43 = vadd.f32 %v698_v9, %v66_v34  ;;  %v90_v44 = vadd.f32 %v698_v9, %v67_v35 }
   0xb   :  { %589 = vmatpush3.bf16.msra.mxu0 %v634_v2  ;;  %626 = vmatpush3.bf16.msra.mxu1 %v634_v2  ;;  %v111_v22 = vmax.f32 %v95_v17, 0.0  ;;  %v119_v28 = vpack.c.bf16 %v104_v20, %v103_v19  ;;  %v97_v45 = vadd.f32 %v698_v9, %v74_v36  ;;  %v98_v46 = vadd.f32 %v698_v9, %v75_v37 }
   0xc   :  { %590 = vmatprep.subr.bf16.mxu0 %v635_v3  ;;  %619 = vmatprep.subr.bf16.mxu1 %v635_v3  ;;  %v91_v47 = vadd.f32 %v698_v9, %v68_v38  ;;  %v92_v49 = vadd.f32 %v698_v9, %v69_v39  ;;  %v99_v50 = vadd.f32 %v698_v9, %v76_v40  ;;  %v105_v56 = vmax.f32 %v89_v43, 0.0 }
   0xd   :  { %v123_v30 = vpack.c.bf16 %v112_v23, %v111_v22  ;;  %600 = vmatprep.mubr.bf16.mxu0 %v119_v28  ;;  %v100_v51 = vadd.f32 %v698_v9, %v77_v41  ;;  %v106_v57 = vmax.f32 %v90_v44, 0.0  ;;  %v113_v58 = vmax.f32 %v97_v45, 0.0 }
   0xe   :  { %v114_v59 = vmax.f32 %v98_v46, 0.0  ;;  %v70_v60 = vmul.f32 %v691_v6, %v47_v48  ;;  %v71_v61 = vmul.f32 %v691_v6, %v48_v52  ;;  %v78_v62 = vmul.f32 %v691_v6, %v55_v53 }
   0xf   :  { %591 = vmatpush3.bf16.msra.mxu0 %v635_v3  ;;  %627 = vmatpush3.bf16.msra.mxu1 %v635_v3  ;;  %v79_v63 = vmul.f32 %v691_v6, %v56_v54  ;;  %v107_v0 = vmax.f32 %v91_v47, 0.0  ;;  %v108_v1 = vmax.f32 %v92_v49, 0.0  ;;  %v115_v2 = vmax.f32 %v99_v50, 0.0 }
  0x10   :  { %592 = vmatprep.subr.bf16.mxu0 %v636_v16  ;;  %620 = vmatprep.subr.bf16.mxu1 %v636_v16  ;;  %v116_v3 = vmax.f32 %v100_v51, 0.0  ;;  %v120_v4 = vpack.c.bf16 %v106_v57, %v105_v56  ;;  %v124_v5 = vpack.c.bf16 %v114_v59, %v113_v58  ;;  %v93_v7 = vadd.f32 %v698_v9, %v70_v60 }
  0x11   :  { %608 = vmatprep.mubr.bf16.mxu1 %v123_v30  ;;  %v94_v8 = vadd.f32 %v698_v9, %v71_v61  ;;  %v101_v10 = vadd.f32 %v698_v9, %v78_v62  ;;  %v102_v11 = vadd.f32 %v698_v9, %v79_v63  ;;  %v121_v6 = vpack.c.bf16 %v108_v1, %v107_v0  ;;  %v488_v9 = vld [vmem:[%s815_s4] ss:$0 sm:$0xff] }
  0x12   :  { %v125_v12 = vpack.c.bf16 %v116_v3, %v115_v2  ;;  %v109_v13 = vmax.f32 %v93_v7, 0.0 }
  0x13   :  { %593 = vmatpush3.bf16.msra.mxu0 %v636_v16  ;;  %628 = vmatpush3.bf16.msra.mxu1 %v636_v16  ;;  %v110_v14 = vmax.f32 %v94_v8, 0.0  ;;  %v117_v15 = vmax.f32 %v101_v10, 0.0  ;;  %v118_v16 = vmax.f32 %v102_v11, 0.0 }
  0x14   :  { %594 = vmatprep.subr.bf16.mxu0 %v637_v27  ;;  %621 = vmatprep.subr.bf16.mxu1 %v637_v27 }
  0x15   :  { %v122_v17 = vpack.c.bf16 %v110_v14, %v109_v13  ;;  %v126_v18 = vpack.c.bf16 %v118_v16, %v117_v15 }
  0x17   :  { %595 = vmatpush3.bf16.msra.mxu0 %v637_v27  ;;  %629 = vmatpush3.bf16.msra.mxu1 %v637_v27 }
  0x18   :  { %596 = vmatprep.subr.bf16.mxu0 %v638_v42  ;;  %622 = vmatprep.subr.bf16.mxu1 %v638_v42 }
  0x1b   :  { %597 = vmatpush3.bf16.msra.mxu0 %v638_v42  ;;  %630 = vmatpush3.bf16.msra.mxu1 %v638_v42 }
  0x1c   :  { %598 = vmatprep.subr.bf16.mxu0 %v639_v55  ;;  %623 = vmatprep.subr.bf16.mxu1 %v639_v55 }
  0x1f   :  { %599 = vmatpush3.bf16.msra.mxu0 %v639_v55  ;;  %631 = vmatpush3.bf16.msra.mxu1 %v639_v55 }
  0x22   :  { %601 = vmatmul.mubr.bf16.vlgmr.msra.gmra.mxu0 %v120_v4  ;;  %609 = vmatmul.mubr.bf16.vlgmr.msra.gmra.mxu1 %v124_v5 }
  0x23   :  { %604 = vmatprep.mubr.bf16.mxu0 %v121_v6  ;;  %612 = vmatprep.mubr.bf16.mxu1 %v125_v12 }
  0x2a   :  { %605 = vmatmul.mubr.bf16.gmra.mxu0 %v122_v17  ;;  %613 = vmatmul.mubr.bf16.gmra.mxu1 %v126_v18 }
  0xe2   :  { %v602_v19 = vpop.f32.mrf.mxu0  ;;  %v610_v20 = vpop.f32.mrf.mxu1 }
  0xe3   :  { %v364_v21 = vadd.f32 %v602_v19, %v488_v9  ;;  %v372_v22 = vadd.f32 %v610_v20, %v488_v9 }
  0xe4   :  { %v241_v23 = vpop.f32.mrf.mxu0  ;;  %v273_v24 = vpop.f32.mrf.mxu1 }
  0xe5   :  { %v362_v25 = vadd.f32 %v488_v9, %v241_v23  ;;  %v370_v26 = vadd.f32 %v488_v9, %v273_v24  ;;  %v380_v31 = vmax.f32 %v364_v21, 0.0  ;;  %v388_v32 = vmax.f32 %v372_v22, 0.0 }
  0xe6   :  { %v603_v27 = vpop.f32.mrf.mxu0  ;;  %v611_v28 = vpop.f32.mrf.mxu1 }
  0xe7   :  { %v365_v29 = vadd.f32 %v603_v27, %v488_v9  ;;  %v373_v30 = vadd.f32 %v611_v28, %v488_v9  ;;  %v378_v39 = vmax.f32 %v362_v25, 0.0  ;;  %v386_v40 = vmax.f32 %v370_v26, 0.0 }
  0xe8   :  { %v244_v33 = vpop.f32.mrf.mxu0  ;;  %v276_v34 = vpop.f32.mrf.mxu1 }
  0xe9   :  { %v381_v35 = vmax.f32 %v365_v29, 0.0  ;;  %v389_v36 = vmax.f32 %v373_v30, 0.0  ;;  %v363_v37 = vadd.f32 %v488_v9, %v244_v33  ;;  %v371_v38 = vadd.f32 %v488_v9, %v276_v34 }
  0xea   :  { %v606_v41 = vpop.f32.mrf.mxu0  ;;  %v614_v42 = vpop.f32.mrf.mxu1 }
  0xeb   :  { %v529_v43 = vpack.c.bf16 %v381_v35, %v380_v31  ;;  %v549_v44 = vpack.c.bf16 %v389_v36, %v388_v32  ;;  %v379_v45 = vmax.f32 %v363_v37, 0.0  ;;  %v387_v46 = vmax.f32 %v371_v38, 0.0 }
  0xec   :  { %v368_v47 = vadd.f32 %v606_v41, %v488_v9  ;;  %v376_v48 = vadd.f32 %v614_v42, %v488_v9  ;;  %v257_v49 = vpop.f32.mrf.mxu0  ;;  %v289_v50 = vpop.f32.mrf.mxu1 }
  0xed   :  { %561 = vst [vmem:[%s816_s5 + $0x8] sm:$0xff] %v529_v43   ;;  %565 = vst [vmem:[%s816_s5 + $0x28] sm:$0xff] %v549_v44   ;;  %v524_v51 = vpack.c.bf16 %v379_v45, %v378_v39  ;;  %v544_v52 = vpack.c.bf16 %v387_v46, %v386_v40  ;;  %v366_v53 = vadd.f32 %v488_v9, %v257_v49 }
  0xee   :  { %v374_v54 = vadd.f32 %v488_v9, %v289_v50  ;;  %v607_v55 = vpop.f32.mrf.mxu0  ;;  %v615_v56 = vpop.f32.mrf.mxu1  ;;  %v384_v59 = vmax.f32 %v368_v47, 0.0  ;;  %v392_v60 = vmax.f32 %v376_v48, 0.0 }
  0xef   :  { %525 = vst [vmem:[%s816_s5] sm:$0xff] %v524_v51   ;;  %564 = vst [vmem:[%s816_s5 + $0x20] sm:$0xff] %v544_v52   ;;  %v369_v57 = vadd.f32 %v607_v55, %v488_v9  ;;  %v377_v58 = vadd.f32 %v615_v56, %v488_v9  ;;  %v382_v3 = vmax.f32 %v366_v53, 0.0 }
  0xf0   :  { %v260_v61 = vpop.f32.mrf.mxu0  ;;  %v292_v62 = vpop.f32.mrf.mxu1  ;;  %v390_v4 = vmax.f32 %v374_v54, 0.0 }
  0xf1   :  { %v385_v63 = vmax.f32 %v369_v57, 0.0  ;;  %v393_v0 = vmax.f32 %v377_v58, 0.0  ;;  %v367_v1 = vadd.f32 %v488_v9, %v260_v61  ;;  %v375_v2 = vadd.f32 %v488_v9, %v292_v62 }
  0xf3   :  { %v539_v5 = vpack.c.bf16 %v385_v63, %v384_v59  ;;  %v559_v7 = vpack.c.bf16 %v393_v0, %v392_v60  ;;  %v383_v8 = vmax.f32 %v367_v1, 0.0  ;;  %v391_v10 = vmax.f32 %v375_v2, 0.0 }
  0xf5   :  { %563 = vst [vmem:[%s816_s5 + $0x18] sm:$0xff] %v539_v5   ;;  %567 = vst [vmem:[%s816_s5 + $0x38] sm:$0xff] %v559_v7   ;;  %v534_v11 = vpack.c.bf16 %v383_v8, %v382_v3  ;;  %v554_v6 = vpack.c.bf16 %v391_v10, %v390_v4 }
  0xf7   :  { %562 = vst [vmem:[%s816_s5 + $0x10] sm:$0xff] %v534_v11   ;;  %566 = vst [vmem:[%s816_s5 + $0x30] sm:$0xff] %v554_v6  }

// kernel: heatmap_forward.31
= control target key start
LH: loop header
LB: loop body
LE: loop exit
PB: predicated region body
PF: predicated region fallthrough
CT: control target
= control target key end

     0   :  { %s641_s1 = inlined_call_operand.vmem [shape: bf16[128,128], index: 1, kind: input, shape index: {}]   ;;  %s642_s0 = inlined_call_operand.vmem [shape: f32[128,128], index: 0, kind: input, shape index: {}]   ;;  %s643_s2 = inlined_call_operand.vmem [shape: f32[1,128], index: 2, kind: input, shape index: {}]   ;;  %s644_s3 = inlined_call_operand.vmem [shape: f32[1,128], index: 3, kind: input, shape index: {}]   ;;  %s645_s4 = inlined_call_operand.vmem [shape: f32[128,128], index: 4, kind: output, shape index: {}]  }
   0x1   :  { %v446_v0 = vld [vmem:[%s641_s1 + $0x38] sm:$0xff]   ;;  %v447_v1 = vld [vmem:[%s641_s1 + $0x30] sm:$0xff]   ;;  %v448_v2 = vld [vmem:[%s641_s1 + $0x28] sm:$0xff]  }
   0x2   :  { %398 = vmatprep.subr.bf16.mxu0 %v446_v0  ;;  %430 = vmatprep.subr.bf16.mxu1 %v446_v0  ;;  %v449_v3 = vld [vmem:[%s641_s1 + $0x20] sm:$0xff]   ;;  %v39_v5 = vld [vmem:[%s642_s0 + $0x8] sm:$0xff]  ;;  %v450_v16 = vld [vmem:[%s641_s1 + $0x18] sm:$0xff]  }
   0x3   :  { %399 = vmatpush3.bf16.msra.mxu0 %v446_v0  ;;  %438 = vmatpush3.bf16.msra.mxu1 %v446_v0  ;;  %v38_v4 = vld [vmem:[%s642_s0] sm:$0xff]  ;;  %v47_v11 = vld [vmem:[%s642_s0 + $0x48] sm:$0xff]  ;;  %v40_v21 = vld [vmem:[%s642_s0 + $0x10] sm:$0xff] }
   0x4   :  { %400 = vmatprep.subr.bf16.mxu0 %v447_v1  ;;  %431 = vmatprep.subr.bf16.mxu1 %v447_v1  ;;  %v500_v6 = vld [vmem:[%s643_s2] ss:$0 sm:$0xff]  ;;  %v41_v24 = vld [vmem:[%s642_s0 + $0x18] sm:$0xff]  ;;  %v48_v25 = vld [vmem:[%s642_s0 + $0x50] sm:$0xff] }
   0x5   :  { %v61_v7 = vmul.f32 %v500_v6, %v38_v4  ;;  %v62_v8 = vmul.f32 %v500_v6, %v39_v5  ;;  %v507_v9 = vld [vmem:[%s644_s3] ss:$0 sm:$0xff]  ;;  %v70_v13 = vmul.f32 %v500_v6, %v47_v11  ;;  %v49_v26 = vld [vmem:[%s642_s0 + $0x58] sm:$0xff]  ;;  %v451_v27 = vld [vmem:[%s641_s1 + $0x10] sm:$0xff]   ;;  %v63_v34 = vmul.f32 %v500_v6, %v40_v21 }
   0x6   :  { %v46_v10 = vld [vmem:[%s642_s0 + $0x40] sm:$0xff]  ;;  %v43_v31 = vld [vmem:[%s642_s0 + $0x28] sm:$0xff]  ;;  %v64_v35 = vmul.f32 %v500_v6, %v41_v24  ;;  %v71_v36 = vmul.f32 %v500_v6, %v48_v25  ;;  %v72_v37 = vmul.f32 %v500_v6, %v49_v26  ;;  %v44_v48 = vld [vmem:[%s642_s0 + $0x30] sm:$0xff] }
   0x7   :  { %401 = vmatpush3.bf16.msra.mxu0 %v447_v1  ;;  %439 = vmatpush3.bf16.msra.mxu1 %v447_v1  ;;  %v69_v12 = vmul.f32 %v500_v6, %v46_v10  ;;  %v84_v14 = vadd.f32 %v507_v9, %v61_v7  ;;  %v85_v15 = vadd.f32 %v507_v9, %v62_v8  ;;  %v42_v29 = vld [vmem:[%s642_s0 + $0x20] sm:$0xff]  ;;  %v51_v33 = vld [vmem:[%s642_s0 + $0x68] sm:$0xff]  ;;  %v45_v52 = vld [vmem:[%s642_s0 + $0x38] sm:$0xff] }
   0x8   :  { %402 = vmatprep.subr.bf16.mxu0 %v448_v2  ;;  %432 = vmatprep.subr.bf16.mxu1 %v448_v2  ;;  %v93_v18 = vadd.f32 %v507_v9, %v70_v13  ;;  %v50_v32 = vld [vmem:[%s642_s0 + $0x60] sm:$0xff]  ;;  %v65_v38 = vmul.f32 %v500_v6, %v42_v29  ;;  %v66_v39 = vmul.f32 %v500_v6, %v43_v31  ;;  %v452_v42 = vld [vmem:[%s641_s1 + $0x8] sm:$0xff]   ;;  %v52_v53 = vld [vmem:[%s642_s0 + $0x70] sm:$0xff] }
   0x9   :  { %v92_v17 = vadd.f32 %v507_v9, %v69_v12  ;;  %v100_v19 = vmax.f32 %v84_v14, 0.0  ;;  %v101_v20 = vmax.f32 %v85_v15, 0.0  ;;  %v73_v40 = vmul.f32 %v500_v6, %v50_v32  ;;  %v53_v54 = vld [vmem:[%s642_s0 + $0x78] sm:$0xff]  ;;  %v453_v55 = vld [vmem:[%s641_s1] sm:$0xff]  }
   0xa   :  { %v109_v23 = vmax.f32 %v93_v18, 0.0  ;;  %v74_v41 = vmul.f32 %v500_v6, %v51_v33  ;;  %v86_v43 = vadd.f32 %v507_v9, %v63_v34  ;;  %v87_v44 = vadd.f32 %v507_v9, %v64_v35 }
   0xb   :  { %403 = vmatpush3.bf16.msra.mxu0 %v448_v2  ;;  %440 = vmatpush3.bf16.msra.mxu1 %v448_v2  ;;  %v108_v22 = vmax.f32 %v92_v17, 0.0  ;;  %v116_v28 = vpack.c.bf16 %v101_v20, %v100_v19  ;;  %v94_v45 = vadd.f32 %v507_v9, %v71_v36  ;;  %v95_v46 = vadd.f32 %v507_v9, %v72_v37 }
   0xc   :  { %404 = vmatprep.subr.bf16.mxu0 %v449_v3  ;;  %433 = vmatprep.subr.bf16.mxu1 %v449_v3  ;;  %v88_v47 = vadd.f32 %v507_v9, %v65_v38  ;;  %v89_v49 = vadd.f32 %v507_v9, %v66_v39  ;;  %v96_v50 = vadd.f32 %v507_v9, %v73_v40  ;;  %v102_v56 = vmax.f32 %v86_v43, 0.0 }
   0xd   :  { %v120_v30 = vpack.c.bf16 %v109_v23, %v108_v22  ;;  %414 = vmatprep.mubr.bf16.mxu0 %v116_v28  ;;  %v97_v51 = vadd.f32 %v507_v9, %v74_v41  ;;  %v103_v57 = vmax.f32 %v87_v44, 0.0  ;;  %v110_v58 = vmax.f32 %v94_v45, 0.0 }
   0xe   :  { %v111_v59 = vmax.f32 %v95_v46, 0.0  ;;  %v67_v60 = vmul.f32 %v500_v6, %v44_v48  ;;  %v68_v61 = vmul.f32 %v500_v6, %v45_v52  ;;  %v75_v62 = vmul.f32 %v500_v6, %v52_v53 }
   0xf   :  { %405 = vmatpush3.bf16.msra.mxu0 %v449_v3  ;;  %441 = vmatpush3.bf16.msra.mxu1 %v449_v3  ;;  %v76_v63 = vmul.f32 %v500_v6, %v53_v54  ;;  %v104_v0 = vmax.f32 %v88_v47, 0.0  ;;  %v105_v1 = vmax.f32 %v89_v49, 0.0  ;;  %v112_v2 = vmax.f32 %v96_v50, 0.0 }
  0x10   :  { %406 = vmatprep.subr.bf16.mxu0 %v450_v16  ;;  %434 = vmatprep.subr.bf16.mxu1 %v450_v16  ;;  %v113_v3 = vmax.f32 %v97_v51, 0.0  ;;  %v117_v4 = vpack.c.bf16 %v103_v57, %v102_v56  ;;  %v121_v5 = vpack.c.bf16 %v111_v59, %v110_v58  ;;  %v90_v7 = vadd.f32 %v507_v9, %v67_v60 }
  0x11   :  { %422 = vmatprep.mubr.bf16.mxu1 %v120_v30  ;;  %v91_v8 = vadd.f32 %v507_v9, %v68_v61  ;;  %v98_v10 = vadd.f32 %v507_v9, %v75_v62  ;;  %v99_v11 = vadd.f32 %v507_v9, %v76_v63  ;;  %v118_v6 = vpack.c.bf16 %v105_v1, %v104_v0 }
  0x12   :  { %v122_v12 = vpack.c.bf16 %v113_v3, %v112_v2  ;;  %v106_v13 = vmax.f32 %v90_v7, 0.0 }
  0x13   :  { %407 = vmatpush3.bf16.msra.mxu0 %v450_v16  ;;  %442 = vmatpush3.bf16.msra.mxu1 %v450_v16  ;;  %v107_v14 = vmax.f32 %v91_v8, 0.0  ;;  %v114_v15 = vmax.f32 %v98_v10, 0.0  ;;  %v115_v16 = vmax.f32 %v99_v11, 0.0 }
  0x14   :  { %408 = vmatprep.subr.bf16.mxu0 %v451_v27  ;;  %435 = vmatprep.subr.bf16.mxu1 %v451_v27 }
  0x15   :  { %v119_v17 = vpack.c.bf16 %v107_v14, %v106_v13  ;;  %v123_v18 = vpack.c.bf16 %v115_v16, %v114_v15 }
  0x17   :  { %409 = vmatpush3.bf16.msra.mxu0 %v451_v27  ;;  %443 = vmatpush3.bf16.msra.mxu1 %v451_v27 }
  0x18   :  { %410 = vmatprep.subr.bf16.mxu0 %v452_v42  ;;  %436 = vmatprep.subr.bf16.mxu1 %v452_v42 }
  0x1b   :  { %411 = vmatpush3.bf16.msra.mxu0 %v452_v42  ;;  %444 = vmatpush3.bf16.msra.mxu1 %v452_v42 }
  0x1c   :  { %412 = vmatprep.subr.bf16.mxu0 %v453_v55  ;;  %437 = vmatprep.subr.bf16.mxu1 %v453_v55 }
  0x1f   :  { %413 = vmatpush3.bf16.msra.mxu0 %v453_v55  ;;  %445 = vmatpush3.bf16.msra.mxu1 %v453_v55 }
  0x22   :  { %415 = vmatmul.mubr.bf16.vlgmr.msra.gmra.mxu0 %v117_v4  ;;  %423 = vmatmul.mubr.bf16.vlgmr.msra.gmra.mxu1 %v121_v5 }
  0x23   :  { %418 = vmatprep.mubr.bf16.mxu0 %v118_v6  ;;  %426 = vmatprep.mubr.bf16.mxu1 %v122_v12 }
  0x2a   :  { %419 = vmatmul.mubr.bf16.gmra.mxu0 %v119_v17  ;;  %427 = vmatmul.mubr.bf16.gmra.mxu1 %v123_v18 }
  0xe2   :  { %v416_v19 = vpop.f32.mrf.mxu0  ;;  %v424_v20 = vpop.f32.mrf.mxu1 }
  0xe3   :  { %354 = vst [vmem:[%s645_s4 + $0x10] sm:$0xff] %v416_v19  ;;  %362 = vst [vmem:[%s645_s4 + $0x50] sm:$0xff] %v424_v20 }
  0xe4   :  { %v238_v9 = vpop.f32.mrf.mxu0  ;;  %v270_v21 = vpop.f32.mrf.mxu1 }
  0xe5   :  { %352 = vst [vmem:[%s645_s4] sm:$0xff] %v238_v9  ;;  %360 = vst [vmem:[%s645_s4 + $0x40] sm:$0xff] %v270_v21 }
  0xe6   :  { %v417_v22 = vpop.f32.mrf.mxu0  ;;  %v425_v23 = vpop.f32.mrf.mxu1 }
  0xe7   :  { %355 = vst [vmem:[%s645_s4 + $0x18] sm:$0xff] %v417_v22  ;;  %363 = vst [vmem:[%s645_s4 + $0x58] sm:$0xff] %v425_v23 }
  0xe8   :  { %v241_v24 = vpop.f32.mrf.mxu0  ;;  %v273_v25 = vpop.f32.mrf.mxu1 }
  0xe9   :  { %353 = vst [vmem:[%s645_s4 + $0x8] sm:$0xff] %v241_v24  ;;  %361 = vst [vmem:[%s645_s4 + $0x48] sm:$0xff] %v273_v25 }
  0xea   :  { %v420_v26 = vpop.f32.mrf.mxu0  ;;  %v428_v27 = vpop.f32.mrf.mxu1 }
  0xeb   :  { %358 = vst [vmem:[%s645_s4 + $0x30] sm:$0xff] %v420_v26  ;;  %366 = vst [vmem:[%s645_s4 + $0x70] sm:$0xff] %v428_v27 }
  0xec   :  { %v254_v28 = vpop.f32.mrf.mxu0  ;;  %v286_v29 = vpop.f32.mrf.mxu1 }
  0xed   :  { %356 = vst [vmem:[%s645_s4 + $0x20] sm:$0xff] %v254_v28  ;;  %364 = vst [vmem:[%s645_s4 + $0x60] sm:$0xff] %v286_v29 }
  0xee   :  { %v421_v30 = vpop.f32.mrf.mxu0  ;;  %v429_v31 = vpop.f32.mrf.mxu1 }
  0xef   :  { %359 = vst [vmem:[%s645_s4 + $0x38] sm:$0xff] %v421_v30  ;;  %367 = vst [vmem:[%s645_s4 + $0x78] sm:$0xff] %v429_v31 }
  0xf0   :  { %v257_v32 = vpop.f32.mrf.mxu0  ;;  %v289_v33 = vpop.f32.mrf.mxu1 }
  0xf1   :  { %357 = vst [vmem:[%s645_s4 + $0x28] sm:$0xff] %v257_v32  ;;  %365 = vst [vmem:[%s645_s4 + $0x68] sm:$0xff] %v289_v33 }

// kernel: heatmap_forward.28
= control target key start
LH: loop header
LB: loop body
LE: loop exit
PB: predicated region body
PF: predicated region fallthrough
CT: control target
= control target key end

     0   :  { %s2659_s9 = smov 0   ;;  %s3209_s0 = inlined_call_operand.vmem [shape: bf16[2,10,16,128], index: 0, kind: input, shape index: {}]   ;;  %s3210_s1 = inlined_call_operand.vmem [shape: bf16[9,128,32], index: 1, kind: input, shape index: {}]   ;;  %s3211_s2 = inlined_call_operand.vmem [shape: f32[2,8,8,32], index: 2, kind: output, shape index: {}]  }
   0x1 LB: > { %s1876_s10 = sadd.s32 4294967295, %s2642_s9   ;;  %p1880_p0 = scmp.ge.s32.totalorder %s2642_s9, 1  ;;  %s2642_s9 = sphi %s2659_s9, %s12_s9  }
   0x2   : > { %p112_p1 = scmp.lt.s32.totalorder %s2642_s9, 3 }
   0x4   : > { %p113_p2 = pnand %p1880_p0, %p112_p1 }
   0x6   : > { %116 = sbr.rel (%p113_p2) target bundleno = 388 (0x184), region = 28 }
   0xb   : > { %v2554_v0 = vld [vmem:[%s3210_s1 + $0xf8] sm:$0xff]   ;;  %p134_p3 = scmp.lt.s32.totalorder %s1876_s10, 1  ;;  %v2556_v2 = vld [vmem:[%s3210_s1 + $0xf0] sm:$0xff]   ;;  %v2558_v4 = vld [vmem:[%s3210_s1 + $0xe8] sm:$0xff]   ;;  %vm1714_vm0 = vcmask 1046528   ;;  %vm1771_vm1 = vcmask 1045504  }
   0xc   : > { %v2555_v1 = vld [vmem:[%s3210_s1 + $0x38] sm:$0xff]   ;;  %2241 = vmatprep.subr.bf16.mxu0 %v2554_v0  ;;  %v2557_v3 = vld [vmem:[%s3210_s1 + $0x30] sm:$0xff]   ;;  %v2559_v5 = vld [vmem:[%s3210_s1 + $0x28] sm:$0xff]   ;;  %vm1812_vm2 = vcmask 261120  }
   0xd   : > { %2273 = vmatprep.subr.bf16.mxu1 %v2555_v1  ;;  %2242 = vmatpush3.bf16.msra.mxu0 %v2554_v0  ;;  %s3225_s10 = smov (!%p134_p3, %s1876_s10), 1  ;;  %v2560_v6 = vld [vmem:[%s3210_s1 + $0xe0] sm:$0xff]   ;;  %v2562_v8 = vld [vmem:[%s3210_s1 + $0xd8] sm:$0xff]   ;;  %v2564_v10 = vld [vmem:[%s3210_s1 + $0xd0] sm:$0xff]  }
   0xe   : > { %2274 = vmatpush3.bf16.msra.mxu1 %v2555_v1  ;;  %2243 = vmatprep.subr.bf16.mxu0 %v2556_v2  ;;  %v2561_v7 = vld [vmem:[%s3210_s1 + $0x20] sm:$0xff]   ;;  %s2545_s27 = smul.u32 80, %s3225_s10  ;;  %v2563_v9 = vld [vmem:[%s3210_s1 + $0x18] sm:$0xff]   ;;  %v2565_v11 = vld [vmem:[%s3210_s1 + $0x10] sm:$0xff]  }
   0xf   : > { %2275 = vmatprep.subr.bf16.mxu1 %v2557_v3  ;;  %v2566_v14 = vld [vmem:[%s3210_s1 + $0xc8] sm:$0xff]   ;;  %v2568_v16 = vld [vmem:[%s3210_s1 + $0xc0] sm:$0xff]   ;;  %v2573_v18 = vld [vmem:[%s3210_s1 + $0x138] sm:$0xff]  }
  0x10   : > { %s2703_s6 = scalar_lea.vmem %s3209_s0, %s2545_s27  ;;  %v2567_v15 = vld [vmem:[%s3210_s1 + $0x8] sm:$0xff]   ;;  %v2569_v17 = vld [vmem:[%s3210_s1] sm:$0xff]   ;;  %v2574_v19 = vld [vmem:[%s3210_s1 + $0x78] sm:$0xff]  }
  0x11   : > { %2244 = vmatpush3.bf16.msra.mxu0 %v2556_v2  ;;  %v2712_v12 = vld [vmem:[%s2703_s6 + $0x8] sm:$0xff]   ;;  %v2715_v13 = vld [vmem:[%s2703_s6] sm:$0xff]   ;;  %v2738_v20 = vld [vmem:[%s2703_s6 + $0x10] sm:$0xff]  }
  0x12   : > { %2276 = vmatpush3.bf16.msra.mxu1 %v2557_v3  ;;  %2245 = vmatprep.subr.bf16.mxu0 %v2558_v4  ;;  %v2575_v21 = vld [vmem:[%s3210_s1 + $0x130] sm:$0xff]   ;;  %v2747_v23 = vld [vmem:[%s2703_s6 + $0x18] sm:$0xff]   ;;  %v2579_v24 = vld [vmem:[%s3210_s1 + $0x128] sm:$0xff]  }
  0x13   : > { %2277 = vmatprep.subr.bf16.mxu1 %v2559_v5  ;;  %2257 = vmatprep.mubr.bf16.mxu0 %v2712_v12  ;;  %v2576_v22 = vld [vmem:[%s3210_s1 + $0x70] sm:$0xff]   ;;  %v2580_v25 = vld [vmem:[%s3210_s1 + $0x68] sm:$0xff]   ;;  %v2760_v26 = vld [vmem:[%s2703_s6 + $0x20] sm:$0xff]  }
  0x14   : > { %2289 = vmatprep.mubr.bf16.mxu1 %v2715_v13  ;;  %v2581_v27 = vld [vmem:[%s3210_s1 + $0x120] sm:$0xff]   ;;  %v2769_v29 = vld [vmem:[%s2703_s6 + $0x28] sm:$0xff]   ;;  %v2585_v30 = vld [vmem:[%s3210_s1 + $0x118] sm:$0xff]  }
  0x15   : > { %2246 = vmatpush3.bf16.msra.mxu0 %v2558_v4  ;;  %v2582_v28 = vld [vmem:[%s3210_s1 + $0x60] sm:$0xff]   ;;  %v2586_v31 = vld [vmem:[%s3210_s1 + $0x58] sm:$0xff]   ;;  %v2782_v32 = vld [vmem:[%s2703_s6 + $0x30] sm:$0xff]  }
  0x16   : > { %2278 = vmatpush3.bf16.msra.mxu1 %v2559_v5  ;;  %2247 = vmatprep.subr.bf16.mxu0 %v2560_v6  ;;  %v2587_v33 = vld [vmem:[%s3210_s1 + $0x110] sm:$0xff]   ;;  %v2791_v35 = vld [vmem:[%s2703_s6 + $0x38] sm:$0xff]   ;;  %v2591_v36 = vld [vmem:[%s3210_s1 + $0x108] sm:$0xff]  }
  0x17   : > { %2279 = vmatprep.subr.bf16.mxu1 %v2561_v7  ;;  %v2588_v34 = vld [vmem:[%s3210_s1 + $0x50] sm:$0xff]   ;;  %v2592_v37 = vld [vmem:[%s3210_s1 + $0x48] sm:$0xff]   ;;  %v2804_v38 = vld [vmem:[%s2703_s6 + $0x40] sm:$0xff]  }
  0x18   : > { %v2593_v39 = vld [vmem:[%s3210_s1 + $0x100] sm:$0xff]   ;;  %v2595_v41 = vld [vmem:[%s3210_s1 + $0x178] sm:$0xff]   ;;  %v2597_v43 = vld [vmem:[%s3210_s1 + $0x170] sm:$0xff]  }
  0x19   : > { %2248 = vmatpush3.bf16.msra.mxu0 %v2560_v6  ;;  %v2594_v40 = vld [vmem:[%s3210_s1 + $0x40] sm:$0xff]   ;;  %v2596_v42 = vld [vmem:[%s3210_s1 + $0xb8] sm:$0xff]   ;;  %v2598_v44 = vld [vmem:[%s3210_s1 + $0xb0] sm:$0xff]  }
  0x1a   : > { %2280 = vmatpush3.bf16.msra.mxu1 %v2561_v7  ;;  %2249 = vmatprep.subr.bf16.mxu0 %v2562_v8  ;;  %v2599_v45 = vld [vmem:[%s3210_s1 + $0x168] sm:$0xff]   ;;  %v2601_v47 = vld [vmem:[%s3210_s1 + $0x160] sm:$0xff]   ;;  %v2603_v49 = vld [vmem:[%s3210_s1 + $0x158] sm:$0xff]  }
  0x1b   : > { %2281 = vmatprep.subr.bf16.mxu1 %v2563_v9  ;;  %v2600_v46 = vld [vmem:[%s3210_s1 + $0xa8] sm:$0xff]   ;;  %v2602_v48 = vld [vmem:[%s3210_s1 + $0xa0] sm:$0xff]   ;;  %v2604_v50 = vld [vmem:[%s3210_s1 + $0x98] sm:$0xff]  }
  0x1c   : > { %v2605_v51 = vld [vmem:[%s3210_s1 + $0x150] sm:$0xff]   ;;  %v2607_v53 = vld [vmem:[%s3210_s1 + $0x148] sm:$0xff]   ;;  %v2609_v55 = vld [vmem:[%s3210_s1 + $0x140] sm:$0xff]  }
  0x1d   : > { %2250 = vmatpush3.bf16.msra.mxu0 %v2562_v8  ;;  %v2606_v52 = vld [vmem:[%s3210_s1 + $0x90] sm:$0xff]   ;;  %v2608_v54 = vld [vmem:[%s3210_s1 + $0x88] sm:$0xff]   ;;  %v2610_v56 = vld [vmem:[%s3210_s1 + $0x80] sm:$0xff]  }
  0x1e   : > { %2282 = vmatpush3.bf16.msra.mxu1 %v2563_v9  ;;  %2251 = vmatprep.subr.bf16.mxu0 %v2564_v10  ;;  %v2611_v57 = vld [vmem:[%s3210_s1 + $0x1b8] sm:$0xff]   ;;  %v2613_v59 = vld [vmem:[%s3210_s1 + $0x1b0] sm:$0xff]   ;;  %v2615_v61 = vld [vmem:[%s3210_s1 + $0x1a8] sm:$0xff]  }
  0x1f   : > { %2283 = vmatprep.subr.bf16.mxu1 %v2565_v11  ;;  %v2612_v58 = vld [vmem:[%s3210_s1 + $0x1f8] sm:$0xff]   ;;  %v2614_v60 = vld [vmem:[%s3210_s1 + $0x1f0] sm:$0xff]   ;;  %v2616_v62 = vld [vmem:[%s3210_s1 + $0x1e8] sm:$0xff]  }
  0x20   : > { %v2617_v63 = vld [vmem:[%s3210_s1 + $0x1a0] sm:$0xff]   ;;  %v2619_v1 = vld [vmem:[%s3210_s1 + $0x198] sm:$0xff]   ;;  %v2621_v3 = vld [vmem:[%s3210_s1 + $0x190] sm:$0xff]  }
  0x21   : > { %2252 = vmatpush3.bf16.msra.mxu0 %v2564_v10  ;;  %v2618_v0 = vld [vmem:[%s3210_s1 + $0x1e0] sm:$0xff]   ;;  %v2620_v2 = vld [vmem:[%s3210_s1 + $0x1d8] sm:$0xff]   ;;  %v2622_v4 = vld [vmem:[%s3210_s1 + $0x1d0] sm:$0xff]  }
  0x22   : > { %2284 = vmatpush3.bf16.msra.mxu1 %v2565_v11  ;;  %2253 = vmatprep.subr.bf16.mxu0 %v2566_v14  ;;  %v2623_v5 = vld [vmem:[%s3210_s1 + $0x188] sm:$0xff]   ;;  %v2625_v7 = vld [vmem:[%s3210_s1 + $0x180] sm:$0xff]   ;;  %v2627_v9 = vld [vmem:[%s3210_s1 + $0x238] sm:$0xff]  }
  0x23   : > { %2285 = vmatprep.subr.bf16.mxu1 %v2567_v15  ;;  %v2624_v6 = vld [vmem:[%s3210_s1 + $0x1c8] sm:$0xff]   ;;  %v2626_v8 = vld [vmem:[%s3210_s1 + $0x1c0] sm:$0xff]   ;;  %v2628_v10 = vld [vmem:[%s3210_s1 + $0x230] sm:$0xff]  }
  0x24   : > { %v2629_v11 = vld [vmem:[%s3210_s1 + $0x228] sm:$0xff]  }
  0x25   : > { %2254 = vmatpush3.bf16.msra.mxu0 %v2566_v14  ;;  %v2632_v14 = vld [vmem:[%s3210_s1 + $0x210] sm:$0xff]  }
  0x26   : > { %2286 = vmatpush3.bf16.msra.mxu1 %v2567_v15  ;;  %2255 = vmatprep.subr.bf16.mxu0 %v2568_v16  ;;  %v2634_v15 = vld [vmem:[%s3210_s1 + $0x208] sm:$0xff]  }
  0x27   : > { %2287 = vmatprep.subr.bf16.mxu1 %v2569_v17 }
  0x29   : > { %2256 = vmatpush3.bf16.msra.mxu0 %v2568_v16  ;;  %v2633_v16 = vld [vmem:[%s2703_s6 + $0x48] sm:$0xff]   ;;  %s2096_s6 = sshll.u32 %s3225_s10, 6 }
  0x2a   : > { %2288 = vmatpush3.bf16.msra.mxu1 %v2569_v17  ;;  %2305 = vmatprep.subr.bf16.mxu0 %v2573_v18  ;;  %v2635_v17 = vld [vmem:[%s3210_s1 + $0x200] sm:$0xff]   ;;  %s3162_s7 = scalar_lea.vmem %s3211_s2, %s2096_s6 }
  0x2b   : > { %2337 = vmatprep.subr.bf16.mxu1 %v2574_v19 }
  0x2c   : > { %2258 = vmatmul.mubr.bf16.vlgmr.msra.gmra.mxu0 %v2738_v20 }
  0x2d   : > { %2290 = vmatmul.mubr.bf16.vlgmr.msra.gmra.mxu1 %v2712_v12  ;;  %2306 = vmatpush3.bf16.msra.mxu0 %v2573_v18 }
  0x2e   : > { %2338 = vmatpush3.bf16.msra.mxu1 %v2574_v19  ;;  %2307 = vmatprep.subr.bf16.mxu0 %v2575_v21 }
  0x2f   : > { %2339 = vmatprep.subr.bf16.mxu1 %v2576_v22  ;;  %2261 = vmatprep.mubr.bf16.mxu0 %v2747_v23 }
  0x30   : > { %2293 = vmatprep.mubr.bf16.mxu1 %v2738_v20 }
  0x31   : > { %2308 = vmatpush3.bf16.msra.mxu0 %v2575_v21 }
  0x32   : > { %2340 = vmatpush3.bf16.msra.mxu1 %v2576_v22  ;;  %2309 = vmatprep.subr.bf16.mxu0 %v2579_v24 }
  0x33   : > { %2341 = vmatprep.subr.bf16.mxu1 %v2580_v25 }
  0x34   : > { %2262 = vmatmul.mubr.bf16.gmra.mxu0 %v2760_v26 }
  0x35   : > { %2294 = vmatmul.mubr.bf16.gmra.mxu1 %v2747_v23  ;;  %2310 = vmatpush3.bf16.msra.mxu0 %v2579_v24 }
  0x36   : > { %2342 = vmatpush3.bf16.msra.mxu1 %v2580_v25  ;;  %2311 = vmatprep.subr.bf16.mxu0 %v2581_v27 }
  0x37   : > { %2343 = vmatprep.subr.bf16.mxu1 %v2582_v28  ;;  %2265 = vmatprep.mubr.bf16.mxu0 %v2769_v29 }
  0x38   : > { %2297 = vmatprep.mubr.bf16.mxu1 %v2760_v26 }
  0x39   : > { %2312 = vmatpush3.bf16.msra.mxu0 %v2581_v27 }
  0x3a   : > { %2344 = vmatpush3.bf16.msra.mxu1 %v2582_v28  ;;  %2313 = vmatprep.subr.bf16.mxu0 %v2585_v30 }
  0x3b   : > { %2345 = vmatprep.subr.bf16.mxu1 %v2586_v31 }
  0x3c   : > { %2266 = vmatmul.mubr.bf16.gmra.mxu0 %v2782_v32 }
  0x3d   : > { %2298 = vmatmul.mubr.bf16.gmra.mxu1 %v2769_v29  ;;  %2314 = vmatpush3.bf16.msra.mxu0 %v2585_v30 }
  0x3e   : > { %2346 = vmatpush3.bf16.msra.mxu1 %v2586_v31  ;;  %2315 = vmatprep.subr.bf16.mxu0 %v2587_v33 }
  0x3f   : > { %2347 = vmatprep.subr.bf16.mxu1 %v2588_v34  ;;  %2269 = vmatprep.mubr.bf16.mxu0 %v2791_v35 }
  0x40   : > { %2301 = vmatprep.mubr.bf16.mxu1 %v2782_v32 }
  0x41   : > { %2316 = vmatpush3.bf16.msra.mxu0 %v2587_v33 }
  0x42   : > { %2348 = vmatpush3.bf16.msra.mxu1 %v2588_v34  ;;  %2317 = vmatprep.subr.bf16.mxu0 %v2591_v36 }
  0x43   : > { %2349 = vmatprep.subr.bf16.mxu1 %v2592_v37 }
  0x44   : > { %2270 = vmatmul.mubr.bf16.gmra.mxu0 %v2804_v38 }
  0x45   : > { %2302 = vmatmul.mubr.bf16.gmra.mxu1 %v2791_v35  ;;  %2318 = vmatpush3.bf16.msra.mxu0 %v2591_v36 }
  0x46   : > { %2350 = vmatpush3.bf16.msra.mxu1 %v2592_v37  ;;  %2319 = vmatprep.subr.bf16.mxu0 %v2593_v39 }
  0x47   : > { %2351 = vmatprep.subr.bf16.mxu1 %v2594_v40  ;;  %2321 = vmatprep.mubr.bf16.mxu0 %v2712_v12 }
  0x48   : > { %2353 = vmatprep.mubr.bf16.mxu1 %v2715_v13 }
  0x49   : > { %2320 = vmatpush3.bf16.msra.mxu0 %v2593_v39 }
  0x4a   : > { %2352 = vmatpush3.bf16.msra.mxu1 %v2594_v40  ;;  %2369 = vmatprep.subr.bf16.mxu0 %v2595_v41 }
  0x4b   : > { %2401 = vmatprep.subr.bf16.mxu1 %v2596_v42 }
  0x4c   : > { %2322 = vmatmul.mubr.bf16.vlgmr.msra.gmra.mxu0 %v2738_v20 }
  0x4d   : > { %2354 = vmatmul.mubr.bf16.vlgmr.msra.gmra.mxu1 %v2712_v12  ;;  %2370 = vmatpush3.bf16.msra.mxu0 %v2595_v41 }
  0x4e   : > { %2402 = vmatpush3.bf16.msra.mxu1 %v2596_v42  ;;  %2371 = vmatprep.subr.bf16.mxu0 %v2597_v43 }
  0x4f   : > { %2403 = vmatprep.subr.bf16.mxu1 %v2598_v44  ;;  %2325 = vmatprep.mubr.bf16.mxu0 %v2747_v23 }
  0x50   : > { %2357 = vmatprep.mubr.bf16.mxu1 %v2738_v20 }
  0x51   : > { %2372 = vmatpush3.bf16.msra.mxu0 %v2597_v43 }
  0x52   : > { %2404 = vmatpush3.bf16.msra.mxu1 %v2598_v44  ;;  %2373 = vmatprep.subr.bf16.mxu0 %v2599_v45 }
  0x53   : > { %2405 = vmatprep.subr.bf16.mxu1 %v2600_v46 }
  0x54   : > { %2326 = vmatmul.mubr.bf16.gmra.mxu0 %v2760_v26 }
  0x55   : > { %2358 = vmatmul.mubr.bf16.gmra.mxu1 %v2747_v23  ;;  %2374 = vmatpush3.bf16.msra.mxu0 %v2599_v45 }
  0x56   : > { %2406 = vmatpush3.bf16.msra.mxu1 %v2600_v46  ;;  %2375 = vmatprep.subr.bf16.mxu0 %v2601_v47 }
  0x57   : > { %2407 = vmatprep.subr.bf16.mxu1 %v2602_v48  ;;  %2329 = vmatprep.mubr.bf16.mxu0 %v2769_v29 }
  0x58   : > { %2361 = vmatprep.mubr.bf16.mxu1 %v2760_v26 }
  0x59   : > { %2376 = vmatpush3.bf16.msra.mxu0 %v2601_v47 }
  0x5a   : > { %2408 = vmatpush3.bf16.msra.mxu1 %v2602_v48  ;;  %2377 = vmatprep.subr.bf16.mxu0 %v2603_v49 }
  0x5b   : > { %2409 = vmatprep.subr.bf16.mxu1 %v2604_v50 }
  0x5c   : > { %2330 = vmatmul.mubr.bf16.gmra.mxu0 %v2782_v32 }
  0x5d   : > { %2362 = vmatmul.mubr.bf16.gmra.mxu1 %v2769_v29  ;;  %2378 = vmatpush3.bf16.msra.mxu0 %v2603_v49 }
  0x5e   : > { %2410 = vmatpush3.bf16.msra.mxu1 %v2604_v50  ;;  %2379 = vmatprep.subr.bf16.mxu0 %v2605_v51 }
  0x5f   : > { %2411 = vmatprep.subr.bf16.mxu1 %v2606_v52  ;;  %2333 = vmatprep.mubr.bf16.mxu0 %v2791_v35 }
  0x60   : > { %2365 = vmatprep.mubr.bf16.mxu1 %v2782_v32 }
  0x61   : > { %2380 = vmatpush3.bf16.msra.mxu0 %v2605_v51 }
  0x62   : > { %2412 = vmatpush3.bf16.msra.mxu1 %v2606_v52  ;;  %2381 = vmatprep.subr.bf16.mxu0 %v2607_v53 }
  0x63   : > { %2413 = vmatprep.subr.bf16.mxu1 %v2608_v54 }
  0x64   : > { %2334 = vmatmul.mubr.bf16.gmra.mxu0 %v2804_v38 }
  0x65   : > { %2366 = vmatmul.mubr.bf16.gmra.mxu1 %v2791_v35  ;;  %2382 = vmatpush3.bf16.msra.mxu0 %v2607_v53 }
  0x66   : > { %2414 = vmatpush3.bf16.msra.mxu1 %v2608_v54  ;;  %2383 = vmatprep.subr.bf16.mxu0 %v2609_v55 }
  0x67   : > { %2415 = vmatprep.subr.bf16.mxu1 %v2610_v56  ;;  %2385 = vmatprep.mubr.bf16.mxu0 %v2712_v12 }
  0x68   : > { %2417 = vmatprep.mubr.bf16.mxu1 %v2715_v13  ;;  %v2631_v13 = vld [vmem:[%s3210_s1 + $0x218] sm:$0xff]  }
  0x69   : > { %2384 = vmatpush3.bf16.msra.mxu0 %v2609_v55 }
  0x6a   : > { %2416 = vmatpush3.bf16.msra.mxu1 %v2610_v56  ;;  %2433 = vmatprep.subr.bf16.mxu0 %v2611_v57 }
  0x6b   : > { %2465 = vmatprep.subr.bf16.mxu1 %v2612_v58 }
  0x6c   : > { %2386 = vmatmul.mubr.bf16.vlgmr.msra.gmra.mxu0 %v2738_v20 }
  0x6d   : > { %2418 = vmatmul.mubr.bf16.vlgmr.msra.gmra.mxu1 %v2712_v12  ;;  %2434 = vmatpush3.bf16.msra.mxu0 %v2611_v57  ;;  %v2630_v12 = vld [vmem:[%s3210_s1 + $0x220] sm:$0xff]  }
  0x6e   : > { %2466 = vmatpush3.bf16.msra.mxu1 %v2612_v58  ;;  %2435 = vmatprep.subr.bf16.mxu0 %v2613_v59 }
  0x6f   : > { %2467 = vmatprep.subr.bf16.mxu1 %v2614_v60  ;;  %2389 = vmatprep.mubr.bf16.mxu0 %v2747_v23 }
  0x70   : > { %2421 = vmatprep.mubr.bf16.mxu1 %v2738_v20 }
  0x71   : > { %2436 = vmatpush3.bf16.msra.mxu0 %v2613_v59 }
  0x72   : > { %2468 = vmatpush3.bf16.msra.mxu1 %v2614_v60  ;;  %2437 = vmatprep.subr.bf16.mxu0 %v2615_v61 }
  0x73   : > { %2469 = vmatprep.subr.bf16.mxu1 %v2616_v62 }
  0x74   : > { %2390 = vmatmul.mubr.bf16.gmra.mxu0 %v2760_v26 }
  0x75   : > { %2422 = vmatmul.mubr.bf16.gmra.mxu1 %v2747_v23  ;;  %2438 = vmatpush3.bf16.msra.mxu0 %v2615_v61 }
  0x76   : > { %2470 = vmatpush3.bf16.msra.mxu1 %v2616_v62  ;;  %2439 = vmatprep.subr.bf16.mxu0 %v2617_v63 }
  0x77   : > { %2471 = vmatprep.subr.bf16.mxu1 %v2618_v0  ;;  %2393 = vmatprep.mubr.bf16.mxu0 %v2769_v29 }
  0x78   : > { %2425 = vmatprep.mubr.bf16.mxu1 %v2760_v26 }
  0x79   : > { %2440 = vmatpush3.bf16.msra.mxu0 %v2617_v63 }
  0x7a   : > { %2472 = vmatpush3.bf16.msra.mxu1 %v2618_v0  ;;  %2441 = vmatprep.subr.bf16.mxu0 %v2619_v1 }
  0x7b   : > { %2473 = vmatprep.subr.bf16.mxu1 %v2620_v2 }
  0x7c   : > { %2394 = vmatmul.mubr.bf16.gmra.mxu0 %v2782_v32 }
  0x7d   : > { %2426 = vmatmul.mubr.bf16.gmra.mxu1 %v2769_v29  ;;  %2442 = vmatpush3.bf16.msra.mxu0 %v2619_v1 }
  0x7e   : > { %2474 = vmatpush3.bf16.msra.mxu1 %v2620_v2  ;;  %2443 = vmatprep.subr.bf16.mxu0 %v2621_v3 }
  0x7f   : > { %2475 = vmatprep.subr.bf16.mxu1 %v2622_v4  ;;  %2397 = vmatprep.mubr.bf16.mxu0 %v2791_v35 }
  0x80   : > { %2429 = vmatprep.mubr.bf16.mxu1 %v2782_v32 }
  0x81   : > { %2444 = vmatpush3.bf16.msra.mxu0 %v2621_v3 }
  0x82   : > { %2476 = vmatpush3.bf16.msra.mxu1 %v2622_v4  ;;  %2445 = vmatprep.subr.bf16.mxu0 %v2623_v5 }
  0x83   : > { %2477 = vmatprep.subr.bf16.mxu1 %v2624_v6 }
  0x84   : > { %2398 = vmatmul.mubr.bf16.gmra.mxu0 %v2804_v38 }
  0x85   : > { %2430 = vmatmul.mubr.bf16.gmra.mxu1 %v2791_v35  ;;  %2446 = vmatpush3.bf16.msra.mxu0 %v2623_v5 }
  0x86   : > { %2478 = vmatpush3.bf16.msra.mxu1 %v2624_v6  ;;  %2447 = vmatprep.subr.bf16.mxu0 %v2625_v7 }
  0x87   : > { %2479 = vmatprep.subr.bf16.mxu1 %v2626_v8  ;;  %2449 = vmatprep.mubr.bf16.mxu0 %v2738_v20 }
  0x88   : > { %2481 = vmatprep.mubr.bf16.mxu1 %v2738_v20 }
  0x89   : > { %2448 = vmatpush3.bf16.msra.mxu0 %v2625_v7 }
  0x8a   : > { %2480 = vmatpush3.bf16.msra.mxu1 %v2626_v8  ;;  %2497 = vmatprep.subr.bf16.mxu0 %v2627_v9 }
  0x8b   : > { %2529 = vmatprep.subr.bf16.mxu1 %v2627_v9 }
  0x8c   : > { %2450 = vmatmul.mubr.bf16.vlgmr.msra.gmra.mxu0 %v2747_v23 }
  0x8d   : > { %2482 = vmatmul.mubr.bf16.vlgmr.msra.gmra.mxu1 %v2747_v23  ;;  %2498 = vmatpush3.bf16.msra.mxu0 %v2627_v9 }
  0x8e   : > { %2537 = vmatpush3.bf16.msra.mxu1 %v2627_v9  ;;  %2499 = vmatprep.subr.bf16.mxu0 %v2628_v10 }
  0x8f   : > { %2530 = vmatprep.subr.bf16.mxu1 %v2628_v10  ;;  %2453 = vmatprep.mubr.bf16.mxu0 %v2760_v26 }
  0x90   : > { %2485 = vmatprep.mubr.bf16.mxu1 %v2760_v26 }
  0x91   : > { %2500 = vmatpush3.bf16.msra.mxu0 %v2628_v10 }
  0x92   : > { %2538 = vmatpush3.bf16.msra.mxu1 %v2628_v10  ;;  %2501 = vmatprep.subr.bf16.mxu0 %v2629_v11 }
  0x93   : > { %2531 = vmatprep.subr.bf16.mxu1 %v2629_v11 }
  0x94   : > { %2454 = vmatmul.mubr.bf16.gmra.mxu0 %v2769_v29 }
  0x95   : > { %2486 = vmatmul.mubr.bf16.gmra.mxu1 %v2769_v29  ;;  %2502 = vmatpush3.bf16.msra.mxu0 %v2629_v11 }
  0x96   : > { %2539 = vmatpush3.bf16.msra.mxu1 %v2629_v11  ;;  %2503 = vmatprep.subr.bf16.mxu0 %v2630_v12 }
  0x97   : > { %2532 = vmatprep.subr.bf16.mxu1 %v2630_v12  ;;  %2457 = vmatprep.mubr.bf16.mxu0 %v2782_v32 }
  0x98   : > { %2489 = vmatprep.mubr.bf16.mxu1 %v2782_v32 }
  0x99   : > { %2504 = vmatpush3.bf16.msra.mxu0 %v2630_v12 }
  0x9a   : > { %2540 = vmatpush3.bf16.msra.mxu1 %v2630_v12  ;;  %2505 = vmatprep.subr.bf16.mxu0 %v2631_v13 }
  0x9b   : > { %2533 = vmatprep.subr.bf16.mxu1 %v2631_v13 }
  0x9c   : > { %2458 = vmatmul.mubr.bf16.gmra.mxu0 %v2791_v35 }
  0x9d   : > { %2490 = vmatmul.mubr.bf16.gmra.mxu1 %v2791_v35  ;;  %2506 = vmatpush3.bf16.msra.mxu0 %v2631_v13 }
  0x9e   : > { %2541 = vmatpush3.bf16.msra.mxu1 %v2631_v13  ;;  %2507 = vmatprep.subr.bf16.mxu0 %v2632_v14 }
  0x9f   : > { %2534 = vmatprep.subr.bf16.mxu1 %v2632_v14  ;;  %2461 = vmatprep.mubr.bf16.mxu0 %v2804_v38 }
  0xa0   : > { %2493 = vmatprep.mubr.bf16.mxu1 %v2804_v38 }
  0xa1   : > { %2508 = vmatpush3.bf16.msra.mxu0 %v2632_v14 }
  0xa2   : > { %2542 = vmatpush3.bf16.msra.mxu1 %v2632_v14  ;;  %2509 = vmatprep.subr.bf16.mxu0 %v2634_v15 }
  0xa3   : > { %2535 = vmatprep.subr.bf16.mxu1 %v2634_v15 }
  0xa4   : > { %2462 = vmatmul.mubr.bf16.gmra.mxu0 %v2633_v16 }
  0xa5   : > { %2494 = vmatmul.mubr.bf16.gmra.mxu1 %v2633_v16  ;;  %2510 = vmatpush3.bf16.msra.mxu0 %v2634_v15 }
  0xa6   : > { %2543 = vmatpush3.bf16.msra.mxu1 %v2634_v15  ;;  %2511 = vmatprep.subr.bf16.mxu0 %v2635_v17 }
  0xa7   : > { %2536 = vmatprep.subr.bf16.mxu1 %v2635_v17  ;;  %2513 = vmatprep.mubr.bf16.mxu0 %v2738_v20 }
  0xa8   : > { %2521 = vmatprep.mubr.bf16.mxu1 %v2782_v32 }
  0xa9   : > { %2512 = vmatpush3.bf16.msra.mxu0 %v2635_v17 }
  0xaa   : > { %2544 = vmatpush3.bf16.msra.mxu1 %v2635_v17 }
  0xac   : > { %2514 = vmatmul.mubr.bf16.vlgmr.msra.gmra.mxu0 %v2747_v23 }
  0xad   : > { %2522 = vmatmul.mubr.bf16.vlgmr.msra.gmra.mxu1 %v2791_v35  ;;  %2517 = vmatprep.mubr.bf16.mxu0 %v2760_v26 }
  0xae   : > { %2525 = vmatprep.mubr.bf16.mxu1 %v2804_v38 }
  0xb4   : > { %2518 = vmatmul.mubr.bf16.gmra.mxu0 %v2769_v29 }
  0xb5   : > { %2526 = vmatmul.mubr.bf16.gmra.mxu1 %v2633_v16 }
  0xec   : > { %v2259_v18 = vpop.f32.mrf.mxu0 }
  0xed   : > { %v2291_v19 = vpop.f32.mrf.mxu1 }
  0xee   : > { %v2988_v21 = vadd.f32 %v2291_v19, %v2259_v18  ;;  %v362_v20 = vpop.f32.mrf.mxu0 }
  0xef   : > { %v505_v22 = vpop.f32.mrf.mxu1 }
  0xf0   : > { %v2990_v24 = vadd.f32 %v505_v22, %v362_v20  ;;  %v2260_v25 = vpop.f32.mrf.mxu0 }
  0xf1   : > { %v2292_v27 = vpop.f32.mrf.mxu1 }
  0xf2   : > { %v365_v23 = vpop.f32.mrf.mxu0 }
  0xf3   : > { %v508_v28 = vpop.f32.mrf.mxu1 }
  0xf4   : > { %v2263_v30 = vpop.f32.mrf.mxu0 }
  0xf5   : > { %v2295_v31 = vpop.f32.mrf.mxu1 }
  0xf6   : > { %v2992_v26 = vadd.f32 %v2295_v31, %v2263_v30  ;;  %v376_v32 = vpop.f32.mrf.mxu0 }
  0xf7   : > { %v519_v33 = vpop.f32.mrf.mxu1 }
  0xf8   : > { %v2994_v29 = vadd.f32 %v519_v33, %v376_v32  ;;  %v2264_v34 = vpop.f32.mrf.mxu0 }
  0xf9   : > { %v2296_v35 = vpop.f32.mrf.mxu1 }
  0xfa   : > { %v379_v36 = vpop.f32.mrf.mxu0 }
  0xfb   : > { %v522_v37 = vpop.f32.mrf.mxu1 }
  0xfc   : > { %v2267_v38 = vpop.f32.mrf.mxu0 }
  0xfd   : > { %v2299_v39 = vpop.f32.mrf.mxu1 }
  0xfe   : > { %v2996_v40 = vadd.f32 %v2299_v39, %v2267_v38  ;;  %v390_v41 = vpop.f32.mrf.mxu0 }
  0xff   : > { %v533_v42 = vpop.f32.mrf.mxu1 }
 0x100   : > { %v2998_v43 = vadd.f32 %v533_v42, %v390_v41  ;;  %v2268_v44 = vpop.f32.mrf.mxu0 }
 0x101   : > { %v2300_v45 = vpop.f32.mrf.mxu1 }
 0x102   : > { %v393_v46 = vpop.f32.mrf.mxu0 }
 0x103   : > { %v536_v47 = vpop.f32.mrf.mxu1 }
 0x104   : > { %v2271_v48 = vpop.f32.mrf.mxu0 }
 0x105   : > { %v2303_v49 = vpop.f32.mrf.mxu1 }
 0x106   : > { %v3000_v50 = vadd.f32 %v2303_v49, %v2271_v48  ;;  %v404_v51 = vpop.f32.mrf.mxu0 }
 0x107   : > { %v547_v52 = vpop.f32.mrf.mxu1 }
 0x108   : > { %v3002_v53 = vadd.f32 %v547_v52, %v404_v51  ;;  %v2272_v54 = vpop.f32.mrf.mxu0 }
 0x109   : > { %v2304_v55 = vpop.f32.mrf.mxu1 }
 0x10a   : > { %v407_v56 = vpop.f32.mrf.mxu0 }
 0x10b   : > { %v550_v57 = vpop.f32.mrf.mxu1 }
 0x10c   : > { %v2323_v58 = vpop.f32.mrf.mxu0 }
 0x10d   : > { %v2355_v59 = vpop.f32.mrf.mxu1 }
 0x10e   : > { %v3004_v60 = vadd.f32 %v2355_v59, %v2323_v58  ;;  %v659_v61 = vpop.f32.mrf.mxu0 }
 0x10f   : > { %v804_v62 = vpop.f32.mrf.mxu1 }
 0x110   : > { %v3006_v63 = vadd.f32 %v804_v62, %v659_v61  ;;  %v2324_v0 = vpop.f32.mrf.mxu0 }
 0x111   : > { %v2356_v1 = vpop.f32.mrf.mxu1 }
 0x112   : > { %v3008_v2 = vadd.f32 %v2356_v1, %v2324_v0  ;;  %v662_v3 = vpop.f32.mrf.mxu0 }
 0x113   : > { %v807_v4 = vpop.f32.mrf.mxu1 }
 0x114   : > { %v3010_v5 = vadd.f32 %v807_v4, %v662_v3  ;;  %v2327_v6 = vpop.f32.mrf.mxu0 }
 0x115   : > { %v2359_v7 = vpop.f32.mrf.mxu1 }
 0x116   : > { %v3012_v8 = vadd.f32 %v2359_v7, %v2327_v6  ;;  %v675_v9 = vpop.f32.mrf.mxu0 }
 0x117   : > { %v820_v10 = vpop.f32.mrf.mxu1 }
 0x118   : > { %v3014_v11 = vadd.f32 %v820_v10, %v675_v9  ;;  %v2328_v12 = vpop.f32.mrf.mxu0 }
 0x119   : > { %v2360_v13 = vpop.f32.mrf.mxu1 }
 0x11a   : > { %v3016_v14 = vadd.f32 %v2360_v13, %v2328_v12  ;;  %v678_v15 = vpop.f32.mrf.mxu0 }
 0x11b   : > { %v823_v16 = vpop.f32.mrf.mxu1 }
 0x11c   : > { %v3018_v17 = vadd.f32 %v823_v16, %v678_v15  ;;  %v2331_v18 = vpop.f32.mrf.mxu0 }
 0x11d   : > { %v2363_v19 = vpop.f32.mrf.mxu1 }
 0x11e   : > { %v3020_v20 = vadd.f32 %v2363_v19, %v2331_v18  ;;  %v691_v22 = vpop.f32.mrf.mxu0 }
 0x11f   : > { %v836_v25 = vpop.f32.mrf.mxu1 }
 0x120   : > { %v3022_v27 = vadd.f32 %v836_v25, %v691_v22  ;;  %v2332_v23 = vpop.f32.mrf.mxu0 }
 0x121   : > { %v2364_v28 = vpop.f32.mrf.mxu1 }
 0x122   : > { %v3024_v30 = vadd.f32 %v2364_v28, %v2332_v23  ;;  %v694_v31 = vpop.f32.mrf.mxu0 }
 0x123   : > { %v839_v32 = vpop.f32.mrf.mxu1 }
 0x124   : > { %v3026_v33 = vadd.f32 %v839_v32, %v694_v31  ;;  %v2335_v34 = vpop.f32.mrf.mxu0 }
 0x125   : > { %v2367_v35 = vpop.f32.mrf.mxu1 }
 0x126   : > { %v3028_v36 = vadd.f32 %v2367_v35, %v2335_v34  ;;  %v707_v37 = vpop.f32.mrf.mxu0 }
 0x127   : > { %v852_v38 = vpop.f32.mrf.mxu1 }
 0x128   : > { %v3030_v39 = vadd.f32 %v852_v38, %v707_v37  ;;  %v2336_v41 = vpop.f32.mrf.mxu0 }
 0x129   : > { %v2368_v42 = vpop.f32.mrf.mxu1 }
 0x12a   : > { %v3032_v44 = vadd.f32 %v2368_v42, %v2336_v41  ;;  %v710_v45 = vpop.f32.mrf.mxu0 }
 0x12b   : > { %v855_v46 = vpop.f32.mrf.mxu1 }
 0x12c   : > { %v3034_v47 = vadd.f32 %v855_v46, %v710_v45  ;;  %v2387_v48 = vpop.f32.mrf.mxu0 }
 0x12d   : > { %v2419_v49 = vpop.f32.mrf.mxu1 }
 0x12e   : > { %v3036_v51 = vadd.f32 %v2419_v49, %v2387_v48  ;;  %v966_v52 = vpop.f32.mrf.mxu0 }
 0x12f   : > { %v1111_v54 = vpop.f32.mrf.mxu1 }
 0x130   : > { %v3038_v55 = vadd.f32 %v1111_v54, %v966_v52  ;;  %v3040_v56 = vpop.f32.mrf.mxu0 }
 0x131   : > { %v3042_v57 = vpop.f32.mrf.mxu1 }
 0x132   : > { %v3044_v58 = vpop.f32.mrf.mxu0 }
 0x133   : > { %v3046_v59 = vpop.f32.mrf.mxu1 }
 0x134   : > { %v2391_v61 = vpop.f32.mrf.mxu0 }
 0x135   : > { %v2423_v62 = vpop.f32.mrf.mxu1 }
 0x136   : > { %v3048_v0 = vadd.f32 %v2423_v62, %v2391_v61  ;;  %v982_v1 = vpop.f32.mrf.mxu0 }
 0x137   : > { %v1127_v3 = vpop.f32.mrf.mxu1 }
 0x138   : > { %v3050_v4 = vadd.f32 %v1127_v3, %v982_v1  ;;  %v3052_v6 = vpop.f32.mrf.mxu0 }
 0x139   : > { %v3054_v7 = vpop.f32.mrf.mxu1 }
 0x13a   : > { %3212 = vst [vmem:[#allocation2_spill] sm:$0xff] %v3050_v4  ;;  %v3056_v9 = vpop.f32.mrf.mxu0 }
 0x13b   : > { %3213 = vst [vmem:[#allocation3_spill] sm:$0xff] %v3056_v9  ;;  %v3058_v10 = vpop.f32.mrf.mxu1 }
 0x13c   : > { %3214 = vst [vmem:[#allocation4_spill] sm:$0xff] %v3058_v10  ;;  %v3060_v12 = vpop.f32.mrf.mxu0 }
 0x13d   : > { %v3062_v13 = vpop.f32.mrf.mxu1 }
 0x13e   : > { %v3064_v15 = vpop.f32.mrf.mxu0 }
 0x13f   : > { %v3066_v16 = vpop.f32.mrf.mxu1 }
 0x140   : > { %v3068_v18 = vpop.f32.mrf.mxu0 }
 0x141   : > { %v3070_v19 = vpop.f32.mrf.mxu1 }
 0x142   : > { %v3072_v22 = vpop.f32.mrf.mxu0 }
 0x143   : > { %v3074_v25 = vpop.f32.mrf.mxu1 }
 0x144   : > { %v3076_v23 = vpop.f32.mrf.mxu0 }
 0x145   : > { %v3078_v28 = vpop.f32.mrf.mxu1 }
 0x146   : > { %v3080_v31 = vpop.f32.mrf.mxu0 }
 0x147   : > { %v3082_v32 = vpop.f32.mrf.mxu1 }
 0x148   : > { %v3084_v34 = vpop.f32.mrf.mxu0 }
 0x149   : > { %v3086_v35 = vpop.f32.mrf.mxu1 }
 0x14a   : > { %3215 = vst [vmem:[#allocation5_spill] sm:$0xff] %v3086_v35  ;;  %v3088_v37 = vpop.f32.mrf.mxu0 }
 0x14b   : > { %3216 = vst [vmem:[#allocation6_spill] sm:$0xff] %v3088_v37  ;;  %v3090_v38 = vpop.f32.mrf.mxu1 }
 0x14c   : > { %3217 = vst [vmem:[#allocation7_spill] sm:$0xff] %v3090_v38  ;;  %v2451_v41 = vpop.f32.mrf.mxu0 }
 0x14d   : > { %v2483_v42 = vpop.f32.mrf.mxu1  ;;  %v1335_v10 = vadd.f32 %v2451_v41, %v2988_v21 }
 0x14e   : > { %v1279_v45 = vpop.f32.mrf.mxu0  ;;  %v1506_v48 = vadd.f32 %v2483_v42, %v3004_v60 }
 0x14f   : > { %v1441_v46 = vpop.f32.mrf.mxu1 }
 0x150   : > { %v2452_v49 = vpop.f32.mrf.mxu0  ;;  %v1504_v54 = vadd.f32 %v1441_v46, %v3006_v63  ;;  %v1718_v3 = vrot.slane %v1506_v48, 1  ;;  %v1334_v63 = vadd.f32 %v1279_v45, %v2990_v24 }
 0x151   : > { %v2484_v52 = vpop.f32.mrf.mxu1 }
 0x152   : > { %v1507_v61 = vadd.f32 %v2484_v52, %v3008_v2  ;;  %v1282_v62 = vpop.f32.mrf.mxu0  ;;  %v1715_v35 = vrot.slane %v1504_v54, 1 }
 0x153   : > { %v1444_v1 = vpop.f32.mrf.mxu1 }
 0x154   : > { %v1719_v4 = vrot.slane %v1507_v61, 1  ;;  %v1505_v37 = vadd.f32 %v1444_v1, %v3010_v5  ;;  %v2455_v38 = vpop.f32.mrf.mxu0 }
 0x155   : > { %v2487_v9 = vpop.f32.mrf.mxu1  ;;  %v1337_v45 = vadd.f32 %v2455_v38, %v2992_v26 }
 0x156   : > { %v1720_v60 = vsel %vm1714_vm0, %v1718_v3, %v1719_v4  ;;  %v1716_v42 = vrot.slane %v1505_v37, 1  ;;  %v1293_v49 = vpop.f32.mrf.mxu0  ;;  %v1510_v48 = vadd.f32 %v2487_v9, %v3012_v8 }
 0x157   : > { %v3099_v46 = vadd.f32 %v1720_v60, %v1335_v10  ;;  %v1457_v2 = vpop.f32.mrf.mxu1 }
 0x158   : > { %v1717_v52 = vsel %vm1714_vm0, %v1715_v35, %v1716_v42  ;;  %v2456_v61 = vpop.f32.mrf.mxu0  ;;  %v1508_v21 = vadd.f32 %v1457_v2, %v3014_v11  ;;  %v1724_v54 = vrot.slane %v1510_v48, 1  ;;  %v1336_v42 = vadd.f32 %v1293_v49, %v2994_v29 }
 0x159   : > { %v3103_v5 = vadd.f32 %v1717_v52, %v1334_v63  ;;  %v2488_v62 = vpop.f32.mrf.mxu1 }
 0x15a   : > { %v1511_v41 = vadd.f32 %v2488_v62, %v3016_v14  ;;  %v1296_v4 = vpop.f32.mrf.mxu0  ;;  %v1721_v3 = vrot.slane %v1508_v21, 1 }
 0x15b   : > { %v1460_v37 = vpop.f32.mrf.mxu1 }
 0x15c   : > { %v1725_v1 = vrot.slane %v1511_v41, 1  ;;  %v1509_v24 = vadd.f32 %v1460_v37, %v3018_v17  ;;  %v2459_v10 = vpop.f32.mrf.mxu0 }
 0x15d   : > { %v2491_v35 = vpop.f32.mrf.mxu1  ;;  %v1339_v4 = vadd.f32 %v2459_v10, %v2996_v40 }
 0x15e   : > { %v1726_v8 = vsel %vm1714_vm0, %v1724_v54, %v1725_v1  ;;  %v1722_v9 = vrot.slane %v1509_v24, 1  ;;  %v1307_v60 = vpop.f32.mrf.mxu0  ;;  %v1514_v2 = vadd.f32 %v2491_v35, %v3020_v20 }
 0x15f   : > { %v3111_v11 = vadd.f32 %v1726_v8, %v1337_v45  ;;  %v1473_v14 = vpop.f32.mrf.mxu1  ;;  %v1338_v45 = vadd.f32 %v1307_v60, %v2998_v43 }
 0x160   : > { %v1723_v63 = vsel %vm1714_vm0, %v1721_v3, %v1722_v9  ;;  %v2460_v52 = vpop.f32.mrf.mxu0  ;;  %v1512_v26 = vadd.f32 %v1473_v14, %v3022_v27  ;;  %v1730_v21 = vrot.slane %v1514_v2, 1 }
 0x161   : > { %v3115_v17 = vadd.f32 %v1723_v63, %v1336_v42  ;;  %v2492_v48 = vpop.f32.mrf.mxu1 }
 0x162   : > { %v1515_v38 = vadd.f32 %v2492_v48, %v3024_v30  ;;  %v1310_v61 = vpop.f32.mrf.mxu0  ;;  %v1727_v54 = vrot.slane %v1512_v26, 1 }
 0x163   : > { %v1476_v62 = vpop.f32.mrf.mxu1 }
 0x164   : > { %v1731_v41 = vrot.slane %v1515_v38, 1  ;;  %v1513_v29 = vadd.f32 %v1476_v62, %v3026_v33  ;;  %v2463_v49 = vpop.f32.mrf.mxu0 }
 0x165   : > { %v2495_v37 = vpop.f32.mrf.mxu1  ;;  %v1341_v52 = vadd.f32 %v2463_v49, %v3000_v50 }
 0x166   : > { %v1732_v20 = vsel %vm1714_vm0, %v1730_v21, %v1731_v41  ;;  %v1728_v1 = vrot.slane %v1513_v29, 1  ;;  %v1321_v24 = vpop.f32.mrf.mxu0  ;;  %v1518_v3 = vadd.f32 %v2495_v37, %v3028_v36  ;;  %v1152_v36 = vadd.f32 %v3062_v13, %v3060_v12 }
 0x167   : > { %v3123_v27 = vadd.f32 %v1732_v20, %v1339_v4  ;;  %v1489_v30 = vpop.f32.mrf.mxu1  ;;  %v1340_v62 = vadd.f32 %v1321_v24, %v3002_v53  ;;  %v1144_v41 = vadd.f32 %v3066_v16, %v3064_v15  ;;  %v1155_v12 = vadd.f32 %v3070_v19, %v3068_v18 }
 0x168   : > { %v1729_v35 = vsel %vm1714_vm0, %v1727_v54, %v1728_v1  ;;  %v2464_v8 = vpop.f32.mrf.mxu0  ;;  %v1516_v40 = vadd.f32 %v1489_v30, %v3030_v39  ;;  %v1736_v63 = vrot.slane %v1518_v3, 1  ;;  %v1147_v37 = vadd.f32 %v3074_v25, %v3072_v22 }
 0x169   : > { %v3127_v33 = vadd.f32 %v1729_v35, %v1338_v45  ;;  %v2496_v9 = vpop.f32.mrf.mxu1  ;;  %v1168_v22 = vadd.f32 %v3078_v28, %v3076_v23  ;;  %v1160_v23 = vadd.f32 %v3082_v32, %v3080_v31  ;;  %v3219_v32 = vld [vmem:[#allocation3_spill] sm:$0xff] }
 0x16a   : > { %v1519_v10 = vadd.f32 %v2496_v9, %v3032_v44  ;;  %v1324_v42 = vpop.f32.mrf.mxu0  ;;  %v1733_v26 = vrot.slane %v1516_v40, 1  ;;  %v1123_v44 = vadd.f32 %v3042_v57, %v3040_v56  ;;  %v1115_v56 = vadd.f32 %v3046_v59, %v3044_v58 }
 0x16b   : > { %v1492_v14 = vpop.f32.mrf.mxu1  ;;  %v1139_v58 = vadd.f32 %v3054_v7, %v3052_v6 }
 0x16c   : > { %v1737_v2 = vrot.slane %v1519_v10, 1  ;;  %v1517_v43 = vadd.f32 %v1492_v14, %v3034_v47  ;;  %v2515_v60 = vpop.f32.mrf.mxu0 }
 0x16d   : > { %v2523_v48 = vpop.f32.mrf.mxu1  ;;  %v1684_v47 = vadd.f32 %v2515_v60, %v3036_v51 }
 0x16e   : > { %v1738_v38 = vsel %vm1714_vm0, %v1736_v63, %v1737_v2  ;;  %v1734_v61 = vrot.slane %v1517_v43, 1  ;;  %v1619_v39 = vpop.f32.mrf.mxu0  ;;  %v1692_v29 = vadd.f32 %v2523_v48, %v1152_v36  ;;  %v3218_v63 = vld [vmem:[#allocation5_spill] sm:$0xff]  ;;  %v3221_v48 = vld [vmem:[#allocation2_spill] sm:$0xff] }
 0x16f   : > { %v3139_v21 = vadd.f32 %v1738_v38, %v1341_v52  ;;  %v1651_v50 = vpop.f32.mrf.mxu1  ;;  %v1682_v57 = vadd.f32 %v1619_v39, %v3038_v55  ;;  %v1775_v19 = vrot.slane %v1684_v47, 2  ;;  %v1171_v2 = vadd.f32 %v3218_v63, %v3084_v34  ;;  %v3222_v38 = vld [vmem:[#allocation6_spill] sm:$0xff] }
 0x170   : > { %v1735_v13 = vsel %vm1714_vm0, %v1733_v26, %v1734_v61  ;;  %v2516_v49 = vpop.f32.mrf.mxu0  ;;  %v1690_v15 = vadd.f32 %v1651_v50, %v1144_v41  ;;  %v1787_v59 = vrot.slane %v1692_v29, 2  ;;  %v3223_v61 = vld [vmem:[#allocation7_spill] sm:$0xff] }
 0x171   : > { %v3149_v53 = vadd.f32 %v1735_v13, %v1340_v62  ;;  %v1685_v4 = vadd.f32 %v2516_v49, %v1123_v44  ;;  %v2524_v51 = vpop.f32.mrf.mxu1  ;;  %v1772_v25 = vrot.slane %v1682_v57, 2  ;;  %v1163_v39 = vadd.f32 %v3223_v61, %v3222_v38 }
 0x172   : > { %v1693_v16 = vadd.f32 %v2524_v51, %v1155_v12  ;;  %v1622_v18 = vpop.f32.mrf.mxu0  ;;  %v1784_v8 = vrot.slane %v1690_v15, 2 }
 0x173   : > { %v1776_v54 = vrot.slane %v1685_v4, 2  ;;  %v1683_v20 = vadd.f32 %v1622_v18, %v1115_v56  ;;  %v1654_v1 = vpop.f32.mrf.mxu1 }
 0x174   : > { %v1788_v55 = vrot.slane %v1693_v16, 2  ;;  %v1691_v24 = vadd.f32 %v1654_v1, %v1147_v37  ;;  %v2519_v45 = vpop.f32.mrf.mxu0 }
 0x175   : > { %v1777_v30 = vsel %vm1771_vm1, %v1775_v19, %v1776_v54  ;;  %v1773_v35 = vrot.slane %v1683_v20, 2  ;;  %v2527_v3 = vpop.f32.mrf.mxu1  ;;  %v1688_v42 = vadd.f32 %v2519_v45, %v3048_v0 }
 0x176   : > { %v1805_v6 = vadd.f32 %v1777_v30, %v3099_v46  ;;  %v1789_v7 = vsel %vm1771_vm1, %v1787_v59, %v1788_v55  ;;  %v1785_v9 = vrot.slane %v1691_v24, 2  ;;  %v1635_v40 = vpop.f32.mrf.mxu0  ;;  %v1696_v60 = vadd.f32 %v2527_v3, %v1168_v22 }
 0x177   : > { %v1809_v28 = vadd.f32 %v1789_v7, %v3123_v27  ;;  %v1774_v10 = vsel %vm1771_vm1, %v1772_v25, %v1773_v35  ;;  %v1667_v14 = vpop.f32.mrf.mxu1  ;;  %v3220_v27 = vld [vmem:[#allocation4_spill] sm:$0xff]  ;;  %v1686_v36 = vadd.f32 %v1635_v40, %v3221_v48  ;;  %v1781_v47 = vrot.slane %v1688_v42, 2 }
 0x178   : > { %1814 = vst.msk [vmem:[%s3162_s7 + $0x8] sm:$0xff] %vm1812_vm2, %v1805_v6  ;;  %v1804_v46 = vadd.f32 %v1774_v10, %v3103_v5  ;;  %v1786_v43 = vsel %vm1771_vm1, %v1784_v8, %v1785_v9  ;;  %v2520_v31 = vpop.f32.mrf.mxu0  ;;  %v1131_v52 = vadd.f32 %v3220_v27, %v3219_v32  ;;  %v1694_v5 = vadd.f32 %v1667_v14, %v1160_v23 }
 0x179   : > { %1818 = vst.msk [vmem:[%s3162_s7 + $0x28] sm:$0xff] %vm1812_vm2, %v1809_v28  ;;  %v1808_v0 = vadd.f32 %v1786_v43, %v3127_v33  ;;  %v1689_v26 = vadd.f32 %v2520_v31, %v1139_v58  ;;  %v2528_v34 = vpop.f32.mrf.mxu1  ;;  %v1793_v33 = vrot.slane %v1696_v60, 2  ;;  %v1778_v49 = vrot.slane %v1686_v36, 2 }
 0x17a   : > { %1813 = vst.msk [vmem:[%s3162_s7] sm:$0xff] %vm1812_vm2, %v1804_v46  ;;  %v1697_v44 = vadd.f32 %v2528_v34, %v1171_v2  ;;  %v1638_v62 = vpop.f32.mrf.mxu0  ;;  %v1790_v4 = vrot.slane %v1694_v5, 2 }
 0x17b   : > { %1817 = vst.msk [vmem:[%s3162_s7 + $0x20] sm:$0xff] %vm1812_vm2, %v1808_v0  ;;  %v1782_v50 = vrot.slane %v1689_v26, 2  ;;  %v1687_v41 = vadd.f32 %v1638_v62, %v1131_v52  ;;  %v1670_v12 = vpop.f32.mrf.mxu1 }
 0x17c   : > { %v1794_v13 = vrot.slane %v1697_v44, 2  ;;  %v1695_v29 = vadd.f32 %v1670_v12, %v1163_v39 }
 0x17d   : > { %v1783_v56 = vsel %vm1771_vm1, %v1781_v47, %v1782_v50  ;;  %v1779_v57 = vrot.slane %v1687_v41, 2 }
 0x17e   : > { %v1807_v51 = vadd.f32 %v1783_v56, %v3111_v11  ;;  %v1795_v37 = vsel %vm1771_vm1, %v1793_v33, %v1794_v13  ;;  %v1791_v15 = vrot.slane %v1695_v29, 2 }
 0x17f   : > { %v1811_v16 = vadd.f32 %v1795_v37, %v3139_v21  ;;  %v1780_v18 = vsel %vm1771_vm1, %v1778_v49, %v1779_v57 }
 0x180   : > { %1816 = vst.msk [vmem:[%s3162_s7 + $0x18] sm:$0xff] %vm1812_vm2, %v1807_v51  ;;  %v1806_v19 = vadd.f32 %v1780_v18, %v3115_v17  ;;  %v1792_v54 = vsel %vm1771_vm1, %v1790_v4, %v1791_v15 }
 0x181   : > { %1820 = vst.msk [vmem:[%s3162_s7 + $0x38] sm:$0xff] %vm1812_vm2, %v1811_v16  ;;  %v1810_v20 = vadd.f32 %v1792_v54, %v3149_v53 }
 0x182   : > { %1815 = vst.msk [vmem:[%s3162_s7 + $0x10] sm:$0xff] %vm1812_vm2, %v1806_v19 }
 0x183   : > { %1819 = vst.msk [vmem:[%s3162_s7 + $0x30] sm:$0xff] %vm1812_vm2, %v1810_v20 }
 0x184 PF: > { %s12_s9 = sadd.s32 1, %s2642_s9  }
 0x185   : > { %p9_p4 = scmp.ge.s32.totalorder %s12_s9, 4  }
 0x187   :  { %11 = sbr.rel (!%p9_p4) target bundleno = 1 (0x1), region = 66 }

// kernel: heatmap_forward.32
= control target key start
LH: loop header
LB: loop body
LE: loop exit
PB: predicated region body
PF: predicated region fallthrough
CT: control target
= control target key end

     0   :  { %s381_s1 = inlined_call_operand.vmem [shape: bf16[128,128], index: 1, kind: input, shape index: {}]   ;;  %s382_s0 = inlined_call_operand.vmem [shape: f32[32,128], index: 0, kind: input, shape index: {}]   ;;  %s383_s2 = inlined_call_operand.vmem [shape: f32[1,128], index: 2, kind: input, shape index: {}]   ;;  %s384_s3 = inlined_call_operand.vmem [shape: f32[1,128], index: 3, kind: input, shape index: {}]   ;;  %s385_s4 = inlined_call_operand.vmem [shape: f32[1,128], index: 4, kind: input, shape index: {}]   ;;  %s386_s5 = inlined_call_operand.vmem [shape: bf16[32,128], index: 5, kind: output, shape index: {}]  }
   0x1   :  { %v292_v0 = vld [vmem:[%s381_s1 + $0x38] sm:$0xff]   ;;  %v293_v1 = vld [vmem:[%s381_s1 + $0x30] sm:$0xff]   ;;  %v294_v2 = vld [vmem:[%s381_s1 + $0x28] sm:$0xff]  }
   0x2   :  { %272 = vmatprep.subr.bf16.mxu0 %v292_v0  ;;  %v295_v3 = vld [vmem:[%s381_s1 + $0x20] sm:$0xff]   ;;  %v30_v5 = vld [vmem:[%s382_s0 + $0x8] sm:$0xff]  ;;  %v296_v12 = vld [vmem:[%s381_s1 + $0x18] sm:$0xff]  }
   0x3   :  { %273 = vmatpush3.bf16.msra.mxu0 %v292_v0  ;;  %v29_v4 = vld [vmem:[%s382_s0] sm:$0xff]  ;;  %v31_v16 = vld [vmem:[%s382_s0 + $0x10] sm:$0xff]  ;;  %v32_v17 = vld [vmem:[%s382_s0 + $0x18] sm:$0xff] }
   0x4   :  { %274 = vmatprep.subr.bf16.mxu0 %v293_v1  ;;  %v232_v6 = vld [vmem:[%s383_s2] ss:$0 sm:$0xff]  ;;  %v297_v18 = vld [vmem:[%s381_s1 + $0x10] sm:$0xff]   ;;  %v298_v21 = vld [vmem:[%s381_s1 + $0x8] sm:$0xff]  }
   0x5   :  { %v40_v7 = vmul.f32 %v232_v6, %v29_v4  ;;  %v41_v8 = vmul.f32 %v232_v6, %v30_v5  ;;  %v233_v9 = vld [vmem:[%s384_s3] ss:$0 sm:$0xff]  ;;  %v42_v19 = vmul.f32 %v232_v6, %v31_v16  ;;  %v43_v20 = vmul.f32 %v232_v6, %v32_v17 }
   0x6   :  { %v299_v24 = vld [vmem:[%s381_s1] sm:$0xff]  }
   0x7   :  { %275 = vmatpush3.bf16.msra.mxu0 %v293_v1  ;;  %v51_v10 = vadd.f32 %v233_v9, %v40_v7  ;;  %v52_v11 = vadd.f32 %v233_v9, %v41_v8  ;;  %v53_v22 = vadd.f32 %v233_v9, %v42_v19  ;;  %v54_v23 = vadd.f32 %v233_v9, %v43_v20  ;;  %v242_v29 = vld [vmem:[%s385_s4] ss:$0 sm:$0xff] }
   0x8   :  { %276 = vmatprep.subr.bf16.mxu0 %v294_v2 }
   0x9   :  { %v55_v13 = vmax.f32 %v51_v10, 0.0  ;;  %v56_v14 = vmax.f32 %v52_v11, 0.0  ;;  %v57_v25 = vmax.f32 %v53_v22, 0.0  ;;  %v58_v26 = vmax.f32 %v54_v23, 0.0 }
   0xb   :  { %277 = vmatpush3.bf16.msra.mxu0 %v294_v2  ;;  %v59_v15 = vpack.c.bf16 %v56_v14, %v55_v13  ;;  %v60_v27 = vpack.c.bf16 %v58_v26, %v57_v25 }
   0xc   :  { %278 = vmatprep.subr.bf16.mxu0 %v295_v3 }
   0xd   :  { %288 = vmatprep.mubr.bf16.mxu0 %v59_v15 }
   0xf   :  { %279 = vmatpush3.bf16.msra.mxu0 %v295_v3 }
  0x10   :  { %280 = vmatprep.subr.bf16.mxu0 %v296_v12 }
  0x13   :  { %281 = vmatpush3.bf16.msra.mxu0 %v296_v12 }
  0x14   :  { %282 = vmatprep.subr.bf16.mxu0 %v297_v18 }
  0x17   :  { %283 = vmatpush3.bf16.msra.mxu0 %v297_v18 }
  0x18   :  { %284 = vmatprep.subr.bf16.mxu0 %v298_v21 }
  0x1b   :  { %285 = vmatpush3.bf16.msra.mxu0 %v298_v21 }
  0x1c   :  { %286 = vmatprep.subr.bf16.mxu0 %v299_v24 }
  0x1f   :  { %287 = vmatpush3.bf16.msra.mxu0 %v299_v24 }
  0x22   :  { %289 = vmatmul.mubr.bf16.vlgmr.msra.gmra.mxu0 %v60_v27 }
  0xe2   :  { %v290_v28 = vpop.f32.mrf.mxu0 }
  0xe3   :  { %v202_v31 = vadd.f32 %v290_v28, %v242_v29 }
  0xe4   :  { %v163_v30 = vpop.f32.mrf.mxu0 }
  0xe5   :  { %v200_v33 = vadd.f32 %v242_v29, %v163_v30  ;;  %v206_v36 = vmax.f32 %v202_v31, 0.0 }
  0xe6   :  { %v291_v32 = vpop.f32.mrf.mxu0 }
  0xe7   :  { %v203_v34 = vadd.f32 %v291_v32, %v242_v29  ;;  %v204_v39 = vmax.f32 %v200_v33, 0.0 }
  0xe8   :  { %v166_v35 = vpop.f32.mrf.mxu0 }
  0xe9   :  { %v207_v37 = vmax.f32 %v203_v34, 0.0  ;;  %v201_v38 = vadd.f32 %v242_v29, %v166_v35 }
  0xeb   :  { %v259_v40 = vpack.c.bf16 %v207_v37, %v206_v36  ;;  %v205_v41 = vmax.f32 %v201_v38, 0.0 }
  0xed   :  { %261 = vst [vmem:[%s386_s5 + $0x8] sm:$0xff] %v259_v40   ;;  %v254_v42 = vpack.c.bf16 %v205_v41, %v204_v39 }
  0xef   :  { %255 = vst [vmem:[%s386_s5] sm:$0xff] %v254_v42  }

// kernel: heatmap_forward.33
= control target key start
LH: loop header
LB: loop body
LE: loop exit
PB: predicated region body
PF: predicated region fallthrough
CT: control target
= control target key end

     0   :  { %s2097_s9 = smov 0   ;;  %s2395_s0 = inlined_call_operand.vmem [shape: bf16[2,6,16,128], index: 0, kind: input, shape index: {}]   ;;  %s2396_s1 = inlined_call_operand.vmem [shape: bf16[9,128,32], index: 1, kind: input, shape index: {}]   ;;  %s2397_s2 = inlined_call_operand.vmem [shape: f32[2,4,4,32], index: 2, kind: output, shape index: {}]  }
   0x1 LB: > { %s1430_s10 = sadd.s32 4294967295, %s2080_s9   ;;  %p1434_p0 = scmp.ge.s32.totalorder %s2080_s9, 1  ;;  %s2080_s9 = sphi %s2097_s9, %s12_s9  }
   0x2   : > { %p112_p1 = scmp.lt.s32.totalorder %s2080_s9, 3 }
   0x4   : > { %p113_p2 = pnand %p1434_p0, %p112_p1 }
   0x5   : > { %p134_p3 = scmp.lt.s32.totalorder (!%p113_p2), %s1430_s10, 1 }
   0x6   : > { %116 = sbr.rel (%p113_p2) target bundleno = 375 (0x177), region = 28 }
   0xb   : > { %v1996_v0 = vld [vmem:[%s2396_s1 + $0xf8] sm:$0xff]   ;;  %v1998_v2 = vld [vmem:[%s2396_s1 + $0xf0] sm:$0xff]   ;;  %v2000_v4 = vld [vmem:[%s2396_s1 + $0xe8] sm:$0xff]   ;;  %s2399_s10 = smov (!%p134_p3, %s1430_s10), 1  ;;  %vm1370_vm0 = vcmask 257024  }
   0xc   : > { %v1997_v1 = vld [vmem:[%s2396_s1 + $0x38] sm:$0xff]   ;;  %1755 = vmatprep.subr.bf16.mxu0 %v1996_v0  ;;  %v1999_v3 = vld [vmem:[%s2396_s1 + $0x30] sm:$0xff]   ;;  %v2001_v5 = vld [vmem:[%s2396_s1 + $0x28] sm:$0xff]   ;;  %s1987_s27 = smul.u32 48, %s2399_s10  ;;  %s1646_s4 = sshll.u32 %s2399_s10, 4 }
   0xd   : > { %1779 = vmatprep.subr.bf16.mxu1 %v1997_v1  ;;  %1756 = vmatpush3.bf16.msra.mxu0 %v1996_v0  ;;  %v2002_v6 = vld [vmem:[%s2396_s1 + $0xe0] sm:$0xff]   ;;  %v2004_v8 = vld [vmem:[%s2396_s1 + $0xd8] sm:$0xff]   ;;  %v2006_v10 = vld [vmem:[%s2396_s1 + $0xd0] sm:$0xff]   ;;  %s143_s8 = scalar_lea.vmem %s2397_s2, %s1646_s4 }
   0xe   : > { %1780 = vmatpush3.bf16.msra.mxu1 %v1997_v1  ;;  %1757 = vmatprep.subr.bf16.mxu0 %v1998_v2  ;;  %v2003_v7 = vld [vmem:[%s2396_s1 + $0x20] sm:$0xff]   ;;  %v2005_v9 = vld [vmem:[%s2396_s1 + $0x18] sm:$0xff]   ;;  %s2141_s6 = scalar_lea.vmem %s2395_s0, %s1987_s27  ;;  %v2007_v11 = vld [vmem:[%s2396_s1 + $0x10] sm:$0xff]  }
   0xf   : > { %1781 = vmatprep.subr.bf16.mxu1 %v1999_v3  ;;  %v2150_v12 = vld [vmem:[%s2141_s6 + $0x8] sm:$0xff]   ;;  %v2153_v13 = vld [vmem:[%s2141_s6] sm:$0xff]   ;;  %v2015_v18 = vld [vmem:[%s2396_s1 + $0x138] sm:$0xff]  }
  0x10   : > { %1771 = vmatprep.mubr.bf16.mxu0 %v2150_v12  ;;  %1795 = vmatprep.mubr.bf16.mxu1 %v2153_v13  ;;  %v2008_v14 = vld [vmem:[%s2396_s1 + $0xc8] sm:$0xff]   ;;  %v2010_v16 = vld [vmem:[%s2396_s1 + $0xc0] sm:$0xff]   ;;  %v2016_v19 = vld [vmem:[%s2396_s1 + $0x78] sm:$0xff]  }
  0x11   : > { %1758 = vmatpush3.bf16.msra.mxu0 %v1998_v2  ;;  %v2009_v15 = vld [vmem:[%s2396_s1 + $0x8] sm:$0xff]   ;;  %v2011_v17 = vld [vmem:[%s2396_s1] sm:$0xff]   ;;  %v2176_v20 = vld [vmem:[%s2141_s6 + $0x10] sm:$0xff]  }
  0x12   : > { %1782 = vmatpush3.bf16.msra.mxu1 %v1999_v3  ;;  %1759 = vmatprep.subr.bf16.mxu0 %v2000_v4  ;;  %v2017_v21 = vld [vmem:[%s2396_s1 + $0x130] sm:$0xff]   ;;  %v2185_v23 = vld [vmem:[%s2141_s6 + $0x18] sm:$0xff]   ;;  %v2019_v24 = vld [vmem:[%s2396_s1 + $0x128] sm:$0xff]  }
  0x13   : > { %1783 = vmatprep.subr.bf16.mxu1 %v2001_v5  ;;  %v2018_v22 = vld [vmem:[%s2396_s1 + $0x70] sm:$0xff]   ;;  %v2020_v25 = vld [vmem:[%s2396_s1 + $0x68] sm:$0xff]   ;;  %v2198_v26 = vld [vmem:[%s2141_s6 + $0x20] sm:$0xff]  }
  0x14   : > { %v2021_v27 = vld [vmem:[%s2396_s1 + $0x120] sm:$0xff]   ;;  %v2023_v29 = vld [vmem:[%s2396_s1 + $0x118] sm:$0xff]   ;;  %v2027_v31 = vld [vmem:[%s2396_s1 + $0x110] sm:$0xff]  }
  0x15   : > { %1760 = vmatpush3.bf16.msra.mxu0 %v2000_v4  ;;  %v2022_v28 = vld [vmem:[%s2396_s1 + $0x60] sm:$0xff]   ;;  %v2024_v30 = vld [vmem:[%s2396_s1 + $0x58] sm:$0xff]   ;;  %v2028_v32 = vld [vmem:[%s2396_s1 + $0x50] sm:$0xff]  }
  0x16   : > { %1784 = vmatpush3.bf16.msra.mxu1 %v2001_v5  ;;  %1761 = vmatprep.subr.bf16.mxu0 %v2002_v6  ;;  %v2029_v33 = vld [vmem:[%s2396_s1 + $0x108] sm:$0xff]   ;;  %v2031_v35 = vld [vmem:[%s2396_s1 + $0x100] sm:$0xff]   ;;  %v2033_v37 = vld [vmem:[%s2396_s1 + $0x178] sm:$0xff]  }
  0x17   : > { %1785 = vmatprep.subr.bf16.mxu1 %v2003_v7  ;;  %v2030_v34 = vld [vmem:[%s2396_s1 + $0x48] sm:$0xff]   ;;  %v2032_v36 = vld [vmem:[%s2396_s1 + $0x40] sm:$0xff]   ;;  %v2034_v38 = vld [vmem:[%s2396_s1 + $0xb8] sm:$0xff]  }
  0x18   : > { %v2035_v39 = vld [vmem:[%s2396_s1 + $0x170] sm:$0xff]   ;;  %v2037_v41 = vld [vmem:[%s2396_s1 + $0x168] sm:$0xff]   ;;  %v2039_v43 = vld [vmem:[%s2396_s1 + $0x160] sm:$0xff]  }
  0x19   : > { %1762 = vmatpush3.bf16.msra.mxu0 %v2002_v6  ;;  %v2036_v40 = vld [vmem:[%s2396_s1 + $0xb0] sm:$0xff]   ;;  %v2038_v42 = vld [vmem:[%s2396_s1 + $0xa8] sm:$0xff]   ;;  %v2040_v44 = vld [vmem:[%s2396_s1 + $0xa0] sm:$0xff]  }
  0x1a   : > { %1786 = vmatpush3.bf16.msra.mxu1 %v2003_v7  ;;  %1763 = vmatprep.subr.bf16.mxu0 %v2004_v8  ;;  %v2041_v45 = vld [vmem:[%s2396_s1 + $0x158] sm:$0xff]   ;;  %v2043_v47 = vld [vmem:[%s2396_s1 + $0x150] sm:$0xff]   ;;  %v2045_v49 = vld [vmem:[%s2396_s1 + $0x148] sm:$0xff]  }
  0x1b   : > { %1787 = vmatprep.subr.bf16.mxu1 %v2005_v9  ;;  %v2042_v46 = vld [vmem:[%s2396_s1 + $0x98] sm:$0xff]   ;;  %v2044_v48 = vld [vmem:[%s2396_s1 + $0x90] sm:$0xff]   ;;  %v2046_v50 = vld [vmem:[%s2396_s1 + $0x88] sm:$0xff]  }
  0x1c   : > { %v2047_v51 = vld [vmem:[%s2396_s1 + $0x140] sm:$0xff]   ;;  %v2049_v53 = vld [vmem:[%s2396_s1 + $0x1b8] sm:$0xff]   ;;  %v2051_v55 = vld [vmem:[%s2396_s1 + $0x1b0] sm:$0xff]  }
  0x1d   : > { %1764 = vmatpush3.bf16.msra.mxu0 %v2004_v8  ;;  %v2048_v52 = vld [vmem:[%s2396_s1 + $0x80] sm:$0xff]   ;;  %v2050_v54 = vld [vmem:[%s2396_s1 + $0x1f8] sm:$0xff]   ;;  %v2052_v56 = vld [vmem:[%s2396_s1 + $0x1f0] sm:$0xff]  }
  0x1e   : > { %1788 = vmatpush3.bf16.msra.mxu1 %v2005_v9  ;;  %1765 = vmatprep.subr.bf16.mxu0 %v2006_v10  ;;  %v2053_v57 = vld [vmem:[%s2396_s1 + $0x1a8] sm:$0xff]   ;;  %v2055_v59 = vld [vmem:[%s2396_s1 + $0x1a0] sm:$0xff]   ;;  %v2057_v61 = vld [vmem:[%s2396_s1 + $0x198] sm:$0xff]  }
  0x1f   : > { %1789 = vmatprep.subr.bf16.mxu1 %v2007_v11  ;;  %v2054_v58 = vld [vmem:[%s2396_s1 + $0x1e8] sm:$0xff]   ;;  %v2056_v60 = vld [vmem:[%s2396_s1 + $0x1e0] sm:$0xff]   ;;  %v2058_v62 = vld [vmem:[%s2396_s1 + $0x1d8] sm:$0xff]  }
  0x20   : > { %v2059_v63 = vld [vmem:[%s2396_s1 + $0x190] sm:$0xff]   ;;  %v2061_v1 = vld [vmem:[%s2396_s1 + $0x188] sm:$0xff]   ;;  %v2063_v3 = vld [vmem:[%s2396_s1 + $0x180] sm:$0xff]  }
  0x21   : > { %1766 = vmatpush3.bf16.msra.mxu0 %v2006_v10  ;;  %v2060_v0 = vld [vmem:[%s2396_s1 + $0x1d0] sm:$0xff]   ;;  %v2062_v2 = vld [vmem:[%s2396_s1 + $0x1c8] sm:$0xff]   ;;  %v2064_v4 = vld [vmem:[%s2396_s1 + $0x1c0] sm:$0xff]  }
  0x22   : > { %1790 = vmatpush3.bf16.msra.mxu1 %v2007_v11  ;;  %1767 = vmatprep.subr.bf16.mxu0 %v2008_v14  ;;  %v2065_v5 = vld [vmem:[%s2396_s1 + $0x238] sm:$0xff]   ;;  %v2066_v6 = vld [vmem:[%s2396_s1 + $0x230] sm:$0xff]   ;;  %v2068_v7 = vld [vmem:[%s2396_s1 + $0x228] sm:$0xff]  }
  0x23   : > { %1791 = vmatprep.subr.bf16.mxu1 %v2009_v15  ;;  %v2067_v8 = vld [vmem:[%s2141_s6 + $0x28] sm:$0xff]   ;;  %v2069_v9 = vld [vmem:[%s2396_s1 + $0x220] sm:$0xff]   ;;  %v2070_v10 = vld [vmem:[%s2396_s1 + $0x218] sm:$0xff]  }
  0x24   : > { %v2071_v11 = vld [vmem:[%s2396_s1 + $0x210] sm:$0xff]  }
  0x25   : > { %1768 = vmatpush3.bf16.msra.mxu0 %v2008_v14 }
  0x26   : > { %1792 = vmatpush3.bf16.msra.mxu1 %v2009_v15  ;;  %1769 = vmatprep.subr.bf16.mxu0 %v2010_v16 }
  0x27   : > { %1793 = vmatprep.subr.bf16.mxu1 %v2011_v17 }
  0x29   : > { %1770 = vmatpush3.bf16.msra.mxu0 %v2010_v16 }
  0x2a   : > { %1794 = vmatpush3.bf16.msra.mxu1 %v2011_v17  ;;  %1803 = vmatprep.subr.bf16.mxu0 %v2015_v18 }
  0x2b   : > { %1827 = vmatprep.subr.bf16.mxu1 %v2016_v19 }
  0x2c   : > { %1772 = vmatmul.mubr.bf16.vlgmr.msra.gmra.mxu0 %v2176_v20 }
  0x2d   : > { %1796 = vmatmul.mubr.bf16.vlgmr.msra.gmra.mxu1 %v2150_v12  ;;  %1804 = vmatpush3.bf16.msra.mxu0 %v2015_v18 }
  0x2e   : > { %1828 = vmatpush3.bf16.msra.mxu1 %v2016_v19  ;;  %1805 = vmatprep.subr.bf16.mxu0 %v2017_v21 }
  0x2f   : > { %1829 = vmatprep.subr.bf16.mxu1 %v2018_v22  ;;  %1775 = vmatprep.mubr.bf16.mxu0 %v2185_v23 }
  0x30   : > { %1799 = vmatprep.mubr.bf16.mxu1 %v2176_v20 }
  0x31   : > { %1806 = vmatpush3.bf16.msra.mxu0 %v2017_v21 }
  0x32   : > { %1830 = vmatpush3.bf16.msra.mxu1 %v2018_v22  ;;  %1807 = vmatprep.subr.bf16.mxu0 %v2019_v24 }
  0x33   : > { %1831 = vmatprep.subr.bf16.mxu1 %v2020_v25 }
  0x34   : > { %1776 = vmatmul.mubr.bf16.gmra.mxu0 %v2198_v26 }
  0x35   : > { %1808 = vmatpush3.bf16.msra.mxu0 %v2019_v24  ;;  %1800 = vmatmul.mubr.bf16.gmra.mxu1 %v2185_v23 }
  0x36   : > { %1832 = vmatpush3.bf16.msra.mxu1 %v2020_v25  ;;  %1809 = vmatprep.subr.bf16.mxu0 %v2021_v27 }
  0x37   : > { %1833 = vmatprep.subr.bf16.mxu1 %v2022_v28  ;;  %1819 = vmatprep.mubr.bf16.mxu0 %v2150_v12 }
  0x38   : > { %1843 = vmatprep.mubr.bf16.mxu1 %v2153_v13 }
  0x39   : > { %1810 = vmatpush3.bf16.msra.mxu0 %v2021_v27 }
  0x3a   : > { %1834 = vmatpush3.bf16.msra.mxu1 %v2022_v28  ;;  %1811 = vmatprep.subr.bf16.mxu0 %v2023_v29 }
  0x3b   : > { %1835 = vmatprep.subr.bf16.mxu1 %v2024_v30 }
  0x3d   : > { %1812 = vmatpush3.bf16.msra.mxu0 %v2023_v29 }
  0x3e   : > { %1836 = vmatpush3.bf16.msra.mxu1 %v2024_v30  ;;  %1813 = vmatprep.subr.bf16.mxu0 %v2027_v31 }
  0x3f   : > { %1837 = vmatprep.subr.bf16.mxu1 %v2028_v32 }
  0x41   : > { %1814 = vmatpush3.bf16.msra.mxu0 %v2027_v31 }
  0x42   : > { %1838 = vmatpush3.bf16.msra.mxu1 %v2028_v32  ;;  %1815 = vmatprep.subr.bf16.mxu0 %v2029_v33 }
  0x43   : > { %1839 = vmatprep.subr.bf16.mxu1 %v2030_v34 }
  0x45   : > { %1816 = vmatpush3.bf16.msra.mxu0 %v2029_v33 }
  0x46   : > { %1840 = vmatpush3.bf16.msra.mxu1 %v2030_v34  ;;  %1817 = vmatprep.subr.bf16.mxu0 %v2031_v35 }
  0x47   : > { %1841 = vmatprep.subr.bf16.mxu1 %v2032_v36 }
  0x49   : > { %1818 = vmatpush3.bf16.msra.mxu0 %v2031_v35 }
  0x4a   : > { %1842 = vmatpush3.bf16.msra.mxu1 %v2032_v36  ;;  %1851 = vmatprep.subr.bf16.mxu0 %v2033_v37 }
  0x4b   : > { %1875 = vmatprep.subr.bf16.mxu1 %v2034_v38 }
  0x4c   : > { %1820 = vmatmul.mubr.bf16.vlgmr.msra.gmra.mxu0 %v2176_v20 }
  0x4d   : > { %1844 = vmatmul.mubr.bf16.vlgmr.msra.gmra.mxu1 %v2150_v12  ;;  %1852 = vmatpush3.bf16.msra.mxu0 %v2033_v37 }
  0x4e   : > { %1876 = vmatpush3.bf16.msra.mxu1 %v2034_v38  ;;  %1853 = vmatprep.subr.bf16.mxu0 %v2035_v39 }
  0x4f   : > { %1877 = vmatprep.subr.bf16.mxu1 %v2036_v40  ;;  %1823 = vmatprep.mubr.bf16.mxu0 %v2185_v23 }
  0x50   : > { %1847 = vmatprep.mubr.bf16.mxu1 %v2176_v20 }
  0x51   : > { %1854 = vmatpush3.bf16.msra.mxu0 %v2035_v39 }
  0x52   : > { %1878 = vmatpush3.bf16.msra.mxu1 %v2036_v40  ;;  %1855 = vmatprep.subr.bf16.mxu0 %v2037_v41 }
  0x53   : > { %1879 = vmatprep.subr.bf16.mxu1 %v2038_v42 }
  0x54   : > { %1824 = vmatmul.mubr.bf16.gmra.mxu0 %v2198_v26 }
  0x55   : > { %1856 = vmatpush3.bf16.msra.mxu0 %v2037_v41  ;;  %1848 = vmatmul.mubr.bf16.gmra.mxu1 %v2185_v23 }
  0x56   : > { %1880 = vmatpush3.bf16.msra.mxu1 %v2038_v42  ;;  %1857 = vmatprep.subr.bf16.mxu0 %v2039_v43 }
  0x57   : > { %1881 = vmatprep.subr.bf16.mxu1 %v2040_v44  ;;  %1867 = vmatprep.mubr.bf16.mxu0 %v2150_v12 }
  0x58   : > { %1891 = vmatprep.mubr.bf16.mxu1 %v2153_v13  ;;  %v2073_v13 = vld [vmem:[%s2396_s1 + $0x200] sm:$0xff]  }
  0x59   : > { %1858 = vmatpush3.bf16.msra.mxu0 %v2039_v43 }
  0x5a   : > { %1882 = vmatpush3.bf16.msra.mxu1 %v2040_v44  ;;  %1859 = vmatprep.subr.bf16.mxu0 %v2041_v45 }
  0x5b   : > { %1883 = vmatprep.subr.bf16.mxu1 %v2042_v46 }
  0x5d   : > { %1860 = vmatpush3.bf16.msra.mxu0 %v2041_v45 }
  0x5e   : > { %1884 = vmatpush3.bf16.msra.mxu1 %v2042_v46  ;;  %1861 = vmatprep.subr.bf16.mxu0 %v2043_v47 }
  0x5f   : > { %1885 = vmatprep.subr.bf16.mxu1 %v2044_v48 }
  0x61   : > { %1862 = vmatpush3.bf16.msra.mxu0 %v2043_v47 }
  0x62   : > { %1886 = vmatpush3.bf16.msra.mxu1 %v2044_v48  ;;  %1863 = vmatprep.subr.bf16.mxu0 %v2045_v49 }
  0x63   : > { %1887 = vmatprep.subr.bf16.mxu1 %v2046_v50 }
  0x65   : > { %1864 = vmatpush3.bf16.msra.mxu0 %v2045_v49 }
  0x66   : > { %1888 = vmatpush3.bf16.msra.mxu1 %v2046_v50  ;;  %1865 = vmatprep.subr.bf16.mxu0 %v2047_v51 }
  0x67   : > { %1889 = vmatprep.subr.bf16.mxu1 %v2048_v52 }
  0x69   : > { %1866 = vmatpush3.bf16.msra.mxu0 %v2047_v51 }
  0x6a   : > { %1890 = vmatpush3.bf16.msra.mxu1 %v2048_v52  ;;  %1899 = vmatprep.subr.bf16.mxu0 %v2049_v53 }
  0x6b   : > { %1923 = vmatprep.subr.bf16.mxu1 %v2050_v54 }
  0x6c   : > { %1868 = vmatmul.mubr.bf16.vlgmr.msra.gmra.mxu0 %v2176_v20 }
  0x6d   : > { %1892 = vmatmul.mubr.bf16.vlgmr.msra.gmra.mxu1 %v2150_v12  ;;  %1900 = vmatpush3.bf16.msra.mxu0 %v2049_v53  ;;  %v2072_v12 = vld [vmem:[%s2396_s1 + $0x208] sm:$0xff]  }
  0x6e   : > { %1924 = vmatpush3.bf16.msra.mxu1 %v2050_v54  ;;  %1901 = vmatprep.subr.bf16.mxu0 %v2051_v55 }
  0x6f   : > { %1925 = vmatprep.subr.bf16.mxu1 %v2052_v56  ;;  %1871 = vmatprep.mubr.bf16.mxu0 %v2185_v23 }
  0x70   : > { %1895 = vmatprep.mubr.bf16.mxu1 %v2176_v20 }
  0x71   : > { %1902 = vmatpush3.bf16.msra.mxu0 %v2051_v55 }
  0x72   : > { %1926 = vmatpush3.bf16.msra.mxu1 %v2052_v56  ;;  %1903 = vmatprep.subr.bf16.mxu0 %v2053_v57 }
  0x73   : > { %1927 = vmatprep.subr.bf16.mxu1 %v2054_v58 }
  0x74   : > { %1872 = vmatmul.mubr.bf16.gmra.mxu0 %v2198_v26 }
  0x75   : > { %1904 = vmatpush3.bf16.msra.mxu0 %v2053_v57  ;;  %1896 = vmatmul.mubr.bf16.gmra.mxu1 %v2185_v23 }
  0x76   : > { %1928 = vmatpush3.bf16.msra.mxu1 %v2054_v58  ;;  %1905 = vmatprep.subr.bf16.mxu0 %v2055_v59 }
  0x77   : > { %1929 = vmatprep.subr.bf16.mxu1 %v2056_v60  ;;  %1915 = vmatprep.mubr.bf16.mxu0 %v2176_v20 }
  0x78   : > { %1939 = vmatprep.mubr.bf16.mxu1 %v2176_v20 }
  0x79   : > { %1906 = vmatpush3.bf16.msra.mxu0 %v2055_v59 }
  0x7a   : > { %1930 = vmatpush3.bf16.msra.mxu1 %v2056_v60  ;;  %1907 = vmatprep.subr.bf16.mxu0 %v2057_v61 }
  0x7b   : > { %1931 = vmatprep.subr.bf16.mxu1 %v2058_v62 }
  0x7d   : > { %1908 = vmatpush3.bf16.msra.mxu0 %v2057_v61 }
  0x7e   : > { %1932 = vmatpush3.bf16.msra.mxu1 %v2058_v62  ;;  %1909 = vmatprep.subr.bf16.mxu0 %v2059_v63 }
  0x7f   : > { %1933 = vmatprep.subr.bf16.mxu1 %v2060_v0 }
  0x81   : > { %1910 = vmatpush3.bf16.msra.mxu0 %v2059_v63 }
  0x82   : > { %1934 = vmatpush3.bf16.msra.mxu1 %v2060_v0  ;;  %1911 = vmatprep.subr.bf16.mxu0 %v2061_v1 }
  0x83   : > { %1935 = vmatprep.subr.bf16.mxu1 %v2062_v2 }
  0x85   : > { %1912 = vmatpush3.bf16.msra.mxu0 %v2061_v1 }
  0x86   : > { %1936 = vmatpush3.bf16.msra.mxu1 %v2062_v2  ;;  %1913 = vmatprep.subr.bf16.mxu0 %v2063_v3 }
  0x87   : > { %1937 = vmatprep.subr.bf16.mxu1 %v2064_v4 }
  0x89   : > { %1914 = vmatpush3.bf16.msra.mxu0 %v2063_v3 }
  0x8a   : > { %1938 = vmatpush3.bf16.msra.mxu1 %v2064_v4  ;;  %1947 = vmatprep.subr.bf16.mxu0 %v2065_v5 }
  0x8b   : > { %1971 = vmatprep.subr.bf16.mxu1 %v2065_v5 }
  0x8c   : > { %1916 = vmatmul.mubr.bf16.vlgmr.msra.gmra.mxu0 %v2185_v23 }
  0x8d   : > { %1940 = vmatmul.mubr.bf16.vlgmr.msra.gmra.mxu1 %v2185_v23  ;;  %1948 = vmatpush3.bf16.msra.mxu0 %v2065_v5 }
  0x8e   : > { %1979 = vmatpush3.bf16.msra.mxu1 %v2065_v5  ;;  %1949 = vmatprep.subr.bf16.mxu0 %v2066_v6 }
  0x8f   : > { %1972 = vmatprep.subr.bf16.mxu1 %v2066_v6  ;;  %1919 = vmatprep.mubr.bf16.mxu0 %v2198_v26 }
  0x90   : > { %1943 = vmatprep.mubr.bf16.mxu1 %v2198_v26 }
  0x91   : > { %1950 = vmatpush3.bf16.msra.mxu0 %v2066_v6 }
  0x92   : > { %1980 = vmatpush3.bf16.msra.mxu1 %v2066_v6  ;;  %1951 = vmatprep.subr.bf16.mxu0 %v2068_v7 }
  0x93   : > { %1973 = vmatprep.subr.bf16.mxu1 %v2068_v7 }
  0x94   : > { %1920 = vmatmul.mubr.bf16.gmra.mxu0 %v2067_v8 }
  0x95   : > { %1944 = vmatmul.mubr.bf16.gmra.mxu1 %v2067_v8  ;;  %1952 = vmatpush3.bf16.msra.mxu0 %v2068_v7 }
  0x96   : > { %1981 = vmatpush3.bf16.msra.mxu1 %v2068_v7  ;;  %1953 = vmatprep.subr.bf16.mxu0 %v2069_v9 }
  0x97   : > { %1974 = vmatprep.subr.bf16.mxu1 %v2069_v9  ;;  %1963 = vmatprep.mubr.bf16.mxu0 %v2176_v20 }
  0x98   : > { %1967 = vmatprep.mubr.bf16.mxu1 %v2198_v26 }
  0x99   : > { %1954 = vmatpush3.bf16.msra.mxu0 %v2069_v9 }
  0x9a   : > { %1982 = vmatpush3.bf16.msra.mxu1 %v2069_v9  ;;  %1955 = vmatprep.subr.bf16.mxu0 %v2070_v10 }
  0x9b   : > { %1975 = vmatprep.subr.bf16.mxu1 %v2070_v10 }
  0x9d   : > { %1956 = vmatpush3.bf16.msra.mxu0 %v2070_v10 }
  0x9e   : > { %1983 = vmatpush3.bf16.msra.mxu1 %v2070_v10  ;;  %1957 = vmatprep.subr.bf16.mxu0 %v2071_v11 }
  0x9f   : > { %1976 = vmatprep.subr.bf16.mxu1 %v2071_v11 }
  0xa1   : > { %1958 = vmatpush3.bf16.msra.mxu0 %v2071_v11 }
  0xa2   : > { %1984 = vmatpush3.bf16.msra.mxu1 %v2071_v11  ;;  %1959 = vmatprep.subr.bf16.mxu0 %v2072_v12 }
  0xa3   : > { %1977 = vmatprep.subr.bf16.mxu1 %v2072_v12 }
  0xa5   : > { %1960 = vmatpush3.bf16.msra.mxu0 %v2072_v12 }
  0xa6   : > { %1985 = vmatpush3.bf16.msra.mxu1 %v2072_v12  ;;  %1961 = vmatprep.subr.bf16.mxu0 %v2073_v13 }
  0xa7   : > { %1978 = vmatprep.subr.bf16.mxu1 %v2073_v13 }
  0xa9   : > { %1962 = vmatpush3.bf16.msra.mxu0 %v2073_v13 }
  0xaa   : > { %1986 = vmatpush3.bf16.msra.mxu1 %v2073_v13 }
  0xac   : > { %1964 = vmatmul.mubr.bf16.vlgmr.msra.gmra.mxu0 %v2185_v23 }
  0xad   : > { %1968 = vmatmul.mubr.bf16.vlgmr.msra.gmra.mxu1 %v2067_v8 }
  0xec   : > { %v1773_v14 = vpop.f32.mrf.mxu0 }
  0xed   : > { %v1797_v15 = vpop.f32.mrf.mxu1 }
  0xee   : > { %v453_v16 = vadd.f32 %v1797_v15, %v1773_v14  ;;  %v330_v17 = vpop.f32.mrf.mxu0 }
  0xef   : > { %v445_v18 = vpop.f32.mrf.mxu1 }
  0xf0   : > { %v446_v19 = vadd.f32 %v445_v18, %v330_v17  ;;  %v1774_v20 = vpop.f32.mrf.mxu0 }
  0xf1   : > { %v1798_v21 = vpop.f32.mrf.mxu1 }
  0xf2   : > { %v333_v22 = vpop.f32.mrf.mxu0 }
  0xf3   : > { %v448_v24 = vpop.f32.mrf.mxu1 }
  0xf4   : > { %v1777_v25 = vpop.f32.mrf.mxu0 }
  0xf5   : > { %v1801_v26 = vpop.f32.mrf.mxu1 }
  0xf6   : > { %v2378_v27 = vadd.f32 %v1801_v26, %v1777_v25  ;;  %v344_v28 = vpop.f32.mrf.mxu0 }
  0xf7   : > { %v459_v29 = vpop.f32.mrf.mxu1 }
  0xf8   : > { %v2380_v30 = vadd.f32 %v459_v29, %v344_v28  ;;  %v1778_v23 = vpop.f32.mrf.mxu0 }
  0xf9   : > { %v1802_v31 = vpop.f32.mrf.mxu1 }
  0xfa   : > { %v347_v32 = vpop.f32.mrf.mxu0 }
  0xfb   : > { %v462_v33 = vpop.f32.mrf.mxu1 }
 0x10c   : > { %v1821_v34 = vpop.f32.mrf.mxu0 }
 0x10d   : > { %v1845_v35 = vpop.f32.mrf.mxu1 }
 0x10e   : > { %v688_v36 = vadd.f32 %v1845_v35, %v1821_v34  ;;  %v571_v37 = vpop.f32.mrf.mxu0 }
 0x10f   : > { %v680_v38 = vpop.f32.mrf.mxu1 }
 0x110   : > { %v681_v39 = vadd.f32 %v680_v38, %v571_v37  ;;  %v1822_v40 = vpop.f32.mrf.mxu0 }
 0x111   : > { %v1846_v41 = vpop.f32.mrf.mxu1 }
 0x112   : > { %v574_v42 = vpop.f32.mrf.mxu0 }
 0x113   : > { %v683_v43 = vpop.f32.mrf.mxu1 }
 0x114   : > { %v1825_v44 = vpop.f32.mrf.mxu0 }
 0x115   : > { %v1849_v45 = vpop.f32.mrf.mxu1 }
 0x116   : > { %v702_v46 = vadd.f32 %v1849_v45, %v1825_v44  ;;  %v585_v47 = vpop.f32.mrf.mxu0 }
 0x117   : > { %v694_v48 = vpop.f32.mrf.mxu1 }
 0x118   : > { %v695_v49 = vadd.f32 %v694_v48, %v585_v47  ;;  %v1826_v50 = vpop.f32.mrf.mxu0 }
 0x119   : > { %v1850_v51 = vpop.f32.mrf.mxu1 }
 0x11a   : > { %v588_v52 = vpop.f32.mrf.mxu0 }
 0x11b   : > { %v697_v53 = vpop.f32.mrf.mxu1 }
 0x12c   : > { %v1869_v54 = vpop.f32.mrf.mxu0 }
 0x12d   : > { %v1893_v55 = vpop.f32.mrf.mxu1 }
 0x12e   : > { %v806_v56 = vpop.f32.mrf.mxu0  ;;  %v923_v40 = vadd.f32 %v1893_v55, %v1869_v54 }
 0x12f   : > { %v915_v57 = vpop.f32.mrf.mxu1 }
 0x130   : > { %v1870_v58 = vpop.f32.mrf.mxu0  ;;  %v916_v43 = vadd.f32 %v915_v57, %v806_v56 }
 0x131   : > { %v1894_v59 = vpop.f32.mrf.mxu1 }
 0x132   : > { %v809_v60 = vpop.f32.mrf.mxu0 }
 0x133   : > { %v918_v61 = vpop.f32.mrf.mxu1 }
 0x134   : > { %v1873_v62 = vpop.f32.mrf.mxu0 }
 0x135   : > { %v1897_v63 = vpop.f32.mrf.mxu1 }
 0x136   : > { %v820_v0 = vpop.f32.mrf.mxu0  ;;  %v937_v41 = vadd.f32 %v1897_v63, %v1873_v62 }
 0x137   : > { %v929_v1 = vpop.f32.mrf.mxu1 }
 0x138   : > { %v1874_v2 = vpop.f32.mrf.mxu0 }
 0x139   : > { %v1898_v3 = vpop.f32.mrf.mxu1 }
 0x13a   : > { %v823_v4 = vpop.f32.mrf.mxu0 }
 0x13b   : > { %v932_v5 = vpop.f32.mrf.mxu1 }
 0x14c   : > { %v1917_v6 = vpop.f32.mrf.mxu0 }
 0x14d   : > { %v1941_v7 = vpop.f32.mrf.mxu1  ;;  %v1075_v11 = vadd.f32 %v1917_v6, %v453_v16 }
 0x14e   : > { %v1205_v8 = vadd.f32 %v1941_v7, %v688_v36  ;;  %v1047_v9 = vpop.f32.mrf.mxu0 }
 0x14f   : > { %v1177_v10 = vpop.f32.mrf.mxu1  ;;  %v1074_v18 = vadd.f32 %v1047_v9, %v446_v19 }
 0x150   : > { %v1343_v12 = vrot.slane %v1205_v8, 1  ;;  %v1204_v13 = vadd.f32 %v1177_v10, %v681_v39  ;;  %v1918_v14 = vpop.f32.mrf.mxu0 }
 0x151   : > { %v1942_v15 = vpop.f32.mrf.mxu1 }
 0x152   : > { %v1351_v17 = vadd.f32 %v1343_v12, %v1075_v11  ;;  %v1342_v20 = vrot.slane %v1204_v13, 1  ;;  %v1050_v21 = vpop.f32.mrf.mxu0 }
 0x153   : > { %v1180_v22 = vpop.f32.mrf.mxu1 }
 0x154   : > { %v1350_v24 = vadd.f32 %v1342_v20, %v1074_v18  ;;  %v1921_v25 = vpop.f32.mrf.mxu0 }
 0x155   : > { %v1945_v26 = vpop.f32.mrf.mxu1  ;;  %v1077_v31 = vadd.f32 %v1921_v25, %v2378_v27 }
 0x156   : > { %v1207_v28 = vadd.f32 %v1945_v26, %v702_v46  ;;  %v1061_v29 = vpop.f32.mrf.mxu0  ;;  %v930_v46 = vadd.f32 %v929_v1, %v820_v0 }
 0x157   : > { %v1191_v23 = vpop.f32.mrf.mxu1  ;;  %v1076_v36 = vadd.f32 %v1061_v29, %v2380_v30 }
 0x158   : > { %v1345_v32 = vrot.slane %v1207_v28, 1  ;;  %v1206_v16 = vadd.f32 %v1191_v23, %v695_v49  ;;  %v1922_v33 = vpop.f32.mrf.mxu0 }
 0x159   : > { %v1946_v34 = vpop.f32.mrf.mxu1 }
 0x15a   : > { %v1353_v35 = vadd.f32 %v1345_v32, %v1077_v31  ;;  %v1344_v19 = vrot.slane %v1206_v16, 1  ;;  %v1064_v37 = vpop.f32.mrf.mxu0 }
 0x15b   : > { %v1194_v38 = vpop.f32.mrf.mxu1 }
 0x15c   : > { %v1352_v39 = vadd.f32 %v1344_v19, %v1076_v36 }
 0x16c   : > { %v1965_v42 = vpop.f32.mrf.mxu0 }
 0x16d   : > { %v1335_v44 = vadd.f32 %v1965_v42, %v923_v40  ;;  %v1969_v45 = vpop.f32.mrf.mxu1 }
 0x16e   : > { %v1337_v27 = vadd.f32 %v1969_v45, %v937_v41  ;;  %v1307_v47 = vpop.f32.mrf.mxu0 }
 0x16f   : > { %v1359_v48 = vrot.slane %v1335_v44, 2  ;;  %v1334_v49 = vadd.f32 %v1307_v47, %v916_v43  ;;  %v1321_v50 = vpop.f32.mrf.mxu1 }
 0x170   : > { %v1361_v30 = vrot.slane %v1337_v27, 2  ;;  %v1336_v51 = vadd.f32 %v1321_v50, %v930_v46  ;;  %v1966_v52 = vpop.f32.mrf.mxu0 }
 0x171   : > { %v1367_v53 = vadd.f32 %v1359_v48, %v1351_v17  ;;  %v1358_v54 = vrot.slane %v1334_v49, 2  ;;  %v1970_v55 = vpop.f32.mrf.mxu1 }
 0x172   : > { %v1369_v56 = vadd.f32 %v1361_v30, %v1353_v35  ;;  %v1360_v57 = vrot.slane %v1336_v51, 2  ;;  %v1310_v58 = vpop.f32.mrf.mxu0 }
 0x173   : > { %1372 = vst.msk [vmem:[%s143_s8 + $0x4] sm:$0xf] %vm1370_vm0, %v1367_v53  ;;  %v1366_v59 = vadd.f32 %v1358_v54, %v1350_v24  ;;  %v1324_v60 = vpop.f32.mrf.mxu1 }
 0x174   : > { %1374 = vst.msk [vmem:[%s143_s8 + $0xc] sm:$0xf] %vm1370_vm0, %v1369_v56  ;;  %v1368_v61 = vadd.f32 %v1360_v57, %v1352_v39 }
 0x175   : > { %1371 = vst.msk [vmem:[%s143_s8] sm:$0xf] %vm1370_vm0, %v1366_v59 }
 0x176   : > { %1373 = vst.msk [vmem:[%s143_s8 + $0x8] sm:$0xf] %vm1370_vm0, %v1368_v61 }
 0x177 PF: > { %s12_s9 = sadd.s32 1, %s2080_s9  }
 0x178   : > { %p9_p4 = scmp.ge.s32.totalorder %s12_s9, 4  }
 0x17a   :  { %11 = sbr.rel (!%p9_p4) target bundleno = 1 (0x1), region = 66 }

// kernel: heatmap_forward.36
= control target key start
LH: loop header
LB: loop body
LE: loop exit
PB: predicated region body
PF: predicated region fallthrough
CT: control target
= control target key end

     0   :  { %s325_s1 = inlined_call_operand.vmem [shape: bf16[128,128], index: 1, kind: input, shape index: {}]   ;;  %s326_s0 = inlined_call_operand.vmem [shape: f32[32,128], index: 0, kind: input, shape index: {}]   ;;  %s327_s2 = inlined_call_operand.vmem [shape: f32[1,128], index: 2, kind: input, shape index: {}]   ;;  %s328_s3 = inlined_call_operand.vmem [shape: f32[1,128], index: 3, kind: input, shape index: {}]   ;;  %s329_s4 = inlined_call_operand.vmem [shape: f32[32,128], index: 4, kind: output, shape index: {}]  }
   0x1   :  { %v238_v0 = vld [vmem:[%s325_s1 + $0x38] sm:$0xff]   ;;  %v239_v1 = vld [vmem:[%s325_s1 + $0x30] sm:$0xff]   ;;  %v240_v2 = vld [vmem:[%s325_s1 + $0x28] sm:$0xff]  }
   0x2   :  { %218 = vmatprep.subr.bf16.mxu0 %v238_v0  ;;  %v241_v3 = vld [vmem:[%s325_s1 + $0x20] sm:$0xff]   ;;  %v27_v5 = vld [vmem:[%s326_s0 + $0x8] sm:$0xff]  ;;  %v242_v12 = vld [vmem:[%s325_s1 + $0x18] sm:$0xff]  }
   0x3   :  { %219 = vmatpush3.bf16.msra.mxu0 %v238_v0  ;;  %v26_v4 = vld [vmem:[%s326_s0] sm:$0xff]  ;;  %v28_v16 = vld [vmem:[%s326_s0 + $0x10] sm:$0xff]  ;;  %v29_v17 = vld [vmem:[%s326_s0 + $0x18] sm:$0xff] }
   0x4   :  { %220 = vmatprep.subr.bf16.mxu0 %v239_v1  ;;  %v198_v6 = vld [vmem:[%s327_s2] ss:$0 sm:$0xff]  ;;  %v243_v18 = vld [vmem:[%s325_s1 + $0x10] sm:$0xff]   ;;  %v244_v21 = vld [vmem:[%s325_s1 + $0x8] sm:$0xff]  }
   0x5   :  { %v37_v7 = vmul.f32 %v198_v6, %v26_v4  ;;  %v38_v8 = vmul.f32 %v198_v6, %v27_v5  ;;  %v199_v9 = vld [vmem:[%s328_s3] ss:$0 sm:$0xff]  ;;  %v39_v19 = vmul.f32 %v198_v6, %v28_v16  ;;  %v40_v20 = vmul.f32 %v198_v6, %v29_v17 }
   0x6   :  { %v245_v24 = vld [vmem:[%s325_s1] sm:$0xff]  }
   0x7   :  { %221 = vmatpush3.bf16.msra.mxu0 %v239_v1  ;;  %v48_v10 = vadd.f32 %v199_v9, %v37_v7  ;;  %v49_v11 = vadd.f32 %v199_v9, %v38_v8  ;;  %v50_v22 = vadd.f32 %v199_v9, %v39_v19  ;;  %v51_v23 = vadd.f32 %v199_v9, %v40_v20 }
   0x8   :  { %222 = vmatprep.subr.bf16.mxu0 %v240_v2 }
   0x9   :  { %v52_v13 = vmax.f32 %v48_v10, 0.0  ;;  %v53_v14 = vmax.f32 %v49_v11, 0.0  ;;  %v54_v25 = vmax.f32 %v50_v22, 0.0  ;;  %v55_v26 = vmax.f32 %v51_v23, 0.0 }
   0xb   :  { %223 = vmatpush3.bf16.msra.mxu0 %v240_v2  ;;  %v56_v15 = vpack.c.bf16 %v53_v14, %v52_v13  ;;  %v57_v27 = vpack.c.bf16 %v55_v26, %v54_v25 }
   0xc   :  { %224 = vmatprep.subr.bf16.mxu0 %v241_v3 }
   0xd   :  { %234 = vmatprep.mubr.bf16.mxu0 %v56_v15 }
   0xf   :  { %225 = vmatpush3.bf16.msra.mxu0 %v241_v3 }
  0x10   :  { %226 = vmatprep.subr.bf16.mxu0 %v242_v12 }
  0x13   :  { %227 = vmatpush3.bf16.msra.mxu0 %v242_v12 }
  0x14   :  { %228 = vmatprep.subr.bf16.mxu0 %v243_v18 }
  0x17   :  { %229 = vmatpush3.bf16.msra.mxu0 %v243_v18 }
  0x18   :  { %230 = vmatprep.subr.bf16.mxu0 %v244_v21 }
  0x1b   :  { %231 = vmatpush3.bf16.msra.mxu0 %v244_v21 }
  0x1c   :  { %232 = vmatprep.subr.bf16.mxu0 %v245_v24 }
  0x1f   :  { %233 = vmatpush3.bf16.msra.mxu0 %v245_v24 }
  0x22   :  { %235 = vmatmul.mubr.bf16.vlgmr.msra.gmra.mxu0 %v57_v27 }
  0xe2   :  { %v236_v28 = vpop.f32.mrf.mxu0 }
  0xe3   :  { %192 = vst [vmem:[%s329_s4 + $0x10] sm:$0xff] %v236_v28 }
  0xe4   :  { %v160_v29 = vpop.f32.mrf.mxu0 }
  0xe5   :  { %190 = vst [vmem:[%s329_s4] sm:$0xff] %v160_v29 }
  0xe6   :  { %v237_v30 = vpop.f32.mrf.mxu0 }
  0xe7   :  { %193 = vst [vmem:[%s329_s4 + $0x18] sm:$0xff] %v237_v30 }
  0xe8   :  { %v163_v31 = vpop.f32.mrf.mxu0 }
  0xe9   :  { %191 = vst [vmem:[%s329_s4 + $0x8] sm:$0xff] %v163_v31 }

// kernel: heatmap_forward.37
= control target key start
LH: loop header
LB: loop body
LE: loop exit
PB: predicated region body
PF: predicated region fallthrough
CT: control target
= control target key end

     0   :  { %v221_v0 = vmov 0.0   ;;  %vm222_vm0 = vmmov 0   ;;  %s292_s1 = inlined_call_operand.vmem [shape: bf16[128,128], index: 1, kind: input, shape index: {}]   ;;  %s293_s0 = inlined_call_operand.vmem [shape: f32[8,128], index: 0, kind: input, shape index: {}]   ;;  %s294_s2 = inlined_call_operand.vmem [shape: f32[1,128], index: 2, kind: input, shape index: {}]   ;;  %s295_s3 = inlined_call_operand.vmem [shape: f32[1,128], index: 3, kind: input, shape index: {}]   ;;  %s296_s4 = inlined_call_operand.vmem [shape: f32[1,128], index: 4, kind: input, shape index: {}]   ;;  %s297_s5 = inlined_call_operand.vmem [shape: bf16[8,128], index: 5, kind: output, shape index: {}]  }
   0x1   :  { %191 = vmatprep.subr.bf16.mxu0 %v221_v0  ;;  %v213_v1 = vld [vmem:[%s292_s1 + $0x38] sm:$0xff]   ;;  %207 = vmatprep.mubr.msk.bf16.mxu0 %vm222_vm0, %v221_v0  ;;  %v214_v2 = vld [vmem:[%s292_s1 + $0x30] sm:$0xff]   ;;  %v215_v3 = vld [vmem:[%s292_s1 + $0x28] sm:$0xff]  }
   0x2   :  { %192 = vmatpush3.bf16.msra.mxu0 %v213_v1  ;;  %v216_v4 = vld [vmem:[%s292_s1 + $0x20] sm:$0xff]   ;;  %v217_v5 = vld [vmem:[%s292_s1 + $0x18] sm:$0xff]   ;;  %v218_v9 = vld [vmem:[%s292_s1 + $0x10] sm:$0xff]  }
   0x3   :  { %193 = vmatprep.subr.bf16.mxu0 %v221_v0  ;;  %v26_v6 = vld [vmem:[%s293_s0] sm:$0xff]  ;;  %v219_v12 = vld [vmem:[%s292_s1 + $0x8] sm:$0xff]  }
   0x4   :  { %v171_v7 = vld [vmem:[%s294_s2] ss:$0 sm:$0xff] }
   0x5   :  { %v34_v8 = vmul.f32 %v171_v7, %v26_v6  ;;  %v172_v10 = vld [vmem:[%s295_s3] ss:$0 sm:$0xff] }
   0x6   :  { %194 = vmatpush3.bf16.msra.mxu0 %v214_v2  ;;  %v220_v14 = vld [vmem:[%s292_s1] sm:$0xff]  }
   0x7   :  { %195 = vmatprep.subr.bf16.mxu0 %v221_v0  ;;  %v42_v11 = vadd.f32 %v172_v10, %v34_v8  ;;  %v181_v16 = vld [vmem:[%s296_s4] ss:$0 sm:$0xff] }
   0x9   :  { %v43_v13 = vmax.f32 %v42_v11, 0.0 }
   0xa   :  { %196 = vmatpush3.bf16.msra.mxu0 %v215_v3 }
   0xb   :  { %197 = vmatprep.subr.bf16.mxu0 %v221_v0  ;;  %v44_v15 = vpack.c.bf16 %v43_v13, %v43_v13 }
   0xe   :  { %198 = vmatpush3.bf16.msra.mxu0 %v216_v4 }
   0xf   :  { %199 = vmatprep.subr.bf16.mxu0 %v221_v0 }
  0x12   :  { %200 = vmatpush3.bf16.msra.mxu0 %v217_v5 }
  0x13   :  { %201 = vmatprep.subr.bf16.mxu0 %v221_v0 }
  0x16   :  { %202 = vmatpush3.bf16.msra.mxu0 %v218_v9 }
  0x17   :  { %203 = vmatprep.subr.bf16.mxu0 %v221_v0 }
  0x1a   :  { %204 = vmatpush3.bf16.msra.mxu0 %v219_v12 }
  0x1b   :  { %205 = vmatprep.subr.bf16.mxu0 %v221_v0 }
  0x1e   :  { %206 = vmatpush3.bf16.msra.mxu0 %v220_v14 }
  0x21   :  { %208 = vmatmul.mubr.bf16.vlgmr.msra.gmra.mxu0 %v44_v15 }
  0xe1   :  { %v144_v17 = vpop.f32.mrf.mxu0 }
  0xe2   :  { %v163_v18 = vadd.f32 %v181_v16, %v144_v17 }
  0xe3   :  { %v209_v19 = vpop.f32.mrf.mxu0 }
  0xe4   :  { %v164_v20 = vmax.f32 %v163_v18, 0.0 }
  0xe5   :  { %v147_v21 = vpop.f32.mrf.mxu0 }
  0xe6   :  { %v165_v22 = vpack.c.bf16 %v164_v20, %v164_v20 }
  0xe7   :  { %v210_v23 = vpop.f32.mrf.mxu0 }
  0xe8   :  { %166 = vst [vmem:[%s297_s5] sm:$0xf] %v165_v22 }

// kernel: heatmap_forward.38
= control target key start
LH: loop header
LB: loop body
LE: loop exit
PB: predicated region body
PF: predicated region fallthrough
CT: control target
= control target key end

     0   :  { %s1858_s9 = smov 0   ;;  %s2122_s0 = inlined_call_operand.vmem [shape: bf16[2,4,16,128], index: 0, kind: input, shape index: {}]   ;;  %s2123_s1 = inlined_call_operand.vmem [shape: bf16[9,128,32], index: 1, kind: input, shape index: {}]   ;;  %s2124_s2 = inlined_call_operand.vmem [shape: f32[2,2,2,32], index: 2, kind: output, shape index: {}]  }
   0x1 LB: > { %s1264_s10 = sadd.s32 4294967295, %s1841_s9   ;;  %p1268_p0 = scmp.ge.s32.totalorder %s1841_s9, 1  ;;  %s1841_s9 = sphi %s1858_s9, %s12_s9  }
   0x2   : > { %p112_p1 = scmp.lt.s32.totalorder %s1841_s9, 3 }
   0x4   : > { %p113_p2 = pnand %p1268_p0, %p112_p1 }
   0x5   : > { %p134_p3 = scmp.lt.s32.totalorder (!%p113_p2), %s1264_s10, 1 }
   0x6   : > { %116 = sbr.rel (%p113_p2) target bundleno = 374 (0x176), region = 28 }
   0xb   : > { %v1759_v0 = vld [vmem:[%s2123_s1 + $0xf8] sm:$0xff]   ;;  %v1761_v2 = vld [vmem:[%s2123_s1 + $0xf0] sm:$0xff]   ;;  %v1763_v4 = vld [vmem:[%s2123_s1 + $0xe8] sm:$0xff]   ;;  %s2126_s10 = smov (!%p134_p3, %s1264_s10), 1  ;;  %vm1206_vm0 = vcmask 254976  }
   0xc   : > { %v1760_v1 = vld [vmem:[%s2123_s1 + $0x38] sm:$0xff]   ;;  %1571 = vmatprep.subr.bf16.mxu0 %v1759_v0  ;;  %v1762_v3 = vld [vmem:[%s2123_s1 + $0x30] sm:$0xff]   ;;  %v1764_v5 = vld [vmem:[%s2123_s1 + $0x28] sm:$0xff]   ;;  %s1479_s27 = sshll.u32 %s2126_s10, 5  ;;  %s1480_s4 = sshll.u32 %s2126_s10, 2 }
   0xd   : > { %1591 = vmatprep.subr.bf16.mxu1 %v1760_v1  ;;  %1572 = vmatpush3.bf16.msra.mxu0 %v1759_v0  ;;  %v1765_v6 = vld [vmem:[%s2123_s1 + $0xe0] sm:$0xff]   ;;  %v1767_v8 = vld [vmem:[%s2123_s1 + $0xd8] sm:$0xff]   ;;  %s1902_s6 = scalar_lea.vmem %s2122_s0, %s1479_s27  ;;  %v1769_v10 = vld [vmem:[%s2123_s1 + $0xd0] sm:$0xff]   ;;  %s143_s8 = scalar_lea.vmem %s2124_s2, %s1480_s4 }
   0xe   : > { %1592 = vmatpush3.bf16.msra.mxu1 %v1760_v1  ;;  %1573 = vmatprep.subr.bf16.mxu0 %v1761_v2  ;;  %v1766_v7 = vld [vmem:[%s2123_s1 + $0x20] sm:$0xff]   ;;  %v1768_v9 = vld [vmem:[%s2123_s1 + $0x18] sm:$0xff]   ;;  %v1770_v11 = vld [vmem:[%s2123_s1 + $0x10] sm:$0xff]  }
   0xf   : > { %1593 = vmatprep.subr.bf16.mxu1 %v1762_v3  ;;  %v1911_v12 = vld [vmem:[%s1902_s6 + $0x8] sm:$0xff]   ;;  %v1914_v13 = vld [vmem:[%s1902_s6] sm:$0xff]   ;;  %v1778_v18 = vld [vmem:[%s2123_s1 + $0x138] sm:$0xff]  }
  0x10   : > { %1587 = vmatprep.mubr.bf16.mxu0 %v1911_v12  ;;  %1607 = vmatprep.mubr.bf16.mxu1 %v1914_v13  ;;  %v1771_v14 = vld [vmem:[%s2123_s1 + $0xc8] sm:$0xff]   ;;  %v1773_v16 = vld [vmem:[%s2123_s1 + $0xc0] sm:$0xff]   ;;  %v1779_v19 = vld [vmem:[%s2123_s1 + $0x78] sm:$0xff]  }
  0x11   : > { %1574 = vmatpush3.bf16.msra.mxu0 %v1761_v2  ;;  %v1772_v15 = vld [vmem:[%s2123_s1 + $0x8] sm:$0xff]   ;;  %v1774_v17 = vld [vmem:[%s2123_s1] sm:$0xff]   ;;  %v1937_v20 = vld [vmem:[%s1902_s6 + $0x10] sm:$0xff]  }
  0x12   : > { %1594 = vmatpush3.bf16.msra.mxu1 %v1762_v3  ;;  %1575 = vmatprep.subr.bf16.mxu0 %v1763_v4  ;;  %v1780_v21 = vld [vmem:[%s2123_s1 + $0x130] sm:$0xff]   ;;  %v1782_v23 = vld [vmem:[%s2123_s1 + $0x128] sm:$0xff]   ;;  %v1784_v25 = vld [vmem:[%s2123_s1 + $0x120] sm:$0xff]  }
  0x13   : > { %1595 = vmatprep.subr.bf16.mxu1 %v1764_v5  ;;  %v1781_v22 = vld [vmem:[%s2123_s1 + $0x70] sm:$0xff]   ;;  %v1783_v24 = vld [vmem:[%s2123_s1 + $0x68] sm:$0xff]   ;;  %v1785_v26 = vld [vmem:[%s2123_s1 + $0x60] sm:$0xff]  }
  0x14   : > { %v1786_v27 = vld [vmem:[%s2123_s1 + $0x118] sm:$0xff]   ;;  %v1788_v29 = vld [vmem:[%s2123_s1 + $0x110] sm:$0xff]   ;;  %v1790_v31 = vld [vmem:[%s2123_s1 + $0x108] sm:$0xff]  }
  0x15   : > { %1576 = vmatpush3.bf16.msra.mxu0 %v1763_v4  ;;  %v1787_v28 = vld [vmem:[%s2123_s1 + $0x58] sm:$0xff]   ;;  %v1789_v30 = vld [vmem:[%s2123_s1 + $0x50] sm:$0xff]   ;;  %v1791_v32 = vld [vmem:[%s2123_s1 + $0x48] sm:$0xff]  }
  0x16   : > { %1596 = vmatpush3.bf16.msra.mxu1 %v1764_v5  ;;  %1577 = vmatprep.subr.bf16.mxu0 %v1765_v6  ;;  %v1792_v33 = vld [vmem:[%s2123_s1 + $0x100] sm:$0xff]   ;;  %v1794_v35 = vld [vmem:[%s2123_s1 + $0x178] sm:$0xff]   ;;  %v1796_v37 = vld [vmem:[%s2123_s1 + $0x170] sm:$0xff]  }
  0x17   : > { %1597 = vmatprep.subr.bf16.mxu1 %v1766_v7  ;;  %v1793_v34 = vld [vmem:[%s2123_s1 + $0x40] sm:$0xff]   ;;  %v1795_v36 = vld [vmem:[%s2123_s1 + $0xb8] sm:$0xff]   ;;  %v1797_v38 = vld [vmem:[%s2123_s1 + $0xb0] sm:$0xff]  }
  0x18   : > { %v1798_v39 = vld [vmem:[%s2123_s1 + $0x168] sm:$0xff]   ;;  %v1800_v41 = vld [vmem:[%s2123_s1 + $0x160] sm:$0xff]   ;;  %v1802_v43 = vld [vmem:[%s2123_s1 + $0x158] sm:$0xff]  }
  0x19   : > { %1578 = vmatpush3.bf16.msra.mxu0 %v1765_v6  ;;  %v1799_v40 = vld [vmem:[%s2123_s1 + $0xa8] sm:$0xff]   ;;  %v1801_v42 = vld [vmem:[%s2123_s1 + $0xa0] sm:$0xff]   ;;  %v1803_v44 = vld [vmem:[%s2123_s1 + $0x98] sm:$0xff]  }
  0x1a   : > { %1598 = vmatpush3.bf16.msra.mxu1 %v1766_v7  ;;  %1579 = vmatprep.subr.bf16.mxu0 %v1767_v8  ;;  %v1804_v45 = vld [vmem:[%s2123_s1 + $0x150] sm:$0xff]   ;;  %v1806_v47 = vld [vmem:[%s2123_s1 + $0x148] sm:$0xff]   ;;  %v1808_v49 = vld [vmem:[%s2123_s1 + $0x140] sm:$0xff]  }
  0x1b   : > { %1599 = vmatprep.subr.bf16.mxu1 %v1768_v9  ;;  %v1805_v46 = vld [vmem:[%s2123_s1 + $0x90] sm:$0xff]   ;;  %v1807_v48 = vld [vmem:[%s2123_s1 + $0x88] sm:$0xff]   ;;  %v1809_v50 = vld [vmem:[%s2123_s1 + $0x80] sm:$0xff]  }
  0x1c   : > { %v1810_v51 = vld [vmem:[%s2123_s1 + $0x1b8] sm:$0xff]   ;;  %v1812_v53 = vld [vmem:[%s2123_s1 + $0x1b0] sm:$0xff]   ;;  %v1814_v55 = vld [vmem:[%s2123_s1 + $0x1a8] sm:$0xff]  }
  0x1d   : > { %1580 = vmatpush3.bf16.msra.mxu0 %v1767_v8  ;;  %v1811_v52 = vld [vmem:[%s2123_s1 + $0x1f8] sm:$0xff]   ;;  %v1813_v54 = vld [vmem:[%s2123_s1 + $0x1f0] sm:$0xff]   ;;  %v1815_v56 = vld [vmem:[%s2123_s1 + $0x1e8] sm:$0xff]  }
  0x1e   : > { %1600 = vmatpush3.bf16.msra.mxu1 %v1768_v9  ;;  %1581 = vmatprep.subr.bf16.mxu0 %v1769_v10  ;;  %v1816_v57 = vld [vmem:[%s2123_s1 + $0x1a0] sm:$0xff]   ;;  %v1818_v59 = vld [vmem:[%s2123_s1 + $0x198] sm:$0xff]   ;;  %v1820_v61 = vld [vmem:[%s2123_s1 + $0x190] sm:$0xff]  }
  0x1f   : > { %1601 = vmatprep.subr.bf16.mxu1 %v1770_v11  ;;  %v1817_v58 = vld [vmem:[%s2123_s1 + $0x1e0] sm:$0xff]   ;;  %v1819_v60 = vld [vmem:[%s2123_s1 + $0x1d8] sm:$0xff]   ;;  %v1821_v62 = vld [vmem:[%s2123_s1 + $0x1d0] sm:$0xff]  }
  0x20   : > { %v1822_v63 = vld [vmem:[%s2123_s1 + $0x188] sm:$0xff]   ;;  %v1824_v1 = vld [vmem:[%s2123_s1 + $0x180] sm:$0xff]   ;;  %v1827_v3 = vld [vmem:[%s2123_s1 + $0x238] sm:$0xff]  }
  0x21   : > { %1582 = vmatpush3.bf16.msra.mxu0 %v1769_v10  ;;  %v1823_v0 = vld [vmem:[%s2123_s1 + $0x1c8] sm:$0xff]   ;;  %v1825_v2 = vld [vmem:[%s2123_s1 + $0x1c0] sm:$0xff]   ;;  %v1826_v4 = vld [vmem:[%s1902_s6 + $0x18] sm:$0xff]  }
  0x22   : > { %1602 = vmatpush3.bf16.msra.mxu1 %v1770_v11  ;;  %1583 = vmatprep.subr.bf16.mxu0 %v1771_v14  ;;  %v1828_v5 = vld [vmem:[%s2123_s1 + $0x230] sm:$0xff]   ;;  %v1829_v6 = vld [vmem:[%s2123_s1 + $0x228] sm:$0xff]   ;;  %v1830_v7 = vld [vmem:[%s2123_s1 + $0x220] sm:$0xff]  }
  0x23   : > { %1603 = vmatprep.subr.bf16.mxu1 %v1772_v15  ;;  %v1831_v8 = vld [vmem:[%s2123_s1 + $0x218] sm:$0xff]   ;;  %v1832_v9 = vld [vmem:[%s2123_s1 + $0x210] sm:$0xff]   ;;  %v1833_v10 = vld [vmem:[%s2123_s1 + $0x208] sm:$0xff]  }
  0x24   : > { %v1834_v11 = vld [vmem:[%s2123_s1 + $0x200] sm:$0xff]  }
  0x25   : > { %1584 = vmatpush3.bf16.msra.mxu0 %v1771_v14 }
  0x26   : > { %1604 = vmatpush3.bf16.msra.mxu1 %v1772_v15  ;;  %1585 = vmatprep.subr.bf16.mxu0 %v1773_v16 }
  0x27   : > { %1605 = vmatprep.subr.bf16.mxu1 %v1774_v17 }
  0x29   : > { %1586 = vmatpush3.bf16.msra.mxu0 %v1773_v16 }
  0x2a   : > { %1606 = vmatpush3.bf16.msra.mxu1 %v1774_v17  ;;  %1611 = vmatprep.subr.bf16.mxu0 %v1778_v18 }
  0x2b   : > { %1631 = vmatprep.subr.bf16.mxu1 %v1779_v19 }
  0x2c   : > { %1588 = vmatmul.mubr.bf16.vlgmr.msra.gmra.mxu0 %v1937_v20 }
  0x2d   : > { %1608 = vmatmul.mubr.bf16.vlgmr.msra.gmra.mxu1 %v1911_v12  ;;  %1612 = vmatpush3.bf16.msra.mxu0 %v1778_v18 }
  0x2e   : > { %1632 = vmatpush3.bf16.msra.mxu1 %v1779_v19  ;;  %1613 = vmatprep.subr.bf16.mxu0 %v1780_v21 }
  0x2f   : > { %1633 = vmatprep.subr.bf16.mxu1 %v1781_v22  ;;  %1627 = vmatprep.mubr.bf16.mxu0 %v1911_v12 }
  0x30   : > { %1647 = vmatprep.mubr.bf16.mxu1 %v1914_v13 }
  0x31   : > { %1614 = vmatpush3.bf16.msra.mxu0 %v1780_v21 }
  0x32   : > { %1634 = vmatpush3.bf16.msra.mxu1 %v1781_v22  ;;  %1615 = vmatprep.subr.bf16.mxu0 %v1782_v23 }
  0x33   : > { %1635 = vmatprep.subr.bf16.mxu1 %v1783_v24 }
  0x35   : > { %1616 = vmatpush3.bf16.msra.mxu0 %v1782_v23 }
  0x36   : > { %1636 = vmatpush3.bf16.msra.mxu1 %v1783_v24  ;;  %1617 = vmatprep.subr.bf16.mxu0 %v1784_v25 }
  0x37   : > { %1637 = vmatprep.subr.bf16.mxu1 %v1785_v26 }
  0x39   : > { %1618 = vmatpush3.bf16.msra.mxu0 %v1784_v25 }
  0x3a   : > { %1638 = vmatpush3.bf16.msra.mxu1 %v1785_v26  ;;  %1619 = vmatprep.subr.bf16.mxu0 %v1786_v27 }
  0x3b   : > { %1639 = vmatprep.subr.bf16.mxu1 %v1787_v28 }
  0x3d   : > { %1620 = vmatpush3.bf16.msra.mxu0 %v1786_v27 }
  0x3e   : > { %1640 = vmatpush3.bf16.msra.mxu1 %v1787_v28  ;;  %1621 = vmatprep.subr.bf16.mxu0 %v1788_v29 }
  0x3f   : > { %1641 = vmatprep.subr.bf16.mxu1 %v1789_v30 }
  0x41   : > { %1622 = vmatpush3.bf16.msra.mxu0 %v1788_v29 }
  0x42   : > { %1642 = vmatpush3.bf16.msra.mxu1 %v1789_v30  ;;  %1623 = vmatprep.subr.bf16.mxu0 %v1790_v31 }
  0x43   : > { %1643 = vmatprep.subr.bf16.mxu1 %v1791_v32 }
  0x45   : > { %1624 = vmatpush3.bf16.msra.mxu0 %v1790_v31 }
  0x46   : > { %1644 = vmatpush3.bf16.msra.mxu1 %v1791_v32  ;;  %1625 = vmatprep.subr.bf16.mxu0 %v1792_v33 }
  0x47   : > { %1645 = vmatprep.subr.bf16.mxu1 %v1793_v34 }
  0x49   : > { %1626 = vmatpush3.bf16.msra.mxu0 %v1792_v33 }
  0x4a   : > { %1646 = vmatpush3.bf16.msra.mxu1 %v1793_v34  ;;  %1651 = vmatprep.subr.bf16.mxu0 %v1794_v35 }
  0x4b   : > { %1671 = vmatprep.subr.bf16.mxu1 %v1795_v36 }
  0x4c   : > { %1628 = vmatmul.mubr.bf16.vlgmr.msra.gmra.mxu0 %v1937_v20 }
  0x4d   : > { %1648 = vmatmul.mubr.bf16.vlgmr.msra.gmra.mxu1 %v1911_v12  ;;  %1652 = vmatpush3.bf16.msra.mxu0 %v1794_v35 }
  0x4e   : > { %1672 = vmatpush3.bf16.msra.mxu1 %v1795_v36  ;;  %1653 = vmatprep.subr.bf16.mxu0 %v1796_v37 }
  0x4f   : > { %1673 = vmatprep.subr.bf16.mxu1 %v1797_v38  ;;  %1667 = vmatprep.mubr.bf16.mxu0 %v1911_v12 }
  0x50   : > { %1687 = vmatprep.mubr.bf16.mxu1 %v1914_v13 }
  0x51   : > { %1654 = vmatpush3.bf16.msra.mxu0 %v1796_v37 }
  0x52   : > { %1674 = vmatpush3.bf16.msra.mxu1 %v1797_v38  ;;  %1655 = vmatprep.subr.bf16.mxu0 %v1798_v39 }
  0x53   : > { %1675 = vmatprep.subr.bf16.mxu1 %v1799_v40 }
  0x55   : > { %1656 = vmatpush3.bf16.msra.mxu0 %v1798_v39 }
  0x56   : > { %1676 = vmatpush3.bf16.msra.mxu1 %v1799_v40  ;;  %1657 = vmatprep.subr.bf16.mxu0 %v1800_v41 }
  0x57   : > { %1677 = vmatprep.subr.bf16.mxu1 %v1801_v42 }
  0x59   : > { %1658 = vmatpush3.bf16.msra.mxu0 %v1800_v41 }
  0x5a   : > { %1678 = vmatpush3.bf16.msra.mxu1 %v1801_v42  ;;  %1659 = vmatprep.subr.bf16.mxu0 %v1802_v43 }
  0x5b   : > { %1679 = vmatprep.subr.bf16.mxu1 %v1803_v44 }
  0x5d   : > { %1660 = vmatpush3.bf16.msra.mxu0 %v1802_v43 }
  0x5e   : > { %1680 = vmatpush3.bf16.msra.mxu1 %v1803_v44  ;;  %1661 = vmatprep.subr.bf16.mxu0 %v1804_v45 }
  0x5f   : > { %1681 = vmatprep.subr.bf16.mxu1 %v1805_v46 }
  0x61   : > { %1662 = vmatpush3.bf16.msra.mxu0 %v1804_v45 }
  0x62   : > { %1682 = vmatpush3.bf16.msra.mxu1 %v1805_v46  ;;  %1663 = vmatprep.subr.bf16.mxu0 %v1806_v47 }
  0x63   : > { %1683 = vmatprep.subr.bf16.mxu1 %v1807_v48 }
  0x65   : > { %1664 = vmatpush3.bf16.msra.mxu0 %v1806_v47 }
  0x66   : > { %1684 = vmatpush3.bf16.msra.mxu1 %v1807_v48  ;;  %1665 = vmatprep.subr.bf16.mxu0 %v1808_v49 }
  0x67   : > { %1685 = vmatprep.subr.bf16.mxu1 %v1809_v50 }
  0x69   : > { %1666 = vmatpush3.bf16.msra.mxu0 %v1808_v49 }
  0x6a   : > { %1686 = vmatpush3.bf16.msra.mxu1 %v1809_v50  ;;  %1691 = vmatprep.subr.bf16.mxu0 %v1810_v51 }
  0x6b   : > { %1711 = vmatprep.subr.bf16.mxu1 %v1811_v52 }
  0x6c   : > { %1668 = vmatmul.mubr.bf16.vlgmr.msra.gmra.mxu0 %v1937_v20 }
  0x6d   : > { %1688 = vmatmul.mubr.bf16.vlgmr.msra.gmra.mxu1 %v1911_v12  ;;  %1692 = vmatpush3.bf16.msra.mxu0 %v1810_v51 }
  0x6e   : > { %1712 = vmatpush3.bf16.msra.mxu1 %v1811_v52  ;;  %1693 = vmatprep.subr.bf16.mxu0 %v1812_v53 }
  0x6f   : > { %1713 = vmatprep.subr.bf16.mxu1 %v1813_v54  ;;  %1707 = vmatprep.mubr.bf16.mxu0 %v1937_v20 }
  0x70   : > { %1727 = vmatprep.mubr.bf16.mxu1 %v1937_v20 }
  0x71   : > { %1694 = vmatpush3.bf16.msra.mxu0 %v1812_v53 }
  0x72   : > { %1714 = vmatpush3.bf16.msra.mxu1 %v1813_v54  ;;  %1695 = vmatprep.subr.bf16.mxu0 %v1814_v55 }
  0x73   : > { %1715 = vmatprep.subr.bf16.mxu1 %v1815_v56 }
  0x75   : > { %1696 = vmatpush3.bf16.msra.mxu0 %v1814_v55 }
  0x76   : > { %1716 = vmatpush3.bf16.msra.mxu1 %v1815_v56  ;;  %1697 = vmatprep.subr.bf16.mxu0 %v1816_v57 }
  0x77   : > { %1717 = vmatprep.subr.bf16.mxu1 %v1817_v58 }
  0x79   : > { %1698 = vmatpush3.bf16.msra.mxu0 %v1816_v57 }
  0x7a   : > { %1718 = vmatpush3.bf16.msra.mxu1 %v1817_v58  ;;  %1699 = vmatprep.subr.bf16.mxu0 %v1818_v59 }
  0x7b   : > { %1719 = vmatprep.subr.bf16.mxu1 %v1819_v60 }
  0x7d   : > { %1700 = vmatpush3.bf16.msra.mxu0 %v1818_v59 }
  0x7e   : > { %1720 = vmatpush3.bf16.msra.mxu1 %v1819_v60  ;;  %1701 = vmatprep.subr.bf16.mxu0 %v1820_v61 }
  0x7f   : > { %1721 = vmatprep.subr.bf16.mxu1 %v1821_v62 }
  0x81   : > { %1702 = vmatpush3.bf16.msra.mxu0 %v1820_v61 }
  0x82   : > { %1722 = vmatpush3.bf16.msra.mxu1 %v1821_v62  ;;  %1703 = vmatprep.subr.bf16.mxu0 %v1822_v63 }
  0x83   : > { %1723 = vmatprep.subr.bf16.mxu1 %v1823_v0 }
  0x85   : > { %1704 = vmatpush3.bf16.msra.mxu0 %v1822_v63 }
  0x86   : > { %1724 = vmatpush3.bf16.msra.mxu1 %v1823_v0  ;;  %1705 = vmatprep.subr.bf16.mxu0 %v1824_v1 }
  0x87   : > { %1725 = vmatprep.subr.bf16.mxu1 %v1825_v2 }
  0x89   : > { %1706 = vmatpush3.bf16.msra.mxu0 %v1824_v1 }
  0x8a   : > { %1726 = vmatpush3.bf16.msra.mxu1 %v1825_v2  ;;  %1731 = vmatprep.subr.bf16.mxu0 %v1827_v3 }
  0x8c   : > { %1708 = vmatmul.mubr.bf16.vlgmr.msra.gmra.mxu0 %v1826_v4 }
  0x8d   : > { %1728 = vmatmul.mubr.bf16.vlgmr.msra.gmra.mxu1 %v1826_v4  ;;  %1732 = vmatpush3.bf16.msra.mxu0 %v1827_v3 }
  0x8e   : > { %1733 = vmatprep.subr.bf16.mxu0 %v1828_v5  ;;  %1747 = vmatprep.mubr.bf16.mxu0 %v1937_v20 }
  0x91   : > { %1734 = vmatpush3.bf16.msra.mxu0 %v1828_v5 }
  0x92   : > { %1735 = vmatprep.subr.bf16.mxu0 %v1829_v6 }
  0x95   : > { %1736 = vmatpush3.bf16.msra.mxu0 %v1829_v6 }
  0x96   : > { %1737 = vmatprep.subr.bf16.mxu0 %v1830_v7 }
  0x99   : > { %1738 = vmatpush3.bf16.msra.mxu0 %v1830_v7 }
  0x9a   : > { %1739 = vmatprep.subr.bf16.mxu0 %v1831_v8 }
  0x9d   : > { %1740 = vmatpush3.bf16.msra.mxu0 %v1831_v8 }
  0x9e   : > { %1741 = vmatprep.subr.bf16.mxu0 %v1832_v9 }
  0xa1   : > { %1742 = vmatpush3.bf16.msra.mxu0 %v1832_v9 }
  0xa2   : > { %1743 = vmatprep.subr.bf16.mxu0 %v1833_v10 }
  0xa5   : > { %1744 = vmatpush3.bf16.msra.mxu0 %v1833_v10 }
  0xa6   : > { %1745 = vmatprep.subr.bf16.mxu0 %v1834_v11 }
  0xa9   : > { %1746 = vmatpush3.bf16.msra.mxu0 %v1834_v11 }
  0xac   : > { %1748 = vmatmul.mubr.bf16.vlgmr.msra.gmra.mxu0 %v1826_v4 }
  0xec   : > { %v1589_v12 = vpop.f32.mrf.mxu0 }
  0xed   : > { %v1609_v13 = vpop.f32.mrf.mxu1 }
  0xee   : > { %v423_v14 = vadd.f32 %v1609_v13, %v1589_v12  ;;  %v314_v15 = vpop.f32.mrf.mxu0 }
  0xef   : > { %v415_v16 = vpop.f32.mrf.mxu1 }
  0xf0   : > { %v416_v17 = vadd.f32 %v415_v16, %v314_v15  ;;  %v1590_v18 = vpop.f32.mrf.mxu0 }
  0xf1   : > { %v1610_v19 = vpop.f32.mrf.mxu1 }
  0xf2   : > { %v317_v20 = vpop.f32.mrf.mxu0 }
  0xf3   : > { %v418_v21 = vpop.f32.mrf.mxu1 }
 0x10c   : > { %v1629_v22 = vpop.f32.mrf.mxu0 }
 0x10d   : > { %v1649_v23 = vpop.f32.mrf.mxu1 }
 0x10e   : > { %v630_v24 = vadd.f32 %v1649_v23, %v1629_v22  ;;  %v527_v25 = vpop.f32.mrf.mxu0 }
 0x10f   : > { %v622_v26 = vpop.f32.mrf.mxu1 }
 0x110   : > { %v623_v27 = vadd.f32 %v622_v26, %v527_v25  ;;  %v1630_v28 = vpop.f32.mrf.mxu0 }
 0x111   : > { %v1650_v29 = vpop.f32.mrf.mxu1 }
 0x112   : > { %v530_v30 = vpop.f32.mrf.mxu0 }
 0x113   : > { %v625_v31 = vpop.f32.mrf.mxu1 }
 0x12c   : > { %v1669_v32 = vpop.f32.mrf.mxu0 }
 0x12d   : > { %v1689_v33 = vpop.f32.mrf.mxu1 }
 0x12e   : > { %v734_v34 = vpop.f32.mrf.mxu0  ;;  %v837_v56 = vadd.f32 %v1689_v33, %v1669_v32 }
 0x12f   : > { %v829_v35 = vpop.f32.mrf.mxu1 }
 0x130   : > { %v1670_v36 = vpop.f32.mrf.mxu0  ;;  %v830_v58 = vadd.f32 %v829_v35, %v734_v34 }
 0x131   : > { %v1690_v37 = vpop.f32.mrf.mxu1 }
 0x132   : > { %v737_v38 = vpop.f32.mrf.mxu0 }
 0x133   : > { %v832_v39 = vpop.f32.mrf.mxu1 }
 0x14c   : > { %v1709_v40 = vpop.f32.mrf.mxu0 }
 0x14d   : > { %v1729_v41 = vpop.f32.mrf.mxu1  ;;  %v961_v45 = vadd.f32 %v1709_v40, %v423_v14 }
 0x14e   : > { %v1075_v42 = vadd.f32 %v1729_v41, %v630_v24  ;;  %v947_v43 = vpop.f32.mrf.mxu0 }
 0x14f   : > { %v1061_v44 = vpop.f32.mrf.mxu1  ;;  %v960_v51 = vadd.f32 %v947_v43, %v416_v17 }
 0x150   : > { %v1193_v46 = vrot.slane %v1075_v42, 1  ;;  %v1074_v47 = vadd.f32 %v1061_v44, %v623_v27  ;;  %v1710_v48 = vpop.f32.mrf.mxu0 }
 0x151   : > { %v1730_v49 = vpop.f32.mrf.mxu1 }
 0x152   : > { %v1197_v50 = vadd.f32 %v1193_v46, %v961_v45  ;;  %v1192_v52 = vrot.slane %v1074_v47, 1  ;;  %v950_v53 = vpop.f32.mrf.mxu0 }
 0x153   : > { %v1064_v54 = vpop.f32.mrf.mxu1 }
 0x154   : > { %v1196_v55 = vadd.f32 %v1192_v52, %v960_v51 }
 0x16c   : > { %v1749_v57 = vpop.f32.mrf.mxu0 }
 0x16d   : > { %v1189_v59 = vadd.f32 %v1749_v57, %v837_v56 }
 0x16e   : > { %v1175_v60 = vpop.f32.mrf.mxu0 }
 0x16f   : > { %v1201_v61 = vrot.slane %v1189_v59, 2  ;;  %v1188_v62 = vadd.f32 %v1175_v60, %v830_v58 }
 0x170   : > { %v1750_v63 = vpop.f32.mrf.mxu0 }
 0x171   : > { %v1205_v0 = vadd.f32 %v1201_v61, %v1197_v50  ;;  %v1200_v1 = vrot.slane %v1188_v62, 2 }
 0x172   : > { %v1178_v2 = vpop.f32.mrf.mxu0 }
 0x173   : > { %1208 = vst.msk [vmem:[%s143_s8 + $0x2] sm:$0x3] %vm1206_vm0, %v1205_v0  ;;  %v1204_v3 = vadd.f32 %v1200_v1, %v1196_v55 }
 0x175   : > { %1207 = vst.msk [vmem:[%s143_s8] sm:$0x3] %vm1206_vm0, %v1204_v3 }
 0x176 PF: > { %s12_s9 = sadd.s32 1, %s1841_s9  }
 0x177   : > { %p9_p4 = scmp.ge.s32.totalorder %s12_s9, 4  }
 0x179   :  { %11 = sbr.rel (!%p9_p4) target bundleno = 1 (0x1), region = 66 }

// kernel: heatmap_forward.41
= control target key start
LH: loop header
LB: loop body
LE: loop exit
PB: predicated region body
PF: predicated region fallthrough
CT: control target
= control target key end

     0   :  { %13 = vsyncpa [#allocation3], 0  ;;  %s1086_s0 = inlined_call_operand.vmem [shape: f32[2,4,128], index: 0, kind: input, shape index: {}]   ;;  %s1087_s1 = inlined_call_operand.vmem [shape: f32[1,1,128], index: 1, kind: input, shape index: {}]   ;;  %s1088_s2 = inlined_call_operand.vmem [shape: f32[1,1,128], index: 2, kind: input, shape index: {}]   ;;  %s1089_s3 = inlined_call_operand.vmem [shape: f32[128,128], index: 3, kind: input, shape index: {}]   ;;  %s1090_s4 = inlined_call_operand.vmem [shape: f32[1,128], index: 4, kind: input, shape index: {}]   ;;  %s1091_s5 = inlined_call_operand.hbm [shape: f32[2,4,128], index: 5, kind: output, shape index: {0}]   ;;  %s1092_s6 = inlined_call_operand.hbm [shape: f32[2,1,128], index: 6, kind: output, shape index: {1}]   ;;  %s1093_s7 = inlined_call_operand.hbm [shape: f32[2,1,128], index: 7, kind: output, shape index: {2}]  }
   0x1   :  { %15 = vsyncpa [#allocation3 + $0x1], 0 }
   0x2   :  { %16 = vsyncpa [#allocation5], 0 }
   0x3   :  { %18 = vsyncpa [#allocation5 + $0x1], 0  ;;  %s861_s24 = smov 0   ;;  %s863_s25 = smov 0  }
   0x4   :  { %s865_s26 = smov 0   ;;  %s867_s27 = smov 0  }
   0x5 LB: > { %s882_s28 = sadd.s32 4294967295, %s814_s27   ;;  %s1094_s29 = sadd.s32 4294967294, %s814_s27   ;;  %s814_s27 = sphi %s867_s27, %s1101_s27   ;;  %s810_s26 = sphi %s865_s26, %s1100_s26   ;;  %s806_s25 = sphi %s863_s25, %s1099_s25   ;;  %s802_s24 = sphi %s861_s24, %s1098_s24  }
   0x6   : > { %s886_s30 = sadd.s32 1, %s814_s27   ;;  %s141_s8 = sadd.s32 1, %s810_s26 }
   0x7   : > { %s138_s9 = ssub.s32 %s814_s27, %s886_s30  ;;  %p151_p0 = scmp.ne.s32.totalorder %s810_s26, %s806_s25 }
   0x8   : > { %p139_p1 = scmp.eq.s32.totalorder %s138_s9, 0  ;;  %p152_p2 = scmp.eq.s32.totalorder %s882_s28, 1 }
   0x9   : > { %p157_p3 = scmp.ne.s32.totalorder %s806_s25, %s802_s24  ;;  %p158_p4 = scmp.eq.s32.totalorder %s1094_s29, 1 }
   0xa   : > { %s899_s10 = scalar_select %p139_p1, %s810_s26, %s141_s8  }
   0xb   : > { %p901_p5 = por %p152_p2, %p151_p0  ;;  %p905_p6 = por %p158_p4, %p157_p3 }
   0xc   : > { %p580_p7 = scmp.ge.s32.totalorder %s814_s27, 1  ;;  %p247_p8 = scmp.lt.s32.totalorder %s814_s27, 3 }
   0xe   : > { %p248_p9 = pnand %p580_p7, %p247_p8 }
   0xf   : > { %p286_p10 = scmp.lt.s32.totalorder (!%p248_p9), %s882_s28, 1  ;;  %s988_s15 = sand.u32 (!%p248_p9), 1, %s806_s25  }
  0x10   : > { %251 = sbr.rel (%p248_p9) target bundleno = 310 (0x136), region = 40  ;;  %s581_s16 = sshll.u32 (!%p248_p9), %s988_s15, 2 }
  0x11   : > { %s586_s18 = sshll.u32 (!%p248_p9), %s882_s28, 6  ;;  %s418_s23 = scalar_lea.sflag (!%p248_p9), [#allocation3], %s988_s15 }
  0x12   : > { %s437_s22 = scalar_lea.hbm (!%p248_p9), %s1091_s5, %s586_s18 }
  0x15   : > { %v333_v0 = vld [vmem:[%s1089_s3 + $0x78] sm:$0xff]  ;;  %v816_v1 = vmov 0.0   ;;  %v332_v2 = vld [vmem:[%s1089_s3 + $0x70] sm:$0xff]  ;;  %vm817_vm0 = vmmov 0   ;;  %s287_s17 = scalar_select %p286_p10, %s882_s28, 1  ;;  %v331_v3 = vld [vmem:[%s1089_s3 + $0x68] sm:$0xff] }
  0x16   : > { %608 = vmatprep.subr.mxu0 %v816_v1  ;;  %640 = vmatprep.mubr.msk.f32.mxu0 %vm817_vm0, %v816_v1  ;;  %v330_v4 = vld [vmem:[%s1089_s3 + $0x60] sm:$0xff]  ;;  %v329_v8 = vld [vmem:[%s1089_s3 + $0x58] sm:$0xff]  ;;  %vm308_vm1 = vcmask 1043456   ;;  %v328_v10 = vld [vmem:[%s1089_s3 + $0x50] sm:$0xff] }
  0x17   : > { %609 = vmatpush3.msra.mxu0 %v333_v0  ;;  %s582_s20 = sshll.u32 %s287_s17, 2  ;;  %v583_v5 = vld [vmem:[%s1087_s1] ss:$0 sm:$0xff]  ;;  %v327_v12 = vld [vmem:[%s1089_s3 + $0x48] sm:$0xff]  ;;  %v325_v17 = vld [vmem:[%s1089_s3 + $0x38] sm:$0xff]  ;;  %s273_s17 = scalar_lea.vmem [#allocation2], %s581_s16 }
  0x18   : > { %610 = vmatprep.subr.mxu0 %v816_v1  ;;  %s289_s9 = scalar_lea.vmem %s1086_s0, %s582_s20  ;;  %v584_v7 = vld [vmem:[%s1088_s2] ss:$0 sm:$0xff]  ;;  %v324_v19 = vld [vmem:[%s1089_s3 + $0x30] sm:$0xff]  ;;  %v323_v21 = vld [vmem:[%s1089_s3 + $0x28] sm:$0xff]  ;;  %s439_s19 = sshll.u32 %s273_s17, 4  ;;  %s440_s19 = int_to_ptr.vmem [resolvable:$true] %s439_s19 }
  0x19   : > { %611 = vmatpush3.msra.mxu0 %v332_v2  ;;  %v290_v6 = vld [vmem:[%s289_s9] sm:$0xf]  ;;  %v321_v24 = vld [vmem:[%s1089_s3 + $0x18] sm:$0xff]  ;;  %v320_v25 = vld [vmem:[%s1089_s3 + $0x10] sm:$0xff]  ;;  %s698_s8 = scalar_lea.vmem %s440_s19, 64  ;;  %s818_s9 = smov [#allocation2]  }
  0x1a   : > { %612 = vmatprep.subr.mxu0 %v816_v1  ;;  %v298_v9 = vmul.f32 %v583_v5, %v290_v6  ;;  %v326_v15 = vld [vmem:[%s1089_s3 + $0x40] sm:$0xff]  ;;  %v319_v27 = vld [vmem:[%s1089_s3 + $0x8] sm:$0xff]  ;;  %p699_p11 = scmp.ne.s32.totalorder %s440_s19, %s698_s8  ;;  %s702_s13 = sshll.u32 %s818_s9, 4  ;;  %s703_s13 = int_to_ptr.vmem [resolvable:$false] %s702_s13 }
  0x1b   : > { %613 = vmatpush3.msra.mxu0 %v331_v3  ;;  %v322_v22 = vld [vmem:[%s1089_s3 + $0x20] sm:$0xff]  ;;  %s704_s14 = scalar_lea.vmem %s703_s13, 128  ;;  %p705_p0 = scmp.lt.s32.totalorder %s440_s19, %s703_s13 }
  0x1c   : > { %614 = vmatprep.subr.mxu0 %v816_v1  ;;  %v306_v11 = vadd.f32 %v584_v7, %v298_v9  ;;  %v318_v28 = vld [vmem:[%s1089_s3] sm:$0xff]  ;;  %p700_p12 = pnand %p699_p11, %p901_p5  ;;  %p706_p1 = scmp.lt.s32.totalorder %s704_s14, %s698_s8 }
  0x1d   : > { %615 = vmatpush3.msra.mxu0 %v330_v4 }
  0x1e   : > { %616 = vmatprep.subr.mxu0 %v816_v1  ;;  %v309_v13 = vsel %vm308_vm1, %v306_v11, 0.0  ;;  %307 = vst [vmem:[%s273_s17] sm:$0xf] %v306_v11  ;;  %p701_p13 = pneg %p700_p12  ;;  %p707_p2 = por %p706_p1, %p705_p0 }
  0x1f   : > { %617 = vmatpush3.msra.mxu0 %v329_v8  ;;  %v310_v14 = vrot.slane %v309_v13, 4 }
  0x20   : > { %618 = vmatprep.subr.mxu0 %v816_v1  ;;  %p708_p3 = pnand %p707_p2, %p701_p13 }
  0x21   : > { %619 = vmatpush3.msra.mxu0 %v328_v10  ;;  %v311_v16 = vadd.f32 %v310_v14, %v309_v13 }
  0x22   : > { %620 = vmatprep.subr.mxu0 %v816_v1 }
  0x23   : > { %621 = vmatpush3.msra.mxu0 %v327_v12  ;;  %v312_v18 = vrot.slane %v311_v16, 2 }
  0x24   : > { %622 = vmatprep.subr.mxu0 %v816_v1 }
  0x25   : > { %623 = vmatpush3.msra.mxu0 %v326_v15  ;;  %v313_v20 = vadd.f32 %v312_v18, %v311_v16 }
  0x26   : > { %624 = vmatprep.subr.mxu0 %v816_v1 }
  0x27   : > { %625 = vmatpush3.msra.mxu0 %v325_v17  ;;  %v314_v23 = vrot.slane %v313_v20, 1 }
  0x28   : > { %626 = vmatprep.subr.mxu0 %v816_v1 }
  0x29   : > { %627 = vmatpush3.msra.mxu0 %v324_v19  ;;  %v315_v26 = vadd.f32 %v314_v23, %v313_v20 }
  0x2a   : > { %628 = vmatprep.subr.mxu0 %v816_v1 }
  0x2b   : > { %629 = vmatpush3.msra.mxu0 %v323_v21  ;;  %v317_v29 = vmul.f32 0.25, %v315_v26 }
  0x2c   : > { %630 = vmatprep.subr.mxu0 %v816_v1 }
  0x2d   : > { %631 = vmatpush3.msra.mxu0 %v322_v22 }
  0x2e   : > { %632 = vmatprep.subr.mxu0 %v816_v1 }
  0x2f   : > { %633 = vmatpush3.msra.mxu0 %v321_v24 }
  0x30   : > { %634 = vmatprep.subr.mxu0 %v816_v1 }
  0x31   : > { %635 = vmatpush3.msra.mxu0 %v320_v25 }
  0x32   : > { %636 = vmatprep.subr.mxu0 %v816_v1 }
  0x33   : > { %637 = vmatpush3.msra.mxu0 %v319_v27 }
  0x34   : > { %638 = vmatprep.subr.mxu0 %v816_v1 }
  0x35   : > { %639 = vmatpush3.msra.mxu0 %v318_v28 }
  0x36   : > { %641 = vmatmul.mubr.f32.vlgmr.msra.gmra.mxu0 %v317_v29 }
  0x37   : > { %711 = shalt.err (!%p708_p3)
}
  0x38   : > { %s712_s16 = scalar_lea.hbm %s437_s22, 64  ;;  %s716_s20 = scalar_lea.hbm %s1091_s5, 128 }
  0x39   : > { %p713_p4 = scmp.ne.s32.totalorder %s437_s22, %s712_s16  ;;  %p717_p9 = scmp.lt.s32.totalorder %s437_s22, %s1091_s5 }
  0x3a   : > { %p718_p10 = scmp.lt.s32.totalorder %s716_s20, %s712_s16 }
  0x3b   : > { %p714_p7 = pnand %p713_p4, %p901_p5 }
  0x3c   : > { %p719_p11 = por %p718_p10, %p717_p9 }
  0x3d   : > { %p715_p8 = pneg %p714_p7 }
  0x3f   : > { %p720_p12 = pnand %p719_p11, %p715_p8 }
  0x41   : > { %723 = shalt.err (!%p720_p12)
}
  0x42   : > { %643 = dma.vmem_to_hbm [thread:$0]  (%p901_p5), %s440_s19, 64, %s437_s22, %s418_s23   ;;  %v334_v30 = vld [vmem:[%s1090_s4] sm:$0x1] }
  0x43   : > { %s422_s8 = sand.u32 1, %s882_s28   ;;  %s587_s14 = sshll.u32 %s882_s28, 4 }
  0x44   : > { %s279_s29 = scalar_lea.vmem [#allocation4], %s988_s15  ;;  %s1019_s20 = scalar_lea.hbm %s1092_s6, %s587_s14 }
  0x45   : > { %s452_s17 = sshll.u32 %s279_s29, 4  ;;  %s1023_s19 = scalar_lea.sflag [#allocation5], %s422_s8  ;;  %s1021_s17 = int_to_ptr.vmem [resolvable:$true] %s452_s17 }
  0x46   : > { %s724_s22 = scalar_lea.vmem %s1021_s17, 16  ;;  %s819_s23 = smov [#allocation4]  }
  0x47   : > { %p725_p13 = scmp.ne.s32.totalorder %s1021_s17, %s724_s22  ;;  %s728_s21 = sshll.u32 %s819_s23, 4  ;;  %s729_s21 = int_to_ptr.vmem [resolvable:$false] %s728_s21 }
  0x48   : > { %s730_s9 = scalar_lea.vmem %s729_s21, 32  ;;  %p731_p2 = scmp.lt.s32.totalorder %s1021_s17, %s729_s21 }
  0x49   : > { %p726_p0 = pnand %p725_p13, %p901_p5  ;;  %p732_p3 = scmp.lt.s32.totalorder %s730_s9, %s724_s22 }
  0x4b   : > { %p727_p1 = pneg %p726_p0  ;;  %p733_p4 = por %p732_p3, %p731_p2 }
  0x4d   : > { %p734_p7 = pnand %p733_p4, %p727_p1 }
  0xf6   : > { %v401_v31 = vpop.f32.mrf.mxu0 }
  0xf7   : > { %v402_v32 = vadd.f32 %v401_v31, %v334_v30 }
  0xf8   : > { %v642_v33 = vpop.f32.mrf.mxu0 }
  0xf9   : > { %vm406_vm2 = vcmp.ge.f32.partialorder %v402_v32, 0.0  ;;  %v407_v34 = vsub.f32 0.0, %v402_v32  ;;  %405 = vst [vmem:[%s279_s29] sm:$0x1] %v402_v32 }
  0xfa   : > { %737 = shalt.err (!%p734_p7)
}
  0xfb   : > { %s738_s8 = scalar_lea.hbm %s1019_s20, 16  ;;  %s742_s16 = scalar_lea.hbm %s1092_s6, 32 }
  0xfc   : > { %p739_p8 = scmp.ne.s32.totalorder %s1019_s20, %s738_s8  ;;  %p743_p11 = scmp.lt.s32.totalorder %s1019_s20, %s1092_s6 }
  0xfd   : > { %p744_p12 = scmp.lt.s32.totalorder %s742_s16, %s738_s8 }
  0xfe   : > { %p740_p9 = pnand %p739_p8, %p901_p5 }
  0xff   : > { %p745_p13 = por %p744_p12, %p743_p11 }
 0x100   : > { %p741_p10 = pneg %p740_p9 }
 0x102   : > { %p746_p0 = pnand %p745_p13, %p741_p10 }
 0x104   : > { %749 = shalt.err (!%p746_p0)
}
 0x105   : > { %644 = dma.vmem_to_hbm [thread:$0]  (%p901_p5), %s1021_s17, 16, %s1019_s20, %s1023_s19   ;;  %v408_v35 = vsel %vm406_vm2, %v407_v34, %v402_v32 }
 0x106   : > { %v409_v36 = vmul.f32 1.442695, %v408_v35  ;;  %s285_s22 = scalar_lea.vmem [#allocation6], %s988_s15  ;;  %s463_s13 = scalar_lea.hbm %s1093_s7, %s587_s14 }
 0x107   : > { %s465_s21 = sshll.u32 %s285_s22, 4  ;;  %s820_s20 = smov [#allocation6]   ;;  %s466_s21 = int_to_ptr.vmem [resolvable:$true] %s465_s21 }
 0x108   : > { %694 = vpow2.f32 %v409_v36  ;;  %s750_s17 = scalar_lea.vmem %s466_s21, 16  ;;  %s754_s29 = sshll.u32 %s820_s20, 4  ;;  %s755_s29 = int_to_ptr.vmem [resolvable:$false] %s754_s29 }
 0x109   : > { %p751_p1 = scmp.ne.s32.totalorder %s466_s21, %s750_s17  ;;  %s756_s15 = scalar_lea.vmem %s755_s29, 32 }
 0x10a   : > { %p757_p4 = scmp.lt.s32.totalorder %s466_s21, %s755_s29  ;;  %p758_p7 = scmp.lt.s32.totalorder %s756_s15, %s750_s17 }
 0x10b   : > { %p752_p2 = pnand %p751_p1, %p901_p5 }
 0x10c   : > { %p759_p8 = por %p758_p7, %p757_p4 }
 0x10d   : > { %p753_p3 = pneg %p752_p2 }
 0x10f   : > { %p760_p9 = pnand %p759_p8, %p753_p3 }
 0x115   : > { %v695_v37 = vpop.eup %694 }
 0x116   : > { %v411_v38 = vadd.f32 1.0, %v695_v37 }
 0x118   : > { %696 = vrcp.f32 %v411_v38 }
 0x125   : > { %v697_v39 = vpop.eup %696 }
 0x126   : > { %v414_v40 = vmul.f32 %v697_v39, %v695_v37 }
 0x128   : > { %v415_v41 = vsel %vm406_vm2, %v697_v39, %v414_v40 }
 0x129   : > { %416 = vst [vmem:[%s285_s22] sm:$0x1] %v415_v41 }
 0x12a   : > { %763 = shalt.err (!%p760_p9)
}
 0x12b   : > { %s764_s28 = scalar_lea.hbm %s463_s13, 16  ;;  %s768_s18 = scalar_lea.hbm %s1093_s7, 32 }
 0x12c   : > { %p765_p10 = scmp.ne.s32.totalorder %s463_s13, %s764_s28  ;;  %p769_p13 = scmp.lt.s32.totalorder %s463_s13, %s1093_s7 }
 0x12d   : > { %p770_p0 = scmp.lt.s32.totalorder %s768_s18, %s764_s28 }
 0x12e   : > { %p766_p11 = pnand %p765_p10, %p901_p5 }
 0x12f   : > { %p771_p1 = por %p770_p0, %p769_p13 }
 0x130   : > { %p767_p12 = pneg %p766_p11 }
 0x132   : > { %p772_p2 = pnand %p771_p1, %p767_p12 }
 0x134   : > { %775 = shalt.err (!%p772_p2)
}
 0x135   : > { %645 = dma.vmem_to_hbm [thread:$0]  (%p901_p5), %s466_s21, 16, %s463_s13, %s1023_s19  }
 0x136 PF: > { %p659_p3 = scmp.ge.s32.totalorder %s814_s27, 2  ;;  %s477_s9 = sand.u32 1, %s802_s24  }
 0x137   : > { %s478_s8 = scalar_lea.sflag [#allocation3], %s477_s9 }
 0x138   : > { %p650_p4 = pnand %p659_p3, %p905_p6 }
 0x13a   : > { %p651_p7 = pneg %p650_p4 }
 0x13c   : > { %793 = dma.done.wait (%p651_p7), %s478_s8, 64  }
 0x13d   : > { %795 = vsyncadd (%p651_p7), %s478_s8, 4294967232  ;;  %s1097_s17 = sadd.s32 4294967294, %s814_s27  }
 0x13e   : > { %s486_s20 = sand.u32 1, %s1097_s17  }
 0x13f   : > { %s487_s29 = scalar_lea.sflag [#allocation5], %s486_s20 }
 0x140   : > { %797 = dma.done.wait (%p651_p7), %s487_s29, 32  }
 0x141   : > { %799 = vsyncadd (%p651_p7), %s487_s29, 4294967264  ;;  %p21_p5 = scmp.ge.s32.totalorder %s886_s30, 4   ;;  %s1098_s24 = smov %s806_s25 }
 0x142   : > { %s1099_s25 = smov %s810_s26  ;;  %s1100_s26 = smov %s899_s10 }
 0x143   : > { %s1101_s27 = smov %s886_s30  ;;  %23 = sbr.rel (!%p21_p5) target bundleno = 5 (0x5), region = 107 }
 0x148   :  { %499 = vsyncpa [#allocation3], 1 }
 0x149   :  { %501 = vsyncpa [#allocation3 + $0x1], 1 }
 0x14a   :  { %502 = vsyncpa [#allocation5], 1 }
 0x14b   :  { %504 = vsyncpa [#allocation5 + $0x1], 1 }

</bundles_post_ra>
